<compile_context>
chip_gen: v6e
topology: v6e:2x2x1
jax: 0.10.0
libtpu: 0.0.40
codegen_flags: <defaults>
</compile_context>

<pallas_src>
import jax
import jax.numpy as jnp
from jax import lax
from jax.experimental import pallas as pl
from jax.experimental.pallas import tpu as pltpu


def _round_up(x, m):
    return ((x + m - 1) // m) * m


def _pick_batch_tile(b, limit=128):
    """Largest batch tile <= limit keeping blocks sublane-aligned (mult of 8 or == B)."""
    if b <= limit:
        return b
    for tb in range(limit, 7, -1):
        if b % tb == 0 and tb % 8 == 0:
            return tb
    return b


# -----------------------------------------------------------------------------
# Recurrent kernel: one grid point = one batch tile; full caption length T runs
# as an in-kernel fori_loop with the hidden state carried in vregs.
# -----------------------------------------------------------------------------
def decoder_seq_kernel(feat_ref, gi_emb_ref, h0_ref,
                       w_ic_ref, w_hh_ref, b_hh_ref, hout_ref):
    seq_len = gi_emb_ref.shape[0]
    hdim = h0_ref.shape[1]
    mm_dt = w_ic_ref.dtype                               # matmul operand dtype

    # Hoisted out of the time loop: single load (+ single f32 cast) of the feature
    # tile and the loop-invariant GRU weights.
    feats = feat_ref[...].astype(jnp.float32)            # (TB, L, E)
    w_ic = w_ic_ref[...]                                 # (E, 3H)  matmul dtype
    w_hh = w_hh_ref[...]                                 # (H, 3H)  matmul dtype
    b_hh = b_hh_ref[...].astype(jnp.float32)             # (1, 3H)

    def step(t, hidden):                                 # hidden: (TB, H) f32 in vregs
        # --- attention (dot-product stand-in) as VPU multiply + reduce ----------
        # TODO(synk): user-provided attention module replaced by dot-product scores.
        scores = jnp.sum(feats * hidden[:, None, :], axis=-1)             # (TB, L)
        scores = scores - jnp.max(scores, axis=-1, keepdims=True)
        expw = jnp.exp(scores)
        alpha = expw / jnp.sum(expw, axis=-1, keepdims=True)              # exact softmax
        context = jnp.sum(alpha[:, :, None] * feats, axis=1)              # (TB, E)

        # --- GRU cell (PyTorch r, z, n gate order) -------------------------------
        # gi_emb[t] already holds  embed_t @ W_ih[:E] + b_ih  (hoisted for all T).
        gi_t = gi_emb_ref[pl.ds(t, 1), :, :][0]                           # (TB, 3H)
        gi = gi_t + jnp.dot(context.astype(mm_dt), w_ic,
                            preferred_element_type=jnp.float32)           # (TB, 3H)
        gh = jnp.dot(hidden.astype(mm_dt), w_hh,
                     preferred_element_type=jnp.float32) + b_hh           # (TB, 3H)
        r = jax.nn.sigmoid(gi[:, 0:hdim] + gh[:, 0:hdim])
        z = jax.nn.sigmoid(gi[:, hdim:2 * hdim] + gh[:, hdim:2 * hdim])
        n = jnp.tanh(gi[:, 2 * hdim:3 * hdim] + r * gh[:, 2 * hdim:3 * hdim])
        h_new = (1.0 - z) * n + z * hidden                                # (TB, H)

        # Leading-dim store into the VMEM-resident (T, TB, H) output tile.
        hout_ref[pl.ds(t, 1), :, :] = h_new[None].astype(hout_ref.dtype)
        return h_new

    lax.fori_loop(0, seq_len, step, h0_ref[...].astype(jnp.float32),
                  unroll=seq_len <= 16)


# -----------------------------------------------------------------------------
# fc_out as a separate tiled matmul over all B*T rows (hoisted out of the loop).
# -----------------------------------------------------------------------------
def fc_out_kernel(h_ref, w_ref, b_ref, o_ref):
    o_ref[...] = (jnp.dot(h_ref[...], w_ref[...],
                          preferred_element_type=jnp.float32)
                  + b_ref[...]).astype(o_ref.dtype)


def fc_out_matmul(h, w, b, *, matmul_dtype=jnp.float32, tm=256, tn=256):
    m, hdim = h.shape
    v = w.shape[1]
    # fc_out is W_out-bandwidth bound at realistic vocab sizes: large tm halves the
    # (M/tm)*H*V W_out HBM stream; tn up to 256 matches the 256-wide v6e/v7x MXU and
    # keeps stores lane-dense.  Pad ragged M/V instead of asserting divisibility.
    tm = min(tm, _round_up(m, 8))
    tn = min(tn, _round_up(v, 128))
    mp, vp = _round_up(m, tm), _round_up(v, tn)
    hp = jnp.pad(h.astype(matmul_dtype), ((0, mp - m), (0, 0)))
    wp = jnp.pad(w.astype(matmul_dtype), ((0, 0), (0, vp - v)))
    bp = jnp.pad(b.astype(jnp.float32), ((0, 0), (0, vp - v)))
    out = pl.pallas_call(
        fc_out_kernel,
        out_shape=jax.ShapeDtypeStruct((mp, vp), jnp.float32),
        grid_spec=pltpu.PrefetchScalarGridSpec(
            num_scalar_prefetch=0,
            grid=(mp // tm, vp // tn),
            in_specs=[pl.BlockSpec((tm, hdim), lambda i, j: (i, 0)),
                      pl.BlockSpec((hdim, tn), lambda i, j: (0, j)),
                      pl.BlockSpec((1, tn), lambda i, j: (0, j))],
            out_specs=pl.BlockSpec((tm, tn), lambda i, j: (i, j))),
        compiler_params=pltpu.CompilerParams(
            dimension_semantics=("parallel", "parallel")),
    )(hp, wp, bp)
    if mp != m or vp != v:
        out = out[:m, :v]
    return out


# -----------------------------------------------------------------------------
# Wrapper
# -----------------------------------------------------------------------------
def decoder_forward(features, captions, params, *, batch_tile=None,
                    matmul_dtype=jnp.float32):
    B, L, E = features.shape
    T = captions.shape[1]
    H = params["w_hh"].shape[0]
    V = params["w_out"].shape[1]
    # The i==0 branch of the original module feeds `output` (B,H) where an embedding
    # (B,E) is expected -> the module only makes sense when E == H.
    assert E == H, "DecoderRNN requires embed_size == hidden_size (i==0 path)."

    f32 = jnp.float32
    mm_dt = matmul_dtype
    features_f = features.astype(f32)

    # ---- one-time init (hoisted out of the recurrent kernel) --------------------
    avg = jnp.mean(features_f, axis=1)                                    # (B, E)
    h0 = jnp.tanh(avg @ params["w_init_h"] + params["b_init_h"])          # (B, H)
    o0 = jnp.tanh(avg @ params["w_init_o"] + params["b_init_o"])          # (B, H)

    # ---- teacher-forced embed sequence + its input projection, hoisted ----------
    emb = jnp.take(params["embedding"], captions, axis=0)                 # (B, T, E)
    emb_t = jnp.transpose(emb, (1, 0, 2))                                 # (T, B, E)
    # step 0 uses `output` (= o0); step i>0 uses embeddings[:, i-1, :]
    embed_seq = jnp.concatenate([o0[None], emb_t[:T - 1]], axis=0)        # (T, B, E)
    gi_emb = (jnp.einsum("tbe,ef->tbf",
                         embed_seq.astype(mm_dt),
                         params["w_ih"][:E].astype(mm_dt),
                         preferred_element_type=f32)
              + params["b_ih"]).astype(f32)                               # (T, B, 3H)

    # ---- recurrent pallas_call: grid over batch tiles only ----------------------
    TB = batch_tile if batch_tile is not None else _pick_batch_tile(B)
    assert B % TB == 0 and (TB % 8 == 0 or TB == B)
    nb = B // TB

    h_seq = pl.pallas_call(
        decoder_seq_kernel,
        out_shape=jax.ShapeDtypeStruct((T, B, H), f32),
        grid_spec=pltpu.PrefetchScalarGridSpec(
            num_scalar_prefetch=0,
            grid=(nb,),
            in_specs=[
                pl.BlockSpec((TB, L, E), lambda b: (b, 0, 0)),            # features
                pl.BlockSpec((T, TB, 3 * H), lambda b: (0, b, 0)),        # gi_emb
                pl.BlockSpec((TB, H), lambda b: (b, 0)),                  # h0
                pl.BlockSpec((E, 3 * H), lambda b: (0, 0)),               # W_ih[E:]
                pl.BlockSpec((H, 3 * H), lambda b: (0, 0)),               # W_hh
                pl.BlockSpec((1, 3 * H), lambda b: (0, 0)),               # b_hh
            ],
            out_specs=pl.BlockSpec((T, TB, H), lambda b: (0, b, 0))),
        compiler_params=pltpu.CompilerParams(
            dimension_semantics=("parallel",)),
    )(features_f.astype(mm_dt), gi_emb, h0.astype(f32),
      params["w_ih"][E:].astype(mm_dt), params["w_hh"].astype(mm_dt),
      params["b_hh"].astype(f32))

    # Layout fix-up on the H-sized hiddens (T*B*H), NOT on the V-sized logits.
    h_btH = jnp.transpose(h_seq, (1, 0, 2)).reshape(B * T, H)             # (B*T, H)
    logits = fc_out_matmul(h_btH, params["w_out"], params["b_out"],
                           matmul_dtype=mm_dt)                            # (B*T, V)
    return logits.reshape(B, T, V)


# -----------------------------------------------------------------------------
# Pure-JAX reference mirroring the PyTorch forward.
# -----------------------------------------------------------------------------
def decoder_reference(features, captions, params):
    H = params["w_hh"].shape[0]
    emb = jnp.take(params["embedding"], captions, axis=0)
    T = captions.shape[1]
    avg = jnp.mean(features, axis=1)
    hidden = jnp.tanh(avg @ params["w_init_h"] + params["b_init_h"])
    output = jnp.tanh(avg @ params["w_init_o"] + params["b_init_o"])
    preds = []
    for i in range(T):
        scores = jnp.einsum("ble,be->bl", features, hidden)
        alpha = jax.nn.softmax(scores, axis=-1)
        context = jnp.einsum("bl,ble->be", alpha, features)
        embed = emb[:, i - 1, :] if i > 0 else output
        x = jnp.concatenate([embed, context], axis=1)
        gi = x @ params["w_ih"] + params["b_ih"]
        gh = hidden @ params["w_hh"] + params["b_hh"]
        r = jax.nn.sigmoid(gi[:, :H] + gh[:, :H])
        z = jax.nn.sigmoid(gi[:, H:2 * H] + gh[:, H:2 * H])
        n = jnp.tanh(gi[:, 2 * H:] + r * gh[:, 2 * H:])
        hidden = (1.0 - z) * n + z * hidden
        output = hidden
        preds.append(output @ params["w_out"] + params["b_out"])
    return jnp.stack(preds, axis=1)


def make_params(key, embed_size, hidden_size, vocab_size):
    ks = jax.random.split(key, 11)
    s = 0.1

    def rn(k, shape):
        return s * jax.random.normal(k, shape, jnp.float32)

    return {
        "embedding": rn(ks[0], (vocab_size, embed_size)),
        "w_init_h": rn(ks[1], (embed_size, hidden_size)),
        "b_init_h": rn(ks[2], (1, hidden_size)),
        "w_init_o": rn(ks[3], (embed_size, hidden_size)),
        "b_init_o": rn(ks[4], (1, hidden_size)),
        "w_ih": rn(ks[5], (2 * embed_size, 3 * hidden_size)),
        "b_ih": rn(ks[6], (1, 3 * hidden_size)),
        "w_hh": rn(ks[7], (hidden_size, 3 * hidden_size)),
        "b_hh": rn(ks[8], (1, 3 * hidden_size)),
        "w_out": rn(ks[9], (hidden_size, vocab_size)),
        "b_out": rn(ks[10], (1, vocab_size)),
    }


if __name__ == "__main__":
    # Small but lane/sublane-aligned shapes: B multiple of 8, E=H multiple of 128,
    # V multiple of 128 so gate slices and output stores are lane-dense.
    B, L, T = 8, 8, 8            # batch, image regions, caption length
    E = H = 128                  # embed_size == hidden_size (required by i==0 path)
    V = 256                      # vocab_size

    key = jax.random.PRNGKey(0)
    k_feat, k_cap, k_par = jax.random.split(key, 3)
    features = jax.random.normal(k_feat, (B, L, E), jnp.float32)
    captions = jax.random.randint(k_cap, (B, T), 0, V, jnp.int32)
    params = make_params(k_par, E, H, V)

    ref = jax.block_until_ready(decoder_reference(features, captions, params))

    # f32 matmul path: tight parity with the f32 reference (softmax uses exact divide).
    out = jax.block_until_ready(decoder_forward(features, captions, params))
    assert out.shape == (B, T, V), out.shape
    assert jnp.allclose(out, ref, rtol=5e-3, atol=5e-3), \
        float(jnp.max(jnp.abs(out - ref)))

    # bf16 matmul-operand path (production MXU setting).  The GRU recurrence amplifies
    # bf16 rounding over T steps, so only step 0 is compared; later steps are
    # sanity-checked for finiteness.
    out_bf16 = jax.block_until_ready(
        decoder_forward(features, captions, params, matmul_dtype=jnp.bfloat16))
    assert out_bf16.shape == (B, T, V)
    assert bool(jnp.isfinite(out_bf16).all())
    assert float(jnp.mean(jnp.abs(out_bf16[:, 0, :] - ref[:, 0, :]))) < 5e-2

    print("KERNEL_OK")
</pallas_src>

<mosaic_0001>
module attributes {stable_mosaic.version = 11 : i64} {
  func.func @decoder_seq_kernel(%arg0: i32, %arg1: memref<8x8x128xf32, #tpu.memory_space<vmem>>, %arg2: memref<8x8x384xf32, #tpu.memory_space<vmem>>, %arg3: memref<8x128xf32, #tpu.memory_space<vmem>>, %arg4: memref<128x384xf32, #tpu.memory_space<vmem>>, %arg5: memref<128x384xf32, #tpu.memory_space<vmem>>, %arg6: memref<1x384xf32, #tpu.memory_space<vmem>>, %arg7: memref<8x8x128xf32, #tpu.memory_space<vmem>>) attributes {dimension_semantics = [#tpu.dimension_semantics<parallel>], iteration_bounds = array<i64: 1>, scalar_prefetch = 0 : i64, scratch_operands = 0 : i64, tpu.core_type = #tpu.core_type<tc>, window_params = [{transform_indices = @transform_0, window_bounds = array<i64: 8, 8, 128>}, {transform_indices = @transform_1, window_bounds = array<i64: 8, 8, 384>}, {transform_indices = @transform_2, window_bounds = array<i64: 8, 128>}, {pipeline_mode = #tpu.pipeline_mode<synchronous>, transform_indices = @transform_3, window_bounds = array<i64: 128, 384>}, {pipeline_mode = #tpu.pipeline_mode<synchronous>, transform_indices = @transform_4, window_bounds = array<i64: 128, 384>}, {pipeline_mode = #tpu.pipeline_mode<synchronous>, transform_indices = @transform_5, window_bounds = array<i64: 1, 384>}, {transform_indices = @transform_6, window_bounds = array<i64: 8, 8, 128>}]} {
    %c0 = arith.constant 0 : index
    %c0_0 = arith.constant 0 : index
    %c0_1 = arith.constant 0 : index
    %0 = vector.load %arg1[%c0, %c0_0, %c0_1] : memref<8x8x128xf32, #tpu.memory_space<vmem>>, vector<8x8x128xf32>
    %c0_2 = arith.constant 0 : index
    %c0_3 = arith.constant 0 : index
    %1 = vector.load %arg4[%c0_2, %c0_3] : memref<128x384xf32, #tpu.memory_space<vmem>>, vector<128x384xf32>
    %c0_4 = arith.constant 0 : index
    %c0_5 = arith.constant 0 : index
    %2 = vector.load %arg5[%c0_4, %c0_5] : memref<128x384xf32, #tpu.memory_space<vmem>>, vector<128x384xf32>
    %c0_6 = arith.constant 0 : index
    %c0_7 = arith.constant 0 : index
    %3 = vector.load %arg6[%c0_6, %c0_7] : memref<1x384xf32, #tpu.memory_space<vmem>>, vector<1x384xf32>
    %c0_8 = arith.constant 0 : index
    %c0_9 = arith.constant 0 : index
    %4 = vector.load %arg3[%c0_8, %c0_9] : memref<8x128xf32, #tpu.memory_space<vmem>>, vector<8x128xf32>
    %c0_i32 = arith.constant 0 : i32
    %5 = vector.shape_cast %4 : vector<8x128xf32> to vector<8x1x128xf32>
    %6 = vector.broadcast %5 : vector<8x1x128xf32> to vector<8x8x128xf32>
    %7 = arith.mulf %0, %6 : vector<8x8x128xf32>
    %cst = arith.constant dense<0.000000e+00> : vector<8x8xf32>
    %8 = vector.multi_reduction <add>, %7, %cst [2] : vector<8x8x128xf32> to vector<8x8xf32>
    %cst_10 = arith.constant dense<0xFF800000> : vector<8xf32>
    %9 = vector.multi_reduction <maximumf>, %8, %cst_10 [1] : vector<8x8xf32> to vector<8xf32>
    %10 = vector.shape_cast %9 : vector<8xf32> to vector<8x1xf32>
    %11 = vector.broadcast %10 : vector<8x1xf32> to vector<8x8xf32>
    %12 = arith.subf %8, %11 : vector<8x8xf32>
    %13 = math.exp %12 : vector<8x8xf32>
    %cst_11 = arith.constant dense<0.000000e+00> : vector<8xf32>
    %14 = vector.multi_reduction <add>, %13, %cst_11 [1] : vector<8x8xf32> to vector<8xf32>
    %15 = vector.shape_cast %14 : vector<8xf32> to vector<8x1xf32>
    %16 = vector.broadcast %15 : vector<8x1xf32> to vector<8x8xf32>
    %17 = arith.divf %13, %16 : vector<8x8xf32>
    %18 = vector.shape_cast %17 : vector<8x8xf32> to vector<8x8x1xf32>
    %19 = vector.broadcast %18 : vector<8x8x1xf32> to vector<8x8x128xf32>
    %20 = arith.mulf %19, %0 : vector<8x8x128xf32>
    %cst_12 = arith.constant dense<0.000000e+00> : vector<8x128xf32>
    %21 = vector.multi_reduction <add>, %20, %cst_12 [1] : vector<8x8x128xf32> to vector<8x128xf32>
    %22 = arith.index_cast %c0_i32 : i32 to index
    %c0_13 = arith.constant 0 : index
    %c0_14 = arith.constant 0 : index
    %23 = vector.load %arg2[%22, %c0_13, %c0_14] : memref<8x8x384xf32, #tpu.memory_space<vmem>>, vector<1x8x384xf32>
    %24 = vector.shape_cast %23 : vector<1x8x384xf32> to vector<8x384xf32>
    %cst_15 = arith.constant dense<0.000000e+00> : vector<8x384xf32>
    %25 = tpu.matmul %21, %1, %cst_15 {dimension_numbers = #tpu.dot_dimension_numbers<[1], [0], [0], [1], [0, 0, 1, 1], [], []>} : vector<8x128xf32>, vector<128x384xf32>, vector<8x384xf32> -> vector<8x384xf32>
    %26 = arith.addf %24, %25 : vector<8x384xf32>
    %cst_16 = arith.constant dense<0.000000e+00> : vector<8x384xf32>
    %27 = tpu.matmul %4, %2, %cst_16 {dimension_numbers = #tpu.dot_dimension_numbers<[1], [0], [0], [1], [0, 0, 1, 1], [], []>} : vector<8x128xf32>, vector<128x384xf32>, vector<8x384xf32> -> vector<8x384xf32>
    %28 = vector.broadcast %3 : vector<1x384xf32> to vector<8x384xf32>
    %29 = arith.addf %27, %28 : vector<8x384xf32>
    %30 = vector.extract_strided_slice %26 {offsets = [0, 0], sizes = [8, 128], strides = [1, 1]} : vector<8x384xf32> to vector<8x128xf32>
    %31 = vector.extract_strided_slice %29 {offsets = [0, 0], sizes = [8, 128], strides = [1, 1]} : vector<8x384xf32> to vector<8x128xf32>
    %32 = arith.addf %30, %31 : vector<8x128xf32>
    %33 = arith.negf %32 : vector<8x128xf32>
    %34 = math.exp %33 : vector<8x128xf32>
    %cst_17 = arith.constant 1.000000e+00 : f32
    %35 = vector.broadcast %cst_17 : f32 to vector<8x128xf32>
    %36 = arith.addf %35, %34 : vector<8x128xf32>
    %37 = arith.divf %35, %36 : vector<8x128xf32>
    %38 = vector.extract_strided_slice %26 {offsets = [0, 128], sizes = [8, 128], strides = [1, 1]} : vector<8x384xf32> to vector<8x128xf32>
    %39 = vector.extract_strided_slice %29 {offsets = [0, 128], sizes = [8, 128], strides = [1, 1]} : vector<8x384xf32> to vector<8x128xf32>
    %40 = arith.addf %38, %39 : vector<8x128xf32>
    %41 = arith.negf %40 : vector<8x128xf32>
    %42 = math.exp %41 : vector<8x128xf32>
    %cst_18 = arith.constant 1.000000e+00 : f32
    %43 = vector.broadcast %cst_18 : f32 to vector<8x128xf32>
    %44 = arith.addf %43, %42 : vector<8x128xf32>
    %45 = arith.divf %43, %44 : vector<8x128xf32>
    %46 = vector.extract_strided_slice %26 {offsets = [0, 256], sizes = [8, 128], strides = [1, 1]} : vector<8x384xf32> to vector<8x128xf32>
    %47 = vector.extract_strided_slice %29 {offsets = [0, 256], sizes = [8, 128], strides = [1, 1]} : vector<8x384xf32> to vector<8x128xf32>
    %48 = arith.mulf %37, %47 : vector<8x128xf32>
    %49 = arith.addf %46, %48 : vector<8x128xf32>
    %50 = math.tanh %49 : vector<8x128xf32>
    %cst_19 = arith.constant 1.000000e+00 : f32
    %51 = vector.broadcast %cst_19 : f32 to vector<8x128xf32>
    %52 = arith.subf %51, %45 : vector<8x128xf32>
    %53 = arith.mulf %52, %50 : vector<8x128xf32>
    %54 = arith.mulf %45, %4 : vector<8x128xf32>
    %55 = arith.addf %53, %54 : vector<8x128xf32>
    %56 = vector.shape_cast %55 : vector<8x128xf32> to vector<1x8x128xf32>
    %57 = arith.index_cast %c0_i32 : i32 to index
    %c0_20 = arith.constant 0 : index
    %c0_21 = arith.constant 0 : index
    %58 = vector.load %arg7[%57, %c0_20, %c0_21] : memref<8x8x128xf32, #tpu.memory_space<vmem>>, vector<1x8x128xf32>
    tpu.vector_store %arg7[%57, %c0_20, %c0_21], %56 {strides = array<i32>} : memref<8x8x128xf32, #tpu.memory_space<vmem>>, vector<1x8x128xf32>,
    %c1_i32 = arith.constant 1 : i32
    %59 = vector.shape_cast %55 : vector<8x128xf32> to vector<8x1x128xf32>
    %60 = vector.broadcast %59 : vector<8x1x128xf32> to vector<8x8x128xf32>
    %61 = arith.mulf %0, %60 : vector<8x8x128xf32>
    %cst_22 = arith.constant dense<0.000000e+00> : vector<8x8xf32>
    %62 = vector.multi_reduction <add>, %61, %cst_22 [2] : vector<8x8x128xf32> to vector<8x8xf32>
    %cst_23 = arith.constant dense<0xFF800000> : vector<8xf32>
    %63 = vector.multi_reduction <maximumf>, %62, %cst_23 [1] : vector<8x8xf32> to vector<8xf32>
    %64 = vector.shape_cast %63 : vector<8xf32> to vector<8x1xf32>
    %65 = vector.broadcast %64 : vector<8x1xf32> to vector<8x8xf32>
    %66 = arith.subf %62, %65 : vector<8x8xf32>
    %67 = math.exp %66 : vector<8x8xf32>
    %cst_24 = arith.constant dense<0.000000e+00> : vector<8xf32>
    %68 = vector.multi_reduction <add>, %67, %cst_24 [1] : vector<8x8xf32> to vector<8xf32>
    %69 = vector.shape_cast %68 : vector<8xf32> to vector<8x1xf32>
    %70 = vector.broadcast %69 : vector<8x1xf32> to vector<8x8xf32>
    %71 = arith.divf %67, %70 : vector<8x8xf32>
    %72 = vector.shape_cast %71 : vector<8x8xf32> to vector<8x8x1xf32>
    %73 = vector.broadcast %72 : vector<8x8x1xf32> to vector<8x8x128xf32>
    %74 = arith.mulf %73, %0 : vector<8x8x128xf32>
    %cst_25 = arith.constant dense<0.000000e+00> : vector<8x128xf32>
    %75 = vector.multi_reduction <add>, %74, %cst_25 [1] : vector<8x8x128xf32> to vector<8x128xf32>
    %76 = arith.index_cast %c1_i32 : i32 to index
    %c0_26 = arith.constant 0 : index
    %c0_27 = arith.constant 0 : index
    %77 = vector.load %arg2[%76, %c0_26, %c0_27] : memref<8x8x384xf32, #tpu.memory_space<vmem>>, vector<1x8x384xf32>
    %78 = vector.shape_cast %77 : vector<1x8x384xf32> to vector<8x384xf32>
    %cst_28 = arith.constant dense<0.000000e+00> : vector<8x384xf32>
    %79 = tpu.matmul %75, %1, %cst_28 {dimension_numbers = #tpu.dot_dimension_numbers<[1], [0], [0], [1], [0, 0, 1, 1], [], []>} : vector<8x128xf32>, vector<128x384xf32>, vector<8x384xf32> -> vector<8x384xf32>
    %80 = arith.addf %78, %79 : vector<8x384xf32>
    %cst_29 = arith.constant dense<0.000000e+00> : vector<8x384xf32>
    %81 = tpu.matmul %55, %2, %cst_29 {dimension_numbers = #tpu.dot_dimension_numbers<[1], [0], [0], [1], [0, 0, 1, 1], [], []>} : vector<8x128xf32>, vector<128x384xf32>, vector<8x384xf32> -> vector<8x384xf32>
    %82 = vector.broadcast %3 : vector<1x384xf32> to vector<8x384xf32>
    %83 = arith.addf %81, %82 : vector<8x384xf32>
    %84 = vector.extract_strided_slice %80 {offsets = [0, 0], sizes = [8, 128], strides = [1, 1]} : vector<8x384xf32> to vector<8x128xf32>
    %85 = vector.extract_strided_slice %83 {offsets = [0, 0], sizes = [8, 128], strides = [1, 1]} : vector<8x384xf32> to vector<8x128xf32>
    %86 = arith.addf %84, %85 : vector<8x128xf32>
    %87 = arith.negf %86 : vector<8x128xf32>
    %88 = math.exp %87 : vector<8x128xf32>
    %cst_30 = arith.constant 1.000000e+00 : f32
    %89 = vector.broadcast %cst_30 : f32 to vector<8x128xf32>
    %90 = arith.addf %89, %88 : vector<8x128xf32>
    %91 = arith.divf %89, %90 : vector<8x128xf32>
    %92 = vector.extract_strided_slice %80 {offsets = [0, 128], sizes = [8, 128], strides = [1, 1]} : vector<8x384xf32> to vector<8x128xf32>
    %93 = vector.extract_strided_slice %83 {offsets = [0, 128], sizes = [8, 128], strides = [1, 1]} : vector<8x384xf32> to vector<8x128xf32>
    %94 = arith.addf %92, %93 : vector<8x128xf32>
    %95 = arith.negf %94 : vector<8x128xf32>
    %96 = math.exp %95 : vector<8x128xf32>
    %cst_31 = arith.constant 1.000000e+00 : f32
    %97 = vector.broadcast %cst_31 : f32 to vector<8x128xf32>
    %98 = arith.addf %97, %96 : vector<8x128xf32>
    %99 = arith.divf %97, %98 : vector<8x128xf32>
    %100 = vector.extract_strided_slice %80 {offsets = [0, 256], sizes = [8, 128], strides = [1, 1]} : vector<8x384xf32> to vector<8x128xf32>
    %101 = vector.extract_strided_slice %83 {offsets = [0, 256], sizes = [8, 128], strides = [1, 1]} : vector<8x384xf32> to vector<8x128xf32>
    %102 = arith.mulf %91, %101 : vector<8x128xf32>
    %103 = arith.addf %100, %102 : vector<8x128xf32>
    %104 = math.tanh %103 : vector<8x128xf32>
    %cst_32 = arith.constant 1.000000e+00 : f32
    %105 = vector.broadcast %cst_32 : f32 to vector<8x128xf32>
    %106 = arith.subf %105, %99 : vector<8x128xf32>
    %107 = arith.mulf %106, %104 : vector<8x128xf32>
    %108 = arith.mulf %99, %55 : vector<8x128xf32>
    %109 = arith.addf %107, %108 : vector<8x128xf32>
    %110 = vector.shape_cast %109 : vector<8x128xf32> to vector<1x8x128xf32>
    %111 = arith.index_cast %c1_i32 : i32 to index
    %c0_33 = arith.constant 0 : index
    %c0_34 = arith.constant 0 : index
    %112 = vector.load %arg7[%111, %c0_33, %c0_34] : memref<8x8x128xf32, #tpu.memory_space<vmem>>, vector<1x8x128xf32>
    tpu.vector_store %arg7[%111, %c0_33, %c0_34], %110 {strides = array<i32>} : memref<8x8x128xf32, #tpu.memory_space<vmem>>, vector<1x8x128xf32>,
    %c2_i32 = arith.constant 2 : i32
    %113 = vector.shape_cast %109 : vector<8x128xf32> to vector<8x1x128xf32>
    %114 = vector.broadcast %113 : vector<8x1x128xf32> to vector<8x8x128xf32>
    %115 = arith.mulf %0, %114 : vector<8x8x128xf32>
    %cst_35 = arith.constant dense<0.000000e+00> : vector<8x8xf32>
    %116 = vector.multi_reduction <add>, %115, %cst_35 [2] : vector<8x8x128xf32> to vector<8x8xf32>
    %cst_36 = arith.constant dense<0xFF800000> : vector<8xf32>
    %117 = vector.multi_reduction <maximumf>, %116, %cst_36 [1] : vector<8x8xf32> to vector<8xf32>
    %118 = vector.shape_cast %117 : vector<8xf32> to vector<8x1xf32>
    %119 = vector.broadcast %118 : vector<8x1xf32> to vector<8x8xf32>
    %120 = arith.subf %116, %119 : vector<8x8xf32>
    %121 = math.exp %120 : vector<8x8xf32>
    %cst_37 = arith.constant dense<0.000000e+00> : vector<8xf32>
    %122 = vector.multi_reduction <add>, %121, %cst_37 [1] : vector<8x8xf32> to vector<8xf32>
    %123 = vector.shape_cast %122 : vector<8xf32> to vector<8x1xf32>
    %124 = vector.broadcast %123 : vector<8x1xf32> to vector<8x8xf32>
    %125 = arith.divf %121, %124 : vector<8x8xf32>
    %126 = vector.shape_cast %125 : vector<8x8xf32> to vector<8x8x1xf32>
    %127 = vector.broadcast %126 : vector<8x8x1xf32> to vector<8x8x128xf32>
    %128 = arith.mulf %127, %0 : vector<8x8x128xf32>
    %cst_38 = arith.constant dense<0.000000e+00> : vector<8x128xf32>
    %129 = vector.multi_reduction <add>, %128, %cst_38 [1] : vector<8x8x128xf32> to vector<8x128xf32>
    %130 = arith.index_cast %c2_i32 : i32 to index
    %c0_39 = arith.constant 0 : index
    %c0_40 = arith.constant 0 : index
    %131 = vector.load %arg2[%130, %c0_39, %c0_40] : memref<8x8x384xf32, #tpu.memory_space<vmem>>, vector<1x8x384xf32>
    %132 = vector.shape_cast %131 : vector<1x8x384xf32> to vector<8x384xf32>
    %cst_41 = arith.constant dense<0.000000e+00> : vector<8x384xf32>
    %133 = tpu.matmul %129, %1, %cst_41 {dimension_numbers = #tpu.dot_dimension_numbers<[1], [0], [0], [1], [0, 0, 1, 1], [], []>} : vector<8x128xf32>, vector<128x384xf32>, vector<8x384xf32> -> vector<8x384xf32>
    %134 = arith.addf %132, %133 : vector<8x384xf32>
    %cst_42 = arith.constant dense<0.000000e+00> : vector<8x384xf32>
    %135 = tpu.matmul %109, %2, %cst_42 {dimension_numbers = #tpu.dot_dimension_numbers<[1], [0], [0], [1], [0, 0, 1, 1], [], []>} : vector<8x128xf32>, vector<128x384xf32>, vector<8x384xf32> -> vector<8x384xf32>
    %136 = vector.broadcast %3 : vector<1x384xf32> to vector<8x384xf32>
    %137 = arith.addf %135, %136 : vector<8x384xf32>
    %138 = vector.extract_strided_slice %134 {offsets = [0, 0], sizes = [8, 128], strides = [1, 1]} : vector<8x384xf32> to vector<8x128xf32>
    %139 = vector.extract_strided_slice %137 {offsets = [0, 0], sizes = [8, 128], strides = [1, 1]} : vector<8x384xf32> to vector<8x128xf32>
    %140 = arith.addf %138, %139 : vector<8x128xf32>
    %141 = arith.negf %140 : vector<8x128xf32>
    %142 = math.exp %141 : vector<8x128xf32>
    %cst_43 = arith.constant 1.000000e+00 : f32
    %143 = vector.broadcast %cst_43 : f32 to vector<8x128xf32>
    %144 = arith.addf %143, %142 : vector<8x128xf32>
    %145 = arith.divf %143, %144 : vector<8x128xf32>
    %146 = vector.extract_strided_slice %134 {offsets = [0, 128], sizes = [8, 128], strides = [1, 1]} : vector<8x384xf32> to vector<8x128xf32>
    %147 = vector.extract_strided_slice %137 {offsets = [0, 128], sizes = [8, 128], strides = [1, 1]} : vector<8x384xf32> to vector<8x128xf32>
    %148 = arith.addf %146, %147 : vector<8x128xf32>
    %149 = arith.negf %148 : vector<8x128xf32>
    %150 = math.exp %149 : vector<8x128xf32>
    %cst_44 = arith.constant 1.000000e+00 : f32
    %151 = vector.broadcast %cst_44 : f32 to vector<8x128xf32>
    %152 = arith.addf %151, %150 : vector<8x128xf32>
    %153 = arith.divf %151, %152 : vector<8x128xf32>
    %154 = vector.extract_strided_slice %134 {offsets = [0, 256], sizes = [8, 128], strides = [1, 1]} : vector<8x384xf32> to vector<8x128xf32>
    %155 = vector.extract_strided_slice %137 {offsets = [0, 256], sizes = [8, 128], strides = [1, 1]} : vector<8x384xf32> to vector<8x128xf32>
    %156 = arith.mulf %145, %155 : vector<8x128xf32>
    %157 = arith.addf %154, %156 : vector<8x128xf32>
    %158 = math.tanh %157 : vector<8x128xf32>
    %cst_45 = arith.constant 1.000000e+00 : f32
    %159 = vector.broadcast %cst_45 : f32 to vector<8x128xf32>
    %160 = arith.subf %159, %153 : vector<8x128xf32>
    %161 = arith.mulf %160, %158 : vector<8x128xf32>
    %162 = arith.mulf %153, %109 : vector<8x128xf32>
    %163 = arith.addf %161, %162 : vector<8x128xf32>
    %164 = vector.shape_cast %163 : vector<8x128xf32> to vector<1x8x128xf32>
    %165 = arith.index_cast %c2_i32 : i32 to index
    %c0_46 = arith.constant 0 : index
    %c0_47 = arith.constant 0 : index
    %166 = vector.load %arg7[%165, %c0_46, %c0_47] : memref<8x8x128xf32, #tpu.memory_space<vmem>>, vector<1x8x128xf32>
    tpu.vector_store %arg7[%165, %c0_46, %c0_47], %164 {strides = array<i32>} : memref<8x8x128xf32, #tpu.memory_space<vmem>>, vector<1x8x128xf32>,
    %c3_i32 = arith.constant 3 : i32
    %167 = vector.shape_cast %163 : vector<8x128xf32> to vector<8x1x128xf32>
    %168 = vector.broadcast %167 : vector<8x1x128xf32> to vector<8x8x128xf32>
    %169 = arith.mulf %0, %168 : vector<8x8x128xf32>
    %cst_48 = arith.constant dense<0.000000e+00> : vector<8x8xf32>
    %170 = vector.multi_reduction <add>, %169, %cst_48 [2] : vector<8x8x128xf32> to vector<8x8xf32>
    %cst_49 = arith.constant dense<0xFF800000> : vector<8xf32>
    %171 = vector.multi_reduction <maximumf>, %170, %cst_49 [1] : vector<8x8xf32> to vector<8xf32>
    %172 = vector.shape_cast %171 : vector<8xf32> to vector<8x1xf32>
    %173 = vector.broadcast %172 : vector<8x1xf32> to vector<8x8xf32>
    %174 = arith.subf %170, %173 : vector<8x8xf32>
    %175 = math.exp %174 : vector<8x8xf32>
    %cst_50 = arith.constant dense<0.000000e+00> : vector<8xf32>
    %176 = vector.multi_reduction <add>, %175, %cst_50 [1] : vector<8x8xf32> to vector<8xf32>
    %177 = vector.shape_cast %176 : vector<8xf32> to vector<8x1xf32>
    %178 = vector.broadcast %177 : vector<8x1xf32> to vector<8x8xf32>
    %179 = arith.divf %175, %178 : vector<8x8xf32>
    %180 = vector.shape_cast %179 : vector<8x8xf32> to vector<8x8x1xf32>
    %181 = vector.broadcast %180 : vector<8x8x1xf32> to vector<8x8x128xf32>
    %182 = arith.mulf %181, %0 : vector<8x8x128xf32>
    %cst_51 = arith.constant dense<0.000000e+00> : vector<8x128xf32>
    %183 = vector.multi_reduction <add>, %182, %cst_51 [1] : vector<8x8x128xf32> to vector<8x128xf32>
    %184 = arith.index_cast %c3_i32 : i32 to index
    %c0_52 = arith.constant 0 : index
    %c0_53 = arith.constant 0 : index
    %185 = vector.load %arg2[%184, %c0_52, %c0_53] : memref<8x8x384xf32, #tpu.memory_space<vmem>>, vector<1x8x384xf32>
    %186 = vector.shape_cast %185 : vector<1x8x384xf32> to vector<8x384xf32>
    %cst_54 = arith.constant dense<0.000000e+00> : vector<8x384xf32>
    %187 = tpu.matmul %183, %1, %cst_54 {dimension_numbers = #tpu.dot_dimension_numbers<[1], [0], [0], [1], [0, 0, 1, 1], [], []>} : vector<8x128xf32>, vector<128x384xf32>, vector<8x384xf32> -> vector<8x384xf32>
    %188 = arith.addf %186, %187 : vector<8x384xf32>
    %cst_55 = arith.constant dense<0.000000e+00> : vector<8x384xf32>
    %189 = tpu.matmul %163, %2, %cst_55 {dimension_numbers = #tpu.dot_dimension_numbers<[1], [0], [0], [1], [0, 0, 1, 1], [], []>} : vector<8x128xf32>, vector<128x384xf32>, vector<8x384xf32> -> vector<8x384xf32>
    %190 = vector.broadcast %3 : vector<1x384xf32> to vector<8x384xf32>
    %191 = arith.addf %189, %190 : vector<8x384xf32>
    %192 = vector.extract_strided_slice %188 {offsets = [0, 0], sizes = [8, 128], strides = [1, 1]} : vector<8x384xf32> to vector<8x128xf32>
    %193 = vector.extract_strided_slice %191 {offsets = [0, 0], sizes = [8, 128], strides = [1, 1]} : vector<8x384xf32> to vector<8x128xf32>
    %194 = arith.addf %192, %193 : vector<8x128xf32>
    %195 = arith.negf %194 : vector<8x128xf32>
    %196 = math.exp %195 : vector<8x128xf32>
    %cst_56 = arith.constant 1.000000e+00 : f32
    %197 = vector.broadcast %cst_56 : f32 to vector<8x128xf32>
    %198 = arith.addf %197, %196 : vector<8x128xf32>
    %199 = arith.divf %197, %198 : vector<8x128xf32>
    %200 = vector.extract_strided_slice %188 {offsets = [0, 128], sizes = [8, 128], strides = [1, 1]} : vector<8x384xf32> to vector<8x128xf32>
    %201 = vector.extract_strided_slice %191 {offsets = [0, 128], sizes = [8, 128], strides = [1, 1]} : vector<8x384xf32> to vector<8x128xf32>
    %202 = arith.addf %200, %201 : vector<8x128xf32>
    %203 = arith.negf %202 : vector<8x128xf32>
    %204 = math.exp %203 : vector<8x128xf32>
    %cst_57 = arith.constant 1.000000e+00 : f32
    %205 = vector.broadcast %cst_57 : f32 to vector<8x128xf32>
    %206 = arith.addf %205, %204 : vector<8x128xf32>
    %207 = arith.divf %205, %206 : vector<8x128xf32>
    %208 = vector.extract_strided_slice %188 {offsets = [0, 256], sizes = [8, 128], strides = [1, 1]} : vector<8x384xf32> to vector<8x128xf32>
    %209 = vector.extract_strided_slice %191 {offsets = [0, 256], sizes = [8, 128], strides = [1, 1]} : vector<8x384xf32> to vector<8x128xf32>
    %210 = arith.mulf %199, %209 : vector<8x128xf32>
    %211 = arith.addf %208, %210 : vector<8x128xf32>
    %212 = math.tanh %211 : vector<8x128xf32>
    %cst_58 = arith.constant 1.000000e+00 : f32
    %213 = vector.broadcast %cst_58 : f32 to vector<8x128xf32>
    %214 = arith.subf %213, %207 : vector<8x128xf32>
    %215 = arith.mulf %214, %212 : vector<8x128xf32>
    %216 = arith.mulf %207, %163 : vector<8x128xf32>
    %217 = arith.addf %215, %216 : vector<8x128xf32>
    %218 = vector.shape_cast %217 : vector<8x128xf32> to vector<1x8x128xf32>
    %219 = arith.index_cast %c3_i32 : i32 to index
    %c0_59 = arith.constant 0 : index
    %c0_60 = arith.constant 0 : index
    %220 = vector.load %arg7[%219, %c0_59, %c0_60] : memref<8x8x128xf32, #tpu.memory_space<vmem>>, vector<1x8x128xf32>
    tpu.vector_store %arg7[%219, %c0_59, %c0_60], %218 {strides = array<i32>} : memref<8x8x128xf32, #tpu.memory_space<vmem>>, vector<1x8x128xf32>,
    %c4_i32 = arith.constant 4 : i32
    %221 = vector.shape_cast %217 : vector<8x128xf32> to vector<8x1x128xf32>
    %222 = vector.broadcast %221 : vector<8x1x128xf32> to vector<8x8x128xf32>
    %223 = arith.mulf %0, %222 : vector<8x8x128xf32>
    %cst_61 = arith.constant dense<0.000000e+00> : vector<8x8xf32>
    %224 = vector.multi_reduction <add>, %223, %cst_61 [2] : vector<8x8x128xf32> to vector<8x8xf32>
    %cst_62 = arith.constant dense<0xFF800000> : vector<8xf32>
    %225 = vector.multi_reduction <maximumf>, %224, %cst_62 [1] : vector<8x8xf32> to vector<8xf32>
    %226 = vector.shape_cast %225 : vector<8xf32> to vector<8x1xf32>
    %227 = vector.broadcast %226 : vector<8x1xf32> to vector<8x8xf32>
    %228 = arith.subf %224, %227 : vector<8x8xf32>
    %229 = math.exp %228 : vector<8x8xf32>
    %cst_63 = arith.constant dense<0.000000e+00> : vector<8xf32>
    %230 = vector.multi_reduction <add>, %229, %cst_63 [1] : vector<8x8xf32> to vector<8xf32>
    %231 = vector.shape_cast %230 : vector<8xf32> to vector<8x1xf32>
    %232 = vector.broadcast %231 : vector<8x1xf32> to vector<8x8xf32>
    %233 = arith.divf %229, %232 : vector<8x8xf32>
    %234 = vector.shape_cast %233 : vector<8x8xf32> to vector<8x8x1xf32>
    %235 = vector.broadcast %234 : vector<8x8x1xf32> to vector<8x8x128xf32>
    %236 = arith.mulf %235, %0 : vector<8x8x128xf32>
    %cst_64 = arith.constant dense<0.000000e+00> : vector<8x128xf32>
    %237 = vector.multi_reduction <add>, %236, %cst_64 [1] : vector<8x8x128xf32> to vector<8x128xf32>
    %238 = arith.index_cast %c4_i32 : i32 to index
    %c0_65 = arith.constant 0 : index
    %c0_66 = arith.constant 0 : index
    %239 = vector.load %arg2[%238, %c0_65, %c0_66] : memref<8x8x384xf32, #tpu.memory_space<vmem>>, vector<1x8x384xf32>
    %240 = vector.shape_cast %239 : vector<1x8x384xf32> to vector<8x384xf32>
    %cst_67 = arith.constant dense<0.000000e+00> : vector<8x384xf32>
    %241 = tpu.matmul %237, %1, %cst_67 {dimension_numbers = #tpu.dot_dimension_numbers<[1], [0], [0], [1], [0, 0, 1, 1], [], []>} : vector<8x128xf32>, vector<128x384xf32>, vector<8x384xf32> -> vector<8x384xf32>
    %242 = arith.addf %240, %241 : vector<8x384xf32>
    %cst_68 = arith.constant dense<0.000000e+00> : vector<8x384xf32>
    %243 = tpu.matmul %217, %2, %cst_68 {dimension_numbers = #tpu.dot_dimension_numbers<[1], [0], [0], [1], [0, 0, 1, 1], [], []>} : vector<8x128xf32>, vector<128x384xf32>, vector<8x384xf32> -> vector<8x384xf32>
    %244 = vector.broadcast %3 : vector<1x384xf32> to vector<8x384xf32>
    %245 = arith.addf %243, %244 : vector<8x384xf32>
    %246 = vector.extract_strided_slice %242 {offsets = [0, 0], sizes = [8, 128], strides = [1, 1]} : vector<8x384xf32> to vector<8x128xf32>
    %247 = vector.extract_strided_slice %245 {offsets = [0, 0], sizes = [8, 128], strides = [1, 1]} : vector<8x384xf32> to vector<8x128xf32>
    %248 = arith.addf %246, %247 : vector<8x128xf32>
    %249 = arith.negf %248 : vector<8x128xf32>
    %250 = math.exp %249 : vector<8x128xf32>
    %cst_69 = arith.constant 1.000000e+00 : f32
    %251 = vector.broadcast %cst_69 : f32 to vector<8x128xf32>
    %252 = arith.addf %251, %250 : vector<8x128xf32>
    %253 = arith.divf %251, %252 : vector<8x128xf32>
    %254 = vector.extract_strided_slice %242 {offsets = [0, 128], sizes = [8, 128], strides = [1, 1]} : vector<8x384xf32> to vector<8x128xf32>
    %255 = vector.extract_strided_slice %245 {offsets = [0, 128], sizes = [8, 128], strides = [1, 1]} : vector<8x384xf32> to vector<8x128xf32>
    %256 = arith.addf %254, %255 : vector<8x128xf32>
    %257 = arith.negf %256 : vector<8x128xf32>
    %258 = math.exp %257 : vector<8x128xf32>
    %cst_70 = arith.constant 1.000000e+00 : f32
    %259 = vector.broadcast %cst_70 : f32 to vector<8x128xf32>
    %260 = arith.addf %259, %258 : vector<8x128xf32>
    %261 = arith.divf %259, %260 : vector<8x128xf32>
    %262 = vector.extract_strided_slice %242 {offsets = [0, 256], sizes = [8, 128], strides = [1, 1]} : vector<8x384xf32> to vector<8x128xf32>
    %263 = vector.extract_strided_slice %245 {offsets = [0, 256], sizes = [8, 128], strides = [1, 1]} : vector<8x384xf32> to vector<8x128xf32>
    %264 = arith.mulf %253, %263 : vector<8x128xf32>
    %265 = arith.addf %262, %264 : vector<8x128xf32>
    %266 = math.tanh %265 : vector<8x128xf32>
    %cst_71 = arith.constant 1.000000e+00 : f32
    %267 = vector.broadcast %cst_71 : f32 to vector<8x128xf32>
    %268 = arith.subf %267, %261 : vector<8x128xf32>
    %269 = arith.mulf %268, %266 : vector<8x128xf32>
    %270 = arith.mulf %261, %217 : vector<8x128xf32>
    %271 = arith.addf %269, %270 : vector<8x128xf32>
    %272 = vector.shape_cast %271 : vector<8x128xf32> to vector<1x8x128xf32>
    %273 = arith.index_cast %c4_i32 : i32 to index
    %c0_72 = arith.constant 0 : index
    %c0_73 = arith.constant 0 : index
    %274 = vector.load %arg7[%273, %c0_72, %c0_73] : memref<8x8x128xf32, #tpu.memory_space<vmem>>, vector<1x8x128xf32>
    tpu.vector_store %arg7[%273, %c0_72, %c0_73], %272 {strides = array<i32>} : memref<8x8x128xf32, #tpu.memory_space<vmem>>, vector<1x8x128xf32>,
    %c5_i32 = arith.constant 5 : i32
    %275 = vector.shape_cast %271 : vector<8x128xf32> to vector<8x1x128xf32>
    %276 = vector.broadcast %275 : vector<8x1x128xf32> to vector<8x8x128xf32>
    %277 = arith.mulf %0, %276 : vector<8x8x128xf32>
    %cst_74 = arith.constant dense<0.000000e+00> : vector<8x8xf32>
    %278 = vector.multi_reduction <add>, %277, %cst_74 [2] : vector<8x8x128xf32> to vector<8x8xf32>
    %cst_75 = arith.constant dense<0xFF800000> : vector<8xf32>
    %279 = vector.multi_reduction <maximumf>, %278, %cst_75 [1] : vector<8x8xf32> to vector<8xf32>
    %280 = vector.shape_cast %279 : vector<8xf32> to vector<8x1xf32>
    %281 = vector.broadcast %280 : vector<8x1xf32> to vector<8x8xf32>
    %282 = arith.subf %278, %281 : vector<8x8xf32>
    %283 = math.exp %282 : vector<8x8xf32>
    %cst_76 = arith.constant dense<0.000000e+00> : vector<8xf32>
    %284 = vector.multi_reduction <add>, %283, %cst_76 [1] : vector<8x8xf32> to vector<8xf32>
    %285 = vector.shape_cast %284 : vector<8xf32> to vector<8x1xf32>
    %286 = vector.broadcast %285 : vector<8x1xf32> to vector<8x8xf32>
    %287 = arith.divf %283, %286 : vector<8x8xf32>
    %288 = vector.shape_cast %287 : vector<8x8xf32> to vector<8x8x1xf32>
    %289 = vector.broadcast %288 : vector<8x8x1xf32> to vector<8x8x128xf32>
    %290 = arith.mulf %289, %0 : vector<8x8x128xf32>
    %cst_77 = arith.constant dense<0.000000e+00> : vector<8x128xf32>
    %291 = vector.multi_reduction <add>, %290, %cst_77 [1] : vector<8x8x128xf32> to vector<8x128xf32>
    %292 = arith.index_cast %c5_i32 : i32 to index
    %c0_78 = arith.constant 0 : index
    %c0_79 = arith.constant 0 : index
    %293 = vector.load %arg2[%292, %c0_78, %c0_79] : memref<8x8x384xf32, #tpu.memory_space<vmem>>, vector<1x8x384xf32>
    %294 = vector.shape_cast %293 : vector<1x8x384xf32> to vector<8x384xf32>
    %cst_80 = arith.constant dense<0.000000e+00> : vector<8x384xf32>
    %295 = tpu.matmul %291, %1, %cst_80 {dimension_numbers = #tpu.dot_dimension_numbers<[1], [0], [0], [1], [0, 0, 1, 1], [], []>} : vector<8x128xf32>, vector<128x384xf32>, vector<8x384xf32> -> vector<8x384xf32>
    %296 = arith.addf %294, %295 : vector<8x384xf32>
    %cst_81 = arith.constant dense<0.000000e+00> : vector<8x384xf32>
    %297 = tpu.matmul %271, %2, %cst_81 {dimension_numbers = #tpu.dot_dimension_numbers<[1], [0], [0], [1], [0, 0, 1, 1], [], []>} : vector<8x128xf32>, vector<128x384xf32>, vector<8x384xf32> -> vector<8x384xf32>
    %298 = vector.broadcast %3 : vector<1x384xf32> to vector<8x384xf32>
    %299 = arith.addf %297, %298 : vector<8x384xf32>
    %300 = vector.extract_strided_slice %296 {offsets = [0, 0], sizes = [8, 128], strides = [1, 1]} : vector<8x384xf32> to vector<8x128xf32>
    %301 = vector.extract_strided_slice %299 {offsets = [0, 0], sizes = [8, 128], strides = [1, 1]} : vector<8x384xf32> to vector<8x128xf32>
    %302 = arith.addf %300, %301 : vector<8x128xf32>
    %303 = arith.negf %302 : vector<8x128xf32>
    %304 = math.exp %303 : vector<8x128xf32>
    %cst_82 = arith.constant 1.000000e+00 : f32
    %305 = vector.broadcast %cst_82 : f32 to vector<8x128xf32>
    %306 = arith.addf %305, %304 : vector<8x128xf32>
    %307 = arith.divf %305, %306 : vector<8x128xf32>
    %308 = vector.extract_strided_slice %296 {offsets = [0, 128], sizes = [8, 128], strides = [1, 1]} : vector<8x384xf32> to vector<8x128xf32>
    %309 = vector.extract_strided_slice %299 {offsets = [0, 128], sizes = [8, 128], strides = [1, 1]} : vector<8x384xf32> to vector<8x128xf32>
    %310 = arith.addf %308, %309 : vector<8x128xf32>
    %311 = arith.negf %310 : vector<8x128xf32>
    %312 = math.exp %311 : vector<8x128xf32>
    %cst_83 = arith.constant 1.000000e+00 : f32
    %313 = vector.broadcast %cst_83 : f32 to vector<8x128xf32>
    %314 = arith.addf %313, %312 : vector<8x128xf32>
    %315 = arith.divf %313, %314 : vector<8x128xf32>
    %316 = vector.extract_strided_slice %296 {offsets = [0, 256], sizes = [8, 128], strides = [1, 1]} : vector<8x384xf32> to vector<8x128xf32>
    %317 = vector.extract_strided_slice %299 {offsets = [0, 256], sizes = [8, 128], strides = [1, 1]} : vector<8x384xf32> to vector<8x128xf32>
    %318 = arith.mulf %307, %317 : vector<8x128xf32>
    %319 = arith.addf %316, %318 : vector<8x128xf32>
    %320 = math.tanh %319 : vector<8x128xf32>
    %cst_84 = arith.constant 1.000000e+00 : f32
    %321 = vector.broadcast %cst_84 : f32 to vector<8x128xf32>
    %322 = arith.subf %321, %315 : vector<8x128xf32>
    %323 = arith.mulf %322, %320 : vector<8x128xf32>
    %324 = arith.mulf %315, %271 : vector<8x128xf32>
    %325 = arith.addf %323, %324 : vector<8x128xf32>
    %326 = vector.shape_cast %325 : vector<8x128xf32> to vector<1x8x128xf32>
    %327 = arith.index_cast %c5_i32 : i32 to index
    %c0_85 = arith.constant 0 : index
    %c0_86 = arith.constant 0 : index
    %328 = vector.load %arg7[%327, %c0_85, %c0_86] : memref<8x8x128xf32, #tpu.memory_space<vmem>>, vector<1x8x128xf32>
    tpu.vector_store %arg7[%327, %c0_85, %c0_86], %326 {strides = array<i32>} : memref<8x8x128xf32, #tpu.memory_space<vmem>>, vector<1x8x128xf32>,
    %c6_i32 = arith.constant 6 : i32
    %329 = vector.shape_cast %325 : vector<8x128xf32> to vector<8x1x128xf32>
    %330 = vector.broadcast %329 : vector<8x1x128xf32> to vector<8x8x128xf32>
    %331 = arith.mulf %0, %330 : vector<8x8x128xf32>
    %cst_87 = arith.constant dense<0.000000e+00> : vector<8x8xf32>
    %332 = vector.multi_reduction <add>, %331, %cst_87 [2] : vector<8x8x128xf32> to vector<8x8xf32>
    %cst_88 = arith.constant dense<0xFF800000> : vector<8xf32>
    %333 = vector.multi_reduction <maximumf>, %332, %cst_88 [1] : vector<8x8xf32> to vector<8xf32>
    %334 = vector.shape_cast %333 : vector<8xf32> to vector<8x1xf32>
    %335 = vector.broadcast %334 : vector<8x1xf32> to vector<8x8xf32>
    %336 = arith.subf %332, %335 : vector<8x8xf32>
    %337 = math.exp %336 : vector<8x8xf32>
    %cst_89 = arith.constant dense<0.000000e+00> : vector<8xf32>
    %338 = vector.multi_reduction <add>, %337, %cst_89 [1] : vector<8x8xf32> to vector<8xf32>
    %339 = vector.shape_cast %338 : vector<8xf32> to vector<8x1xf32>
    %340 = vector.broadcast %339 : vector<8x1xf32> to vector<8x8xf32>
    %341 = arith.divf %337, %340 : vector<8x8xf32>
    %342 = vector.shape_cast %341 : vector<8x8xf32> to vector<8x8x1xf32>
    %343 = vector.broadcast %342 : vector<8x8x1xf32> to vector<8x8x128xf32>
    %344 = arith.mulf %343, %0 : vector<8x8x128xf32>
    %cst_90 = arith.constant dense<0.000000e+00> : vector<8x128xf32>
    %345 = vector.multi_reduction <add>, %344, %cst_90 [1] : vector<8x8x128xf32> to vector<8x128xf32>
    %346 = arith.index_cast %c6_i32 : i32 to index
    %c0_91 = arith.constant 0 : index
    %c0_92 = arith.constant 0 : index
    %347 = vector.load %arg2[%346, %c0_91, %c0_92] : memref<8x8x384xf32, #tpu.memory_space<vmem>>, vector<1x8x384xf32>
    %348 = vector.shape_cast %347 : vector<1x8x384xf32> to vector<8x384xf32>
    %cst_93 = arith.constant dense<0.000000e+00> : vector<8x384xf32>
    %349 = tpu.matmul %345, %1, %cst_93 {dimension_numbers = #tpu.dot_dimension_numbers<[1], [0], [0], [1], [0, 0, 1, 1], [], []>} : vector<8x128xf32>, vector<128x384xf32>, vector<8x384xf32> -> vector<8x384xf32>
    %350 = arith.addf %348, %349 : vector<8x384xf32>
    %cst_94 = arith.constant dense<0.000000e+00> : vector<8x384xf32>
    %351 = tpu.matmul %325, %2, %cst_94 {dimension_numbers = #tpu.dot_dimension_numbers<[1], [0], [0], [1], [0, 0, 1, 1], [], []>} : vector<8x128xf32>, vector<128x384xf32>, vector<8x384xf32> -> vector<8x384xf32>
    %352 = vector.broadcast %3 : vector<1x384xf32> to vector<8x384xf32>
    %353 = arith.addf %351, %352 : vector<8x384xf32>
    %354 = vector.extract_strided_slice %350 {offsets = [0, 0], sizes = [8, 128], strides = [1, 1]} : vector<8x384xf32> to vector<8x128xf32>
    %355 = vector.extract_strided_slice %353 {offsets = [0, 0], sizes = [8, 128], strides = [1, 1]} : vector<8x384xf32> to vector<8x128xf32>
    %356 = arith.addf %354, %355 : vector<8x128xf32>
    %357 = arith.negf %356 : vector<8x128xf32>
    %358 = math.exp %357 : vector<8x128xf32>
    %cst_95 = arith.constant 1.000000e+00 : f32
    %359 = vector.broadcast %cst_95 : f32 to vector<8x128xf32>
    %360 = arith.addf %359, %358 : vector<8x128xf32>
    %361 = arith.divf %359, %360 : vector<8x128xf32>
    %362 = vector.extract_strided_slice %350 {offsets = [0, 128], sizes = [8, 128], strides = [1, 1]} : vector<8x384xf32> to vector<8x128xf32>
    %363 = vector.extract_strided_slice %353 {offsets = [0, 128], sizes = [8, 128], strides = [1, 1]} : vector<8x384xf32> to vector<8x128xf32>
    %364 = arith.addf %362, %363 : vector<8x128xf32>
    %365 = arith.negf %364 : vector<8x128xf32>
    %366 = math.exp %365 : vector<8x128xf32>
    %cst_96 = arith.constant 1.000000e+00 : f32
    %367 = vector.broadcast %cst_96 : f32 to vector<8x128xf32>
    %368 = arith.addf %367, %366 : vector<8x128xf32>
    %369 = arith.divf %367, %368 : vector<8x128xf32>
    %370 = vector.extract_strided_slice %350 {offsets = [0, 256], sizes = [8, 128], strides = [1, 1]} : vector<8x384xf32> to vector<8x128xf32>
    %371 = vector.extract_strided_slice %353 {offsets = [0, 256], sizes = [8, 128], strides = [1, 1]} : vector<8x384xf32> to vector<8x128xf32>
    %372 = arith.mulf %361, %371 : vector<8x128xf32>
    %373 = arith.addf %370, %372 : vector<8x128xf32>
    %374 = math.tanh %373 : vector<8x128xf32>
    %cst_97 = arith.constant 1.000000e+00 : f32
    %375 = vector.broadcast %cst_97 : f32 to vector<8x128xf32>
    %376 = arith.subf %375, %369 : vector<8x128xf32>
    %377 = arith.mulf %376, %374 : vector<8x128xf32>
    %378 = arith.mulf %369, %325 : vector<8x128xf32>
    %379 = arith.addf %377, %378 : vector<8x128xf32>
    %380 = vector.shape_cast %379 : vector<8x128xf32> to vector<1x8x128xf32>
    %381 = arith.index_cast %c6_i32 : i32 to index
    %c0_98 = arith.constant 0 : index
    %c0_99 = arith.constant 0 : index
    %382 = vector.load %arg7[%381, %c0_98, %c0_99] : memref<8x8x128xf32, #tpu.memory_space<vmem>>, vector<1x8x128xf32>
    tpu.vector_store %arg7[%381, %c0_98, %c0_99], %380 {strides = array<i32>} : memref<8x8x128xf32, #tpu.memory_space<vmem>>, vector<1x8x128xf32>,
    %c7_i32 = arith.constant 7 : i32
    %383 = vector.shape_cast %379 : vector<8x128xf32> to vector<8x1x128xf32>
    %384 = vector.broadcast %383 : vector<8x1x128xf32> to vector<8x8x128xf32>
    %385 = arith.mulf %0, %384 : vector<8x8x128xf32>
    %cst_100 = arith.constant dense<0.000000e+00> : vector<8x8xf32>
    %386 = vector.multi_reduction <add>, %385, %cst_100 [2] : vector<8x8x128xf32> to vector<8x8xf32>
    %cst_101 = arith.constant dense<0xFF800000> : vector<8xf32>
    %387 = vector.multi_reduction <maximumf>, %386, %cst_101 [1] : vector<8x8xf32> to vector<8xf32>
    %388 = vector.shape_cast %387 : vector<8xf32> to vector<8x1xf32>
    %389 = vector.broadcast %388 : vector<8x1xf32> to vector<8x8xf32>
    %390 = arith.subf %386, %389 : vector<8x8xf32>
    %391 = math.exp %390 : vector<8x8xf32>
    %cst_102 = arith.constant dense<0.000000e+00> : vector<8xf32>
    %392 = vector.multi_reduction <add>, %391, %cst_102 [1] : vector<8x8xf32> to vector<8xf32>
    %393 = vector.shape_cast %392 : vector<8xf32> to vector<8x1xf32>
    %394 = vector.broadcast %393 : vector<8x1xf32> to vector<8x8xf32>
    %395 = arith.divf %391, %394 : vector<8x8xf32>
    %396 = vector.shape_cast %395 : vector<8x8xf32> to vector<8x8x1xf32>
    %397 = vector.broadcast %396 : vector<8x8x1xf32> to vector<8x8x128xf32>
    %398 = arith.mulf %397, %0 : vector<8x8x128xf32>
    %cst_103 = arith.constant dense<0.000000e+00> : vector<8x128xf32>
    %399 = vector.multi_reduction <add>, %398, %cst_103 [1] : vector<8x8x128xf32> to vector<8x128xf32>
    %400 = arith.index_cast %c7_i32 : i32 to index
    %c0_104 = arith.constant 0 : index
    %c0_105 = arith.constant 0 : index
    %401 = vector.load %arg2[%400, %c0_104, %c0_105] : memref<8x8x384xf32, #tpu.memory_space<vmem>>, vector<1x8x384xf32>
    %402 = vector.shape_cast %401 : vector<1x8x384xf32> to vector<8x384xf32>
    %cst_106 = arith.constant dense<0.000000e+00> : vector<8x384xf32>
    %403 = tpu.matmul %399, %1, %cst_106 {dimension_numbers = #tpu.dot_dimension_numbers<[1], [0], [0], [1], [0, 0, 1, 1], [], []>} : vector<8x128xf32>, vector<128x384xf32>, vector<8x384xf32> -> vector<8x384xf32>
    %404 = arith.addf %402, %403 : vector<8x384xf32>
    %cst_107 = arith.constant dense<0.000000e+00> : vector<8x384xf32>
    %405 = tpu.matmul %379, %2, %cst_107 {dimension_numbers = #tpu.dot_dimension_numbers<[1], [0], [0], [1], [0, 0, 1, 1], [], []>} : vector<8x128xf32>, vector<128x384xf32>, vector<8x384xf32> -> vector<8x384xf32>
    %406 = vector.broadcast %3 : vector<1x384xf32> to vector<8x384xf32>
    %407 = arith.addf %405, %406 : vector<8x384xf32>
    %408 = vector.extract_strided_slice %404 {offsets = [0, 0], sizes = [8, 128], strides = [1, 1]} : vector<8x384xf32> to vector<8x128xf32>
    %409 = vector.extract_strided_slice %407 {offsets = [0, 0], sizes = [8, 128], strides = [1, 1]} : vector<8x384xf32> to vector<8x128xf32>
    %410 = arith.addf %408, %409 : vector<8x128xf32>
    %411 = arith.negf %410 : vector<8x128xf32>
    %412 = math.exp %411 : vector<8x128xf32>
    %cst_108 = arith.constant 1.000000e+00 : f32
    %413 = vector.broadcast %cst_108 : f32 to vector<8x128xf32>
    %414 = arith.addf %413, %412 : vector<8x128xf32>
    %415 = arith.divf %413, %414 : vector<8x128xf32>
    %416 = vector.extract_strided_slice %404 {offsets = [0, 128], sizes = [8, 128], strides = [1, 1]} : vector<8x384xf32> to vector<8x128xf32>
    %417 = vector.extract_strided_slice %407 {offsets = [0, 128], sizes = [8, 128], strides = [1, 1]} : vector<8x384xf32> to vector<8x128xf32>
    %418 = arith.addf %416, %417 : vector<8x128xf32>
    %419 = arith.negf %418 : vector<8x128xf32>
    %420 = math.exp %419 : vector<8x128xf32>
    %cst_109 = arith.constant 1.000000e+00 : f32
    %421 = vector.broadcast %cst_109 : f32 to vector<8x128xf32>
    %422 = arith.addf %421, %420 : vector<8x128xf32>
    %423 = arith.divf %421, %422 : vector<8x128xf32>
    %424 = vector.extract_strided_slice %404 {offsets = [0, 256], sizes = [8, 128], strides = [1, 1]} : vector<8x384xf32> to vector<8x128xf32>
    %425 = vector.extract_strided_slice %407 {offsets = [0, 256], sizes = [8, 128], strides = [1, 1]} : vector<8x384xf32> to vector<8x128xf32>
    %426 = arith.mulf %415, %425 : vector<8x128xf32>
    %427 = arith.addf %424, %426 : vector<8x128xf32>
    %428 = math.tanh %427 : vector<8x128xf32>
    %cst_110 = arith.constant 1.000000e+00 : f32
    %429 = vector.broadcast %cst_110 : f32 to vector<8x128xf32>
    %430 = arith.subf %429, %423 : vector<8x128xf32>
    %431 = arith.mulf %430, %428 : vector<8x128xf32>
    %432 = arith.mulf %423, %379 : vector<8x128xf32>
    %433 = arith.addf %431, %432 : vector<8x128xf32>
    %434 = vector.shape_cast %433 : vector<8x128xf32> to vector<1x8x128xf32>
    %435 = arith.index_cast %c7_i32 : i32 to index
    %c0_111 = arith.constant 0 : index
    %c0_112 = arith.constant 0 : index
    %436 = vector.load %arg7[%435, %c0_111, %c0_112] : memref<8x8x128xf32, #tpu.memory_space<vmem>>, vector<1x8x128xf32>
    tpu.vector_store %arg7[%435, %c0_111, %c0_112], %434 {strides = array<i32>} : memref<8x8x128xf32, #tpu.memory_space<vmem>>, vector<1x8x128xf32>,
    %c8_i32 = arith.constant 8 : i32
    return
  }
  func.func @transform_0(%arg0: i32) -> (i32, i32, i32) {
    %c0_i32 = arith.constant 0 : i32
    %c0_i32_0 = arith.constant 0 : i32
    %c0_i32_1 = arith.constant 0 : i32
    return %arg0, %c0_i32, %c0_i32_0 : i32, i32, i32
  }
  func.func @transform_1(%arg0: i32) -> (i32, i32, i32) {
    %c0_i32 = arith.constant 0 : i32
    %c0_i32_0 = arith.constant 0 : i32
    %c0_i32_1 = arith.constant 0 : i32
    return %c0_i32, %arg0, %c0_i32_0 : i32, i32, i32
  }
  func.func @transform_2(%arg0: i32) -> (i32, i32) {
    %c0_i32 = arith.constant 0 : i32
    %c0_i32_0 = arith.constant 0 : i32
    return %arg0, %c0_i32 : i32, i32
  }
  func.func @transform_3(%arg0: i32) -> (i32, i32) {
    %c0_i32 = arith.constant 0 : i32
    %c0_i32_0 = arith.constant 0 : i32
    %c0_i32_1 = arith.constant 0 : i32
    return %c0_i32, %c0_i32_0 : i32, i32
  }
  func.func @transform_4(%arg0: i32) -> (i32, i32) {
    %c0_i32 = arith.constant 0 : i32
    %c0_i32_0 = arith.constant 0 : i32
    %c0_i32_1 = arith.constant 0 : i32
    return %c0_i32, %c0_i32_0 : i32, i32
  }
  func.func @transform_5(%arg0: i32) -> (i32, i32) {
    %c0_i32 = arith.constant 0 : i32
    %c0_i32_0 = arith.constant 0 : i32
    %c0_i32_1 = arith.constant 0 : i32
    return %c0_i32, %c0_i32_0 : i32, i32
  }
  func.func @transform_6(%arg0: i32) -> (i32, i32, i32) {
    %c0_i32 = arith.constant 0 : i32
    %c0_i32_0 = arith.constant 0 : i32
    %c0_i32_1 = arith.constant 0 : i32
    return %c0_i32, %arg0, %c0_i32_0 : i32, i32, i32
  }
}

</mosaic_0001>

<bundles_post_ra>
// kernel: tpu_custom_call.1
= control target key start
LH: loop header
LB: loop body
LE: loop exit
PB: predicated region body
PF: predicated region fallthrough
CT: control target
= control target key end

     0   :  { %11 = vsyncpa [#allocation3], 0  ;;  %s11161_s0 = inlined_call_operand.hbm [shape: f32[8,8,128], index: 0, kind: input, shape index: {}]   ;;  %s11162_s1 = inlined_call_operand.hbm [shape: f32[8,8,384], index: 1, kind: input, shape index: {}]   ;;  %s11163_s2 = inlined_call_operand.hbm [shape: f32[8,128], index: 2, kind: input, shape index: {}]   ;;  %s11164_s3 = inlined_call_operand.hbm [shape: f32[128,384], index: 3, kind: input, shape index: {}]   ;;  %s11165_s4 = inlined_call_operand.hbm [shape: f32[128,384], index: 4, kind: input, shape index: {}]   ;;  %s11166_s5 = inlined_call_operand.vmem [shape: f32[1,384], index: 5, kind: input, shape index: {}]   ;;  %s11167_s6 = inlined_call_operand.hbm [shape: f32[8,8,128], index: 6, kind: output, shape index: {}]  }
   0x1   :  { %12 = vsyncpa [#allocation6], 0 }
   0x2   :  { %13 = vsyncpa [#allocation9], 0 }
   0x3   :  { %14 = vsyncpa [#allocation4], 0  ;;  %s8185_s21 = smov [#allocation5]  }
   0x4   :  { %s32_s22 = sshll.u32 %s8185_s21, 4  ;;  %s33_s22 = int_to_ptr.vmem [resolvable:$true] %s32_s22 }
   0x5   :  { %s8065_s23 = scalar_lea.vmem %s33_s22, 3072  ;;  %p8070_p1 = scmp.lt.s32.totalorder %s33_s22, %s33_s22 }
   0x6   :  { %p8066_p0 = scmp.ne.s32.totalorder %s33_s22, %s8065_s23  ;;  %p8071_p2 = scmp.lt.s32.totalorder %s8065_s23, %s8065_s23 }
   0x8   :  { %p8072_p3 = por %p8071_p2, %p8070_p1 }
   0xa   :  { %p8073_p4 = pnand %p8072_p3, %p8066_p0 }
   0xc   :  { %8076 = shalt.err (!%p8073_p4)
}
   0xd   :  { %s8186_s24 = smov 384   ;;  %s8187_s25 = smov 24  }
   0xe   :  { %38 = dma.hbm_to_vmem [thread:$0]  %s11162_s1, 3072, %s33_s22, [#allocation6], %s8186_s24, %s8186_s24, %s8187_s25  }
   0xf   :  { %s8188_s28 = smov [#allocation8]   ;;  %s8189_s30 = smov [#allocation2]  }
  0x10   :  { %s54_s29 = sshll.u32 %s8188_s28, 4  ;;  %s20_s7 = sshll.u32 %s8189_s30, 4  ;;  %s55_s29 = int_to_ptr.vmem [resolvable:$true] %s54_s29  ;;  %s21_s7 = int_to_ptr.vmem [resolvable:$true] %s20_s7 }
  0x11   :  { %s8085_s8 = scalar_lea.vmem %s55_s29, 6144  ;;  %p8090_p6 = scmp.lt.s32.totalorder %s55_s29, %s55_s29 }
  0x12   :  { %p8086_p5 = scmp.ne.s32.totalorder %s55_s29, %s8085_s8  ;;  %p8091_p7 = scmp.lt.s32.totalorder %s8085_s8, %s8085_s8 }
  0x14   :  { %p8092_p8 = por %p8091_p7, %p8090_p6 }
  0x16   :  { %p8093_p9 = pnand %p8092_p8, %p8086_p5 }
  0x18   :  { %8096 = shalt.err (!%p8093_p9)
}
  0x19   :  { %60 = dma.hbm_to_vmem [thread:$0]  %s11164_s3, 6144, %s55_s29, [#allocation9], %s8186_s24, %s8186_s24, %s8187_s25  }
  0x1a   :  { %s8105_s1 = scalar_lea.vmem %s21_s7, 1024  ;;  %p8110_p11 = scmp.lt.s32.totalorder %s21_s7, %s21_s7 }
  0x1b   :  { %p8106_p10 = scmp.ne.s32.totalorder %s21_s7, %s8105_s1  ;;  %p8111_p12 = scmp.lt.s32.totalorder %s8105_s1, %s8105_s1 }
  0x1d   :  { %p8112_p13 = por %p8111_p12, %p8110_p11 }
  0x1f   :  { %p8113_p0 = pnand %p8112_p13, %p8106_p10 }
  0x21   :  { %8116 = shalt.err (!%p8113_p0)
}
  0x22   :  { %s8190_s11 = smov 128   ;;  %s8191_s12 = smov 8  }
  0x23   :  { %26 = dma.hbm_to_vmem [thread:$0]  %s11161_s0, 1024, %s21_s7, [#allocation3], %s8190_s11, %s8190_s11, %s8191_s12  }
  0x24   :  { %s8192_s15 = smov [#allocation7]   ;;  %s8193_s3 = smov [#allocation10]  }
  0x25   :  { %s45_s16 = sshll.u32 %s8192_s15, 4  ;;  %s66_s17 = sshll.u32 %s8193_s3, 4  ;;  %s46_s16 = int_to_ptr.vmem [resolvable:$true] %s45_s16  ;;  %s67_s17 = int_to_ptr.vmem [resolvable:$true] %s66_s17 }
  0x26   :  { %s8125_s18 = scalar_lea.vmem %s46_s16, 128  ;;  %p8130_p2 = scmp.lt.s32.totalorder %s46_s16, %s46_s16 }
  0x27   :  { %p8126_p1 = scmp.ne.s32.totalorder %s46_s16, %s8125_s18  ;;  %p8131_p3 = scmp.lt.s32.totalorder %s8125_s18, %s8125_s18 }
  0x29   :  { %p8132_p4 = por %p8131_p3, %p8130_p2 }
  0x2b   :  { %p8133_p5 = pnand %p8132_p4, %p8126_p1 }
  0x2d   :  { %8136 = shalt.err (!%p8133_p5)
}
  0x2e   :  { %48 = dma.hbm_to_vmem [thread:$0]  %s11163_s2, 128, %s46_s16, [#allocation6]  }
  0x2f   :  { %s8145_s21 = scalar_lea.vmem %s67_s17, 6144  ;;  %p8150_p7 = scmp.lt.s32.totalorder %s67_s17, %s67_s17 }
  0x30   :  { %p8146_p6 = scmp.ne.s32.totalorder %s67_s17, %s8145_s21  ;;  %p8151_p8 = scmp.lt.s32.totalorder %s8145_s21, %s8145_s21 }
  0x32   :  { %p8152_p9 = por %p8151_p8, %p8150_p7 }
  0x34   :  { %p8153_p10 = pnand %p8152_p9, %p8146_p6 }
  0x36   :  { %8156 = shalt.err (!%p8153_p10)
}
  0x37   :  { %72 = dma.hbm_to_vmem [thread:$0]  %s11165_s4, 6144, %s67_s17, [#allocation9], %s8186_s24, %s8186_s24, %s8187_s25  }
  0x38   :  { %8177 = dma.done.wait [#allocation3], 1024  }
  0x39   :  { %8178 = vsyncadd [#allocation3], 4294966272 }
  0x3a   :  { %8179 = dma.done.wait [#allocation6], 3200  }
  0x3b   :  { %8180 = vsyncadd [#allocation6], 4294964096 }
  0x3c   :  { %8181 = dma.done.wait [#allocation9], 12288  }
  0x3d   :  { %8182 = vsyncadd [#allocation9], 4294955008  ;;  %v201_v0 = vlaneseq  ;;  %v8194_v1 = vmov 1966171168   ;;  %v8269_v8 = vld [vmem:[#allocation7] sm:$0xff]  ;;  %v8285_v20 = vld [vmem:[#allocation2 + $0x10] sm:$0xff] }
  0x3e   :  { %v199_v2 = vunpack.c.l.s4 %v8194_v1  ;;  %v197_v11 = vcombine.high %v8269_v8, %v8269_v8  ;;  %v8280_v15 = vld [vmem:[#allocation2] sm:$0xff]  ;;  %v8287_v21 = vld [vmem:[#allocation2 + $0x8] sm:$0xff]  ;;  %v8292_v27 = vld [vmem:[#allocation2 + $0x18] sm:$0xff]  ;;  %vm352_vm0 = vcmask 1041409   ;;  %vm354_vm1 = vcmask 1042434  }
  0x3f   :  { %v8261_v3 = vshrl.u32 %v201_v0, 7  ;;  %v319_v4 = vand.u32 127, %v201_v0  ;;  %v8299_v34 = vld [vmem:[#allocation2 + $0x20] sm:$0xff]  ;;  %v8303_v38 = vld [vmem:[#allocation2 + $0x28] sm:$0xff]  ;;  %v8307_v41 = vld [vmem:[#allocation2 + $0x30] sm:$0xff]  ;;  %vm356_vm2 = vcmask 1043459  }
  0x40   :  { %v200_v5 = vunpack.c.0.s8 %v199_v2  ;;  %v8311_v44 = vld [vmem:[#allocation2 + $0x38] sm:$0xff]  ;;  %vm358_vm3 = vcmask 1044484   ;;  %vm360_vm4 = vcmask 1045509   ;;  %vm362_vm5 = vcmask 1046534  }
  0x41   :  { %v8264_v6 = vsub.s32 %v319_v4, %v8261_v3  ;;  %v8274_v10 = vsub.s32 0, %v8261_v3  ;;  %vm364_vm6 = vcmask 1047559   ;;  %vm367_vm7 = vcmask 64512  }
  0x42   :  { %v8267_v7 = vsub.s32 %v200_v5, %v8261_v3  ;;  %vm8197_vm8 = vmmov 0  }
  0x43   :  { %11465 = vst [vmem:[#allocation16_spill] sm:$0xff] %v8264_v6  ;;  %11467 = vst [vmem:[#allocation18_spill] sm:$0xff] %v8274_v10 }
  0x44   :  { %11466 = vst [vmem:[#allocation17_spill] sm:$0xff] %v8267_v7  ;;  %v204_v9 = vrot.slane %v8269_v8, %v8267_v7  ;;  %v211_v14 = vrot.slane %v197_v11, %v8267_v7 }
  0x46   :  { %v220_v12 = vrot.slane %v204_v9, %v8267_v7  ;;  %v212_v13 = vcombine.high %v204_v9, %v204_v9  ;;  %v227_v19 = vrot.slane %v211_v14, %v8267_v7  ;;  %v213_v22 = vcombine.high %v211_v14, %v211_v14 }
  0x47   :  { %v8335_v14 = vsub.s32 2, %v8261_v3 }
  0x48   :  { %v249_v16 = vrot.slane %v220_v12, %v8274_v10  ;;  %v242_v17 = vcombine.high %v220_v12, %v220_v12  ;;  %v234_v18 = vrot.slane %v212_v13, %v8267_v7  ;;  %v265_v28 = vrot.slane %v227_v19, %v8274_v10 }
  0x49   :  { %v241_v29 = vrot.slane %v213_v22, %v8267_v7  ;;  %v243_v33 = vcombine.high %v227_v19, %v227_v19  ;;  %v8195_v12 = vmov 0   ;;  %v8332_v13 = vsub.s32 1, %v8261_v3  ;;  %11469 = vst [vmem:[#allocation20_spill] sm:$0xff] %v8335_v14 }
  0x4a   :  { %v286_v23 = vmul.f32 %v249_v16, %v8280_v15  ;;  %v257_v24 = vrot.slane %v242_v17, %v8274_v10  ;;  %v253_v25 = vrot.slane %v234_v18, %v8274_v10  ;;  %v244_v26 = vcombine.high %v234_v18, %v234_v18  ;;  %7390 = vset.pattern.permute.xlu0 %v8195_v12 }
  0x4b   :  { %v269_v36 = vrot.slane %v241_v29, %v8274_v10  ;;  %v245_v37 = vcombine.high %v241_v29, %v241_v29  ;;  %v290_v39 = vmul.f32 %v265_v28, %v8299_v34  ;;  %v273_v40 = vrot.slane %v243_v33, %v8274_v10  ;;  %7389 = vset.pattern.permute.xlu1 %v8195_v12 }
  0x4c   :  { %294 = vadd.xlane.f32.xlu0 %v286_v23  ;;  %v288_v30 = vmul.f32 %v257_v24, %v8285_v20  ;;  %v287_v31 = vmul.f32 %v253_v25, %v8287_v21  ;;  %v261_v32 = vrot.slane %v244_v26, %v8274_v10  ;;  %11468 = vst [vmem:[#allocation19_spill] sm:$0xff] %v8332_v13  ;;  %v8338_v16 = vsub.s32 3, %v8261_v3 }
  0x4d   :  { %v291_v42 = vmul.f32 %v269_v36, %v8303_v38  ;;  %v277_v43 = vrot.slane %v245_v37, %v8274_v10  ;;  %v292_v45 = vmul.f32 %v273_v40, %v8307_v41  ;;  %v8344_v23 = vsub.s32 4, %v8261_v3 }
  0x4e   :  { %298 = vadd.xlane.f32.xlu1 %v288_v30  ;;  %v289_v35 = vmul.f32 %v261_v32, %v8292_v27  ;;  %11470 = vst [vmem:[#allocation21_spill] sm:$0xff] %v8338_v16  ;;  %v8352_v36 = vsub.s32 6, %v8261_v3 }
  0x4f   :  { %v293_v46 = vmul.f32 %v277_v43, %v8311_v44  ;;  %11471 = vst [vmem:[#allocation22_spill] sm:$0xff] %v8344_v23 }
  0x50   :  { %296 = vadd.xlane.f32.xlu0 %v287_v31  ;;  %v8348_v31 = vsub.s32 5, %v8261_v3  ;;  %11473 = vst [vmem:[#allocation24_spill] sm:$0xff] %v8352_v36 }
  0x52   :  { %300 = vadd.xlane.f32.xlu1 %v289_v35  ;;  %11472 = vst [vmem:[#allocation23_spill] sm:$0xff] %v8348_v31 }
  0x54   :  { %302 = vadd.xlane.f32.xlu0 %v290_v39 }
  0x56   :  { %304 = vadd.xlane.f32.xlu1 %v291_v42  ;;  %v8356_v42 = vsub.s32 7, %v8261_v3 }
  0x58   :  { %306 = vadd.xlane.f32.xlu0 %v292_v45  ;;  %11474 = vst [vmem:[#allocation25_spill] sm:$0xff] %v8356_v42 }
  0x5a   :  { %308 = vadd.xlane.f32.xlu1 %v293_v46 }
  0xd5   :  { %v295_v47 = vpop.xlane.xlu0 %294 }
  0xd6   :  { %v323_v50 = vrot.slane %v295_v47, %v8264_v6 }
  0xd7   :  { %v299_v48 = vpop.xlane.xlu1 %298 }
  0xd8   :  { %v331_v52 = vrot.slane %v299_v48, %v8264_v6 }
  0xd9   :  { %v297_v49 = vpop.xlane.xlu0 %296 }
  0xda   :  { %v327_v51 = vrot.slane %v297_v49, %v8264_v6 }
  0xdb   :  { %v301_v53 = vpop.xlane.xlu1 %300 }
  0xdc   :  { %v353_v54 = vsel %vm352_vm0, %v327_v51, %v323_v50  ;;  %v335_v55 = vrot.slane %v301_v53, %v8264_v6 }
  0xdd   :  { %v355_v56 = vsel %vm354_vm1, %v331_v52, %v353_v54  ;;  %v303_v57 = vpop.xlane.xlu0 %302 }
  0xde   :  { %v357_v58 = vsel %vm356_vm2, %v335_v55, %v355_v56  ;;  %v339_v59 = vrot.slane %v303_v57, %v8264_v6 }
  0xdf   :  { %v305_v60 = vpop.xlane.xlu1 %304 }
  0xe0   :  { %v359_v61 = vsel %vm358_vm3, %v339_v59, %v357_v58  ;;  %v343_v62 = vrot.slane %v305_v60, %v8264_v6 }
  0xe1   :  { %v307_v63 = vpop.xlane.xlu0 %306 }
  0xe2   :  { %v347_v0 = vrot.slane %v307_v63, %v8264_v6  ;;  %v361_v1 = vsel %vm360_vm4, %v343_v62, %v359_v61 }
  0xe3   :  { %v309_v2 = vpop.xlane.xlu1 %308 }
  0xe4   :  { %v351_v4 = vrot.slane %v309_v2, %v8264_v6  ;;  %v363_v5 = vsel %vm362_vm5, %v347_v0, %v361_v1 }
  0xe6   :  { %v365_v9 = vsel %vm364_vm6, %v351_v4, %v363_v5 }
  0xe7   :  { %v368_v11 = vsel %vm367_vm7, %v365_v9, -inf }
  0xe8   :  { %369 = vmax.xlane.f32.xlu0 %v368_v11 }
 0x171   :  { %v370_v17 = vpop.xlane.xlu0 %369 }
 0x172   :  { %v375_v18 = vrot.slane %v370_v17, %v8274_v10  ;;  %v379_v19 = vrot.slane %v370_v17, %v8332_v13  ;;  %v383_v22 = vrot.slane %v370_v17, %v8335_v14  ;;  %v387_v24 = vrot.slane %v370_v17, %v8338_v16 }
 0x173   :  { %v391_v32 = vrot.slane %v370_v17, %v8344_v23  ;;  %v395_v37 = vrot.slane %v370_v17, %v8348_v31  ;;  %v399_v43 = vrot.slane %v370_v17, %v8352_v36 }
 0x174   :  { %v412_v25 = vsub.f32 %v295_v47, %v375_v18  ;;  %v413_v26 = vsub.f32 %v297_v49, %v379_v19  ;;  %v414_v28 = vsub.f32 %v299_v48, %v383_v22  ;;  %v415_v33 = vsub.f32 %v301_v53, %v387_v24 }
 0x175   :  { %v416_v39 = vsub.f32 %v303_v57, %v391_v32  ;;  %v417_v45 = vsub.f32 %v305_v60, %v395_v37  ;;  %v403_v47 = vrot.slane %v370_v17, %v8356_v42  ;;  %v418_v48 = vsub.f32 %v307_v63, %v399_v43 }
 0x176   :  { %v420_v29 = vmul.f32 1.442695, %v412_v25  ;;  %v422_v30 = vmul.f32 1.442695, %v413_v26  ;;  %v424_v35 = vmul.f32 1.442695, %v414_v28 }
 0x177   :  { %v426_v40 = vmul.f32 1.442695, %v415_v33  ;;  %v428_v46 = vmul.f32 1.442695, %v416_v39  ;;  %v430_v49 = vmul.f32 1.442695, %v417_v45  ;;  %v419_v52 = vsub.f32 %v309_v2, %v403_v47 }
 0x178   :  { %7392 = vpow2.f32 %v420_v29  ;;  %v432_v53 = vmul.f32 1.442695, %v418_v48 }
 0x179   :  { %7394 = vpow2.f32 %v422_v30  ;;  %v434_v3 = vmul.f32 1.442695, %v419_v52 }
 0x17a   :  { %7396 = vpow2.f32 %v424_v35 }
 0x17b   :  { %7398 = vpow2.f32 %v426_v40 }
 0x17c   :  { %7400 = vpow2.f32 %v428_v46 }
 0x17d   :  { %7402 = vpow2.f32 %v430_v49 }
 0x17e   :  { %7404 = vpow2.f32 %v432_v53 }
 0x17f   :  { %7406 = vpow2.f32 %v434_v3 }
 0x185   :  { %v7393_v50 = vpop.eup %7392 }
 0x186   :  { %v7395_v51 = vpop.eup %7394  ;;  %445 = vperm.xlu1 %7389, %v7393_v50  }
 0x187   :  { %448 = vperm.xlu0 %7390, %v7395_v51   ;;  %v7397_v54 = vpop.eup %7396 }
 0x188   :  { %v7399_v55 = vpop.eup %7398 }
 0x189   :  { %v8360_v56 = vpop.eup %7400 }
 0x18a   :  { %451 = vperm.xlu1 %7389, %v7397_v54   ;;  %v8363_v57 = vpop.eup %7402 }
 0x18b   :  { %v8366_v58 = vpop.eup %7404 }
 0x18c   :  { %v8369_v59 = vpop.eup %7406 }
 0x18e   :  { %454 = vperm.xlu1 %7389, %v7399_v55  }
 0x192   :  { %457 = vperm.xlu1 %7389, %v8360_v56  }
 0x196   :  { %460 = vperm.xlu1 %7389, %v8363_v57  }
 0x19a   :  { %463 = vperm.xlu1 %7389, %v8366_v58  }
 0x19e   :  { %466 = vperm.xlu1 %7389, %v8369_v59  }
 0x201   :  { %v446_v60 = vpop.permute.xlu1 %445 }
 0x202   :  { %v449_v0 = vpop.permute.xlu0 %448  ;;  %v471_v4 = vrot.slane %v446_v60, %v8264_v6 }
 0x203   :  { %v475_v2 = vrot.slane %v449_v0, %v8264_v6  ;;  %v8396_v0 = vld [vmem:[#allocation8 + $0x170] sm:$0xff] }
 0x204   :  { %683 = vmatprep.subr.mxu0 %v8396_v0 }
 0x205   :  { %v452_v61 = vpop.permute.xlu1 %451  ;;  %v500_v17 = vsel %vm352_vm0, %v475_v2, %v471_v4  ;;  %v8404_v2 = vld [vmem:[#allocation8 + $0x158] sm:$0xff] }
 0x206   :  { %v479_v5 = vrot.slane %v452_v61, %v8264_v6  ;;  %v8406_v4 = vld [vmem:[#allocation8 + $0x178] sm:$0xff] }
 0x208   :  { %v501_v19 = vsel %vm354_vm1, %v479_v5, %v500_v17  ;;  %v8410_v5 = vld [vmem:[#allocation8 + $0x150] sm:$0xff]  ;;  %v8424_v17 = vld [vmem:[#allocation8 + $0x128] sm:$0xff] }
 0x209   :  { %v455_v62 = vpop.permute.xlu1 %454 }
 0x20a   :  { %v483_v9 = vrot.slane %v455_v62, %v8264_v6 }
 0x20c   :  { %v502_v24 = vsel %vm356_vm2, %v483_v9, %v501_v19  ;;  %v8415_v9 = vld [vmem:[#allocation8 + $0x160] sm:$0xff] }
 0x20d   :  { %v458_v63 = vpop.permute.xlu1 %457 }
 0x20e   :  { %v487_v11 = vrot.slane %v458_v63, %v8264_v6 }
 0x210   :  { %v503_v25 = vsel %vm358_vm3, %v487_v11, %v502_v24  ;;  %v8419_v11 = vld [vmem:[#allocation8 + $0x138] sm:$0xff]  ;;  %v8433_v24 = vld [vmem:[#allocation8 + $0x110] sm:$0xff] }
 0x211   :  { %v461_v1 = vpop.permute.xlu1 %460 }
 0x212   :  { %v491_v18 = vrot.slane %v461_v1, %v8264_v6 }
 0x214   :  { %v504_v29 = vsel %vm360_vm4, %v491_v18, %v503_v25  ;;  %v8426_v18 = vld [vmem:[#allocation8 + $0x148] sm:$0xff] }
 0x215   :  { %v464_v12 = vpop.permute.xlu1 %463  ;;  %v8439_v25 = vld [vmem:[#allocation8 + $0x108] sm:$0xff] }
 0x216   :  { %v495_v22 = vrot.slane %v464_v12, %v8264_v6 }
 0x218   :  { %v505_v30 = vsel %vm362_vm5, %v495_v22, %v504_v29  ;;  %v8430_v22 = vld [vmem:[#allocation8 + $0x120] sm:$0xff]  ;;  %v8446_v29 = vld [vmem:[#allocation8 + $0x118] sm:$0xff] }
 0x219   :  { %v467_v26 = vpop.permute.xlu1 %466 }
 0x21a   :  { %v499_v28 = vrot.slane %v467_v26, %v8264_v6 }
 0x21c   :  { %v506_v32 = vsel %vm364_vm6, %v499_v28, %v505_v30  ;;  %v8444_v28 = vld [vmem:[#allocation8 + $0xf8] sm:$0xff] }
 0x21d   :  { %v508_v33 = vsel %vm367_vm7, %v506_v32, 0.0  ;;  %v8450_v32 = vld [vmem:[#allocation8 + $0xf0] sm:$0xff] }
 0x21e   :  { %509 = vadd.xlane.f32.xlu1 %v508_v33  ;;  %v8453_v33 = vld [vmem:[#allocation8 + $0xe0] sm:$0xff] }
 0x2a7   :  { %v510_v35 = vpop.xlane.xlu1 %509 }
 0x2a8   :  { %v515_v37 = vrot.slane %v510_v35, %v8274_v10  ;;  %v519_v39 = vrot.slane %v510_v35, %v8332_v13  ;;  %v523_v40 = vrot.slane %v510_v35, %v8335_v14  ;;  %v527_v43 = vrot.slane %v510_v35, %v8338_v16  ;;  %v8553_v16 = vld [vmem:[#allocation8 + $0x10] sm:$0xff] }
 0x2a9   :  { %v531_v45 = vrot.slane %v510_v35, %v8344_v23  ;;  %v535_v48 = vrot.slane %v510_v35, %v8348_v31  ;;  %v539_v53 = vrot.slane %v510_v35, %v8352_v36  ;;  %v543_v61 = vrot.slane %v510_v35, %v8356_v42  ;;  %v8459_v35 = vld [vmem:[#allocation8 + $0xd8] sm:$0xff]  ;;  %v8543_v42 = vld [vmem:[#allocation8 + $0x8] sm:$0xff]  ;;  %v8549_v36 = vld [vmem:[#allocation8] sm:$0xff]  ;;  %11492 = vst [vmem:[#allocation43_spill] sm:$0xff] %v8553_v16 }
 0x2aa   :  { %7408 = vrcp.f32 %v515_v37  ;;  %11489 = vst [vmem:[#allocation40_spill] sm:$0xff] %v8543_v42  ;;  %v8545_v31 = vld [vmem:[#allocation8 + $0x28] sm:$0xff]  ;;  %11491 = vst [vmem:[#allocation42_spill] sm:$0xff] %v8549_v36  ;;  %v8557_v23 = vld [vmem:[#allocation10 + $0x170] sm:$0xff] }
 0x2ab   :  { %7410 = vrcp.f32 %v519_v39  ;;  %v8464_v39 = vld [vmem:[#allocation8 + $0xc8] sm:$0xff]  ;;  %11490 = vst [vmem:[#allocation41_spill] sm:$0xff] %v8545_v31  ;;  %11493 = vst [vmem:[#allocation44_spill] sm:$0xff] %v8557_v23 }
 0x2ac   :  { %7412 = vrcp.f32 %v523_v40  ;;  %v8466_v40 = vld [vmem:[#allocation8 + $0xe8] sm:$0xff] }
 0x2ad   :  { %7414 = vrcp.f32 %v527_v43  ;;  %v8470_v43 = vld [vmem:[#allocation8 + $0xc0] sm:$0xff] }
 0x2ae   :  { %7416 = vrcp.f32 %v531_v45  ;;  %v8473_v45 = vld [vmem:[#allocation8 + $0xb0] sm:$0xff] }
 0x2af   :  { %7418 = vrcp.f32 %v535_v48  ;;  %v8485_v48 = vld [vmem:[#allocation8 + $0xb8] sm:$0xff] }
 0x2b0   :  { %7420 = vrcp.f32 %v539_v53  ;;  %v8495_v53 = vld [vmem:[#allocation8 + $0xa0] sm:$0xff] }
 0x2b1   :  { %7422 = vrcp.f32 %v543_v61  ;;  %v8505_v61 = vld [vmem:[#allocation8 + $0x88] sm:$0xff] }
 0x2b2   :  { %11478 = vst [vmem:[#allocation29_spill] sm:$0xff] %v8505_v61 }
 0x2b7   :  { %v7409_v46 = vpop.eup %7408 }
 0x2b8   :  { %v553_v47 = vmul.f32 %v7409_v46, %v7393_v50  ;;  %v7411_v49 = vpop.eup %7410  ;;  %v8479_v46 = vld [vmem:[#allocation8 + $0xa8] sm:$0xff] }
 0x2b9   :  { %v555_v52 = vmul.f32 %v7411_v49, %v7395_v51  ;;  %v7413_v3 = vpop.eup %7412  ;;  %v8399_v51 = vld [vmem:[#allocation8 + $0x168] sm:$0xff]  ;;  %v8489_v49 = vld [vmem:[#allocation8 + $0x90] sm:$0xff] }
 0x2ba   :  { %570 = vperm.xlu0 %7390, %v553_v47   ;;  %v557_v60 = vmul.f32 %v7413_v3, %v7397_v54  ;;  %v7415_v62 = vpop.eup %7414  ;;  %684 = vmatpush1.msra.mxu0 %v8399_v51  ;;  %v11197_v54 = vmov 0.0   ;;  %v8483_v47 = vld [vmem:[#allocation8 + $0x98] sm:$0xff] }
 0x2bb   :  { %v559_v63 = vmul.f32 %v7415_v62, %v7399_v55  ;;  %v7417_v50 = vpop.eup %7416  ;;  %6815 = vmatprep.subr.mxu1 %v11197_v54  ;;  %685 = vmatprep.subr.mxu0 %v8404_v2  ;;  %v8499_v3 = vld [vmem:[#allocation8 + $0x78] sm:$0xff]  ;;  %v8509_v62 = vld [vmem:[#allocation8 + $0x60] sm:$0xff] }
 0x2bc   :  { %v561_v1 = vmul.f32 %v7417_v50, %v8360_v56  ;;  %v7419_v55 = vpop.eup %7418  ;;  %6816 = vmatpush3.msra.mxu1 %v8406_v4  ;;  %686 = vmatpush1.msra.mxu0 %v8410_v5  ;;  %v8413_v56 = vld [vmem:[#allocation8 + $0x140] sm:$0xff]  ;;  %11476 = vst [vmem:[#allocation27_spill] sm:$0xff] %v8499_v3  ;;  %11479 = vst [vmem:[#allocation30_spill] sm:$0xff] %v8509_v62  ;;  %v8515_v50 = vld [vmem:[#allocation8 + $0x70] sm:$0xff] }
 0x2bd   :  { %6817 = vmatprep.subr.mxu1 %v11197_v54  ;;  %687 = vmatprep.subr.mxu0 %v8413_v56  ;;  %v563_v12 = vmul.f32 %v7419_v55, %v8363_v57  ;;  %v7421_v19 = vpop.eup %7420  ;;  %v8435_v57 = vld [vmem:[#allocation8 + $0x130] sm:$0xff]  ;;  %11481 = vst [vmem:[#allocation32_spill] sm:$0xff] %v8515_v50  ;;  %v8523_v55 = vld [vmem:[#allocation8 + $0x38] sm:$0xff] }
 0x2be   :  { %575 = vperm.xlu0 %7390, %v555_v52   ;;  %6818 = vmatpush3.msra.mxu1 %v8415_v9  ;;  %v565_v26 = vmul.f32 %v7421_v19, %v8366_v58  ;;  %v7423_v30 = vpop.eup %7422  ;;  %v8455_v58 = vld [vmem:[#allocation8 + $0x100] sm:$0xff]  ;;  %11483 = vst [vmem:[#allocation34_spill] sm:$0xff] %v8523_v55  ;;  %v8529_v19 = vld [vmem:[#allocation8 + $0x30] sm:$0xff] }
 0x2bf   :  { %688 = vmatpush1.msra.mxu0 %v8419_v11  ;;  %6819 = vmatprep.subr.mxu1 %v11197_v54  ;;  %v567_v37 = vmul.f32 %v7423_v30, %v8369_v59  ;;  %v8475_v59 = vld [vmem:[#allocation8 + $0xd0] sm:$0xff]  ;;  %v8493_v52 = vld [vmem:[#allocation8 + $0x80] sm:$0xff]  ;;  %11485 = vst [vmem:[#allocation36_spill] sm:$0xff] %v8529_v19 }
 0x2c0   :  { %689 = vmatprep.subr.mxu0 %v8424_v17  ;;  %6820 = vmatpush3.msra.mxu1 %v8426_v18  ;;  %11475 = vst [vmem:[#allocation26_spill] sm:$0xff] %v8493_v52  ;;  %v8535_v30 = vld [vmem:[#allocation8 + $0x40] sm:$0xff] }
 0x2c1   :  { %690 = vmatpush1.msra.mxu0 %v8430_v22  ;;  %6821 = vmatprep.subr.mxu1 %v11197_v54  ;;  %11487 = vst [vmem:[#allocation38_spill] sm:$0xff] %v8535_v30 }
 0x2c2   :  { %580 = vperm.xlu0 %7390, %v557_v60   ;;  %691 = vmatprep.subr.mxu0 %v8433_v24  ;;  %v8503_v60 = vld [vmem:[#allocation8 + $0x68] sm:$0xff] }
 0x2c3   :  { %6822 = vmatpush3.msra.mxu1 %v8435_v57  ;;  %692 = vmatpush1.msra.mxu0 %v8439_v25  ;;  %11477 = vst [vmem:[#allocation28_spill] sm:$0xff] %v8503_v60 }
 0x2c4   :  { %6823 = vmatprep.subr.mxu1 %v11197_v54  ;;  %693 = vmatprep.subr.mxu0 %v8444_v28 }
 0x2c5   :  { %6824 = vmatpush3.msra.mxu1 %v8446_v29  ;;  %694 = vmatpush1.msra.mxu0 %v8450_v32 }
 0x2c6   :  { %585 = vperm.xlu0 %7390, %v559_v63   ;;  %6825 = vmatprep.subr.mxu1 %v11197_v54  ;;  %v8513_v63 = vld [vmem:[#allocation8 + $0x50] sm:$0xff] }
 0x2c7   :  { %695 = vmatprep.subr.mxu0 %v8453_v33  ;;  %6826 = vmatpush3.msra.mxu1 %v8455_v58  ;;  %11480 = vst [vmem:[#allocation31_spill] sm:$0xff] %v8513_v63 }
 0x2c8   :  { %696 = vmatpush1.msra.mxu0 %v8459_v35  ;;  %6827 = vmatprep.subr.mxu1 %v11197_v54 }
 0x2c9   :  { %697 = vmatprep.subr.mxu0 %v8464_v39  ;;  %6828 = vmatpush3.msra.mxu1 %v8466_v40 }
 0x2ca   :  { %590 = vperm.xlu0 %7390, %v561_v1   ;;  %698 = vmatpush1.msra.mxu0 %v8470_v43  ;;  %v8519_v1 = vld [vmem:[#allocation8 + $0x48] sm:$0xff] }
 0x2cb   :  { %6829 = vmatprep.subr.mxu1 %v11197_v54  ;;  %699 = vmatprep.subr.mxu0 %v8473_v45  ;;  %11482 = vst [vmem:[#allocation33_spill] sm:$0xff] %v8519_v1 }
 0x2cc   :  { %6830 = vmatpush3.msra.mxu1 %v8475_v59  ;;  %700 = vmatpush1.msra.mxu0 %v8479_v46 }
 0x2cd   :  { %6831 = vmatprep.subr.mxu1 %v11197_v54  ;;  %701 = vmatprep.subr.mxu0 %v8483_v47 }
 0x2ce   :  { %595 = vperm.xlu0 %7390, %v563_v12   ;;  %6832 = vmatpush3.msra.mxu1 %v8485_v48  ;;  %v8525_v12 = vld [vmem:[#allocation8 + $0x58] sm:$0xff] }
 0x2cf   :  { %702 = vmatpush1.msra.mxu0 %v8489_v49  ;;  %6833 = vmatprep.subr.mxu1 %v11197_v54  ;;  %11484 = vst [vmem:[#allocation35_spill] sm:$0xff] %v8525_v12 }
 0x2d0   :  { %703 = vmatprep.subr.mxu0 %v8493_v52  ;;  %6834 = vmatpush3.msra.mxu1 %v8495_v53 }
 0x2d1   :  { %704 = vmatpush1.msra.mxu0 %v8499_v3  ;;  %6835 = vmatprep.subr.mxu1 %v11197_v54 }
 0x2d2   :  { %600 = vperm.xlu0 %7390, %v565_v26   ;;  %705 = vmatprep.subr.mxu0 %v8503_v60  ;;  %v8533_v26 = vld [vmem:[#allocation8 + $0x20] sm:$0xff] }
 0x2d3   :  { %6836 = vmatpush3.msra.mxu1 %v8505_v61  ;;  %706 = vmatpush1.msra.mxu0 %v8509_v62  ;;  %11486 = vst [vmem:[#allocation37_spill] sm:$0xff] %v8533_v26 }
 0x2d4   :  { %6837 = vmatprep.subr.mxu1 %v11197_v54  ;;  %707 = vmatprep.subr.mxu0 %v8513_v63 }
 0x2d5   :  { %6838 = vmatpush3.msra.mxu1 %v8515_v50  ;;  %708 = vmatpush1.msra.mxu0 %v8519_v1 }
 0x2d6   :  { %605 = vperm.xlu0 %7390, %v567_v37   ;;  %6839 = vmatprep.subr.mxu1 %v11197_v54  ;;  %v8539_v37 = vld [vmem:[#allocation8 + $0x18] sm:$0xff] }
 0x2d7   :  { %709 = vmatprep.subr.mxu0 %v8523_v55  ;;  %6840 = vmatpush3.msra.mxu1 %v8525_v12  ;;  %11488 = vst [vmem:[#allocation39_spill] sm:$0xff] %v8539_v37 }
 0x2d8   :  { %710 = vmatpush1.msra.mxu0 %v8529_v19  ;;  %6841 = vmatprep.subr.mxu1 %v11197_v54 }
 0x2d9   :  { %711 = vmatprep.subr.mxu0 %v8533_v26  ;;  %6842 = vmatpush3.msra.mxu1 %v8535_v30 }
 0x2da   :  { %712 = vmatpush1.msra.mxu0 %v8539_v37  ;;  %6843 = vmatprep.subr.mxu1 %v11197_v54 }
 0x2db   :  { %713 = vmatprep.subr.mxu0 %v8543_v42  ;;  %6844 = vmatpush3.msra.mxu1 %v8545_v31 }
 0x2dc   :  { %714 = vmatpush1.msra.mxu0 %v8549_v36  ;;  %6845 = vmatprep.subr.mxu1 %v11197_v54 }
 0x2dd   :  { %747 = vmatprep.mubr.f32.mxu0 %v11197_v54  ;;  %6846 = vmatpush3.msra.mxu1 %v8553_v16 }
 0x2de   :  { %6847 = vmatprep.mubr.msk.f32.mxu1 %vm8197_vm8, %v11197_v54  ;;  %843 = vmatprep.subr.mxu0 %v8557_v23 }
 0x2df   :  { %6850 = vmatprep.subr.mxu1 %v11197_v54 }
 0x335   :  { %v571_v6 = vpop.permute.xlu0 %570 }
 0x336   :  { %v608_v36 = vmul.f32 %v571_v6, %v8280_v15 }
 0x338   :  { %v616_v26 = vrot.slane %v608_v36, 4 }
 0x339   :  { %v576_v7 = vpop.permute.xlu0 %575 }
 0x33a   :  { %v609_v13 = vmul.f32 %v576_v7, %v8287_v21  ;;  %v617_v12 = vadd.f32 %v616_v26, %v608_v36 }
 0x33c   :  { %v622_v31 = vrot.slane %v609_v13, 4 }
 0x33d   :  { %v581_v14 = vpop.permute.xlu0 %580 }
 0x33e   :  { %v610_v10 = vmul.f32 %v581_v14, %v8285_v20  ;;  %v623_v23 = vadd.f32 %v622_v31, %v609_v13  ;;  %v618_v14 = vrot.slane %v617_v12, 2 }
 0x340   :  { %v628_v37 = vrot.slane %v610_v10, 4  ;;  %v624_v21 = vrot.slane %v623_v23, 2 }
 0x341   :  { %v586_v42 = vpop.permute.xlu0 %585 }
 0x342   :  { %v611_v16 = vmul.f32 %v586_v42, %v8292_v27  ;;  %v629_v55 = vadd.f32 %v628_v37, %v610_v10  ;;  %v625_v60 = vadd.f32 %v624_v21, %v623_v23  ;;  %v619_v10 = vadd.f32 %v618_v14, %v617_v12 }
 0x344   :  { %v634_v30 = vrot.slane %v611_v16, 4  ;;  %v630_v15 = vrot.slane %v629_v55, 2 }
 0x345   :  { %v591_v19 = vpop.permute.xlu0 %590 }
 0x346   :  { %v612_v54 = vmul.f32 %v591_v19, %v8299_v34  ;;  %v635_v1 = vadd.f32 %v634_v30, %v611_v16  ;;  %v631_v34 = vadd.f32 %v630_v15, %v629_v55 }
 0x348   :  { %v640_v63 = vrot.slane %v612_v54, 4  ;;  %v636_v50 = vrot.slane %v635_v1, 2  ;;  %v632_v37 = vrot.slane %v631_v34, 1 }
 0x349   :  { %v596_v7 = vpop.permute.xlu0 %595 }
 0x34a   :  { %v641_v20 = vadd.f32 %v640_v63, %v612_v54  ;;  %v613_v6 = vmul.f32 %v596_v7, %v8303_v38  ;;  %v637_v31 = vadd.f32 %v636_v50, %v635_v1  ;;  %v626_v54 = vrot.slane %v625_v60, 1 }
 0x34b   :  { %v620_v7 = vrot.slane %v619_v10, 1  ;;  %v633_v50 = vadd.f32 %v632_v37, %v631_v34  ;;  %v8597_v37 = vld [vmem:[#allocation10 + $0x138] sm:$0xff] }
 0x34c   :  { %v646_v27 = vrot.slane %v613_v6, 4  ;;  %v642_v42 = vrot.slane %v641_v20, 2  ;;  %v638_v3 = vrot.slane %v637_v31, 1 }
 0x34d   :  { %v601_v62 = vpop.permute.xlu0 %600  ;;  %v621_v1 = vadd.f32 %v620_v7, %v619_v10  ;;  %v8581_v10 = vld [vmem:[#allocation10 + $0x168] sm:$0xff] }
 0x34e   :  { %v647_v61 = vadd.f32 %v646_v27, %v613_v6  ;;  %v614_v13 = vmul.f32 %v601_v62, %v8307_v41  ;;  %v643_v19 = vadd.f32 %v642_v42, %v641_v20  ;;  %v627_v6 = vadd.f32 %v626_v54, %v625_v60  ;;  %v8588_v54 = vld [vmem:[#allocation10 + $0x150] sm:$0xff]  ;;  %v8601_v7 = vld [vmem:[#allocation10 + $0x128] sm:$0xff] }
 0x34f   :  { %v639_v12 = vadd.f32 %v638_v3, %v637_v31 }
 0x350   :  { %v648_v16 = vrot.slane %v647_v61, 2  ;;  %v652_v36 = vrot.slane %v614_v13, 4  ;;  %v644_v21 = vrot.slane %v643_v19, 1 }
 0x351   :  { %v606_v26 = vpop.permute.xlu0 %605 }
 0x352   :  { %v649_v63 = vadd.f32 %v648_v16, %v647_v61  ;;  %v653_v38 = vadd.f32 %v652_v36, %v614_v13  ;;  %v615_v30 = vmul.f32 %v606_v26, %v8311_v44  ;;  %v645_v14 = vadd.f32 %v644_v21, %v643_v19  ;;  %v8584_v19 = vld [vmem:[#allocation10 + $0x158] sm:$0xff]  ;;  %v8607_v21 = vld [vmem:[#allocation10 + $0x120] sm:$0xff] }
 0x353   :  { %v675_v61 = vsel %vm352_vm0, %v627_v6, %v621_v1  ;;  %v8586_v26 = vld [vmem:[#allocation10 + $0x178] sm:$0xff]  ;;  %v8611_v6 = vld [vmem:[#allocation10 + $0x110] sm:$0xff] }
 0x354   :  { %v654_v52 = vrot.slane %v653_v38, 2  ;;  %v658_v23 = vrot.slane %v615_v30, 4  ;;  %v650_v41 = vrot.slane %v649_v63, 1  ;;  %v676_v42 = vsel %vm354_vm1, %v633_v50, %v675_v61  ;;  %v8624_v50 = vld [vmem:[#allocation10 + $0x118] sm:$0xff]  ;;  %v8627_v1 = vld [vmem:[#allocation10 + $0xf0] sm:$0xff]  ;;  %v8644_v61 = vld [vmem:[#allocation10 + $0xe8] sm:$0xff] }
 0x355   :  { %v677_v36 = vsel %vm356_vm2, %v639_v12, %v676_v42  ;;  %v8631_v12 = vld [vmem:[#allocation10 + $0xe0] sm:$0xff]  ;;  %11497 = vst [vmem:[#allocation47_spill] sm:$0xff] %v8644_v61  ;;  %v8654_v42 = vld [vmem:[#allocation10 + $0xd0] sm:$0xff] }
 0x356   :  { %v655_v62 = vadd.f32 %v654_v52, %v653_v38  ;;  %v659_v55 = vadd.f32 %v658_v23, %v615_v30  ;;  %v651_v27 = vadd.f32 %v650_v41, %v649_v63  ;;  %v678_v60 = vsel %vm358_vm3, %v645_v14, %v677_v36  ;;  %v8591_v63 = vld [vmem:[#allocation10 + $0x140] sm:$0xff]  ;;  %v8604_v23 = vld [vmem:[#allocation10 + $0x148] sm:$0xff]  ;;  %v8614_v41 = vld [vmem:[#allocation10 + $0x130] sm:$0xff]  ;;  %11500 = vst [vmem:[#allocation50_spill] sm:$0xff] %v8654_v42 }
 0x357   :  { %v11494_v38 = vmov 0.0   ;;  %v8594_v30 = vld [vmem:[#allocation10 + $0x160] sm:$0xff]  ;;  %v8641_v14 = vld [vmem:[#allocation10 + $0xc8] sm:$0xff]  ;;  %v8664_v36 = vld [vmem:[#allocation10 + $0xb8] sm:$0xff] }
 0x358   :  { %v656_v20 = vrot.slane %v655_v62, 1  ;;  %v660_v15 = vrot.slane %v659_v55, 2  ;;  %v679_v34 = vsel %vm360_vm4, %v651_v27, %v678_v60  ;;  %11496 = vst [vmem:[#allocation46_spill] sm:$0xff] %v8641_v14  ;;  %v8647_v27 = vld [vmem:[#allocation10 + $0xc0] sm:$0xff]  ;;  %11503 = vst [vmem:[#allocation53_spill] sm:$0xff] %v8664_v36  ;;  %v8667_v60 = vld [vmem:[#allocation10 + $0x90] sm:$0xff] }
 0x359   :  { %11498 = vst [vmem:[#allocation48_spill] sm:$0xff] %v8647_v27  ;;  %11504 = vst [vmem:[#allocation54_spill] sm:$0xff] %v8667_v60 }
 0x35a   :  { %v661_v44 = vadd.f32 %v660_v15, %v659_v55  ;;  %v657_v13 = vadd.f32 %v656_v20, %v655_v62  ;;  %v8617_v62 = vld [vmem:[#allocation10 + $0x108] sm:$0xff]  ;;  %v8621_v55 = vld [vmem:[#allocation10 + $0xf8] sm:$0xff]  ;;  %v8634_v20 = vld [vmem:[#allocation10 + $0x100] sm:$0xff] }
 0x35b   :  { %v8637_v15 = vld [vmem:[#allocation10 + $0xd8] sm:$0xff] }
 0x35c   :  { %v662_v16 = vrot.slane %v661_v44, 1  ;;  %v680_v3 = vsel %vm362_vm5, %v657_v13, %v679_v34  ;;  %11495 = vst [vmem:[#allocation45_spill] sm:$0xff] %v8637_v15  ;;  %v8657_v13 = vld [vmem:[#allocation10 + $0xa8] sm:$0xff]  ;;  %v8674_v34 = vld [vmem:[#allocation10 + $0xa0] sm:$0xff] }
 0x35d   :  { %11501 = vst [vmem:[#allocation51_spill] sm:$0xff] %v8657_v13  ;;  %11506 = vst [vmem:[#allocation56_spill] sm:$0xff] %v8674_v34 }
 0x35e   :  { %v663_v52 = vadd.f32 %v662_v16, %v661_v44  ;;  %v8651_v44 = vld [vmem:[#allocation10 + $0xb0] sm:$0xff]  ;;  %v8661_v16 = vld [vmem:[#allocation10 + $0x98] sm:$0xff] }
 0x35f   :  { %11499 = vst [vmem:[#allocation49_spill] sm:$0xff] %v8651_v44  ;;  %11502 = vst [vmem:[#allocation52_spill] sm:$0xff] %v8661_v16 }
 0x360   :  { %v681_v31 = vsel %vm364_vm6, %v663_v52, %v680_v3  ;;  %v8671_v52 = vld [vmem:[#allocation10 + $0x80] sm:$0xff]  ;;  %v8677_v3 = vld [vmem:[#allocation10 + $0x78] sm:$0xff] }
 0x361   :  { %748 = vmatmul.mubr.f32.vlgmr.msra.gmra.mxu0 %v681_v31  ;;  %6848 = vmatmul.mubr.f32.vlgmr.msra.gmra.mxu1 %v681_v31  ;;  %11505 = vst [vmem:[#allocation55_spill] sm:$0xff] %v8671_v52  ;;  %11507 = vst [vmem:[#allocation57_spill] sm:$0xff] %v8677_v3  ;;  %v8681_v31 = vld [vmem:[#allocation10 + $0x68] sm:$0xff] }
 0x362   :  { %844 = vmatpush1.msra.mxu0 %v8581_v10  ;;  %907 = vmatprep.mubr.f32.mxu0 %v11494_v38  ;;  %11508 = vst [vmem:[#allocation58_spill] sm:$0xff] %v8681_v31 }
 0x363   :  { %845 = vmatprep.subr.mxu0 %v8584_v19  ;;  %6851 = vmatpush3.msra.mxu1 %v8586_v26 }
 0x364   :  { %846 = vmatpush1.msra.mxu0 %v8588_v54  ;;  %6852 = vmatprep.subr.mxu1 %v11494_v38 }
 0x365   :  { %847 = vmatprep.subr.mxu0 %v8591_v63  ;;  %6853 = vmatpush3.msra.mxu1 %v8594_v30 }
 0x366   :  { %848 = vmatpush1.msra.mxu0 %v8597_v37  ;;  %6854 = vmatprep.subr.mxu1 %v11494_v38 }
 0x367   :  { %849 = vmatprep.subr.mxu0 %v8601_v7  ;;  %6855 = vmatpush3.msra.mxu1 %v8604_v23 }
 0x368   :  { %850 = vmatpush1.msra.mxu0 %v8607_v21  ;;  %6856 = vmatprep.subr.mxu1 %v11494_v38 }
 0x369   :  { %851 = vmatprep.subr.mxu0 %v8611_v6  ;;  %6857 = vmatpush3.msra.mxu1 %v8614_v41 }
 0x36a   :  { %852 = vmatpush1.msra.mxu0 %v8617_v62  ;;  %6858 = vmatprep.subr.mxu1 %v11494_v38 }
 0x36b   :  { %853 = vmatprep.subr.mxu0 %v8621_v55  ;;  %6859 = vmatpush3.msra.mxu1 %v8624_v50 }
 0x36c   :  { %854 = vmatpush1.msra.mxu0 %v8627_v1  ;;  %6860 = vmatprep.subr.mxu1 %v11494_v38 }
 0x36d   :  { %855 = vmatprep.subr.mxu0 %v8631_v12  ;;  %6861 = vmatpush3.msra.mxu1 %v8634_v20 }
 0x36e   :  { %856 = vmatpush1.msra.mxu0 %v8637_v15  ;;  %6862 = vmatprep.subr.mxu1 %v11494_v38 }
 0x36f   :  { %857 = vmatprep.subr.mxu0 %v8641_v14  ;;  %6863 = vmatpush3.msra.mxu1 %v8644_v61  ;;  %v11556_v14 = vld [vmem:[#allocation25_spill] sm:$0xff] }
 0x370   :  { %858 = vmatpush1.msra.mxu0 %v8647_v27  ;;  %6864 = vmatprep.subr.mxu1 %v11494_v38 }
 0x371   :  { %859 = vmatprep.subr.mxu0 %v8651_v44  ;;  %6865 = vmatpush3.msra.mxu1 %v8654_v42  ;;  %v8684_v44 = vld [vmem:[#allocation10 + $0x88] sm:$0xff] }
 0x372   :  { %860 = vmatpush1.msra.mxu0 %v8657_v13  ;;  %6866 = vmatprep.subr.mxu1 %v11494_v38  ;;  %11509 = vst [vmem:[#allocation59_spill] sm:$0xff] %v8684_v44  ;;  %v8687_v13 = vld [vmem:[#allocation10 + $0x60] sm:$0xff] }
 0x373   :  { %861 = vmatprep.subr.mxu0 %v8661_v16  ;;  %6867 = vmatpush3.msra.mxu1 %v8664_v36  ;;  %11510 = vst [vmem:[#allocation60_spill] sm:$0xff] %v8687_v13  ;;  %v8691_v16 = vld [vmem:[#allocation10 + $0x50] sm:$0xff] }
 0x374   :  { %862 = vmatpush1.msra.mxu0 %v8667_v60  ;;  %6868 = vmatprep.subr.mxu1 %v11494_v38  ;;  %11511 = vst [vmem:[#allocation61_spill] sm:$0xff] %v8691_v16  ;;  %v8694_v36 = vld [vmem:[#allocation10 + $0x70] sm:$0xff]  ;;  %v8697_v60 = vld [vmem:[#allocation10 + $0x48] sm:$0xff] }
 0x375   :  { %863 = vmatprep.subr.mxu0 %v8671_v52  ;;  %6869 = vmatpush3.msra.mxu1 %v8674_v34  ;;  %11512 = vst [vmem:[#allocation62_spill] sm:$0xff] %v8694_v36  ;;  %11513 = vst [vmem:[#allocation63_spill] sm:$0xff] %v8697_v60  ;;  %v8701_v52 = vld [vmem:[#allocation10 + $0x38] sm:$0xff] }
 0x376   :  { %864 = vmatpush1.msra.mxu0 %v8677_v3  ;;  %6870 = vmatprep.subr.mxu1 %v11494_v38  ;;  %11514 = vst [vmem:[#allocation64_spill] sm:$0xff] %v8701_v52  ;;  %v8704_v34 = vld [vmem:[#allocation10 + $0x58] sm:$0xff]  ;;  %v8707_v3 = vld [vmem:[#allocation10 + $0x30] sm:$0xff] }
 0x377   :  { %865 = vmatprep.subr.mxu0 %v8681_v31  ;;  %6871 = vmatpush3.msra.mxu1 %v8684_v44  ;;  %11515 = vst [vmem:[#allocation65_spill] sm:$0xff] %v8704_v34  ;;  %11516 = vst [vmem:[#allocation66_spill] sm:$0xff] %v8707_v3  ;;  %v8711_v31 = vld [vmem:[#allocation10 + $0x20] sm:$0xff] }
 0x378   :  { %866 = vmatpush1.msra.mxu0 %v8687_v13  ;;  %6872 = vmatprep.subr.mxu1 %v11494_v38  ;;  %11517 = vst [vmem:[#allocation67_spill] sm:$0xff] %v8711_v31  ;;  %v8714_v44 = vld [vmem:[#allocation10 + $0x40] sm:$0xff]  ;;  %v8717_v13 = vld [vmem:[#allocation10 + $0x18] sm:$0xff] }
 0x379   :  { %867 = vmatprep.subr.mxu0 %v8691_v16  ;;  %6873 = vmatpush3.msra.mxu1 %v8694_v36  ;;  %11518 = vst [vmem:[#allocation68_spill] sm:$0xff] %v8714_v44  ;;  %11519 = vst [vmem:[#allocation69_spill] sm:$0xff] %v8717_v13  ;;  %v8721_v16 = vld [vmem:[#allocation10 + $0x8] sm:$0xff] }
 0x37a   :  { %868 = vmatpush1.msra.mxu0 %v8697_v60  ;;  %6874 = vmatprep.subr.mxu1 %v11494_v38  ;;  %11520 = vst [vmem:[#allocation70_spill] sm:$0xff] %v8721_v16  ;;  %v8724_v36 = vld [vmem:[#allocation10 + $0x28] sm:$0xff]  ;;  %v8727_v60 = vld [vmem:[#allocation10] sm:$0xff] }
 0x37b   :  { %869 = vmatprep.subr.mxu0 %v8701_v52  ;;  %6875 = vmatpush3.msra.mxu1 %v8704_v34  ;;  %11521 = vst [vmem:[#allocation71_spill] sm:$0xff] %v8724_v36  ;;  %11522 = vst [vmem:[#allocation72_spill] sm:$0xff] %v8727_v60  ;;  %v8732_v52 = vld [vmem:[#allocation10 + $0x10] sm:$0xff] }
 0x37c   :  { %870 = vmatpush1.msra.mxu0 %v8707_v3  ;;  %6876 = vmatprep.subr.mxu1 %v11494_v38  ;;  %11523 = vst [vmem:[#allocation73_spill] sm:$0xff] %v8732_v52 }
 0x37d   :  { %871 = vmatprep.subr.mxu0 %v8711_v31  ;;  %6877 = vmatpush3.msra.mxu1 %v8714_v44 }
 0x37e   :  { %872 = vmatpush1.msra.mxu0 %v8717_v13  ;;  %6878 = vmatprep.subr.mxu1 %v11494_v38 }
 0x37f   :  { %873 = vmatprep.subr.mxu0 %v8721_v16  ;;  %6879 = vmatpush3.msra.mxu1 %v8724_v36  ;;  %v11552_v36 = vld [vmem:[#allocation22_spill] sm:$0xff] }
 0x380   :  { %874 = vmatpush1.msra.mxu0 %v8727_v60  ;;  %6880 = vmatprep.subr.mxu1 %v11494_v38 }
 0x381   :  { %908 = vmatmul.mubr.f32.vlgmr.msra.gmra.mxu0 %v8269_v8  ;;  %6881 = vmatpush3.msra.mxu1 %v8732_v52 }
 0x382   :  { %6882 = vmatprep.mubr.msk.f32.mxu1 %vm8197_vm8, %v11494_v38  ;;  %1484 = vmatprep.subr.mxu0 %v8396_v0  ;;  %v11525_v0 = vld [vmem:[#allocation27_spill] sm:$0xff] }
 0x383   :  { %6883 = vmatmul.mubr.f32.vlgmr.msra.gmra.mxu1 %v8269_v8  ;;  %6885 = vmatprep.subr.mxu1 %v11494_v38  ;;  %v11524_v8 = vld [vmem:[#allocation26_spill] sm:$0xff] }
 0x384   :  { %1485 = vmatpush1.msra.mxu0 %v8399_v51  ;;  %6886 = vmatpush3.msra.mxu1 %v8406_v4  ;;  %v11526_v51 = vld [vmem:[#allocation29_spill] sm:$0xff]  ;;  %v11528_v4 = vld [vmem:[#allocation30_spill] sm:$0xff] }
 0x385   :  { %1486 = vmatprep.subr.mxu0 %v8404_v2  ;;  %6887 = vmatprep.subr.mxu1 %v11494_v38  ;;  %v11527_v2 = vld [vmem:[#allocation28_spill] sm:$0xff] }
 0x386   :  { %1487 = vmatpush1.msra.mxu0 %v8410_v5  ;;  %6888 = vmatpush3.msra.mxu1 %v8415_v9  ;;  %v11529_v5 = vld [vmem:[#allocation32_spill] sm:$0xff]  ;;  %v11531_v9 = vld [vmem:[#allocation33_spill] sm:$0xff] }
 0x387   :  { %1488 = vmatprep.subr.mxu0 %v8413_v56  ;;  %6889 = vmatprep.subr.mxu1 %v11494_v38  ;;  %v11530_v56 = vld [vmem:[#allocation31_spill] sm:$0xff] }
 0x388   :  { %1489 = vmatpush1.msra.mxu0 %v8419_v11  ;;  %6890 = vmatpush3.msra.mxu1 %v8426_v18  ;;  %v11532_v11 = vld [vmem:[#allocation35_spill] sm:$0xff]  ;;  %v11534_v18 = vld [vmem:[#allocation36_spill] sm:$0xff] }
 0x389   :  { %1490 = vmatprep.subr.mxu0 %v8424_v17  ;;  %6891 = vmatprep.subr.mxu1 %v11494_v38  ;;  %v11533_v17 = vld [vmem:[#allocation34_spill] sm:$0xff] }
 0x38a   :  { %1491 = vmatpush1.msra.mxu0 %v8430_v22  ;;  %6892 = vmatpush3.msra.mxu1 %v8435_v57  ;;  %v11535_v22 = vld [vmem:[#allocation38_spill] sm:$0xff]  ;;  %v11537_v57 = vld [vmem:[#allocation39_spill] sm:$0xff] }
 0x38b   :  { %1492 = vmatprep.subr.mxu0 %v8433_v24  ;;  %6893 = vmatprep.subr.mxu1 %v11494_v38  ;;  %v11536_v24 = vld [vmem:[#allocation37_spill] sm:$0xff] }
 0x38c   :  { %1493 = vmatpush1.msra.mxu0 %v8439_v25  ;;  %6894 = vmatpush3.msra.mxu1 %v8446_v29  ;;  %v11538_v25 = vld [vmem:[#allocation41_spill] sm:$0xff]  ;;  %v11540_v29 = vld [vmem:[#allocation42_spill] sm:$0xff] }
 0x38d   :  { %1494 = vmatprep.subr.mxu0 %v8444_v28  ;;  %6895 = vmatprep.subr.mxu1 %v11494_v38  ;;  %v11539_v28 = vld [vmem:[#allocation40_spill] sm:$0xff] }
 0x38e   :  { %1495 = vmatpush1.msra.mxu0 %v8450_v32  ;;  %6896 = vmatpush3.msra.mxu1 %v8455_v58  ;;  %v11541_v32 = vld [vmem:[#allocation43_spill] sm:$0xff] }
 0x38f   :  { %1496 = vmatprep.subr.mxu0 %v8453_v33  ;;  %6897 = vmatprep.subr.mxu1 %v11494_v38  ;;  %v11542_v33 = vld [vmem:[#allocation44_spill] sm:$0xff] }
 0x390   :  { %1497 = vmatpush1.msra.mxu0 %v8459_v35  ;;  %6898 = vmatpush3.msra.mxu1 %v8466_v40  ;;  %v194_v40 = vld [vmem:[%s11166_s5] sm:$0x7]  ;;  %s8198_s5 = smov [#allocation11]  }
 0x391   :  { %1498 = vmatprep.subr.mxu0 %v8464_v39  ;;  %6899 = vmatprep.subr.mxu1 %v11494_v38  ;;  %s6513_s23 = sshll.u32 %s8198_s5, 4  ;;  %s6514_s23 = int_to_ptr.vmem [resolvable:$true] %s6513_s23 }
 0x392   :  { %1499 = vmatpush1.msra.mxu0 %v8470_v43  ;;  %6900 = vmatpush3.msra.mxu1 %v8475_v59  ;;  %v11543_v43 = vld [vmem:[#allocation18_spill] sm:$0xff]  ;;  %v664_v59 = vld [vmem:[#allocation5] sm:$0xff]  ;;  %s8157_s24 = scalar_lea.vmem %s6514_s23, 1024  ;;  %p8162_p12 = scmp.lt.s32.totalorder %s6514_s23, %s6514_s23 }
 0x393   :  { %1500 = vmatprep.subr.mxu0 %v8473_v45  ;;  %6901 = vmatprep.subr.mxu1 %v11494_v38  ;;  %v8816_v45 = vrot.slane %v194_v40, %v11543_v43  ;;  %p8158_p11 = scmp.ne.s32.totalorder %s6514_s23, %s8157_s24  ;;  %p8163_p13 = scmp.lt.s32.totalorder %s8157_s24, %s8157_s24 }
 0x394   :  { %1501 = vmatpush1.msra.mxu0 %v8479_v46  ;;  %6902 = vmatpush3.msra.mxu1 %v8485_v48 }
 0x395   :  { %1502 = vmatprep.subr.mxu0 %v8483_v47  ;;  %6903 = vmatprep.subr.mxu1 %v11494_v38  ;;  %11544 = vst [vmem:[#allocation26_spill] sm:$0xff] %v8816_v45  ;;  %p8164_p0 = por %p8163_p13, %p8162_p12 }
 0x396   :  { %1503 = vmatpush1.msra.mxu0 %v8489_v49  ;;  %6904 = vmatpush3.msra.mxu1 %v8495_v53  ;;  %v11545_v53 = vld [vmem:[#allocation19_spill] sm:$0xff] }
 0x397   :  { %1504 = vmatprep.subr.mxu0 %v11524_v8  ;;  %6905 = vmatprep.subr.mxu1 %v11494_v38  ;;  %v8820_v8 = vrot.slane %v194_v40, %v11545_v53  ;;  %p8165_p1 = pnand %p8164_p0, %p8158_p11 }
 0x398   :  { %1505 = vmatpush1.msra.mxu0 %v11525_v0  ;;  %6906 = vmatpush3.msra.mxu1 %v11526_v51 }
 0x399   :  { %1506 = vmatprep.subr.mxu0 %v11527_v2  ;;  %6907 = vmatprep.subr.mxu1 %v11494_v38  ;;  %11546 = vst [vmem:[#allocation27_spill] sm:$0xff] %v8820_v8 }
 0x39a   :  { %1507 = vmatpush1.msra.mxu0 %v11528_v4  ;;  %6908 = vmatpush3.msra.mxu1 %v11529_v5  ;;  %v665_v4 = vld [vmem:[#allocation5 + $0x8] sm:$0xff] }
 0x39b   :  { %1508 = vmatprep.subr.mxu0 %v11530_v56  ;;  %6909 = vmatprep.subr.mxu1 %v11494_v38 }
 0x39c   :  { %1509 = vmatpush1.msra.mxu0 %v11531_v9  ;;  %6910 = vmatpush3.msra.mxu1 %v11532_v11 }
 0x39d   :  { %1510 = vmatprep.subr.mxu0 %v11533_v17  ;;  %6911 = vmatprep.subr.mxu1 %v11494_v38 }
 0x39e   :  { %1511 = vmatpush1.msra.mxu0 %v11534_v18  ;;  %6912 = vmatpush3.msra.mxu1 %v11535_v22 }
 0x39f   :  { %1512 = vmatprep.subr.mxu0 %v11536_v24  ;;  %6913 = vmatprep.subr.mxu1 %v11494_v38 }
 0x3a0   :  { %1513 = vmatpush1.msra.mxu0 %v11537_v57  ;;  %6914 = vmatpush3.msra.mxu1 %v11538_v25  ;;  %v11547_v57 = vld [vmem:[#allocation20_spill] sm:$0xff] }
 0x3a1   :  { %1514 = vmatprep.subr.mxu0 %v11539_v28  ;;  %6915 = vmatprep.subr.mxu1 %v11494_v38  ;;  %v8824_v25 = vrot.slane %v194_v40, %v11547_v57  ;;  %v11550_v40 = vld [vmem:[#allocation17_spill] sm:$0xff] }
 0x3a2   :  { %1515 = vmatpush1.msra.mxu0 %v11540_v29  ;;  %6916 = vmatpush3.msra.mxu1 %v11541_v32 }
 0x3a3   :  { %1548 = vmatprep.mubr.f32.mxu0 %v11494_v38  ;;  %6917 = vmatprep.mubr.msk.f32.mxu1 %vm8197_vm8, %v11494_v38  ;;  %11548 = vst [vmem:[#allocation29_spill] sm:$0xff] %v8824_v25 }
 0x3a4   :  { %1628 = vmatprep.subr.mxu0 %v11542_v33  ;;  %6920 = vmatprep.subr.mxu1 %v11494_v38  ;;  %v666_v33 = vld [vmem:[#allocation5 + $0x10] sm:$0xff] }
 0x421   :  { %v820_v58 = vpop.f32.mrf.mxu1  ;;  %v749_v39 = vpop.f32.mrf.mxu0 }
 0x422   :  { %v824_v48 = vadd.f32 %v749_v39, %v664_v59  ;;  %v826_v39 = vadd.f32 %v820_v58, %v666_v33 }
 0x423   :  { %v6849_v35 = vpop.f32.mrf.mxu1  ;;  %v751_v46 = vpop.f32.mrf.mxu0 }
 0x424   :  { %v825_v11 = vadd.f32 %v751_v46, %v665_v4 }
 0x441   :  { %v909_v47 = vpop.f32.mrf.mxu0 }
 0x442   :  { %v910_v49 = vadd.f32 %v909_v47, %v8816_v45 }
 0x443   :  { %v911_v0 = vpop.f32.mrf.mxu0  ;;  %v980_v51 = vpop.f32.mrf.mxu1 }
 0x444   :  { %v984_v2 = vadd.f32 %v910_v49, %v824_v48  ;;  %v912_v9 = vadd.f32 %v911_v0, %v8820_v8  ;;  %v981_v32 = vadd.f32 %v980_v51, %v8824_v25  ;;  %v7728_v0 = vld [vmem:[#allocation7] sm:$0xff] }
 0x445   :  { %v6884_v5 = vpop.f32.mrf.mxu1 }
 0x446   :  { %v6527_v56 = vmul.f32 -1.442695, %v984_v2  ;;  %v991_v17 = vadd.f32 %v912_v9, %v825_v11 }
 0x448   :  { %7424 = vpow2.f32 %v6527_v56  ;;  %v6528_v18 = vmul.f32 -1.442695, %v991_v17 }
 0x44a   :  { %7426 = vpow2.f32 %v6528_v18 }
 0x455   :  { %v7425_v22 = vpop.eup %7424 }
 0x456   :  { %v988_v24 = vadd.f32 1.0, %v7425_v22 }
 0x457   :  { %v7427_v28 = vpop.eup %7426 }
 0x458   :  { %7428 = vrcp.f32 %v988_v24  ;;  %v995_v29 = vadd.f32 1.0, %v7427_v28  ;;  %v8838_v24 = vld [vmem:[#allocation2] sm:$0xff] }
 0x45a   :  { %7430 = vrcp.f32 %v995_v29 }
 0x465   :  { %v7429_v35 = vpop.eup %7428 }
 0x466   :  { %v998_v59 = vmul.f32 %v7429_v35, %v981_v32  ;;  %v8844_v35 = vld [vmem:[#allocation2 + $0x8] sm:$0xff] }
 0x467   :  { %v7431_v47 = vpop.eup %7430 }
 0x468   :  { %v999_v46 = vadd.f32 %v998_v59, %v826_v39  ;;  %v1001_v48 = vsub.f32 1.0, %v7431_v47  ;;  %v1003_v2 = vmul.f32 %v7728_v0, %v7431_v47  ;;  %v8847_v59 = vld [vmem:[#allocation2 + $0x10] sm:$0xff]  ;;  %v8851_v0 = vld [vmem:[#allocation2 + $0x20] sm:$0xff] }
 0x46a   :  { %7432 = vtanh.f32 %v999_v46 }
 0x477   :  { %v7433_v49 = vpop.eup %7432 }
 0x478   :  { %v1002_v4 = vmul.f32 %v7433_v49, %v1001_v48 }
 0x47a   :  { %v8827_v5 = vadd.f32 %v1003_v2, %v1002_v4 }
 0x47c   :  { %11549 = vst [vmem:[#allocation28_spill] sm:$0xff] %v8827_v5  ;;  %1005 = vst [vmem:[#allocation11] sm:$0xff] %v8827_v5  ;;  %v1014_v51 = vrot.slane %v8827_v5, %v11550_v40  ;;  %v1007_v58 = vcombine.high %v8827_v5, %v8827_v5 }
 0x47e   :  { %v1030_v56 = vrot.slane %v1014_v51, %v11550_v40  ;;  %v1022_v9 = vcombine.high %v1014_v51, %v1014_v51  ;;  %v1021_v11 = vrot.slane %v1007_v58, %v11550_v40  ;;  %v8856_v58 = vld [vmem:[#allocation2 + $0x18] sm:$0xff] }
 0x480   :  { %v1059_v17 = vrot.slane %v1030_v56, %v11543_v43  ;;  %v1044_v18 = vrot.slane %v1022_v9, %v11550_v40  ;;  %v1052_v22 = vcombine.high %v1030_v56, %v1030_v56  ;;  %v1037_v33 = vrot.slane %v1021_v11, %v11550_v40 }
 0x481   :  { %v1023_v49 = vcombine.high %v1021_v11, %v1021_v11 }
 0x482   :  { %v1096_v28 = vmul.f32 %v8838_v24, %v1059_v17  ;;  %v1063_v29 = vrot.slane %v1044_v18, %v11543_v43  ;;  %v1067_v32 = vrot.slane %v1052_v22, %v11543_v43  ;;  %v1075_v47 = vrot.slane %v1037_v33, %v11543_v43 }
 0x483   :  { %v1054_v48 = vcombine.high %v1044_v18, %v1044_v18  ;;  %v1051_v51 = vrot.slane %v1023_v49, %v11550_v40  ;;  %v1053_v17 = vcombine.high %v1037_v33, %v1037_v33  ;;  %v8860_v18 = vld [vmem:[#allocation2 + $0x28] sm:$0xff] }
 0x484   :  { %1104 = vadd.xlane.f32.xlu1 %v1096_v28  ;;  %v1097_v39 = vmul.f32 %v8844_v35, %v1063_v29  ;;  %v1098_v46 = vmul.f32 %v8847_v59, %v1067_v32  ;;  %v1100_v2 = vmul.f32 %v8851_v0, %v1075_v47  ;;  %v8864_v29 = vld [vmem:[#allocation2 + $0x30] sm:$0xff] }
 0x485   :  { %v1071_v4 = vrot.slane %v1054_v48, %v11543_v43  ;;  %v1079_v9 = vrot.slane %v1051_v51, %v11543_v43  ;;  %v1083_v22 = vrot.slane %v1053_v17, %v11543_v43  ;;  %v1055_v28 = vcombine.high %v1051_v51, %v1051_v51 }
 0x486   :  { %1106 = vadd.xlane.f32.xlu0 %v1097_v39 }
 0x487   :  { %v1099_v56 = vmul.f32 %v8856_v58, %v1071_v4  ;;  %v1101_v11 = vmul.f32 %v8860_v18, %v1079_v9  ;;  %v1102_v32 = vmul.f32 %v8864_v29, %v1083_v22  ;;  %v1087_v39 = vrot.slane %v1055_v28, %v11543_v43 }
 0x488   :  { %1108 = vadd.xlane.f32.xlu1 %v1098_v46  ;;  %v8868_v46 = vld [vmem:[#allocation2 + $0x38] sm:$0xff] }
 0x489   :  { %v1103_v33 = vmul.f32 %v8868_v46, %v1087_v39 }
 0x48c   :  { %1112 = vadd.xlane.f32.xlu1 %v1100_v2 }
 0x490   :  { %1110 = vadd.xlane.f32.xlu1 %v1099_v56  ;;  %v11551_v56 = vld [vmem:[#allocation16_spill] sm:$0xff] }
 0x494   :  { %1114 = vadd.xlane.f32.xlu1 %v1101_v11 }
 0x498   :  { %1116 = vadd.xlane.f32.xlu1 %v1102_v32 }
 0x49c   :  { %1118 = vadd.xlane.f32.xlu1 %v1103_v33 }
 0x50d   :  { %v1105_v47 = vpop.xlane.xlu1 %1104 }
 0x50e   :  { %v1131_v9 = vrot.slane %v1105_v47, %v11551_v56 }
 0x50f   :  { %v1107_v2 = vpop.xlane.xlu0 %1106 }
 0x510   :  { %v1135_v51 = vrot.slane %v1107_v2, %v11551_v56 }
 0x511   :  { %v1109_v48 = vpop.xlane.xlu1 %1108 }
 0x512   :  { %v1139_v17 = vrot.slane %v1109_v48, %v11551_v56  ;;  %v1160_v22 = vsel %vm352_vm0, %v1135_v51, %v1131_v9 }
 0x514   :  { %v1161_v32 = vsel %vm354_vm1, %v1139_v17, %v1160_v22 }
 0x515   :  { %v1113_v49 = vpop.xlane.xlu1 %1112 }
 0x516   :  { %v1147_v25 = vrot.slane %v1113_v49, %v11551_v56 }
 0x519   :  { %v1111_v4 = vpop.xlane.xlu1 %1110 }
 0x51a   :  { %v1143_v28 = vrot.slane %v1111_v4, %v11551_v56 }
 0x51c   :  { %v1162_v33 = vsel %vm356_vm2, %v1143_v28, %v1161_v32 }
 0x51d   :  { %v1115_v11 = vpop.xlane.xlu1 %1114  ;;  %v1163_v5 = vsel %vm358_vm3, %v1147_v25, %v1162_v33  ;;  %v11553_v33 = vld [vmem:[#allocation21_spill] sm:$0xff] }
 0x51e   :  { %v1151_v40 = vrot.slane %v1115_v11, %v11551_v56 }
 0x520   :  { %v1164_v51 = vsel %vm360_vm4, %v1151_v40, %v1163_v5 }
 0x521   :  { %v1117_v39 = vpop.xlane.xlu1 %1116 }
 0x522   :  { %v1155_v8 = vrot.slane %v1117_v39, %v11551_v56 }
 0x524   :  { %v1165_v9 = vsel %vm362_vm5, %v1155_v8, %v1164_v51  ;;  %v11554_v8 = vld [vmem:[#allocation24_spill] sm:$0xff] }
 0x525   :  { %v1119_v45 = vpop.xlane.xlu1 %1118 }
 0x526   :  { %v1159_v52 = vrot.slane %v1119_v45, %v11551_v56 }
 0x528   :  { %v1166_v17 = vsel %vm364_vm6, %v1159_v52, %v1165_v9 }
 0x529   :  { %v1168_v22 = vsel %vm367_vm7, %v1166_v17, -inf }
 0x52a   :  { %1169 = vmax.xlane.f32.xlu1 %v1168_v22  ;;  %v11555_v22 = vld [vmem:[#allocation23_spill] sm:$0xff] }
 0x5b3   :  { %v1170_v28 = vpop.xlane.xlu1 %1169 }
 0x5b4   :  { %v1175_v32 = vrot.slane %v1170_v28, %v11543_v43  ;;  %v1179_v60 = vrot.slane %v1170_v28, %v11545_v53  ;;  %v1183_v16 = vrot.slane %v1170_v28, %v11547_v57  ;;  %v1191_v25 = vrot.slane %v1170_v28, %v11552_v36 }
 0x5b5   :  { %v1187_v13 = vrot.slane %v1170_v28, %v11553_v33  ;;  %v1199_v51 = vrot.slane %v1170_v28, %v11554_v8  ;;  %v1195_v44 = vrot.slane %v1170_v28, %v11555_v22  ;;  %v1203_v61 = vrot.slane %v1170_v28, %v11556_v14 }
 0x5b6   :  { %v1212_v31 = vsub.f32 %v1105_v47, %v1175_v32  ;;  %v1213_v5 = vsub.f32 %v1107_v2, %v1179_v60  ;;  %v1214_v40 = vsub.f32 %v1109_v48, %v1183_v16  ;;  %v1216_v52 = vsub.f32 %v1113_v49, %v1191_v25 }
 0x5b7   :  { %v1215_v3 = vsub.f32 %v1111_v4, %v1187_v13  ;;  %v1218_v42 = vsub.f32 %v1117_v39, %v1199_v51  ;;  %v1217_v15 = vsub.f32 %v1115_v11, %v1195_v44  ;;  %v1219_v60 = vsub.f32 %v1119_v45, %v1203_v61 }
 0x5b8   :  { %v1220_v9 = vmul.f32 1.442695, %v1212_v31  ;;  %v1222_v17 = vmul.f32 1.442695, %v1213_v5  ;;  %v1224_v34 = vmul.f32 1.442695, %v1214_v40 }
 0x5b9   :  { %v1228_v27 = vmul.f32 1.442695, %v1216_v52  ;;  %v1226_v47 = vmul.f32 1.442695, %v1215_v3  ;;  %v1232_v16 = vmul.f32 1.442695, %v1218_v42 }
 0x5ba   :  { %7434 = vpow2.f32 %v1220_v9  ;;  %v1230_v48 = vmul.f32 1.442695, %v1217_v15  ;;  %v1234_v31 = vmul.f32 1.442695, %v1219_v60 }
 0x5bb   :  { %7436 = vpow2.f32 %v1222_v17 }
 0x5bc   :  { %7438 = vpow2.f32 %v1224_v34 }
 0x5bd   :  { %7440 = vpow2.f32 %v1228_v27 }
 0x5be   :  { %7442 = vpow2.f32 %v1226_v47 }
 0x5bf   :  { %7444 = vpow2.f32 %v1232_v16 }
 0x5c0   :  { %7446 = vpow2.f32 %v1230_v48 }
 0x5c1   :  { %7448 = vpow2.f32 %v1234_v31 }
 0x5c7   :  { %v7435_v49 = vpop.eup %7434 }
 0x5c8   :  { %v7437_v13 = vpop.eup %7436  ;;  %1245 = vperm.xlu1 %7389, %v7435_v49  }
 0x5c9   :  { %1248 = vperm.xlu0 %7390, %v7437_v13   ;;  %v7439_v2 = vpop.eup %7438 }
 0x5ca   :  { %v8895_v4 = vpop.eup %7440 }
 0x5cb   :  { %v7443_v44 = vpop.eup %7442 }
 0x5cc   :  { %1251 = vperm.xlu1 %7389, %v7439_v2   ;;  %v8898_v27 = vpop.eup %7444 }
 0x5cd   :  { %1257 = vperm.xlu0 %7390, %v8895_v4   ;;  %v7447_v15 = vpop.eup %7446 }
 0x5ce   :  { %v8901_v61 = vpop.eup %7448 }
 0x5d0   :  { %1254 = vperm.xlu1 %7389, %v7443_v44  }
 0x5d1   :  { %1263 = vperm.xlu0 %7390, %v8898_v27  }
 0x5d4   :  { %1260 = vperm.xlu1 %7389, %v7447_v15  }
 0x5d8   :  { %1266 = vperm.xlu1 %7389, %v8901_v61  }
 0x643   :  { %v1246_v42 = vpop.permute.xlu1 %1245 }
 0x644   :  { %v1249_v34 = vpop.permute.xlu0 %1248  ;;  %v1271_v11 = vrot.slane %v1246_v42, %v11551_v56 }
 0x645   :  { %v1275_v45 = vrot.slane %v1249_v34, %v11551_v56 }
 0x647   :  { %v1252_v3 = vpop.permute.xlu1 %1251  ;;  %v1300_v25 = vsel %vm352_vm0, %v1275_v45, %v1271_v11 }
 0x648   :  { %v1279_v39 = vrot.slane %v1252_v3, %v11551_v56  ;;  %v1258_v28 = vpop.permute.xlu0 %1257 }
 0x649   :  { %v1287_v52 = vrot.slane %v1258_v28, %v11551_v56 }
 0x64a   :  { %v1301_v40 = vsel %vm354_vm1, %v1279_v39, %v1300_v25 }
 0x64b   :  { %v1255_v32 = vpop.permute.xlu1 %1254 }
 0x64c   :  { %v1283_v5 = vrot.slane %v1255_v32, %v11551_v56  ;;  %v1264_v17 = vpop.permute.xlu0 %1263 }
 0x64d   :  { %v1295_v48 = vrot.slane %v1264_v17, %v11551_v56 }
 0x64e   :  { %v1302_v51 = vsel %vm356_vm2, %v1283_v5, %v1301_v40 }
 0x64f   :  { %v1261_v9 = vpop.permute.xlu1 %1260  ;;  %v1303_v16 = vsel %vm358_vm3, %v1287_v52, %v1302_v51 }
 0x650   :  { %v1291_v47 = vrot.slane %v1261_v9, %v11551_v56 }
 0x652   :  { %v1304_v60 = vsel %vm360_vm4, %v1291_v47, %v1303_v16 }
 0x653   :  { %v1267_v31 = vpop.permute.xlu1 %1266  ;;  %v1305_v34 = vsel %vm362_vm5, %v1295_v48, %v1304_v60 }
 0x654   :  { %v1299_v42 = vrot.slane %v1267_v31, %v11551_v56 }
 0x656   :  { %v1306_v3 = vsel %vm364_vm6, %v1299_v42, %v1305_v34 }
 0x657   :  { %v1308_v45 = vsel %vm367_vm7, %v1306_v3, 0.0 }
 0x658   :  { %1309 = vadd.xlane.f32.xlu0 %v1308_v45 }
 0x6e1   :  { %v1310_v11 = vpop.xlane.xlu0 %1309 }
 0x6e2   :  { %v1315_v39 = vrot.slane %v1310_v11, %v11543_v43  ;;  %v1319_v28 = vrot.slane %v1310_v11, %v11545_v53  ;;  %v1323_v32 = vrot.slane %v1310_v11, %v11547_v57  ;;  %v1327_v25 = vrot.slane %v1310_v11, %v11553_v33 }
 0x6e3   :  { %v1331_v5 = vrot.slane %v1310_v11, %v11552_v36  ;;  %v1335_v52 = vrot.slane %v1310_v11, %v11555_v22  ;;  %v1339_v47 = vrot.slane %v1310_v11, %v11554_v8  ;;  %v1343_v48 = vrot.slane %v1310_v11, %v11556_v14 }
 0x6e4   :  { %7450 = vrcp.f32 %v1315_v39 }
 0x6e5   :  { %7452 = vrcp.f32 %v1319_v28 }
 0x6e6   :  { %7454 = vrcp.f32 %v1323_v32 }
 0x6e7   :  { %7456 = vrcp.f32 %v1327_v25 }
 0x6e8   :  { %7458 = vrcp.f32 %v1331_v5 }
 0x6e9   :  { %7460 = vrcp.f32 %v1335_v52 }
 0x6ea   :  { %7462 = vrcp.f32 %v1339_v47 }
 0x6eb   :  { %7464 = vrcp.f32 %v1343_v48 }
 0x6f1   :  { %v7451_v40 = vpop.eup %7450 }
 0x6f2   :  { %v1353_v51 = vmul.f32 %v7451_v40, %v7435_v49  ;;  %v7453_v9 = vpop.eup %7452 }
 0x6f3   :  { %v1355_v17 = vmul.f32 %v7453_v9, %v7437_v13  ;;  %v7455_v16 = vpop.eup %7454 }
 0x6f4   :  { %1370 = vperm.xlu1 %7389, %v1353_v51   ;;  %v1357_v60 = vmul.f32 %v7455_v16, %v7439_v2  ;;  %v7457_v31 = vpop.eup %7456 }
 0x6f5   :  { %v1359_v42 = vmul.f32 %v7457_v31, %v7443_v44  ;;  %v7459_v49 = vpop.eup %7458 }
 0x6f6   :  { %v1361_v34 = vmul.f32 %v7459_v49, %v8895_v4  ;;  %v7461_v3 = vpop.eup %7460 }
 0x6f7   :  { %v1363_v13 = vmul.f32 %v7461_v3, %v7447_v15  ;;  %v7463_v45 = vpop.eup %7462 }
 0x6f8   :  { %1375 = vperm.xlu1 %7389, %v1355_v17   ;;  %v1365_v39 = vmul.f32 %v7463_v45, %v8898_v27  ;;  %v7465_v28 = vpop.eup %7464 }
 0x6f9   :  { %v1367_v2 = vmul.f32 %v7465_v28, %v8901_v61 }
 0x6fc   :  { %1380 = vperm.xlu1 %7389, %v1357_v60  }
 0x700   :  { %1385 = vperm.xlu1 %7389, %v1359_v42  }
 0x704   :  { %1390 = vperm.xlu1 %7389, %v1361_v34  }
 0x708   :  { %1395 = vperm.xlu1 %7389, %v1363_v13  }
 0x70c   :  { %1400 = vperm.xlu1 %7389, %v1365_v39  }
 0x710   :  { %1405 = vperm.xlu1 %7389, %v1367_v2  }
 0x76f   :  { %v1371_v11 = vpop.permute.xlu1 %1370 }
 0x770   :  { %v1408_v4 = vmul.f32 %v8838_v24, %v1371_v11 }
 0x772   :  { %v1416_v27 = vrot.slane %v1408_v4, 4 }
 0x773   :  { %v1376_v32 = vpop.permute.xlu1 %1375 }
 0x774   :  { %v1409_v25 = vmul.f32 %v8844_v35, %v1376_v32  ;;  %v1417_v60 = vadd.f32 %v1416_v27, %v1408_v4 }
 0x776   :  { %v1422_v15 = vrot.slane %v1409_v25, 4  ;;  %v1418_v45 = vrot.slane %v1417_v60, 2 }
 0x777   :  { %v1381_v44 = vpop.permute.xlu1 %1380 }
 0x778   :  { %v1410_v5 = vmul.f32 %v8847_v59, %v1381_v44  ;;  %v1423_v47 = vadd.f32 %v1422_v15, %v1409_v25 }
 0x77a   :  { %v1428_v52 = vrot.slane %v1410_v5, 4  ;;  %v1424_v49 = vrot.slane %v1423_v47, 2 }
 0x77b   :  { %v1386_v40 = vpop.permute.xlu1 %1385 }
 0x77c   :  { %v1411_v51 = vmul.f32 %v8856_v58, %v1386_v40  ;;  %v1429_v16 = vadd.f32 %v1428_v52, %v1410_v5  ;;  %v1425_v32 = vadd.f32 %v1424_v49, %v1423_v47  ;;  %v1419_v5 = vadd.f32 %v1418_v45, %v1417_v60 }
 0x77e   :  { %v1434_v9 = vrot.slane %v1411_v51, 4  ;;  %v1430_v13 = vrot.slane %v1429_v16, 2  ;;  %v1420_v14 = vrot.slane %v1419_v5, 1 }
 0x77f   :  { %v1391_v17 = vpop.permute.xlu1 %1390 }
 0x780   :  { %v1412_v61 = vmul.f32 %v8851_v0, %v1391_v17  ;;  %v1435_v48 = vadd.f32 %v1434_v9, %v1411_v51  ;;  %v1431_v40 = vadd.f32 %v1430_v13, %v1429_v16  ;;  %v1426_v9 = vrot.slane %v1425_v32, 1 }
 0x781   :  { %v1421_v13 = vadd.f32 %v1420_v14, %v1419_v5  ;;  %v11576_v5 = vld [vmem:[#allocation65_spill] sm:$0xff] }
 0x782   :  { %v1440_v31 = vrot.slane %v1412_v61, 4  ;;  %v1436_v39 = vrot.slane %v1435_v48, 2 }
 0x783   :  { %v1396_v42 = vpop.permute.xlu1 %1395 }
 0x784   :  { %v1441_v34 = vadd.f32 %v1440_v31, %v1412_v61  ;;  %v1413_v3 = vmul.f32 %v8860_v18, %v1396_v42  ;;  %v1437_v4 = vadd.f32 %v1436_v39, %v1435_v48  ;;  %v1432_v42 = vrot.slane %v1431_v40, 1 }
 0x786   :  { %v1446_v28 = vrot.slane %v1413_v3, 4  ;;  %v1442_v2 = vrot.slane %v1441_v34, 2  ;;  %v1438_v8 = vrot.slane %v1437_v4, 1  ;;  %v1433_v48 = vadd.f32 %v1432_v42, %v1431_v40  ;;  %v11583_v42 = vld [vmem:[#allocation70_spill] sm:$0xff] }
 0x787   :  { %v1401_v11 = vpop.permute.xlu1 %1400 }
 0x788   :  { %v1447_v44 = vadd.f32 %v1446_v28, %v1413_v3  ;;  %v1414_v25 = vmul.f32 %v8864_v29, %v1401_v11  ;;  %v1443_v52 = vadd.f32 %v1442_v2, %v1441_v34  ;;  %v1427_v3 = vadd.f32 %v1426_v9, %v1425_v32  ;;  %v11579_v9 = vld [vmem:[#allocation68_spill] sm:$0xff] }
 0x789   :  { %v1439_v45 = vadd.f32 %v1438_v8, %v1437_v4  ;;  %v11577_v4 = vld [vmem:[#allocation64_spill] sm:$0xff] }
 0x78a   :  { %v1448_v15 = vrot.slane %v1447_v44, 2  ;;  %v1452_v51 = vrot.slane %v1414_v25, 4  ;;  %v1444_v49 = vrot.slane %v1443_v52, 1  ;;  %v1476_v11 = vsel %vm352_vm0, %v1427_v3, %v1421_v13  ;;  %v11586_v3 = vld [vmem:[#allocation28_spill] sm:$0xff]  ;;  %v9027_v13 = vld [vmem:[#allocation8 + $0x150] sm:$0xff] }
 0x78b   :  { %v1406_v27 = vpop.permute.xlu1 %1405 }
 0x78c   :  { %v1449_v17 = vadd.f32 %v1448_v15, %v1447_v44  ;;  %v1453_v61 = vadd.f32 %v1452_v51, %v1414_v25  ;;  %v1415_v31 = vmul.f32 %v8868_v46, %v1406_v27  ;;  %v1445_v2 = vadd.f32 %v1444_v49, %v1443_v52  ;;  %v11578_v52 = vld [vmem:[#allocation66_spill] sm:$0xff]  ;;  %v11585_v49 = vld [vmem:[#allocation73_spill] sm:$0xff] }
 0x78d   :  { %v1477_v15 = vsel %vm354_vm1, %v1433_v48, %v1476_v11  ;;  %v9023_v48 = vld [vmem:[#allocation8 + $0x158] sm:$0xff]  ;;  %v9043_v11 = vld [vmem:[#allocation8 + $0x128] sm:$0xff] }
 0x78e   :  { %v1454_v22 = vrot.slane %v1453_v61, 2  ;;  %v1458_v47 = vrot.slane %v1415_v31, 4  ;;  %v1450_v28 = vrot.slane %v1449_v17, 1  ;;  %v1478_v27 = vsel %vm356_vm2, %v1439_v45, %v1477_v15  ;;  %v9030_v45 = vld [vmem:[#allocation8 + $0x160] sm:$0xff]  ;;  %v9053_v15 = vld [vmem:[#allocation8 + $0x110] sm:$0xff] }
 0x78f   :  { %v1479_v32 = vsel %vm358_vm3, %v1445_v2, %v1478_v27  ;;  %v9040_v2 = vld [vmem:[#allocation8 + $0x148] sm:$0xff]  ;;  %v9060_v27 = vld [vmem:[#allocation8 + $0x118] sm:$0xff] }
 0x790   :  { %v1455_v16 = vadd.f32 %v1454_v22, %v1453_v61  ;;  %v1459_v60 = vadd.f32 %v1458_v47, %v1415_v31  ;;  %v1451_v44 = vadd.f32 %v1450_v28, %v1449_v17  ;;  %v11580_v17 = vld [vmem:[#allocation67_spill] sm:$0xff]  ;;  %v11581_v61 = vld [vmem:[#allocation69_spill] sm:$0xff]  ;;  %v11584_v47 = vld [vmem:[#allocation72_spill] sm:$0xff] }
 0x791   :  { %v11582_v31 = vld [vmem:[#allocation71_spill] sm:$0xff]  ;;  %v9013_v28 = vld [vmem:[#allocation8 + $0x170] sm:$0xff] }
 0x792   :  { %v1456_v34 = vrot.slane %v1455_v16, 1  ;;  %v1460_v39 = vrot.slane %v1459_v60, 2  ;;  %v1480_v40 = vsel %vm360_vm4, %v1451_v44, %v1479_v32  ;;  %v9047_v44 = vld [vmem:[#allocation8 + $0x120] sm:$0xff]  ;;  %v9063_v32 = vld [vmem:[#allocation8 + $0xf8] sm:$0xff] }
 0x794   :  { %v1461_v25 = vadd.f32 %v1460_v39, %v1459_v60  ;;  %v1457_v51 = vadd.f32 %v1456_v34, %v1455_v16  ;;  %v9017_v16 = vld [vmem:[#allocation8 + $0x168] sm:$0xff]  ;;  %v9020_v60 = vld [vmem:[#allocation8 + $0x178] sm:$0xff]  ;;  %v9033_v34 = vld [vmem:[#allocation8 + $0x140] sm:$0xff] }
 0x795   :  { %v9037_v39 = vld [vmem:[#allocation8 + $0x138] sm:$0xff] }
 0x796   :  { %v1462_v36 = vrot.slane %v1461_v25, 1  ;;  %v1481_v14 = vsel %vm362_vm5, %v1457_v51, %v1480_v40  ;;  %v9057_v51 = vld [vmem:[#allocation8 + $0x108] sm:$0xff]  ;;  %v9070_v40 = vld [vmem:[#allocation8 + $0x100] sm:$0xff] }
 0x798   :  { %v1463_v22 = vadd.f32 %v1462_v36, %v1461_v25  ;;  %v11575_v36 = vld [vmem:[#allocation63_spill] sm:$0xff]  ;;  %v9050_v25 = vld [vmem:[#allocation8 + $0x130] sm:$0xff] }
 0x79a   :  { %v1482_v8 = vsel %vm364_vm6, %v1463_v22, %v1481_v14  ;;  %v9067_v22 = vld [vmem:[#allocation8 + $0xf0] sm:$0xff]  ;;  %v9073_v14 = vld [vmem:[#allocation8 + $0xe0] sm:$0xff] }
 0x79b   :  { %1549 = vmatmul.mubr.f32.vlgmr.msra.gmra.mxu0 %v1482_v8  ;;  %6918 = vmatmul.mubr.f32.vlgmr.msra.gmra.mxu1 %v1482_v8  ;;  %v9077_v8 = vld [vmem:[#allocation8 + $0xd8] sm:$0xff] }
 0x79c   :  { %1629 = vmatpush1.msra.mxu0 %v8581_v10  ;;  %6921 = vmatpush3.msra.mxu1 %v8586_v26  ;;  %v11557_v10 = vld [vmem:[#allocation45_spill] sm:$0xff]  ;;  %v11559_v26 = vld [vmem:[#allocation46_spill] sm:$0xff] }
 0x79d   :  { %1630 = vmatprep.subr.mxu0 %v8584_v19  ;;  %6922 = vmatprep.subr.mxu1 %v11494_v38  ;;  %v11558_v19 = vld [vmem:[#allocation47_spill] sm:$0xff] }
 0x79e   :  { %1631 = vmatpush1.msra.mxu0 %v8588_v54  ;;  %6923 = vmatpush3.msra.mxu1 %v8594_v30  ;;  %v11560_v54 = vld [vmem:[#allocation48_spill] sm:$0xff]  ;;  %v11562_v30 = vld [vmem:[#allocation49_spill] sm:$0xff] }
 0x79f   :  { %1632 = vmatprep.subr.mxu0 %v8591_v63  ;;  %6924 = vmatprep.subr.mxu1 %v11494_v38  ;;  %v11561_v63 = vld [vmem:[#allocation50_spill] sm:$0xff] }
 0x7a0   :  { %1633 = vmatpush1.msra.mxu0 %v8597_v37  ;;  %6925 = vmatpush3.msra.mxu1 %v8604_v23  ;;  %v11563_v37 = vld [vmem:[#allocation51_spill] sm:$0xff]  ;;  %v11565_v23 = vld [vmem:[#allocation52_spill] sm:$0xff] }
 0x7a1   :  { %1634 = vmatprep.subr.mxu0 %v8601_v7  ;;  %6926 = vmatprep.subr.mxu1 %v11494_v38  ;;  %v11564_v7 = vld [vmem:[#allocation53_spill] sm:$0xff] }
 0x7a2   :  { %1635 = vmatpush1.msra.mxu0 %v8607_v21  ;;  %6927 = vmatpush3.msra.mxu1 %v8614_v41  ;;  %v11566_v21 = vld [vmem:[#allocation54_spill] sm:$0xff]  ;;  %v11568_v41 = vld [vmem:[#allocation55_spill] sm:$0xff] }
 0x7a3   :  { %1636 = vmatprep.subr.mxu0 %v8611_v6  ;;  %6928 = vmatprep.subr.mxu1 %v11494_v38  ;;  %v11567_v6 = vld [vmem:[#allocation56_spill] sm:$0xff] }
 0x7a4   :  { %1637 = vmatpush1.msra.mxu0 %v8617_v62  ;;  %6929 = vmatpush3.msra.mxu1 %v8624_v50  ;;  %v11569_v62 = vld [vmem:[#allocation57_spill] sm:$0xff]  ;;  %v11571_v50 = vld [vmem:[#allocation58_spill] sm:$0xff] }
 0x7a5   :  { %1638 = vmatprep.subr.mxu0 %v8621_v55  ;;  %6930 = vmatprep.subr.mxu1 %v11494_v38  ;;  %v11570_v55 = vld [vmem:[#allocation59_spill] sm:$0xff] }
 0x7a6   :  { %1639 = vmatpush1.msra.mxu0 %v8627_v1  ;;  %6931 = vmatpush3.msra.mxu1 %v8634_v20  ;;  %v11572_v1 = vld [vmem:[#allocation60_spill] sm:$0xff]  ;;  %v11574_v20 = vld [vmem:[#allocation61_spill] sm:$0xff] }
 0x7a7   :  { %1640 = vmatprep.subr.mxu0 %v8631_v12  ;;  %6932 = vmatprep.subr.mxu1 %v11494_v38  ;;  %v11573_v12 = vld [vmem:[#allocation62_spill] sm:$0xff] }
 0x7a8   :  { %1641 = vmatpush1.msra.mxu0 %v11557_v10  ;;  %6933 = vmatpush3.msra.mxu1 %v11558_v19  ;;  %v9080_v10 = vld [vmem:[#allocation8 + $0xe8] sm:$0xff] }
 0x7a9   :  { %1642 = vmatprep.subr.mxu0 %v11559_v26  ;;  %6934 = vmatprep.subr.mxu1 %v11494_v38  ;;  %v9083_v19 = vld [vmem:[#allocation8 + $0xc8] sm:$0xff]  ;;  %v9087_v26 = vld [vmem:[#allocation8 + $0xc0] sm:$0xff] }
 0x7aa   :  { %1643 = vmatpush1.msra.mxu0 %v11560_v54  ;;  %6935 = vmatpush3.msra.mxu1 %v11561_v63  ;;  %v9090_v54 = vld [vmem:[#allocation8 + $0xd0] sm:$0xff] }
 0x7ab   :  { %1644 = vmatprep.subr.mxu0 %v11562_v30  ;;  %6936 = vmatprep.subr.mxu1 %v11494_v38  ;;  %v9093_v63 = vld [vmem:[#allocation8 + $0xb0] sm:$0xff]  ;;  %v9097_v30 = vld [vmem:[#allocation8 + $0xa8] sm:$0xff] }
 0x7ac   :  { %1645 = vmatpush1.msra.mxu0 %v11563_v37  ;;  %6937 = vmatpush3.msra.mxu1 %v11564_v7  ;;  %11587 = vst [vmem:[#allocation30_spill] sm:$0xff] %v9097_v30  ;;  %v9100_v37 = vld [vmem:[#allocation8 + $0xb8] sm:$0xff] }
 0x7ad   :  { %1646 = vmatprep.subr.mxu0 %v11565_v23  ;;  %6938 = vmatprep.subr.mxu1 %v11494_v38  ;;  %11588 = vst [vmem:[#allocation32_spill] sm:$0xff] %v9100_v37  ;;  %v9103_v7 = vld [vmem:[#allocation8 + $0x98] sm:$0xff]  ;;  %v9107_v23 = vld [vmem:[#allocation8 + $0x90] sm:$0xff] }
 0x7ae   :  { %1647 = vmatpush1.msra.mxu0 %v11566_v21  ;;  %6939 = vmatpush3.msra.mxu1 %v11567_v6  ;;  %11589 = vst [vmem:[#allocation31_spill] sm:$0xff] %v9103_v7  ;;  %11590 = vst [vmem:[#allocation33_spill] sm:$0xff] %v9107_v23  ;;  %v9110_v21 = vld [vmem:[#allocation8 + $0xa0] sm:$0xff] }
 0x7af   :  { %1648 = vmatprep.subr.mxu0 %v11568_v41  ;;  %6940 = vmatprep.subr.mxu1 %v11494_v38  ;;  %11591 = vst [vmem:[#allocation35_spill] sm:$0xff] %v9110_v21  ;;  %v9113_v6 = vld [vmem:[#allocation8 + $0x80] sm:$0xff]  ;;  %v9117_v41 = vld [vmem:[#allocation8 + $0x78] sm:$0xff] }
 0x7b0   :  { %1649 = vmatpush1.msra.mxu0 %v11569_v62  ;;  %6941 = vmatpush3.msra.mxu1 %v11570_v55  ;;  %11592 = vst [vmem:[#allocation34_spill] sm:$0xff] %v9113_v6  ;;  %11593 = vst [vmem:[#allocation36_spill] sm:$0xff] %v9117_v41  ;;  %v9120_v62 = vld [vmem:[#allocation8 + $0x88] sm:$0xff] }
 0x7b1   :  { %1650 = vmatprep.subr.mxu0 %v11571_v50  ;;  %6942 = vmatprep.subr.mxu1 %v11494_v38  ;;  %11594 = vst [vmem:[#allocation38_spill] sm:$0xff] %v9120_v62  ;;  %v9123_v55 = vld [vmem:[#allocation8 + $0x68] sm:$0xff]  ;;  %v9127_v50 = vld [vmem:[#allocation8 + $0x60] sm:$0xff] }
 0x7b2   :  { %1651 = vmatpush1.msra.mxu0 %v11572_v1  ;;  %6943 = vmatpush3.msra.mxu1 %v11573_v12  ;;  %11595 = vst [vmem:[#allocation37_spill] sm:$0xff] %v9123_v55  ;;  %11596 = vst [vmem:[#allocation39_spill] sm:$0xff] %v9127_v50  ;;  %v9130_v1 = vld [vmem:[#allocation8 + $0x70] sm:$0xff] }
 0x7b3   :  { %1652 = vmatprep.subr.mxu0 %v11574_v20  ;;  %6944 = vmatprep.subr.mxu1 %v11494_v38  ;;  %11597 = vst [vmem:[#allocation41_spill] sm:$0xff] %v9130_v1  ;;  %v9133_v12 = vld [vmem:[#allocation8 + $0x50] sm:$0xff]  ;;  %v9137_v20 = vld [vmem:[#allocation8 + $0x48] sm:$0xff] }
 0x7b4   :  { %1653 = vmatpush1.msra.mxu0 %v11575_v36  ;;  %6945 = vmatpush3.msra.mxu1 %v11576_v5  ;;  %11598 = vst [vmem:[#allocation40_spill] sm:$0xff] %v9133_v12  ;;  %11599 = vst [vmem:[#allocation42_spill] sm:$0xff] %v9137_v20  ;;  %v9140_v36 = vld [vmem:[#allocation8 + $0x58] sm:$0xff] }
 0x7b5   :  { %1654 = vmatprep.subr.mxu0 %v11577_v4  ;;  %6946 = vmatprep.subr.mxu1 %v11494_v38  ;;  %11600 = vst [vmem:[#allocation43_spill] sm:$0xff] %v9140_v36  ;;  %v9143_v5 = vld [vmem:[#allocation8 + $0x38] sm:$0xff]  ;;  %v9147_v4 = vld [vmem:[#allocation8 + $0x30] sm:$0xff] }
 0x7b6   :  { %1655 = vmatpush1.msra.mxu0 %v11578_v52  ;;  %6947 = vmatpush3.msra.mxu1 %v11579_v9  ;;  %11601 = vst [vmem:[#allocation44_spill] sm:$0xff] %v9143_v5  ;;  %11602 = vst [vmem:[#allocation18_spill] sm:$0xff] %v9147_v4  ;;  %v9150_v52 = vld [vmem:[#allocation8 + $0x40] sm:$0xff] }
 0x7b7   :  { %1656 = vmatprep.subr.mxu0 %v11580_v17  ;;  %6948 = vmatprep.subr.mxu1 %v11494_v38  ;;  %11603 = vst [vmem:[#allocation45_spill] sm:$0xff] %v9150_v52  ;;  %v9153_v9 = vld [vmem:[#allocation8 + $0x20] sm:$0xff]  ;;  %v9157_v17 = vld [vmem:[#allocation8 + $0x18] sm:$0xff] }
 0x7b8   :  { %1657 = vmatpush1.msra.mxu0 %v11581_v61  ;;  %6949 = vmatpush3.msra.mxu1 %v11582_v31  ;;  %11604 = vst [vmem:[#allocation47_spill] sm:$0xff] %v9153_v9  ;;  %11605 = vst [vmem:[#allocation46_spill] sm:$0xff] %v9157_v17  ;;  %v9160_v61 = vld [vmem:[#allocation8 + $0x28] sm:$0xff] }
 0x7b9   :  { %1658 = vmatprep.subr.mxu0 %v11583_v42  ;;  %6950 = vmatprep.subr.mxu1 %v11494_v38  ;;  %11606 = vst [vmem:[#allocation48_spill] sm:$0xff] %v9160_v61  ;;  %v9163_v31 = vld [vmem:[#allocation8 + $0x8] sm:$0xff]  ;;  %v9167_v42 = vld [vmem:[#allocation8] sm:$0xff] }
 0x7ba   :  { %1659 = vmatpush1.msra.mxu0 %v11584_v47  ;;  %1692 = vmatprep.mubr.f32.mxu0 %v11494_v38  ;;  %11607 = vst [vmem:[#allocation50_spill] sm:$0xff] %v9163_v31  ;;  %11608 = vst [vmem:[#allocation49_spill] sm:$0xff] %v9167_v42  ;;  %v9170_v47 = vld [vmem:[#allocation8 + $0x10] sm:$0xff] }
 0x7bb   :  { %6951 = vmatpush3.msra.mxu1 %v11585_v49  ;;  %6952 = vmatprep.mubr.msk.f32.mxu1 %vm8197_vm8, %v11494_v38  ;;  %11609 = vst [vmem:[#allocation51_spill] sm:$0xff] %v9170_v47  ;;  %v9176_v49 = vld [vmem:[#allocation10 + $0x170] sm:$0xff] }
 0x7bc   :  { %1693 = vmatmul.mubr.f32.vlgmr.msra.gmra.mxu0 %v11586_v3  ;;  %6953 = vmatmul.mubr.f32.vlgmr.msra.gmra.mxu1 %v11586_v3  ;;  %11610 = vst [vmem:[#allocation53_spill] sm:$0xff] %v9176_v49 }
 0x7bd   :  { %2270 = vmatprep.subr.mxu0 %v9013_v28  ;;  %6955 = vmatprep.subr.mxu1 %v11494_v38 }
 0x7be   :  { %2271 = vmatpush1.msra.mxu0 %v9017_v16  ;;  %6956 = vmatpush3.msra.mxu1 %v9020_v60 }
 0x7bf   :  { %2272 = vmatprep.subr.mxu0 %v9023_v48  ;;  %6957 = vmatprep.subr.mxu1 %v11494_v38 }
 0x7c0   :  { %2273 = vmatpush1.msra.mxu0 %v9027_v13  ;;  %6958 = vmatpush3.msra.mxu1 %v9030_v45 }
 0x7c1   :  { %2274 = vmatprep.subr.mxu0 %v9033_v34  ;;  %6959 = vmatprep.subr.mxu1 %v11494_v38 }
 0x7c2   :  { %2275 = vmatpush1.msra.mxu0 %v9037_v39  ;;  %6960 = vmatpush3.msra.mxu1 %v9040_v2 }
 0x7c3   :  { %2276 = vmatprep.subr.mxu0 %v9043_v11  ;;  %6961 = vmatprep.subr.mxu1 %v11494_v38 }
 0x7c4   :  { %2277 = vmatpush1.msra.mxu0 %v9047_v44  ;;  %6962 = vmatpush3.msra.mxu1 %v9050_v25 }
 0x7c5   :  { %2278 = vmatprep.subr.mxu0 %v9053_v15  ;;  %6963 = vmatprep.subr.mxu1 %v11494_v38 }
 0x7c6   :  { %2279 = vmatpush1.msra.mxu0 %v9057_v51  ;;  %6964 = vmatpush3.msra.mxu1 %v9060_v27 }
 0x7c7   :  { %2280 = vmatprep.subr.mxu0 %v9063_v32  ;;  %6965 = vmatprep.subr.mxu1 %v11494_v38 }
 0x7c8   :  { %2281 = vmatpush1.msra.mxu0 %v9067_v22  ;;  %6966 = vmatpush3.msra.mxu1 %v9070_v40 }
 0x7c9   :  { %2282 = vmatprep.subr.mxu0 %v9073_v14  ;;  %6967 = vmatprep.subr.mxu1 %v11494_v38 }
 0x7ca   :  { %2283 = vmatpush1.msra.mxu0 %v9077_v8  ;;  %6968 = vmatpush3.msra.mxu1 %v9080_v10 }
 0x7cb   :  { %2284 = vmatprep.subr.mxu0 %v9083_v19  ;;  %6969 = vmatprep.subr.mxu1 %v11494_v38 }
 0x7cc   :  { %2285 = vmatpush1.msra.mxu0 %v9087_v26  ;;  %6970 = vmatpush3.msra.mxu1 %v9090_v54 }
 0x7cd   :  { %2286 = vmatprep.subr.mxu0 %v9093_v63  ;;  %6971 = vmatprep.subr.mxu1 %v11494_v38 }
 0x7ce   :  { %2287 = vmatpush1.msra.mxu0 %v9097_v30  ;;  %6972 = vmatpush3.msra.mxu1 %v9100_v37 }
 0x7cf   :  { %2288 = vmatprep.subr.mxu0 %v9103_v7  ;;  %6973 = vmatprep.subr.mxu1 %v11494_v38 }
 0x7d0   :  { %2289 = vmatpush1.msra.mxu0 %v9107_v23  ;;  %6974 = vmatpush3.msra.mxu1 %v9110_v21 }
 0x7d1   :  { %2290 = vmatprep.subr.mxu0 %v9113_v6  ;;  %6975 = vmatprep.subr.mxu1 %v11494_v38 }
 0x7d2   :  { %2291 = vmatpush1.msra.mxu0 %v9117_v41  ;;  %6976 = vmatpush3.msra.mxu1 %v9120_v62  ;;  %v11612_v62 = vld [vmem:[#allocation27_spill] sm:$0xff] }
 0x7d3   :  { %2292 = vmatprep.subr.mxu0 %v9123_v55  ;;  %6977 = vmatprep.subr.mxu1 %v11494_v38 }
 0x7d4   :  { %2293 = vmatpush1.msra.mxu0 %v9127_v50  ;;  %6978 = vmatpush3.msra.mxu1 %v9130_v1  ;;  %v1466_v50 = vld [vmem:[#allocation5 + $0x20] sm:$0xff] }
 0x7d5   :  { %2294 = vmatprep.subr.mxu0 %v9133_v12  ;;  %6979 = vmatprep.subr.mxu1 %v11494_v38 }
 0x7d6   :  { %2295 = vmatpush1.msra.mxu0 %v9137_v20  ;;  %6980 = vmatpush3.msra.mxu1 %v9140_v36 }
 0x7d7   :  { %2296 = vmatprep.subr.mxu0 %v9143_v5  ;;  %6981 = vmatprep.subr.mxu1 %v11494_v38 }
 0x7d8   :  { %2297 = vmatpush1.msra.mxu0 %v9147_v4  ;;  %6982 = vmatpush3.msra.mxu1 %v9150_v52 }
 0x7d9   :  { %2298 = vmatprep.subr.mxu0 %v9153_v9  ;;  %6983 = vmatprep.subr.mxu1 %v11494_v38  ;;  %v1465_v9 = vld [vmem:[#allocation5 + $0x18] sm:$0xff] }
 0x7da   :  { %2299 = vmatpush1.msra.mxu0 %v9157_v17  ;;  %6984 = vmatpush3.msra.mxu1 %v9160_v61 }
 0x7db   :  { %2300 = vmatprep.subr.mxu0 %v9163_v31  ;;  %6985 = vmatprep.subr.mxu1 %v11494_v38 }
 0x7dc   :  { %2301 = vmatpush1.msra.mxu0 %v9167_v42  ;;  %6986 = vmatpush3.msra.mxu1 %v9170_v47  ;;  %v11611_v47 = vld [vmem:[#allocation26_spill] sm:$0xff] }
 0x7dd   :  { %2334 = vmatprep.mubr.f32.mxu0 %v11494_v38  ;;  %6987 = vmatprep.mubr.msk.f32.mxu1 %vm8197_vm8, %v11494_v38 }
 0x7de   :  { %2414 = vmatprep.subr.mxu0 %v9176_v49  ;;  %6990 = vmatprep.subr.mxu1 %v11494_v38 }
 0x85b   :  { %v1621_v31 = vpop.f32.mrf.mxu1  ;;  %v1550_v17 = vpop.f32.mrf.mxu0 }
 0x85c   :  { %v1625_v5 = vadd.f32 %v1550_v17, %v1465_v9  ;;  %v1467_v9 = vld [vmem:[#allocation5 + $0x28] sm:$0xff]  ;;  %v11613_v17 = vld [vmem:[#allocation29_spill] sm:$0xff] }
 0x85d   :  { %v6919_v61 = vpop.f32.mrf.mxu1  ;;  %v1552_v42 = vpop.f32.mrf.mxu0 }
 0x85e   :  { %v1626_v49 = vadd.f32 %v1552_v42, %v1466_v50 }
 0x87c   :  { %v1694_v52 = vpop.f32.mrf.mxu0  ;;  %v1765_v4 = vpop.f32.mrf.mxu1 }
 0x87d   :  { %v1695_v36 = vadd.f32 %v1694_v52, %v11611_v47  ;;  %v1766_v52 = vadd.f32 %v1765_v4, %v11613_v17 }
 0x87e   :  { %v1696_v20 = vpop.f32.mrf.mxu0  ;;  %v6954_v12 = vpop.f32.mrf.mxu1 }
 0x87f   :  { %v1769_v1 = vadd.f32 %v1695_v36, %v1625_v5  ;;  %v1697_v41 = vadd.f32 %v1696_v20, %v11612_v62  ;;  %v1627_v12 = vadd.f32 %v1621_v31, %v1467_v9 }
 0x881   :  { %v6529_v55 = vmul.f32 -1.442695, %v1769_v1  ;;  %v1776_v6 = vadd.f32 %v1697_v41, %v1626_v49 }
 0x883   :  { %7466 = vpow2.f32 %v6529_v55  ;;  %v6530_v21 = vmul.f32 -1.442695, %v1776_v6 }
 0x885   :  { %7468 = vpow2.f32 %v6530_v21 }
 0x890   :  { %v7467_v61 = vpop.eup %7466 }
 0x891   :  { %v1773_v23 = vadd.f32 1.0, %v7467_v61 }
 0x892   :  { %v7469_v7 = vpop.eup %7468 }
 0x893   :  { %7470 = vrcp.f32 %v1773_v23  ;;  %v1780_v37 = vadd.f32 1.0, %v7469_v7  ;;  %v11614_v7 = vld [vmem:[#allocation17_spill] sm:$0xff] }
 0x895   :  { %7472 = vrcp.f32 %v1780_v37 }
 0x8a0   :  { %v7471_v47 = vpop.eup %7470 }
 0x8a1   :  { %v1783_v36 = vmul.f32 %v7471_v47, %v1766_v52 }
 0x8a2   :  { %v7473_v20 = vpop.eup %7472 }
 0x8a3   :  { %v1784_v1 = vadd.f32 %v1783_v36, %v1627_v12  ;;  %v1786_v50 = vsub.f32 1.0, %v7473_v20  ;;  %v1788_v21 = vmul.f32 %v7473_v20, %v11586_v3 }
 0x8a5   :  { %7474 = vtanh.f32 %v1784_v1 }
 0x8b2   :  { %v7475_v55 = vpop.eup %7474 }
 0x8b3   :  { %v1787_v41 = vmul.f32 %v7475_v55, %v1786_v50 }
 0x8b5   :  { %v9184_v6 = vadd.f32 %v1788_v21, %v1787_v41 }
 0x8b7   :  { %1791 = vst [vmem:[#allocation11 + $0x8] sm:$0xff] %v9184_v6  ;;  %v1800_v23 = vrot.slane %v9184_v6, %v11614_v7  ;;  %v1793_v5 = vcombine.high %v9184_v6, %v9184_v6 }
 0x8b9   :  { %v1816_v37 = vrot.slane %v1800_v23, %v11614_v7  ;;  %v1808_v4 = vcombine.high %v1800_v23, %v1800_v23  ;;  %v1807_v31 = vrot.slane %v1793_v5, %v11614_v7 }
 0x8bb   :  { %v1845_v42 = vrot.slane %v1816_v37, %v11543_v43  ;;  %v1830_v47 = vrot.slane %v1808_v4, %v11614_v7  ;;  %v1838_v3 = vcombine.high %v1816_v37, %v1816_v37  ;;  %v1823_v52 = vrot.slane %v1807_v31, %v11614_v7 }
 0x8bc   :  { %v1809_v50 = vcombine.high %v1807_v31, %v1807_v31 }
 0x8bd   :  { %v1882_v49 = vmul.f32 %v8838_v24, %v1845_v42  ;;  %v1849_v61 = vrot.slane %v1830_v47, %v11543_v43  ;;  %v1853_v9 = vrot.slane %v1838_v3, %v11543_v43  ;;  %v1861_v1 = vrot.slane %v1823_v52, %v11543_v43 }
 0x8be   :  { %v1840_v20 = vcombine.high %v1830_v47, %v1830_v47  ;;  %v1837_v41 = vrot.slane %v1809_v50, %v11614_v7 }
 0x8bf   :  { %1890 = vadd.xlane.f32.xlu0 %v1882_v49  ;;  %v1883_v12 = vmul.f32 %v8844_v35, %v1849_v61  ;;  %v1884_v36 = vmul.f32 %v8847_v59, %v1853_v9  ;;  %v1886_v55 = vmul.f32 %v8851_v0, %v1861_v1  ;;  %v1839_v35 = vcombine.high %v1823_v52, %v1823_v52 }
 0x8c0   :  { %v1857_v24 = vrot.slane %v1840_v20, %v11543_v43  ;;  %v1865_v23 = vrot.slane %v1837_v41, %v11543_v43  ;;  %v1841_v37 = vcombine.high %v1837_v41, %v1837_v41 }
 0x8c1   :  { %1892 = vadd.xlane.f32.xlu1 %v1883_v12  ;;  %v1869_v5 = vrot.slane %v1839_v35, %v11543_v43 }
 0x8c2   :  { %v1885_v21 = vmul.f32 %v8856_v58, %v1857_v24  ;;  %v1887_v59 = vmul.f32 %v8860_v18, %v1865_v23  ;;  %v1873_v0 = vrot.slane %v1841_v37, %v11543_v43 }
 0x8c3   :  { %1894 = vadd.xlane.f32.xlu0 %v1884_v36  ;;  %v1888_v4 = vmul.f32 %v8864_v29, %v1869_v5 }
 0x8c4   :  { %v1889_v31 = vmul.f32 %v8868_v46, %v1873_v0 }
 0x8c7   :  { %1898 = vadd.xlane.f32.xlu0 %v1886_v55 }
 0x8cb   :  { %1896 = vadd.xlane.f32.xlu0 %v1885_v21 }
 0x8cf   :  { %1900 = vadd.xlane.f32.xlu0 %v1887_v59 }
 0x8d3   :  { %1902 = vadd.xlane.f32.xlu0 %v1888_v4 }
 0x8d7   :  { %1904 = vadd.xlane.f32.xlu0 %v1889_v31 }
 0x948   :  { %v1891_v42 = vpop.xlane.xlu0 %1890 }
 0x949   :  { %v1917_v18 = vrot.slane %v1891_v42, %v11551_v56 }
 0x94a   :  { %v1893_v3 = vpop.xlane.xlu1 %1892 }
 0x94b   :  { %v1921_v61 = vrot.slane %v1893_v3, %v11551_v56 }
 0x94c   :  { %v1895_v58 = vpop.xlane.xlu0 %1894 }
 0x94d   :  { %v1925_v9 = vrot.slane %v1895_v58, %v11551_v56  ;;  %v1946_v29 = vsel %vm352_vm0, %v1921_v61, %v1917_v18  ;;  %v11615_v18 = vld [vmem:[#allocation22_spill] sm:$0xff] }
 0x94f   :  { %v1947_v36 = vsel %vm354_vm1, %v1925_v9, %v1946_v29 }
 0x950   :  { %v1899_v47 = vpop.xlane.xlu0 %1898 }
 0x951   :  { %v1933_v50 = vrot.slane %v1899_v47, %v11551_v56 }
 0x954   :  { %v1897_v49 = vpop.xlane.xlu0 %1896 }
 0x955   :  { %v1929_v12 = vrot.slane %v1897_v49, %v11551_v56 }
 0x957   :  { %v1948_v1 = vsel %vm356_vm2, %v1929_v12, %v1947_v36 }
 0x958   :  { %v1901_v52 = vpop.xlane.xlu0 %1900  ;;  %v1949_v41 = vsel %vm358_vm3, %v1933_v50, %v1948_v1  ;;  %v11616_v1 = vld [vmem:[#allocation23_spill] sm:$0xff] }
 0x959   :  { %v1937_v20 = vrot.slane %v1901_v52, %v11551_v56 }
 0x95b   :  { %v1950_v23 = vsel %vm360_vm4, %v1937_v20, %v1949_v41 }
 0x95c   :  { %v1903_v46 = vpop.xlane.xlu0 %1902 }
 0x95d   :  { %v1941_v55 = vrot.slane %v1903_v46, %v11551_v56 }
 0x95f   :  { %v1951_v35 = vsel %vm362_vm5, %v1941_v55, %v1950_v23 }
 0x960   :  { %v1905_v24 = vpop.xlane.xlu0 %1904 }
 0x961   :  { %v1945_v21 = vrot.slane %v1905_v24, %v11551_v56 }
 0x963   :  { %v1952_v59 = vsel %vm364_vm6, %v1945_v21, %v1951_v35  ;;  %v11617_v21 = vld [vmem:[#allocation24_spill] sm:$0xff] }
 0x964   :  { %v1954_v5 = vsel %vm367_vm7, %v1952_v59, -inf }
 0x965   :  { %1955 = vmax.xlane.f32.xlu0 %v1954_v5  ;;  %v11618_v5 = vld [vmem:[#allocation25_spill] sm:$0xff] }
 0x9ee   :  { %v1956_v37 = vpop.xlane.xlu0 %1955 }
 0x9ef   :  { %v1961_v4 = vrot.slane %v1956_v37, %v11543_v43  ;;  %v1965_v0 = vrot.slane %v1956_v37, %v11545_v53  ;;  %v1969_v31 = vrot.slane %v1956_v37, %v11547_v57  ;;  %v1973_v61 = vrot.slane %v1956_v37, %v11553_v33 }
 0x9f0   :  { %v1977_v9 = vrot.slane %v1956_v37, %v11615_v18  ;;  %v1981_v20 = vrot.slane %v1956_v37, %v11616_v1  ;;  %v1985_v23 = vrot.slane %v1956_v37, %v11617_v21  ;;  %v1989_v7 = vrot.slane %v1956_v37, %v11618_v5 }
 0x9f1   :  { %v1998_v29 = vsub.f32 %v1891_v42, %v1961_v4  ;;  %v1999_v12 = vsub.f32 %v1893_v3, %v1965_v0  ;;  %v2000_v36 = vsub.f32 %v1895_v58, %v1969_v31  ;;  %v2001_v50 = vsub.f32 %v1897_v49, %v1973_v61 }
 0x9f2   :  { %v2002_v35 = vsub.f32 %v1899_v47, %v1977_v9  ;;  %v2003_v17 = vsub.f32 %v1901_v52, %v1981_v20  ;;  %v2004_v30 = vsub.f32 %v1903_v46, %v1985_v23  ;;  %v2005_v3 = vsub.f32 %v1905_v24, %v1989_v7 }
 0x9f3   :  { %v2006_v55 = vmul.f32 1.442695, %v1998_v29  ;;  %v2008_v41 = vmul.f32 1.442695, %v1999_v12  ;;  %v2010_v59 = vmul.f32 1.442695, %v2000_v36 }
 0x9f4   :  { %v2012_v62 = vmul.f32 1.442695, %v2001_v50  ;;  %v2014_v42 = vmul.f32 1.442695, %v2002_v35  ;;  %v2016_v58 = vmul.f32 1.442695, %v2003_v17 }
 0x9f5   :  { %7476 = vpow2.f32 %v2006_v55  ;;  %v2018_v49 = vmul.f32 1.442695, %v2004_v30  ;;  %v2020_v4 = vmul.f32 1.442695, %v2005_v3 }
 0x9f6   :  { %7478 = vpow2.f32 %v2008_v41 }
 0x9f7   :  { %7480 = vpow2.f32 %v2010_v59 }
 0x9f8   :  { %7482 = vpow2.f32 %v2012_v62 }
 0x9f9   :  { %7484 = vpow2.f32 %v2014_v42 }
 0x9fa   :  { %7486 = vpow2.f32 %v2016_v58 }
 0x9fb   :  { %7488 = vpow2.f32 %v2018_v49 }
 0x9fc   :  { %7490 = vpow2.f32 %v2020_v4 }
 0xa02   :  { %v7477_v0 = vpop.eup %7476 }
 0xa03   :  { %v7479_v47 = vpop.eup %7478  ;;  %2031 = vperm.xlu0 %7390, %v7477_v0  }
 0xa04   :  { %2034 = vperm.xlu1 %7389, %v7479_v47   ;;  %v7481_v37 = vpop.eup %7480 }
 0xa05   :  { %v7483_v52 = vpop.eup %7482 }
 0xa06   :  { %v9236_v46 = vpop.eup %7484 }
 0xa07   :  { %2037 = vperm.xlu0 %7390, %v7481_v37   ;;  %v9238_v31 = vpop.eup %7486 }
 0xa08   :  { %2040 = vperm.xlu1 %7389, %v7483_v52   ;;  %v9242_v30 = vpop.eup %7488 }
 0xa09   :  { %v9244_v62 = vpop.eup %7490 }
 0xa0b   :  { %2043 = vperm.xlu0 %7390, %v9236_v46  }
 0xa0c   :  { %2046 = vperm.xlu1 %7389, %v9238_v31  }
 0xa0f   :  { %2049 = vperm.xlu0 %7390, %v9242_v30  }
 0xa10   :  { %2052 = vperm.xlu1 %7389, %v9244_v62  }
 0xa7e   :  { %v2032_v17 = vpop.permute.xlu0 %2031 }
 0xa7f   :  { %v2035_v7 = vpop.permute.xlu1 %2034  ;;  %v2057_v61 = vrot.slane %v2032_v17, %v11551_v56 }
 0xa80   :  { %v2061_v24 = vrot.slane %v2035_v7, %v11551_v56 }
 0xa82   :  { %v2038_v9 = vpop.permute.xlu0 %2037  ;;  %v2086_v36 = vsel %vm352_vm0, %v2061_v24, %v2057_v61 }
 0xa83   :  { %v2041_v29 = vpop.permute.xlu1 %2040  ;;  %v2065_v12 = vrot.slane %v2038_v9, %v11551_v56 }
 0xa84   :  { %v2069_v20 = vrot.slane %v2041_v29, %v11551_v56 }
 0xa85   :  { %v2087_v50 = vsel %vm354_vm1, %v2065_v12, %v2086_v36 }
 0xa86   :  { %v2044_v55 = vpop.permute.xlu0 %2043  ;;  %v2088_v59 = vsel %vm356_vm2, %v2069_v20, %v2087_v50 }
 0xa87   :  { %v2047_v41 = vpop.permute.xlu1 %2046  ;;  %v2073_v23 = vrot.slane %v2044_v55, %v11551_v56 }
 0xa88   :  { %v2077_v35 = vrot.slane %v2047_v41, %v11551_v56 }
 0xa89   :  { %v2089_v42 = vsel %vm358_vm3, %v2073_v23, %v2088_v59 }
 0xa8a   :  { %v2050_v3 = vpop.permute.xlu0 %2049  ;;  %v2090_v17 = vsel %vm360_vm4, %v2077_v35, %v2089_v42 }
 0xa8b   :  { %v2053_v58 = vpop.permute.xlu1 %2052  ;;  %v2081_v49 = vrot.slane %v2050_v3, %v11551_v56 }
 0xa8c   :  { %v2085_v4 = vrot.slane %v2053_v58, %v11551_v56 }
 0xa8d   :  { %v2091_v7 = vsel %vm362_vm5, %v2081_v49, %v2090_v17 }
 0xa8e   :  { %v2092_v24 = vsel %vm364_vm6, %v2085_v4, %v2091_v7 }
 0xa8f   :  { %v2094_v61 = vsel %vm367_vm7, %v2092_v24, 0.0 }
 0xa90   :  { %2095 = vadd.xlane.f32.xlu0 %v2094_v61 }
 0xb19   :  { %v2096_v9 = vpop.xlane.xlu0 %2095 }
 0xb1a   :  { %v2101_v29 = vrot.slane %v2096_v9, %v11543_v43  ;;  %v2105_v12 = vrot.slane %v2096_v9, %v11545_v53  ;;  %v2109_v36 = vrot.slane %v2096_v9, %v11547_v57  ;;  %v2113_v20 = vrot.slane %v2096_v9, %v11553_v33  ;;  %v9297_v57 = vld [vmem:[#allocation2 + $0x38] sm:$0xff] }
 0xb1b   :  { %v2117_v50 = vrot.slane %v2096_v9, %v11615_v18  ;;  %v2121_v23 = vrot.slane %v2096_v9, %v11616_v1  ;;  %v2125_v42 = vrot.slane %v2096_v9, %v11617_v21  ;;  %v2129_v49 = vrot.slane %v2096_v9, %v11618_v5  ;;  %11622 = vst [vmem:[#allocation55_spill] sm:$0xff] %v9297_v57 }
 0xb1c   :  { %7492 = vrcp.f32 %v2101_v29 }
 0xb1d   :  { %7494 = vrcp.f32 %v2105_v12 }
 0xb1e   :  { %7496 = vrcp.f32 %v2109_v36 }
 0xb1f   :  { %7498 = vrcp.f32 %v2113_v20  ;;  %v9276_v20 = vld [vmem:[#allocation2 + $0x8] sm:$0xff] }
 0xb20   :  { %7500 = vrcp.f32 %v2117_v50  ;;  %v9279_v50 = vld [vmem:[#allocation2 + $0x10] sm:$0xff] }
 0xb21   :  { %7502 = vrcp.f32 %v2121_v23 }
 0xb22   :  { %7504 = vrcp.f32 %v2125_v42 }
 0xb23   :  { %7506 = vrcp.f32 %v2129_v49 }
 0xb29   :  { %v7493_v55 = vpop.eup %7492 }
 0xb2a   :  { %v2139_v41 = vmul.f32 %v7493_v55, %v7477_v0  ;;  %v7495_v35 = vpop.eup %7494  ;;  %v9282_v55 = vld [vmem:[#allocation2] sm:$0xff] }
 0xb2b   :  { %v2141_v59 = vmul.f32 %v7495_v35, %v7479_v47  ;;  %v7497_v3 = vpop.eup %7496  ;;  %v9285_v35 = vld [vmem:[#allocation2 + $0x18] sm:$0xff] }
 0xb2c   :  { %2156 = vperm.xlu1 %7389, %v2139_v41   ;;  %v2143_v58 = vmul.f32 %v7497_v3, %v7481_v37  ;;  %v7499_v4 = vpop.eup %7498  ;;  %11619 = vst [vmem:[#allocation52_spill] sm:$0xff] %v9285_v35 }
 0xb2d   :  { %v2145_v17 = vmul.f32 %v7499_v4, %v7483_v52  ;;  %v7501_v0 = vpop.eup %7500  ;;  %v9288_v4 = vld [vmem:[#allocation2 + $0x20] sm:$0xff] }
 0xb2e   :  { %v2147_v7 = vmul.f32 %v7501_v0, %v9236_v46  ;;  %v7503_v24 = vpop.eup %7502 }
 0xb2f   :  { %v2149_v47 = vmul.f32 %v7503_v24, %v9238_v31  ;;  %v7505_v61 = vpop.eup %7504 }
 0xb30   :  { %2161 = vperm.xlu1 %7389, %v2141_v59   ;;  %v2151_v29 = vmul.f32 %v7505_v61, %v9242_v30  ;;  %v7507_v37 = vpop.eup %7506 }
 0xb31   :  { %v2153_v9 = vmul.f32 %v7507_v37, %v9244_v62 }
 0xb34   :  { %2166 = vperm.xlu1 %7389, %v2143_v58  }
 0xb38   :  { %2171 = vperm.xlu1 %7389, %v2145_v17  }
 0xb3c   :  { %2176 = vperm.xlu1 %7389, %v2147_v7  }
 0xb40   :  { %2181 = vperm.xlu1 %7389, %v2149_v47  }
 0xb44   :  { %2186 = vperm.xlu1 %7389, %v2151_v29  }
 0xb48   :  { %2191 = vperm.xlu1 %7389, %v2153_v9   ;;  %v9291_v9 = vld [vmem:[#allocation2 + $0x28] sm:$0xff] }
 0xb49   :  { %11620 = vst [vmem:[#allocation54_spill] sm:$0xff] %v9291_v9 }
 0xba7   :  { %v2157_v12 = vpop.permute.xlu1 %2156 }
 0xba8   :  { %v2194_v30 = vmul.f32 %v9282_v55, %v2157_v12 }
 0xbaa   :  { %v2202_v42 = vrot.slane %v2194_v30, 4 }
 0xbab   :  { %v2162_v52 = vpop.permute.xlu1 %2161 }
 0xbac   :  { %v2195_v46 = vmul.f32 %v9276_v20, %v2162_v52  ;;  %v2203_v7 = vadd.f32 %v2202_v42, %v2194_v30 }
 0xbae   :  { %v2208_v23 = vrot.slane %v2195_v46, 4 }
 0xbaf   :  { %v2167_v36 = vpop.permute.xlu1 %2166 }
 0xbb0   :  { %v2196_v31 = vmul.f32 %v9279_v50, %v2167_v36  ;;  %v2209_v49 = vadd.f32 %v2208_v23, %v2195_v46  ;;  %v2204_v36 = vrot.slane %v2203_v7, 2 }
 0xbb2   :  { %v2214_v59 = vrot.slane %v2196_v31, 4  ;;  %v2210_v29 = vrot.slane %v2209_v49, 2 }
 0xbb3   :  { %v2172_v41 = vpop.permute.xlu1 %2171 }
 0xbb4   :  { %v2197_v62 = vmul.f32 %v9285_v35, %v2172_v41  ;;  %v2215_v0 = vadd.f32 %v2214_v59, %v2196_v31  ;;  %v2211_v21 = vadd.f32 %v2210_v29, %v2209_v49 }
 0xbb6   :  { %v2220_v3 = vrot.slane %v2197_v62, 4  ;;  %v2216_v52 = vrot.slane %v2215_v0, 2 }
 0xbb7   :  { %v2177_v58 = vpop.permute.xlu1 %2176 }
 0xbb8   :  { %v2198_v17 = vmul.f32 %v9288_v4, %v2177_v58  ;;  %v2221_v24 = vadd.f32 %v2220_v3, %v2197_v62  ;;  %v9294_v58 = vld [vmem:[#allocation2 + $0x30] sm:$0xff]  ;;  %v2217_v30 = vadd.f32 %v2216_v52, %v2215_v0  ;;  %v2205_v62 = vadd.f32 %v2204_v36, %v2203_v7 }
 0xbb9   :  { %11621 = vst [vmem:[#allocation56_spill] sm:$0xff] %v9294_v58 }
 0xbba   :  { %v2226_v47 = vrot.slane %v2198_v17, 4  ;;  %v2222_v41 = vrot.slane %v2221_v24, 2  ;;  %v2218_v49 = vrot.slane %v2217_v30, 1 }
 0xbbb   :  { %v2182_v61 = vpop.permute.xlu1 %2181 }
 0xbbc   :  { %v2227_v37 = vadd.f32 %v2226_v47, %v2198_v17  ;;  %v2199_v12 = vmul.f32 %v9291_v9, %v2182_v61  ;;  %v2223_v59 = vadd.f32 %v2222_v41, %v2221_v24  ;;  %v2212_v61 = vrot.slane %v2211_v21, 1 }
 0xbbd   :  { %v2219_v36 = vadd.f32 %v2218_v49, %v2217_v30  ;;  %v9337_v49 = vld [vmem:[#allocation10 + $0x120] sm:$0xff] }
 0xbbe   :  { %v2232_v5 = vrot.slane %v2199_v12, 4  ;;  %v2228_v46 = vrot.slane %v2227_v37, 2  ;;  %v2224_v29 = vrot.slane %v2223_v59, 1  ;;  %v2213_v0 = vadd.f32 %v2212_v61, %v2211_v21  ;;  %v9333_v61 = vld [vmem:[#allocation10 + $0x128] sm:$0xff] }
 0xbbf   :  { %v2187_v23 = vpop.permute.xlu1 %2186 }
 0xbc0   :  { %v2233_v1 = vadd.f32 %v2232_v5, %v2199_v12  ;;  %v2200_v31 = vmul.f32 %v9294_v58, %v2187_v23  ;;  %v2229_v17 = vadd.f32 %v2228_v46, %v2227_v37  ;;  %v2206_v5 = vrot.slane %v2205_v62, 1 }
 0xbc1   :  { %v2225_v41 = vadd.f32 %v2224_v29, %v2223_v59  ;;  %v9327_v59 = vld [vmem:[#allocation10 + $0x138] sm:$0xff]  ;;  %v9343_v29 = vld [vmem:[#allocation10 + $0x110] sm:$0xff] }
 0xbc2   :  { %v2234_v42 = vrot.slane %v2233_v1, 2  ;;  %v2238_v3 = vrot.slane %v2200_v31, 4  ;;  %v2230_v23 = vrot.slane %v2229_v17, 1  ;;  %v2207_v37 = vadd.f32 %v2206_v5, %v2205_v62  ;;  %v9307_v62 = vld [vmem:[#allocation10 + $0x168] sm:$0xff]  ;;  %v9340_v5 = vld [vmem:[#allocation10 + $0x130] sm:$0xff] }
 0xbc3   :  { %v2192_v47 = vpop.permute.xlu1 %2191 }
 0xbc4   :  { %v2235_v18 = vadd.f32 %v2234_v42, %v2233_v1  ;;  %v2239_v33 = vadd.f32 %v2238_v3, %v2200_v31  ;;  %v2201_v53 = vmul.f32 %v9297_v57, %v2192_v47  ;;  %v2231_v31 = vadd.f32 %v2230_v23, %v2229_v17  ;;  %v9330_v17 = vld [vmem:[#allocation10 + $0x148] sm:$0xff]  ;;  %v9350_v23 = vld [vmem:[#allocation10 + $0x118] sm:$0xff] }
 0xbc5   :  { %v2262_v42 = vsel %vm352_vm0, %v2213_v0, %v2207_v37  ;;  %v9353_v0 = vld [vmem:[#allocation10 + $0xf8] sm:$0xff]  ;;  %v9370_v37 = vld [vmem:[#allocation10 + $0xe8] sm:$0xff] }
 0xbc6   :  { %v2240_v12 = vrot.slane %v2239_v33, 2  ;;  %v2244_v56 = vrot.slane %v2201_v53, 4  ;;  %v2236_v7 = vrot.slane %v2235_v18, 1  ;;  %v2263_v57 = vsel %vm354_vm1, %v2219_v36, %v2262_v42  ;;  %v9367_v36 = vld [vmem:[#allocation10 + $0xd8] sm:$0xff]  ;;  %11624 = vst [vmem:[#allocation59_spill] sm:$0xff] %v9370_v37  ;;  %v9387_v42 = vld [vmem:[#allocation10 + $0xa8] sm:$0xff] }
 0xbc7   :  { %v2264_v9 = vsel %vm356_vm2, %v2225_v41, %v2263_v57  ;;  %v9313_v57 = vld [vmem:[#allocation10 + $0x158] sm:$0xff]  ;;  %11623 = vst [vmem:[#allocation57_spill] sm:$0xff] %v9367_v36  ;;  %v9373_v41 = vld [vmem:[#allocation10 + $0xc8] sm:$0xff]  ;;  %11629 = vst [vmem:[#allocation63_spill] sm:$0xff] %v9387_v42 }
 0xbc8   :  { %v2241_v24 = vadd.f32 %v2240_v12, %v2239_v33  ;;  %v2245_v52 = vadd.f32 %v2244_v56, %v2201_v53  ;;  %v2237_v3 = vadd.f32 %v2236_v7, %v2235_v18  ;;  %v2265_v21 = vsel %vm358_vm3, %v2231_v31, %v2264_v9  ;;  %v9310_v18 = vld [vmem:[#allocation10 + $0x178] sm:$0xff]  ;;  %v9320_v9 = vld [vmem:[#allocation10 + $0x160] sm:$0xff]  ;;  %v9347_v12 = vld [vmem:[#allocation10 + $0x108] sm:$0xff]  ;;  %11625 = vst [vmem:[#allocation58_spill] sm:$0xff] %v9373_v41 }
 0xbc9   :  { %v9357_v7 = vld [vmem:[#allocation10 + $0xf0] sm:$0xff] }
 0xbca   :  { %v2242_v46 = vrot.slane %v2241_v24, 1  ;;  %v2246_v1 = vrot.slane %v2245_v52, 2  ;;  %v2266_v53 = vsel %vm360_vm4, %v2237_v3, %v2265_v21  ;;  %v9383_v31 = vld [vmem:[#allocation10 + $0xb0] sm:$0xff]  ;;  %v9390_v3 = vld [vmem:[#allocation10 + $0xb8] sm:$0xff] }
 0xbcb   :  { %11628 = vst [vmem:[#allocation61_spill] sm:$0xff] %v9383_v31  ;;  %11630 = vst [vmem:[#allocation65_spill] sm:$0xff] %v9390_v3  ;;  %v9397_v21 = vld [vmem:[#allocation10 + $0x90] sm:$0xff] }
 0xbcc   :  { %v2247_v47 = vadd.f32 %v2246_v1, %v2245_v52  ;;  %v2243_v58 = vadd.f32 %v2242_v46, %v2241_v24  ;;  %v9360_v24 = vld [vmem:[#allocation10 + $0x100] sm:$0xff]  ;;  %v9380_v1 = vld [vmem:[#allocation10 + $0xd0] sm:$0xff]  ;;  %11632 = vst [vmem:[#allocation66_spill] sm:$0xff] %v9397_v21 }
 0xbcd   :  { %v9363_v52 = vld [vmem:[#allocation10 + $0xe0] sm:$0xff]  ;;  %11627 = vst [vmem:[#allocation62_spill] sm:$0xff] %v9380_v1 }
 0xbce   :  { %v2248_v35 = vrot.slane %v2247_v47, 1  ;;  %v2267_v56 = vsel %vm362_vm5, %v2243_v58, %v2266_v53  ;;  %v9323_v58 = vld [vmem:[#allocation10 + $0x140] sm:$0xff] }
 0xbcf   :  { %v9377_v46 = vld [vmem:[#allocation10 + $0xc0] sm:$0xff] }
 0xbd0   :  { %v2249_v33 = vadd.f32 %v2248_v35, %v2247_v47  ;;  %v9317_v35 = vld [vmem:[#allocation10 + $0x150] sm:$0xff]  ;;  %11626 = vst [vmem:[#allocation60_spill] sm:$0xff] %v9377_v46  ;;  %v9393_v47 = vld [vmem:[#allocation10 + $0x98] sm:$0xff]  ;;  %v9403_v53 = vld [vmem:[#allocation10 + $0x80] sm:$0xff] }
 0xbd1   :  { %11631 = vst [vmem:[#allocation64_spill] sm:$0xff] %v9393_v47  ;;  %11634 = vst [vmem:[#allocation67_spill] sm:$0xff] %v9403_v53 }
 0xbd2   :  { %v2268_v30 = vsel %vm364_vm6, %v2249_v33, %v2267_v56  ;;  %v9400_v33 = vld [vmem:[#allocation10 + $0xa0] sm:$0xff]  ;;  %v9407_v56 = vld [vmem:[#allocation10 + $0x78] sm:$0xff] }
 0xbd3   :  { %2335 = vmatmul.mubr.f32.vlgmr.msra.gmra.mxu0 %v2268_v30  ;;  %6988 = vmatmul.mubr.f32.vlgmr.msra.gmra.mxu1 %v2268_v30  ;;  %11633 = vst [vmem:[#allocation68_spill] sm:$0xff] %v9400_v33  ;;  %11635 = vst [vmem:[#allocation69_spill] sm:$0xff] %v9407_v56  ;;  %v9410_v30 = vld [vmem:[#allocation10 + $0x88] sm:$0xff] }
 0xbd4   :  { %2415 = vmatpush1.msra.mxu0 %v9307_v62  ;;  %6991 = vmatpush3.msra.mxu1 %v9310_v18  ;;  %11636 = vst [vmem:[#allocation71_spill] sm:$0xff] %v9410_v30 }
 0xbd5   :  { %2416 = vmatprep.subr.mxu0 %v9313_v57  ;;  %6992 = vmatprep.subr.mxu1 %v11494_v38 }
 0xbd6   :  { %2417 = vmatpush1.msra.mxu0 %v9317_v35  ;;  %6993 = vmatpush3.msra.mxu1 %v9320_v9 }
 0xbd7   :  { %2418 = vmatprep.subr.mxu0 %v9323_v58  ;;  %6994 = vmatprep.subr.mxu1 %v11494_v38 }
 0xbd8   :  { %2419 = vmatpush1.msra.mxu0 %v9327_v59  ;;  %6995 = vmatpush3.msra.mxu1 %v9330_v17 }
 0xbd9   :  { %2420 = vmatprep.subr.mxu0 %v9333_v61  ;;  %6996 = vmatprep.subr.mxu1 %v11494_v38 }
 0xbda   :  { %2421 = vmatpush1.msra.mxu0 %v9337_v49  ;;  %6997 = vmatpush3.msra.mxu1 %v9340_v5 }
 0xbdb   :  { %2422 = vmatprep.subr.mxu0 %v9343_v29  ;;  %6998 = vmatprep.subr.mxu1 %v11494_v38 }
 0xbdc   :  { %2423 = vmatpush1.msra.mxu0 %v9347_v12  ;;  %6999 = vmatpush3.msra.mxu1 %v9350_v23 }
 0xbdd   :  { %2424 = vmatprep.subr.mxu0 %v9353_v0  ;;  %7000 = vmatprep.subr.mxu1 %v11494_v38 }
 0xbde   :  { %2425 = vmatpush1.msra.mxu0 %v9357_v7  ;;  %7001 = vmatpush3.msra.mxu1 %v9360_v24 }
 0xbdf   :  { %2426 = vmatprep.subr.mxu0 %v9363_v52  ;;  %7002 = vmatprep.subr.mxu1 %v11494_v38 }
 0xbe0   :  { %2427 = vmatpush1.msra.mxu0 %v9367_v36  ;;  %7003 = vmatpush3.msra.mxu1 %v9370_v37 }
 0xbe1   :  { %2428 = vmatprep.subr.mxu0 %v9373_v41  ;;  %7004 = vmatprep.subr.mxu1 %v11494_v38 }
 0xbe2   :  { %2429 = vmatpush1.msra.mxu0 %v9377_v46  ;;  %7005 = vmatpush3.msra.mxu1 %v9380_v1  ;;  %v11692_v1 = vld [vmem:[#allocation25_spill] sm:$0xff] }
 0xbe3   :  { %2430 = vmatprep.subr.mxu0 %v9383_v31  ;;  %7006 = vmatprep.subr.mxu1 %v11494_v38 }
 0xbe4   :  { %2431 = vmatpush1.msra.mxu0 %v9387_v42  ;;  %7007 = vmatpush3.msra.mxu1 %v9390_v3 }
 0xbe5   :  { %2432 = vmatprep.subr.mxu0 %v9393_v47  ;;  %7008 = vmatprep.subr.mxu1 %v11494_v38  ;;  %v9413_v47 = vld [vmem:[#allocation10 + $0x68] sm:$0xff] }
 0xbe6   :  { %2433 = vmatpush1.msra.mxu0 %v9397_v21  ;;  %7009 = vmatpush3.msra.mxu1 %v9400_v33  ;;  %11637 = vst [vmem:[#allocation70_spill] sm:$0xff] %v9413_v47  ;;  %v9417_v33 = vld [vmem:[#allocation10 + $0x60] sm:$0xff]  ;;  %v9423_v21 = vld [vmem:[#allocation10 + $0x50] sm:$0xff] }
 0xbe7   :  { %2434 = vmatprep.subr.mxu0 %v9403_v53  ;;  %7010 = vmatprep.subr.mxu1 %v11494_v38  ;;  %11638 = vst [vmem:[#allocation72_spill] sm:$0xff] %v9417_v33  ;;  %v9420_v53 = vld [vmem:[#allocation10 + $0x70] sm:$0xff]  ;;  %11640 = vst [vmem:[#allocation28_spill] sm:$0xff] %v9423_v21 }
 0xbe8   :  { %2435 = vmatpush1.msra.mxu0 %v9407_v56  ;;  %7011 = vmatpush3.msra.mxu1 %v9410_v30  ;;  %11639 = vst [vmem:[#allocation73_spill] sm:$0xff] %v9420_v53  ;;  %v9427_v30 = vld [vmem:[#allocation10 + $0x48] sm:$0xff]  ;;  %v9433_v56 = vld [vmem:[#allocation10 + $0x38] sm:$0xff] }
 0xbe9   :  { %2436 = vmatprep.subr.mxu0 %v9413_v47  ;;  %7012 = vmatprep.subr.mxu1 %v11494_v38  ;;  %11641 = vst [vmem:[#allocation74_spill] sm:$0xff] %v9427_v30  ;;  %v9430_v47 = vld [vmem:[#allocation10 + $0x58] sm:$0xff]  ;;  %11643 = vst [vmem:[#allocation76_spill] sm:$0xff] %v9433_v56 }
 0xbea   :  { %2437 = vmatpush1.msra.mxu0 %v9417_v33  ;;  %7013 = vmatpush3.msra.mxu1 %v9420_v53  ;;  %11642 = vst [vmem:[#allocation75_spill] sm:$0xff] %v9430_v47  ;;  %v9437_v53 = vld [vmem:[#allocation10 + $0x30] sm:$0xff]  ;;  %v9443_v33 = vld [vmem:[#allocation10 + $0x20] sm:$0xff] }
 0xbeb   :  { %2438 = vmatprep.subr.mxu0 %v9423_v21  ;;  %7014 = vmatprep.subr.mxu1 %v11494_v38  ;;  %11644 = vst [vmem:[#allocation77_spill] sm:$0xff] %v9437_v53  ;;  %v9440_v21 = vld [vmem:[#allocation10 + $0x40] sm:$0xff]  ;;  %11646 = vst [vmem:[#allocation79_spill] sm:$0xff] %v9443_v33 }
 0xbec   :  { %2439 = vmatpush1.msra.mxu0 %v9427_v30  ;;  %7015 = vmatpush3.msra.mxu1 %v9430_v47  ;;  %11645 = vst [vmem:[#allocation78_spill] sm:$0xff] %v9440_v21  ;;  %v9447_v47 = vld [vmem:[#allocation10 + $0x18] sm:$0xff]  ;;  %v9453_v30 = vld [vmem:[#allocation10 + $0x8] sm:$0xff] }
 0xbed   :  { %2440 = vmatprep.subr.mxu0 %v9433_v56  ;;  %7016 = vmatprep.subr.mxu1 %v11494_v38  ;;  %11647 = vst [vmem:[#allocation80_spill] sm:$0xff] %v9447_v47  ;;  %v9450_v56 = vld [vmem:[#allocation10 + $0x28] sm:$0xff]  ;;  %11649 = vst [vmem:[#allocation82_spill] sm:$0xff] %v9453_v30 }
 0xbee   :  { %2441 = vmatpush1.msra.mxu0 %v9437_v53  ;;  %7017 = vmatpush3.msra.mxu1 %v9440_v21  ;;  %11648 = vst [vmem:[#allocation81_spill] sm:$0xff] %v9450_v56  ;;  %v9457_v21 = vld [vmem:[#allocation10] sm:$0xff] }
 0xbef   :  { %2442 = vmatprep.subr.mxu0 %v9443_v33  ;;  %7018 = vmatprep.subr.mxu1 %v11494_v38  ;;  %11650 = vst [vmem:[#allocation83_spill] sm:$0xff] %v9457_v21  ;;  %v9461_v33 = vld [vmem:[#allocation10 + $0x10] sm:$0xff] }
 0xbf0   :  { %2443 = vmatpush1.msra.mxu0 %v9447_v47  ;;  %7019 = vmatpush3.msra.mxu1 %v9450_v56  ;;  %11651 = vst [vmem:[#allocation84_spill] sm:$0xff] %v9461_v33  ;;  %v11688_v56 = vld [vmem:[#allocation21_spill] sm:$0xff] }
 0xbf1   :  { %2444 = vmatprep.subr.mxu0 %v9453_v30  ;;  %7020 = vmatprep.subr.mxu1 %v11494_v38 }
 0xbf2   :  { %2445 = vmatpush1.msra.mxu0 %v9457_v21  ;;  %2478 = vmatprep.mubr.f32.mxu0 %v11494_v38  ;;  %v11687_v21 = vld [vmem:[#allocation20_spill] sm:$0xff] }
 0xbf3   :  { %7021 = vmatpush3.msra.mxu1 %v9461_v33  ;;  %7022 = vmatprep.mubr.msk.f32.mxu1 %vm8197_vm8, %v11494_v38 }
 0xbf4   :  { %2479 = vmatmul.mubr.f32.vlgmr.msra.gmra.mxu0 %v9184_v6  ;;  %7023 = vmatmul.mubr.f32.vlgmr.msra.gmra.mxu1 %v9184_v6 }
 0xbf5   :  { %3056 = vmatprep.subr.mxu0 %v9013_v28  ;;  %7025 = vmatprep.subr.mxu1 %v11494_v38  ;;  %v11652_v28 = vld [vmem:[#allocation30_spill] sm:$0xff] }
 0xbf6   :  { %3057 = vmatpush1.msra.mxu0 %v9017_v16  ;;  %7026 = vmatpush3.msra.mxu1 %v9020_v60  ;;  %v11653_v16 = vld [vmem:[#allocation32_spill] sm:$0xff]  ;;  %v11654_v60 = vld [vmem:[#allocation31_spill] sm:$0xff] }
 0xbf7   :  { %3058 = vmatprep.subr.mxu0 %v9023_v48  ;;  %7027 = vmatprep.subr.mxu1 %v11494_v38  ;;  %v11655_v48 = vld [vmem:[#allocation33_spill] sm:$0xff] }
 0xbf8   :  { %3059 = vmatpush1.msra.mxu0 %v9027_v13  ;;  %7028 = vmatpush3.msra.mxu1 %v9030_v45  ;;  %v11656_v13 = vld [vmem:[#allocation35_spill] sm:$0xff]  ;;  %v11657_v45 = vld [vmem:[#allocation34_spill] sm:$0xff] }
 0xbf9   :  { %3060 = vmatprep.subr.mxu0 %v9033_v34  ;;  %7029 = vmatprep.subr.mxu1 %v11494_v38  ;;  %v11658_v34 = vld [vmem:[#allocation36_spill] sm:$0xff] }
 0xbfa   :  { %3061 = vmatpush1.msra.mxu0 %v9037_v39  ;;  %7030 = vmatpush3.msra.mxu1 %v9040_v2  ;;  %v11659_v39 = vld [vmem:[#allocation38_spill] sm:$0xff]  ;;  %v11660_v2 = vld [vmem:[#allocation37_spill] sm:$0xff] }
 0xbfb   :  { %3062 = vmatprep.subr.mxu0 %v9043_v11  ;;  %7031 = vmatprep.subr.mxu1 %v11494_v38  ;;  %v11661_v11 = vld [vmem:[#allocation39_spill] sm:$0xff] }
 0xbfc   :  { %3063 = vmatpush1.msra.mxu0 %v9047_v44  ;;  %7032 = vmatpush3.msra.mxu1 %v9050_v25  ;;  %v11662_v44 = vld [vmem:[#allocation41_spill] sm:$0xff]  ;;  %v11663_v25 = vld [vmem:[#allocation40_spill] sm:$0xff] }
 0xbfd   :  { %3064 = vmatprep.subr.mxu0 %v9053_v15  ;;  %7033 = vmatprep.subr.mxu1 %v11494_v38  ;;  %v11664_v15 = vld [vmem:[#allocation42_spill] sm:$0xff] }
 0xbfe   :  { %3065 = vmatpush1.msra.mxu0 %v9057_v51  ;;  %7034 = vmatpush3.msra.mxu1 %v9060_v27  ;;  %v11665_v51 = vld [vmem:[#allocation43_spill] sm:$0xff]  ;;  %v11666_v27 = vld [vmem:[#allocation44_spill] sm:$0xff] }
 0xbff   :  { %3066 = vmatprep.subr.mxu0 %v9063_v32  ;;  %7035 = vmatprep.subr.mxu1 %v11494_v38  ;;  %v11667_v32 = vld [vmem:[#allocation18_spill] sm:$0xff] }
 0xc00   :  { %3067 = vmatpush1.msra.mxu0 %v9067_v22  ;;  %7036 = vmatpush3.msra.mxu1 %v9070_v40  ;;  %v11668_v22 = vld [vmem:[#allocation45_spill] sm:$0xff]  ;;  %v11669_v40 = vld [vmem:[#allocation47_spill] sm:$0xff] }
 0xc01   :  { %3068 = vmatprep.subr.mxu0 %v9073_v14  ;;  %7037 = vmatprep.subr.mxu1 %v11494_v38  ;;  %v11670_v14 = vld [vmem:[#allocation46_spill] sm:$0xff] }
 0xc02   :  { %3069 = vmatpush1.msra.mxu0 %v9077_v8  ;;  %7038 = vmatpush3.msra.mxu1 %v9080_v10  ;;  %v11671_v8 = vld [vmem:[#allocation48_spill] sm:$0xff]  ;;  %v11672_v10 = vld [vmem:[#allocation50_spill] sm:$0xff] }
 0xc03   :  { %3070 = vmatprep.subr.mxu0 %v9083_v19  ;;  %7039 = vmatprep.subr.mxu1 %v11494_v38  ;;  %v11673_v19 = vld [vmem:[#allocation49_spill] sm:$0xff] }
 0xc04   :  { %3071 = vmatpush1.msra.mxu0 %v9087_v26  ;;  %7040 = vmatpush3.msra.mxu1 %v9090_v54  ;;  %v11674_v26 = vld [vmem:[#allocation51_spill] sm:$0xff]  ;;  %v11675_v54 = vld [vmem:[#allocation53_spill] sm:$0xff] }
 0xc05   :  { %3072 = vmatprep.subr.mxu0 %v9093_v63  ;;  %7041 = vmatprep.subr.mxu1 %v11494_v38 }
 0xc06   :  { %3073 = vmatpush1.msra.mxu0 %v11652_v28  ;;  %7042 = vmatpush3.msra.mxu1 %v11653_v16 }
 0xc07   :  { %3074 = vmatprep.subr.mxu0 %v11654_v60  ;;  %7043 = vmatprep.subr.mxu1 %v11494_v38  ;;  %v2251_v60 = vld [vmem:[#allocation5 + $0x30] sm:$0xff] }
 0xc08   :  { %3075 = vmatpush1.msra.mxu0 %v11655_v48  ;;  %7044 = vmatpush3.msra.mxu1 %v11656_v13 }
 0xc09   :  { %3076 = vmatprep.subr.mxu0 %v11657_v45  ;;  %7045 = vmatprep.subr.mxu1 %v11494_v38 }
 0xc0a   :  { %3077 = vmatpush1.msra.mxu0 %v11658_v34  ;;  %7046 = vmatpush3.msra.mxu1 %v11659_v39  ;;  %v11676_v39 = vld [vmem:[#allocation26_spill] sm:$0xff] }
 0xc0b   :  { %3078 = vmatprep.subr.mxu0 %v11660_v2  ;;  %7047 = vmatprep.subr.mxu1 %v11494_v38 }
 0xc0c   :  { %3079 = vmatpush1.msra.mxu0 %v11661_v11  ;;  %7048 = vmatpush3.msra.mxu1 %v11662_v44 }
 0xc0d   :  { %3080 = vmatprep.subr.mxu0 %v11663_v25  ;;  %7049 = vmatprep.subr.mxu1 %v11494_v38 }
 0xc0e   :  { %3081 = vmatpush1.msra.mxu0 %v11664_v15  ;;  %7050 = vmatpush3.msra.mxu1 %v11665_v51  ;;  %v2252_v15 = vld [vmem:[#allocation5 + $0x38] sm:$0xff] }
 0xc0f   :  { %3082 = vmatprep.subr.mxu0 %v11666_v27  ;;  %7051 = vmatprep.subr.mxu1 %v11494_v38  ;;  %v11677_v27 = vld [vmem:[#allocation27_spill] sm:$0xff] }
 0xc10   :  { %3083 = vmatpush1.msra.mxu0 %v11667_v32  ;;  %7052 = vmatpush3.msra.mxu1 %v11668_v22 }
 0xc11   :  { %3084 = vmatprep.subr.mxu0 %v11669_v40  ;;  %7053 = vmatprep.subr.mxu1 %v11494_v38 }
 0xc12   :  { %3085 = vmatpush1.msra.mxu0 %v11670_v14  ;;  %7054 = vmatpush3.msra.mxu1 %v11671_v8 }
 0xc13   :  { %3086 = vmatprep.subr.mxu0 %v11672_v10  ;;  %7055 = vmatprep.subr.mxu1 %v11494_v38 }
 0xc14   :  { %3087 = vmatpush1.msra.mxu0 %v11673_v19  ;;  %7056 = vmatpush3.msra.mxu1 %v11674_v26 }
 0xc15   :  { %3120 = vmatprep.mubr.f32.mxu0 %v11494_v38  ;;  %7057 = vmatprep.mubr.msk.f32.mxu1 %vm8197_vm8, %v11494_v38 }
 0xc16   :  { %3200 = vmatprep.subr.mxu0 %v11675_v54  ;;  %7060 = vmatprep.subr.mxu1 %v11494_v38  ;;  %v2253_v54 = vld [vmem:[#allocation5 + $0x40] sm:$0xff] }
 0xc93   :  { %v2407_v63 = vpop.f32.mrf.mxu1  ;;  %v2336_v16 = vpop.f32.mrf.mxu0 }
 0xc94   :  { %v2411_v34 = vadd.f32 %v2336_v16, %v2251_v60 }
 0xc95   :  { %v6989_v28 = vpop.f32.mrf.mxu1  ;;  %v2338_v48 = vpop.f32.mrf.mxu0 }
 0xc96   :  { %v2412_v22 = vadd.f32 %v2338_v48, %v2252_v15  ;;  %v11678_v28 = vld [vmem:[#allocation29_spill] sm:$0xff] }
 0xcb4   :  { %v2480_v13 = vpop.f32.mrf.mxu0  ;;  %v2551_v45 = vpop.f32.mrf.mxu1 }
 0xcb5   :  { %v2481_v2 = vadd.f32 %v2480_v13, %v11676_v39  ;;  %v2552_v16 = vadd.f32 %v2551_v45, %v11678_v28  ;;  %v2413_v13 = vadd.f32 %v2407_v63, %v2253_v54 }
 0xcb6   :  { %v2482_v11 = vpop.f32.mrf.mxu0  ;;  %v7024_v44 = vpop.f32.mrf.mxu1 }
 0xcb7   :  { %v2555_v25 = vadd.f32 %v2481_v2, %v2411_v34  ;;  %v2483_v32 = vadd.f32 %v2482_v11, %v11677_v27 }
 0xcb9   :  { %v6531_v51 = vmul.f32 -1.442695, %v2555_v25  ;;  %v2562_v40 = vadd.f32 %v2483_v32, %v2412_v22  ;;  %v11680_v32 = vld [vmem:[#allocation17_spill] sm:$0xff] }
 0xcbb   :  { %7508 = vpow2.f32 %v6531_v51  ;;  %v6532_v14 = vmul.f32 -1.442695, %v2562_v40 }
 0xcbd   :  { %7510 = vpow2.f32 %v6532_v14 }
 0xcc8   :  { %v7509_v8 = vpop.eup %7508 }
 0xcc9   :  { %v2559_v10 = vadd.f32 1.0, %v7509_v8 }
 0xcca   :  { %v7511_v19 = vpop.eup %7510 }
 0xccb   :  { %7512 = vrcp.f32 %v2559_v10  ;;  %v2566_v26 = vadd.f32 1.0, %v7511_v19 }
 0xccd   :  { %7514 = vrcp.f32 %v2566_v26 }
 0xcd8   :  { %v7513_v60 = vpop.eup %7512 }
 0xcd9   :  { %v2569_v34 = vmul.f32 %v7513_v60, %v2552_v16 }
 0xcda   :  { %v7515_v11 = vpop.eup %7514 }
 0xcdb   :  { %v2570_v2 = vadd.f32 %v2569_v34, %v2413_v13  ;;  %v2572_v48 = vsub.f32 1.0, %v7515_v11  ;;  %v2574_v15 = vmul.f32 %v7515_v11, %v9184_v6 }
 0xcdd   :  { %7516 = vtanh.f32 %v2570_v2 }
 0xcea   :  { %v7517_v44 = vpop.eup %7516 }
 0xceb   :  { %v2573_v25 = vmul.f32 %v7517_v44, %v2572_v48 }
 0xced   :  { %v9541_v51 = vadd.f32 %v2574_v15, %v2573_v25  ;;  %v11681_v15 = vld [vmem:[#allocation52_spill] sm:$0xff] }
 0xcef   :  { %11679 = vst [vmem:[#allocation30_spill] sm:$0xff] %v9541_v51  ;;  %2577 = vst [vmem:[#allocation11 + $0x10] sm:$0xff] %v9541_v51  ;;  %v2586_v22 = vrot.slane %v9541_v51, %v11680_v32  ;;  %v2579_v63 = vcombine.high %v9541_v51, %v9541_v51  ;;  %v11686_v51 = vld [vmem:[#allocation19_spill] sm:$0xff] }
 0xcf1   :  { %v2602_v45 = vrot.slane %v2586_v22, %v11680_v32  ;;  %v2594_v40 = vcombine.high %v2586_v22, %v2586_v22  ;;  %v2593_v14 = vrot.slane %v2579_v63, %v11680_v32 }
 0xcf3   :  { %v2631_v8 = vrot.slane %v2602_v45, %v11543_v43  ;;  %v2616_v10 = vrot.slane %v2594_v40, %v11680_v32  ;;  %v2624_v6 = vcombine.high %v2602_v45, %v2602_v45  ;;  %v2609_v16 = vrot.slane %v2593_v14, %v11680_v32  ;;  %v11682_v40 = vld [vmem:[#allocation54_spill] sm:$0xff] }
 0xcf4   :  { %v2595_v11 = vcombine.high %v2593_v14, %v2593_v14  ;;  %v11683_v14 = vld [vmem:[#allocation56_spill] sm:$0xff] }
 0xcf5   :  { %v2668_v19 = vmul.f32 %v9282_v55, %v2631_v8  ;;  %v2635_v26 = vrot.slane %v2616_v10, %v11543_v43  ;;  %v2639_v54 = vrot.slane %v2624_v6, %v11543_v43  ;;  %v2647_v34 = vrot.slane %v2609_v16, %v11543_v43 }
 0xcf6   :  { %v2626_v2 = vcombine.high %v2616_v10, %v2616_v10  ;;  %v2623_v25 = vrot.slane %v2595_v11, %v11680_v32  ;;  %v2625_v45 = vcombine.high %v2609_v16, %v2609_v16 }
 0xcf7   :  { %2676 = vadd.xlane.f32.xlu0 %v2668_v19  ;;  %v2669_v60 = vmul.f32 %v9276_v20, %v2635_v26  ;;  %v2670_v13 = vmul.f32 %v9279_v50, %v2639_v54  ;;  %v2672_v48 = vmul.f32 %v9288_v4, %v2647_v34  ;;  %v11684_v54 = vld [vmem:[#allocation55_spill] sm:$0xff] }
 0xcf8   :  { %v2643_v44 = vrot.slane %v2626_v2, %v11543_v43  ;;  %v2651_v63 = vrot.slane %v2623_v25, %v11543_v43  ;;  %v2655_v6 = vrot.slane %v2625_v45, %v11543_v43  ;;  %v2627_v10 = vcombine.high %v2623_v25, %v2623_v25 }
 0xcf9   :  { %2678 = vadd.xlane.f32.xlu1 %v2669_v60 }
 0xcfa   :  { %v2671_v22 = vmul.f32 %v11681_v15, %v2643_v44  ;;  %v2673_v8 = vmul.f32 %v11682_v40, %v2651_v63  ;;  %v2674_v19 = vmul.f32 %v11683_v14, %v2655_v6  ;;  %v2659_v26 = vrot.slane %v2627_v10, %v11543_v43 }
 0xcfb   :  { %2680 = vadd.xlane.f32.xlu0 %v2670_v13 }
 0xcfc   :  { %v2675_v60 = vmul.f32 %v11684_v54, %v2659_v26 }
 0xcff   :  { %2684 = vadd.xlane.f32.xlu0 %v2672_v48  ;;  %v11685_v48 = vld [vmem:[#allocation16_spill] sm:$0xff] }
 0xd03   :  { %2682 = vadd.xlane.f32.xlu0 %v2671_v22 }
 0xd07   :  { %2686 = vadd.xlane.f32.xlu0 %v2673_v8 }
 0xd0b   :  { %2688 = vadd.xlane.f32.xlu0 %v2674_v19 }
 0xd0f   :  { %2690 = vadd.xlane.f32.xlu0 %v2675_v60 }
 0xd80   :  { %v2677_v13 = vpop.xlane.xlu0 %2676 }
 0xd81   :  { %v2703_v22 = vrot.slane %v2677_v13, %v11685_v48 }
 0xd82   :  { %v2679_v11 = vpop.xlane.xlu1 %2678 }
 0xd83   :  { %v2707_v44 = vrot.slane %v2679_v11, %v11685_v48 }
 0xd84   :  { %v2681_v34 = vpop.xlane.xlu0 %2680 }
 0xd85   :  { %v2711_v25 = vrot.slane %v2681_v34, %v11685_v48  ;;  %v2732_v45 = vsel %vm352_vm0, %v2707_v44, %v2703_v22 }
 0xd87   :  { %v2733_v6 = vsel %vm354_vm1, %v2711_v25, %v2732_v45 }
 0xd88   :  { %v2685_v2 = vpop.xlane.xlu0 %2684 }
 0xd89   :  { %v2719_v60 = vrot.slane %v2685_v2, %v11685_v48 }
 0xd8c   :  { %v2683_v16 = vpop.xlane.xlu0 %2682 }
 0xd8d   :  { %v2715_v8 = vrot.slane %v2683_v16, %v11685_v48 }
 0xd8f   :  { %v2734_v19 = vsel %vm356_vm2, %v2715_v8, %v2733_v6 }
 0xd90   :  { %v2687_v63 = vpop.xlane.xlu0 %2686  ;;  %v2735_v27 = vsel %vm358_vm3, %v2719_v60, %v2734_v19  ;;  %v11689_v60 = vld [vmem:[#allocation22_spill] sm:$0xff] }
 0xd91   :  { %v2723_v26 = vrot.slane %v2687_v63, %v11685_v48 }
 0xd93   :  { %v2736_v44 = vsel %vm360_vm4, %v2723_v26, %v2735_v27 }
 0xd94   :  { %v2689_v10 = vpop.xlane.xlu0 %2688 }
 0xd95   :  { %v2727_v32 = vrot.slane %v2689_v10, %v11685_v48 }
 0xd97   :  { %v2737_v22 = vsel %vm362_vm5, %v2727_v32, %v2736_v44  ;;  %v11690_v32 = vld [vmem:[#allocation23_spill] sm:$0xff] }
 0xd98   :  { %v2691_v28 = vpop.xlane.xlu0 %2690 }
 0xd99   :  { %v2731_v39 = vrot.slane %v2691_v28, %v11685_v48 }
 0xd9b   :  { %v2738_v25 = vsel %vm364_vm6, %v2731_v39, %v2737_v22 }
 0xd9c   :  { %v2740_v45 = vsel %vm367_vm7, %v2738_v25, -inf }
 0xd9d   :  { %2741 = vmax.xlane.f32.xlu0 %v2740_v45  ;;  %v11691_v45 = vld [vmem:[#allocation24_spill] sm:$0xff] }
 0xe26   :  { %v2742_v8 = vpop.xlane.xlu0 %2741 }
 0xe27   :  { %v2747_v6 = vrot.slane %v2742_v8, %v11543_v43  ;;  %v2751_v33 = vrot.slane %v2742_v8, %v11686_v51  ;;  %v2755_v30 = vrot.slane %v2742_v8, %v11687_v21  ;;  %v2759_v19 = vrot.slane %v2742_v8, %v11688_v56 }
 0xe28   :  { %v2763_v47 = vrot.slane %v2742_v8, %v11689_v60  ;;  %v2767_v44 = vrot.slane %v2742_v8, %v11690_v32  ;;  %v2771_v3 = vrot.slane %v2742_v8, %v11691_v45  ;;  %v2775_v46 = vrot.slane %v2742_v8, %v11692_v1 }
 0xe29   :  { %v2784_v53 = vsub.f32 %v2677_v13, %v2747_v6  ;;  %v2785_v27 = vsub.f32 %v2679_v11, %v2751_v33  ;;  %v2786_v26 = vsub.f32 %v2681_v34, %v2755_v30  ;;  %v2787_v39 = vsub.f32 %v2683_v16, %v2759_v19 }
 0xe2a   :  { %v2788_v42 = vsub.f32 %v2685_v2, %v2763_v47  ;;  %v2789_v41 = vsub.f32 %v2687_v63, %v2767_v44  ;;  %v2790_v36 = vsub.f32 %v2689_v10, %v2771_v3  ;;  %v2791_v33 = vsub.f32 %v2691_v28, %v2775_v46 }
 0xe2b   :  { %v2792_v22 = vmul.f32 1.442695, %v2784_v53  ;;  %v2794_v25 = vmul.f32 1.442695, %v2785_v27  ;;  %v2796_v31 = vmul.f32 1.442695, %v2786_v26 }
 0xe2c   :  { %v2798_v37 = vmul.f32 1.442695, %v2787_v39  ;;  %v2800_v13 = vmul.f32 1.442695, %v2788_v42  ;;  %v2802_v30 = vmul.f32 1.442695, %v2789_v41 }
 0xe2d   :  { %7518 = vpow2.f32 %v2792_v22  ;;  %v2804_v34 = vmul.f32 1.442695, %v2790_v36  ;;  %v2806_v53 = vmul.f32 1.442695, %v2791_v33 }
 0xe2e   :  { %7520 = vpow2.f32 %v2794_v25 }
 0xe2f   :  { %7522 = vpow2.f32 %v2796_v31 }
 0xe30   :  { %7524 = vpow2.f32 %v2798_v37 }
 0xe31   :  { %7526 = vpow2.f32 %v2800_v13 }
 0xe32   :  { %7528 = vpow2.f32 %v2802_v30 }
 0xe33   :  { %7530 = vpow2.f32 %v2804_v34 }
 0xe34   :  { %7532 = vpow2.f32 %v2806_v53 }
 0xe3a   :  { %v7519_v11 = vpop.eup %7518 }
 0xe3b   :  { %v7521_v47 = vpop.eup %7520  ;;  %2817 = vperm.xlu0 %7390, %v7519_v11  }
 0xe3c   :  { %2820 = vperm.xlu1 %7389, %v7521_v47   ;;  %v7523_v2 = vpop.eup %7522 }
 0xe3d   :  { %v7525_v16 = vpop.eup %7524 }
 0xe3e   :  { %v9593_v3 = vpop.eup %7526 }
 0xe3f   :  { %2823 = vperm.xlu0 %7390, %v7523_v2   ;;  %v9595_v31 = vpop.eup %7528 }
 0xe40   :  { %2826 = vperm.xlu1 %7389, %v7525_v16   ;;  %v9599_v36 = vpop.eup %7530 }
 0xe41   :  { %v9601_v37 = vpop.eup %7532 }
 0xe43   :  { %2829 = vperm.xlu0 %7390, %v9593_v3  }
 0xe44   :  { %2832 = vperm.xlu1 %7389, %v9595_v31  }
 0xe47   :  { %2835 = vperm.xlu0 %7390, %v9599_v36  }
 0xe48   :  { %2838 = vperm.xlu1 %7389, %v9601_v37  }
 0xeb6   :  { %v2818_v41 = vpop.permute.xlu0 %2817 }
 0xeb7   :  { %v2821_v46 = vpop.permute.xlu1 %2820  ;;  %v2843_v28 = vrot.slane %v2818_v41, %v11685_v48 }
 0xeb8   :  { %v2847_v42 = vrot.slane %v2821_v46, %v11685_v48 }
 0xeba   :  { %v2824_v63 = vpop.permute.xlu0 %2823  ;;  %v2872_v6 = vsel %vm352_vm0, %v2847_v42, %v2843_v28 }
 0xebb   :  { %v2827_v10 = vpop.permute.xlu1 %2826  ;;  %v2851_v8 = vrot.slane %v2824_v63, %v11685_v48 }
 0xebc   :  { %v2855_v19 = vrot.slane %v2827_v10, %v11685_v48 }
 0xebd   :  { %v2873_v27 = vsel %vm354_vm1, %v2851_v8, %v2872_v6 }
 0xebe   :  { %v2830_v26 = vpop.permute.xlu0 %2829  ;;  %v2874_v25 = vsel %vm356_vm2, %v2855_v19, %v2873_v27 }
 0xebf   :  { %v2833_v44 = vpop.permute.xlu1 %2832  ;;  %v2859_v39 = vrot.slane %v2830_v26, %v11685_v48 }
 0xec0   :  { %v2863_v22 = vrot.slane %v2833_v44, %v11685_v48 }
 0xec1   :  { %v2875_v13 = vsel %vm358_vm3, %v2859_v39, %v2874_v25 }
 0xec2   :  { %v2836_v33 = vpop.permute.xlu0 %2835  ;;  %v2876_v41 = vsel %vm360_vm4, %v2863_v22, %v2875_v13 }
 0xec3   :  { %v2839_v30 = vpop.permute.xlu1 %2838  ;;  %v2867_v34 = vrot.slane %v2836_v33, %v11685_v48 }
 0xec4   :  { %v2871_v53 = vrot.slane %v2839_v30, %v11685_v48 }
 0xec5   :  { %v2877_v46 = vsel %vm362_vm5, %v2867_v34, %v2876_v41 }
 0xec6   :  { %v2878_v42 = vsel %vm364_vm6, %v2871_v53, %v2877_v46 }
 0xec7   :  { %v2880_v28 = vsel %vm367_vm7, %v2878_v42, 0.0 }
 0xec8   :  { %2881 = vadd.xlane.f32.xlu0 %v2880_v28 }
 0xf51   :  { %v2882_v63 = vpop.xlane.xlu0 %2881 }
 0xf52   :  { %v2887_v10 = vrot.slane %v2882_v63, %v11543_v43  ;;  %v2891_v8 = vrot.slane %v2882_v63, %v11686_v51  ;;  %v2895_v6 = vrot.slane %v2882_v63, %v11687_v21  ;;  %v2899_v19 = vrot.slane %v2882_v63, %v11688_v56 }
 0xf53   :  { %v2903_v27 = vrot.slane %v2882_v63, %v11689_v60  ;;  %v2907_v39 = vrot.slane %v2882_v63, %v11690_v32  ;;  %v2911_v13 = vrot.slane %v2882_v63, %v11691_v45  ;;  %v2915_v34 = vrot.slane %v2882_v63, %v11692_v1 }
 0xf54   :  { %7534 = vrcp.f32 %v2887_v10 }
 0xf55   :  { %7536 = vrcp.f32 %v2891_v8 }
 0xf56   :  { %7538 = vrcp.f32 %v2895_v6 }
 0xf57   :  { %7540 = vrcp.f32 %v2899_v19 }
 0xf58   :  { %7542 = vrcp.f32 %v2903_v27 }
 0xf59   :  { %7544 = vrcp.f32 %v2907_v39 }
 0xf5a   :  { %7546 = vrcp.f32 %v2911_v13 }
 0xf5b   :  { %7548 = vrcp.f32 %v2915_v34 }
 0xf61   :  { %v7535_v26 = vpop.eup %7534 }
 0xf62   :  { %v2925_v44 = vmul.f32 %v7535_v26, %v7519_v11  ;;  %v7537_v22 = vpop.eup %7536 }
 0xf63   :  { %v2927_v25 = vmul.f32 %v7537_v22, %v7521_v47  ;;  %v7539_v33 = vpop.eup %7538 }
 0xf64   :  { %2942 = vperm.xlu1 %7389, %v2925_v44   ;;  %v2929_v30 = vmul.f32 %v7539_v33, %v7523_v2  ;;  %v7541_v53 = vpop.eup %7540 }
 0xf65   :  { %v2931_v41 = vmul.f32 %v7541_v53, %v7525_v16  ;;  %v7543_v11 = vpop.eup %7542 }
 0xf66   :  { %v2933_v46 = vmul.f32 %v7543_v11, %v9593_v3  ;;  %v7545_v42 = vpop.eup %7544 }
 0xf67   :  { %v2935_v47 = vmul.f32 %v7545_v42, %v9595_v31  ;;  %v7547_v28 = vpop.eup %7546 }
 0xf68   :  { %2947 = vperm.xlu1 %7389, %v2927_v25   ;;  %v2937_v10 = vmul.f32 %v7547_v28, %v9599_v36  ;;  %v7549_v2 = vpop.eup %7548 }
 0xf69   :  { %v2939_v63 = vmul.f32 %v7549_v2, %v9601_v37 }
 0xf6c   :  { %2952 = vperm.xlu1 %7389, %v2929_v30  }
 0xf70   :  { %2957 = vperm.xlu1 %7389, %v2931_v41  }
 0xf74   :  { %2962 = vperm.xlu1 %7389, %v2933_v46  }
 0xf78   :  { %2967 = vperm.xlu1 %7389, %v2935_v47  }
 0xf7c   :  { %2972 = vperm.xlu1 %7389, %v2937_v10  }
 0xf80   :  { %2977 = vperm.xlu1 %7389, %v2939_v63  }
 0xfdf   :  { %v2943_v8 = vpop.permute.xlu1 %2942 }
 0xfe0   :  { %v2980_v27 = vmul.f32 %v9282_v55, %v2943_v8 }
 0xfe2   :  { %v2988_v36 = vrot.slane %v2980_v27, 4 }
 0xfe3   :  { %v2948_v16 = vpop.permute.xlu1 %2947 }
 0xfe4   :  { %v2981_v19 = vmul.f32 %v9276_v20, %v2948_v16  ;;  %v2989_v30 = vadd.f32 %v2988_v36, %v2980_v27 }
 0xfe6   :  { %v2994_v31 = vrot.slane %v2981_v19, 4  ;;  %v2990_v46 = vrot.slane %v2989_v30, 2 }
 0xfe7   :  { %v2953_v6 = vpop.permute.xlu1 %2952 }
 0xfe8   :  { %v2982_v3 = vmul.f32 %v9279_v50, %v2953_v6  ;;  %v2995_v13 = vadd.f32 %v2994_v31, %v2981_v19  ;;  %v2991_v8 = vadd.f32 %v2990_v46, %v2989_v30 }
 0xfea   :  { %v3000_v39 = vrot.slane %v2982_v3, 4  ;;  %v2996_v41 = vrot.slane %v2995_v13, 2  ;;  %v2992_v36 = vrot.slane %v2991_v8, 1 }
 0xfeb   :  { %v2958_v26 = vpop.permute.xlu1 %2957 }
 0xfec   :  { %v2983_v44 = vmul.f32 %v11681_v15, %v2958_v26  ;;  %v3001_v33 = vadd.f32 %v3000_v39, %v2982_v3  ;;  %v2997_v10 = vadd.f32 %v2996_v41, %v2995_v13 }
 0xfee   :  { %v3006_v22 = vrot.slane %v2983_v44, 4  ;;  %v3002_v11 = vrot.slane %v3001_v33, 2  ;;  %v2998_v26 = vrot.slane %v2997_v10, 1 }
 0xfef   :  { %v2963_v25 = vpop.permute.xlu1 %2962 }
 0xff0   :  { %v2984_v37 = vmul.f32 %v9288_v4, %v2963_v25  ;;  %v3007_v34 = vadd.f32 %v3006_v22, %v2983_v44  ;;  %v3003_v4 = vadd.f32 %v3002_v11, %v3001_v33 }
 0xff2   :  { %v3012_v53 = vrot.slane %v2984_v37, 4  ;;  %v3008_v42 = vrot.slane %v3007_v34, 2  ;;  %v3004_v39 = vrot.slane %v3003_v4, 1 }
 0xff3   :  { %v2968_v20 = vpop.permute.xlu1 %2967 }
 0xff4   :  { %v3013_v50 = vadd.f32 %v3012_v53, %v2984_v37  ;;  %v2985_v55 = vmul.f32 %v11682_v40, %v2968_v20  ;;  %v3009_v16 = vadd.f32 %v3008_v42, %v3007_v34  ;;  %v2999_v53 = vadd.f32 %v2998_v26, %v2997_v10  ;;  %v11715_v26 = vld [vmem:[#allocation78_spill] sm:$0xff] }
 0xff5   :  { %v3005_v34 = vadd.f32 %v3004_v39, %v3003_v4  ;;  %v2993_v20 = vadd.f32 %v2992_v36, %v2991_v8  ;;  %v11719_v39 = vld [vmem:[#allocation82_spill] sm:$0xff]  ;;  %v11720_v36 = vld [vmem:[#allocation83_spill] sm:$0xff] }
 0xff6   :  { %v3018_v15 = vrot.slane %v2985_v55, 4  ;;  %v3014_v47 = vrot.slane %v3013_v50, 2  ;;  %v3010_v22 = vrot.slane %v3009_v16, 1 }
 0xff7   :  { %v2973_v28 = vpop.permute.xlu1 %2972  ;;  %v3048_v46 = vsel %vm352_vm0, %v2999_v53, %v2993_v20  ;;  %v9722_v53 = vld [vmem:[#allocation8 + $0x178] sm:$0xff] }
 0xff8   :  { %v3019_v2 = vadd.f32 %v3018_v15, %v2985_v55  ;;  %v2986_v63 = vmul.f32 %v11683_v14, %v2973_v28  ;;  %v3015_v3 = vadd.f32 %v3014_v47, %v3013_v50  ;;  %v3011_v41 = vadd.f32 %v3010_v22, %v3009_v16  ;;  %v11721_v22 = vld [vmem:[#allocation84_spill] sm:$0xff]  ;;  %v9739_v20 = vld [vmem:[#allocation8 + $0x138] sm:$0xff] }
 0xff9   :  { %v3049_v15 = vsel %vm354_vm1, %v3005_v34, %v3048_v46  ;;  %v9735_v34 = vld [vmem:[#allocation8 + $0x140] sm:$0xff]  ;;  %v9755_v46 = vld [vmem:[#allocation8 + $0x110] sm:$0xff] }
 0xffa   :  { %v3020_v6 = vrot.slane %v3019_v2, 2  ;;  %v3024_v19 = vrot.slane %v2986_v63, 4  ;;  %v3016_v37 = vrot.slane %v3015_v3, 1  ;;  %v3050_v28 = vsel %vm356_vm2, %v3011_v41, %v3049_v15  ;;  %v9742_v41 = vld [vmem:[#allocation8 + $0x148] sm:$0xff]  ;;  %v9765_v15 = vld [vmem:[#allocation8 + $0xf8] sm:$0xff] }
 0xffb   :  { %v2978_v27 = vpop.permute.xlu1 %2977 }
 0xffc   :  { %v3021_v31 = vadd.f32 %v3020_v6, %v3019_v2  ;;  %v3025_v40 = vadd.f32 %v3024_v19, %v2986_v63  ;;  %v2987_v44 = vmul.f32 %v11684_v54, %v2978_v27  ;;  %v3017_v11 = vadd.f32 %v3016_v37, %v3015_v3  ;;  %v11711_v6 = vld [vmem:[#allocation74_spill] sm:$0xff]  ;;  %v11712_v19 = vld [vmem:[#allocation75_spill] sm:$0xff]  ;;  %v11713_v3 = vld [vmem:[#allocation76_spill] sm:$0xff] }
 0xffd   :  { %v11714_v27 = vld [vmem:[#allocation77_spill] sm:$0xff] }
 0xffe   :  { %v3026_v25 = vrot.slane %v3025_v40, 2  ;;  %v3030_v13 = vrot.slane %v2987_v44, 4  ;;  %v3022_v14 = vrot.slane %v3021_v31, 1  ;;  %v3051_v10 = vsel %vm358_vm3, %v3017_v11, %v3050_v28  ;;  %v9719_v37 = vld [vmem:[#allocation8 + $0x168] sm:$0xff]  ;;  %v9752_v11 = vld [vmem:[#allocation8 + $0x130] sm:$0xff]  ;;  %v9772_v28 = vld [vmem:[#allocation8 + $0x100] sm:$0xff] }
 0xfff   :  { %11723 = vst [vmem:[#allocation32_spill] sm:$0xff] %v9772_v28 }
0x1000   :  { %v3027_v33 = vadd.f32 %v3026_v25, %v3025_v40  ;;  %v3031_v30 = vadd.f32 %v3030_v13, %v2987_v44  ;;  %v3023_v42 = vadd.f32 %v3022_v14, %v3021_v31  ;;  %v11716_v31 = vld [vmem:[#allocation79_spill] sm:$0xff]  ;;  %v11717_v40 = vld [vmem:[#allocation80_spill] sm:$0xff]  ;;  %v11718_v44 = vld [vmem:[#allocation81_spill] sm:$0xff] }
0x1001   :  { %v11722_v25 = vld [vmem:[#allocation30_spill] sm:$0xff]  ;;  %v9725_v14 = vld [vmem:[#allocation8 + $0x158] sm:$0xff] }
0x1002   :  { %v3028_v50 = vrot.slane %v3027_v33, 1  ;;  %v3032_v55 = vrot.slane %v3031_v30, 2  ;;  %v3052_v4 = vsel %vm360_vm4, %v3023_v42, %v3051_v10  ;;  %v9715_v13 = vld [vmem:[#allocation8 + $0x170] sm:$0xff]  ;;  %v9759_v42 = vld [vmem:[#allocation8 + $0x108] sm:$0xff]  ;;  %v9779_v10 = vld [vmem:[#allocation8 + $0xd8] sm:$0xff] }
0x1003   :  { %11725 = vst [vmem:[#allocation33_spill] sm:$0xff] %v9779_v10 }
0x1004   :  { %v3033_v54 = vadd.f32 %v3032_v55, %v3031_v30  ;;  %v3029_v47 = vadd.f32 %v3028_v50, %v3027_v33  ;;  %v9729_v33 = vld [vmem:[#allocation8 + $0x150] sm:$0xff]  ;;  %v9732_v30 = vld [vmem:[#allocation8 + $0x160] sm:$0xff]  ;;  %v9745_v50 = vld [vmem:[#allocation8 + $0x128] sm:$0xff] }
0x1005   :  { %v9749_v55 = vld [vmem:[#allocation8 + $0x120] sm:$0xff] }
0x1006   :  { %v3034_v2 = vrot.slane %v3033_v54, 1  ;;  %v3053_v8 = vsel %vm362_vm5, %v3029_v47, %v3052_v4  ;;  %v9769_v47 = vld [vmem:[#allocation8 + $0xf0] sm:$0xff]  ;;  %v9785_v4 = vld [vmem:[#allocation8 + $0xc8] sm:$0xff] }
0x1007   :  { %11727 = vst [vmem:[#allocation34_spill] sm:$0xff] %v9785_v4 }
0x1008   :  { %v3035_v63 = vadd.f32 %v3034_v2, %v3033_v54  ;;  %v9762_v54 = vld [vmem:[#allocation8 + $0x118] sm:$0xff]  ;;  %v9775_v2 = vld [vmem:[#allocation8 + $0xe0] sm:$0xff] }
0x1009   :  { %11724 = vst [vmem:[#allocation31_spill] sm:$0xff] %v9775_v2 }
0x100a   :  { %v3054_v16 = vsel %vm364_vm6, %v3035_v63, %v3053_v8  ;;  %v9782_v63 = vld [vmem:[#allocation8 + $0xe8] sm:$0xff]  ;;  %v9789_v8 = vld [vmem:[#allocation8 + $0xc0] sm:$0xff] }
0x100b   :  { %3121 = vmatmul.mubr.f32.vlgmr.msra.gmra.mxu0 %v3054_v16  ;;  %7058 = vmatmul.mubr.f32.vlgmr.msra.gmra.mxu1 %v3054_v16  ;;  %11726 = vst [vmem:[#allocation35_spill] sm:$0xff] %v9782_v63  ;;  %11728 = vst [vmem:[#allocation36_spill] sm:$0xff] %v9789_v8  ;;  %v9792_v16 = vld [vmem:[#allocation8 + $0xd0] sm:$0xff] }
0x100c   :  { %3201 = vmatpush1.msra.mxu0 %v9307_v62  ;;  %7061 = vmatpush3.msra.mxu1 %v9310_v18  ;;  %v11693_v62 = vld [vmem:[#allocation57_spill] sm:$0xff]  ;;  %v11694_v18 = vld [vmem:[#allocation59_spill] sm:$0xff]  ;;  %11729 = vst [vmem:[#allocation38_spill] sm:$0xff] %v9792_v16 }
0x100d   :  { %3202 = vmatprep.subr.mxu0 %v9313_v57  ;;  %7062 = vmatprep.subr.mxu1 %v11494_v38  ;;  %v11695_v57 = vld [vmem:[#allocation58_spill] sm:$0xff] }
0x100e   :  { %3203 = vmatpush1.msra.mxu0 %v9317_v35  ;;  %7063 = vmatpush3.msra.mxu1 %v9320_v9  ;;  %v11696_v35 = vld [vmem:[#allocation60_spill] sm:$0xff]  ;;  %v11697_v9 = vld [vmem:[#allocation62_spill] sm:$0xff] }
0x100f   :  { %3204 = vmatprep.subr.mxu0 %v9323_v58  ;;  %7064 = vmatprep.subr.mxu1 %v11494_v38  ;;  %v11698_v58 = vld [vmem:[#allocation61_spill] sm:$0xff] }
0x1010   :  { %3205 = vmatpush1.msra.mxu0 %v9327_v59  ;;  %7065 = vmatpush3.msra.mxu1 %v9330_v17  ;;  %v11699_v59 = vld [vmem:[#allocation63_spill] sm:$0xff]  ;;  %v11700_v17 = vld [vmem:[#allocation65_spill] sm:$0xff] }
0x1011   :  { %3206 = vmatprep.subr.mxu0 %v9333_v61  ;;  %7066 = vmatprep.subr.mxu1 %v11494_v38  ;;  %v11701_v61 = vld [vmem:[#allocation64_spill] sm:$0xff] }
0x1012   :  { %3207 = vmatpush1.msra.mxu0 %v9337_v49  ;;  %7067 = vmatpush3.msra.mxu1 %v9340_v5  ;;  %v11702_v49 = vld [vmem:[#allocation66_spill] sm:$0xff]  ;;  %v11703_v5 = vld [vmem:[#allocation68_spill] sm:$0xff] }
0x1013   :  { %3208 = vmatprep.subr.mxu0 %v9343_v29  ;;  %7068 = vmatprep.subr.mxu1 %v11494_v38  ;;  %v11704_v29 = vld [vmem:[#allocation67_spill] sm:$0xff] }
0x1014   :  { %3209 = vmatpush1.msra.mxu0 %v9347_v12  ;;  %7069 = vmatpush3.msra.mxu1 %v9350_v23  ;;  %v11705_v12 = vld [vmem:[#allocation69_spill] sm:$0xff]  ;;  %v11706_v23 = vld [vmem:[#allocation71_spill] sm:$0xff] }
0x1015   :  { %3210 = vmatprep.subr.mxu0 %v9353_v0  ;;  %7070 = vmatprep.subr.mxu1 %v11494_v38  ;;  %v11707_v0 = vld [vmem:[#allocation70_spill] sm:$0xff] }
0x1016   :  { %3211 = vmatpush1.msra.mxu0 %v9357_v7  ;;  %7071 = vmatpush3.msra.mxu1 %v9360_v24  ;;  %v11708_v7 = vld [vmem:[#allocation72_spill] sm:$0xff]  ;;  %v11709_v24 = vld [vmem:[#allocation73_spill] sm:$0xff] }
0x1017   :  { %3212 = vmatprep.subr.mxu0 %v9363_v52  ;;  %7072 = vmatprep.subr.mxu1 %v11494_v38  ;;  %v11710_v52 = vld [vmem:[#allocation28_spill] sm:$0xff] }
0x1018   :  { %3213 = vmatpush1.msra.mxu0 %v11693_v62  ;;  %7073 = vmatpush3.msra.mxu1 %v11694_v18  ;;  %v9795_v62 = vld [vmem:[#allocation8 + $0xb0] sm:$0xff]  ;;  %v9799_v18 = vld [vmem:[#allocation8 + $0xa8] sm:$0xff] }
0x1019   :  { %3214 = vmatprep.subr.mxu0 %v11695_v57  ;;  %7074 = vmatprep.subr.mxu1 %v11494_v38  ;;  %11730 = vst [vmem:[#allocation37_spill] sm:$0xff] %v9795_v62  ;;  %11731 = vst [vmem:[#allocation39_spill] sm:$0xff] %v9799_v18  ;;  %v9802_v57 = vld [vmem:[#allocation8 + $0xb8] sm:$0xff] }
0x101a   :  { %3215 = vmatpush1.msra.mxu0 %v11696_v35  ;;  %7075 = vmatpush3.msra.mxu1 %v11697_v9  ;;  %11732 = vst [vmem:[#allocation41_spill] sm:$0xff] %v9802_v57  ;;  %v9805_v35 = vld [vmem:[#allocation8 + $0x98] sm:$0xff]  ;;  %v9809_v9 = vld [vmem:[#allocation8 + $0x90] sm:$0xff] }
0x101b   :  { %3216 = vmatprep.subr.mxu0 %v11698_v58  ;;  %7076 = vmatprep.subr.mxu1 %v11494_v38  ;;  %11733 = vst [vmem:[#allocation40_spill] sm:$0xff] %v9805_v35  ;;  %11734 = vst [vmem:[#allocation42_spill] sm:$0xff] %v9809_v9  ;;  %v9812_v58 = vld [vmem:[#allocation8 + $0xa0] sm:$0xff] }
0x101c   :  { %3217 = vmatpush1.msra.mxu0 %v11699_v59  ;;  %7077 = vmatpush3.msra.mxu1 %v11700_v17  ;;  %11735 = vst [vmem:[#allocation43_spill] sm:$0xff] %v9812_v58  ;;  %v9815_v59 = vld [vmem:[#allocation8 + $0x80] sm:$0xff]  ;;  %v9819_v17 = vld [vmem:[#allocation8 + $0x78] sm:$0xff] }
0x101d   :  { %3218 = vmatprep.subr.mxu0 %v11701_v61  ;;  %7078 = vmatprep.subr.mxu1 %v11494_v38  ;;  %11736 = vst [vmem:[#allocation44_spill] sm:$0xff] %v9815_v59  ;;  %11737 = vst [vmem:[#allocation18_spill] sm:$0xff] %v9819_v17  ;;  %v9822_v61 = vld [vmem:[#allocation8 + $0x88] sm:$0xff] }
0x101e   :  { %3219 = vmatpush1.msra.mxu0 %v11702_v49  ;;  %7079 = vmatpush3.msra.mxu1 %v11703_v5  ;;  %11738 = vst [vmem:[#allocation45_spill] sm:$0xff] %v9822_v61  ;;  %v9825_v49 = vld [vmem:[#allocation8 + $0x68] sm:$0xff]  ;;  %v9829_v5 = vld [vmem:[#allocation8 + $0x60] sm:$0xff] }
0x101f   :  { %3220 = vmatprep.subr.mxu0 %v11704_v29  ;;  %7080 = vmatprep.subr.mxu1 %v11494_v38  ;;  %11739 = vst [vmem:[#allocation47_spill] sm:$0xff] %v9825_v49  ;;  %11740 = vst [vmem:[#allocation46_spill] sm:$0xff] %v9829_v5  ;;  %v9832_v29 = vld [vmem:[#allocation8 + $0x70] sm:$0xff] }
0x1020   :  { %3221 = vmatpush1.msra.mxu0 %v11705_v12  ;;  %7081 = vmatpush3.msra.mxu1 %v11706_v23  ;;  %11741 = vst [vmem:[#allocation48_spill] sm:$0xff] %v9832_v29  ;;  %v9835_v12 = vld [vmem:[#allocation8 + $0x50] sm:$0xff]  ;;  %v9839_v23 = vld [vmem:[#allocation8 + $0x48] sm:$0xff] }
0x1021   :  { %3222 = vmatprep.subr.mxu0 %v11707_v0  ;;  %7082 = vmatprep.subr.mxu1 %v11494_v38  ;;  %11742 = vst [vmem:[#allocation50_spill] sm:$0xff] %v9835_v12  ;;  %11743 = vst [vmem:[#allocation49_spill] sm:$0xff] %v9839_v23  ;;  %v9842_v0 = vld [vmem:[#allocation8 + $0x58] sm:$0xff] }
0x1022   :  { %3223 = vmatpush1.msra.mxu0 %v11708_v7  ;;  %7083 = vmatpush3.msra.mxu1 %v11709_v24  ;;  %11744 = vst [vmem:[#allocation51_spill] sm:$0xff] %v9842_v0  ;;  %v9845_v7 = vld [vmem:[#allocation8 + $0x38] sm:$0xff]  ;;  %v9849_v24 = vld [vmem:[#allocation8 + $0x30] sm:$0xff] }
0x1023   :  { %3224 = vmatprep.subr.mxu0 %v11710_v52  ;;  %7084 = vmatprep.subr.mxu1 %v11494_v38  ;;  %11745 = vst [vmem:[#allocation53_spill] sm:$0xff] %v9845_v7  ;;  %11746 = vst [vmem:[#allocation52_spill] sm:$0xff] %v9849_v24  ;;  %v9852_v52 = vld [vmem:[#allocation8 + $0x40] sm:$0xff] }
0x1024   :  { %3225 = vmatpush1.msra.mxu0 %v11711_v6  ;;  %7085 = vmatpush3.msra.mxu1 %v11712_v19  ;;  %11747 = vst [vmem:[#allocation54_spill] sm:$0xff] %v9852_v52  ;;  %v9855_v6 = vld [vmem:[#allocation8 + $0x20] sm:$0xff]  ;;  %v9859_v19 = vld [vmem:[#allocation8 + $0x18] sm:$0xff] }
0x1025   :  { %3226 = vmatprep.subr.mxu0 %v11713_v3  ;;  %7086 = vmatprep.subr.mxu1 %v11494_v38  ;;  %11748 = vst [vmem:[#allocation56_spill] sm:$0xff] %v9855_v6  ;;  %11749 = vst [vmem:[#allocation55_spill] sm:$0xff] %v9859_v19  ;;  %v9862_v3 = vld [vmem:[#allocation8 + $0x28] sm:$0xff] }
0x1026   :  { %3227 = vmatpush1.msra.mxu0 %v11714_v27  ;;  %7087 = vmatpush3.msra.mxu1 %v11715_v26  ;;  %11750 = vst [vmem:[#allocation57_spill] sm:$0xff] %v9862_v3  ;;  %v9865_v27 = vld [vmem:[#allocation8 + $0x8] sm:$0xff]  ;;  %v9869_v26 = vld [vmem:[#allocation8] sm:$0xff] }
0x1027   :  { %3228 = vmatprep.subr.mxu0 %v11716_v31  ;;  %7088 = vmatprep.subr.mxu1 %v11494_v38  ;;  %11751 = vst [vmem:[#allocation59_spill] sm:$0xff] %v9865_v27  ;;  %11752 = vst [vmem:[#allocation58_spill] sm:$0xff] %v9869_v26  ;;  %v9872_v31 = vld [vmem:[#allocation8 + $0x10] sm:$0xff] }
0x1028   :  { %3229 = vmatpush1.msra.mxu0 %v11717_v40  ;;  %7089 = vmatpush3.msra.mxu1 %v11718_v44  ;;  %11753 = vst [vmem:[#allocation60_spill] sm:$0xff] %v9872_v31  ;;  %v9878_v40 = vld [vmem:[#allocation10 + $0x170] sm:$0xff] }
0x1029   :  { %3230 = vmatprep.subr.mxu0 %v11719_v39  ;;  %7090 = vmatprep.subr.mxu1 %v11494_v38  ;;  %11754 = vst [vmem:[#allocation62_spill] sm:$0xff] %v9878_v40 }
0x102a   :  { %3231 = vmatpush1.msra.mxu0 %v11720_v36  ;;  %3264 = vmatprep.mubr.f32.mxu0 %v11494_v38 }
0x102b   :  { %7091 = vmatpush3.msra.mxu1 %v11721_v22  ;;  %7092 = vmatprep.mubr.msk.f32.mxu1 %vm8197_vm8, %v11494_v38  ;;  %v3037_v22 = vld [vmem:[#allocation5 + $0x48] sm:$0xff] }
0x102c   :  { %3265 = vmatmul.mubr.f32.vlgmr.msra.gmra.mxu0 %v11722_v25  ;;  %7093 = vmatmul.mubr.f32.vlgmr.msra.gmra.mxu1 %v11722_v25 }
0x102d   :  { %3842 = vmatprep.subr.mxu0 %v9715_v13  ;;  %7095 = vmatprep.subr.mxu1 %v11494_v38 }
0x102e   :  { %3843 = vmatpush1.msra.mxu0 %v9719_v37  ;;  %7096 = vmatpush3.msra.mxu1 %v9722_v53 }
0x102f   :  { %3844 = vmatprep.subr.mxu0 %v9725_v14  ;;  %7097 = vmatprep.subr.mxu1 %v11494_v38 }
0x1030   :  { %3845 = vmatpush1.msra.mxu0 %v9729_v33  ;;  %7098 = vmatpush3.msra.mxu1 %v9732_v30 }
0x1031   :  { %3846 = vmatprep.subr.mxu0 %v9735_v34  ;;  %7099 = vmatprep.subr.mxu1 %v11494_v38 }
0x1032   :  { %3847 = vmatpush1.msra.mxu0 %v9739_v20  ;;  %7100 = vmatpush3.msra.mxu1 %v9742_v41 }
0x1033   :  { %3848 = vmatprep.subr.mxu0 %v9745_v50  ;;  %7101 = vmatprep.subr.mxu1 %v11494_v38 }
0x1034   :  { %3849 = vmatpush1.msra.mxu0 %v9749_v55  ;;  %7102 = vmatpush3.msra.mxu1 %v9752_v11 }
0x1035   :  { %3850 = vmatprep.subr.mxu0 %v9755_v46  ;;  %7103 = vmatprep.subr.mxu1 %v11494_v38 }
0x1036   :  { %3851 = vmatpush1.msra.mxu0 %v9759_v42  ;;  %7104 = vmatpush3.msra.mxu1 %v9762_v54 }
0x1037   :  { %3852 = vmatprep.subr.mxu0 %v9765_v15  ;;  %7105 = vmatprep.subr.mxu1 %v11494_v38 }
0x1038   :  { %3853 = vmatpush1.msra.mxu0 %v9769_v47  ;;  %7106 = vmatpush3.msra.mxu1 %v9772_v28 }
0x1039   :  { %3854 = vmatprep.subr.mxu0 %v9775_v2  ;;  %7107 = vmatprep.subr.mxu1 %v11494_v38 }
0x103a   :  { %3855 = vmatpush1.msra.mxu0 %v9779_v10  ;;  %7108 = vmatpush3.msra.mxu1 %v9782_v63 }
0x103b   :  { %3856 = vmatprep.subr.mxu0 %v9785_v4  ;;  %7109 = vmatprep.subr.mxu1 %v11494_v38 }
0x103c   :  { %3857 = vmatpush1.msra.mxu0 %v9789_v8  ;;  %7110 = vmatpush3.msra.mxu1 %v9792_v16 }
0x103d   :  { %3858 = vmatprep.subr.mxu0 %v9795_v62  ;;  %7111 = vmatprep.subr.mxu1 %v11494_v38 }
0x103e   :  { %3859 = vmatpush1.msra.mxu0 %v9799_v18  ;;  %7112 = vmatpush3.msra.mxu1 %v9802_v57 }
0x103f   :  { %3860 = vmatprep.subr.mxu0 %v9805_v35  ;;  %7113 = vmatprep.subr.mxu1 %v11494_v38 }
0x1040   :  { %3861 = vmatpush1.msra.mxu0 %v9809_v9  ;;  %7114 = vmatpush3.msra.mxu1 %v9812_v58 }
0x1041   :  { %3862 = vmatprep.subr.mxu0 %v9815_v59  ;;  %7115 = vmatprep.subr.mxu1 %v11494_v38 }
0x1042   :  { %3863 = vmatpush1.msra.mxu0 %v9819_v17  ;;  %7116 = vmatpush3.msra.mxu1 %v9822_v61 }
0x1043   :  { %3864 = vmatprep.subr.mxu0 %v9825_v49  ;;  %7117 = vmatprep.subr.mxu1 %v11494_v38 }
0x1044   :  { %3865 = vmatpush1.msra.mxu0 %v9829_v5  ;;  %7118 = vmatpush3.msra.mxu1 %v9832_v29 }
0x1045   :  { %3866 = vmatprep.subr.mxu0 %v9835_v12  ;;  %7119 = vmatprep.subr.mxu1 %v11494_v38  ;;  %v11756_v12 = vld [vmem:[#allocation27_spill] sm:$0xff] }
0x1046   :  { %3867 = vmatpush1.msra.mxu0 %v9839_v23  ;;  %7120 = vmatpush3.msra.mxu1 %v9842_v0  ;;  %v3038_v0 = vld [vmem:[#allocation5 + $0x50] sm:$0xff] }
0x1047   :  { %3868 = vmatprep.subr.mxu0 %v9845_v7  ;;  %7121 = vmatprep.subr.mxu1 %v11494_v38 }
0x1048   :  { %3869 = vmatpush1.msra.mxu0 %v9849_v24  ;;  %7122 = vmatpush3.msra.mxu1 %v9852_v52 }
0x1049   :  { %3870 = vmatprep.subr.mxu0 %v9855_v6  ;;  %7123 = vmatprep.subr.mxu1 %v11494_v38 }
0x104a   :  { %3871 = vmatpush1.msra.mxu0 %v9859_v19  ;;  %7124 = vmatpush3.msra.mxu1 %v9862_v3 }
0x104b   :  { %3872 = vmatprep.subr.mxu0 %v9865_v27  ;;  %7125 = vmatprep.subr.mxu1 %v11494_v38 }
0x104c   :  { %3873 = vmatpush1.msra.mxu0 %v9869_v26  ;;  %7126 = vmatpush3.msra.mxu1 %v9872_v31  ;;  %v11755_v31 = vld [vmem:[#allocation26_spill] sm:$0xff] }
0x104d   :  { %3906 = vmatprep.mubr.f32.mxu0 %v11494_v38  ;;  %7127 = vmatprep.mubr.msk.f32.mxu1 %vm8197_vm8, %v11494_v38 }
0x104e   :  { %3986 = vmatprep.subr.mxu0 %v9878_v40  ;;  %7130 = vmatprep.subr.mxu1 %v11494_v38 }
0x10cb   :  { %v3193_v44 = vpop.f32.mrf.mxu1  ;;  %v3122_v36 = vpop.f32.mrf.mxu0 }
0x10cc   :  { %v3197_v19 = vadd.f32 %v3122_v36, %v3037_v22  ;;  %v3039_v36 = vld [vmem:[#allocation5 + $0x58] sm:$0xff]  ;;  %v11757_v22 = vld [vmem:[#allocation29_spill] sm:$0xff] }
0x10cd   :  { %v7059_v39 = vpop.f32.mrf.mxu1  ;;  %v3124_v26 = vpop.f32.mrf.mxu0 }
0x10ce   :  { %v3198_v40 = vadd.f32 %v3124_v26, %v3038_v0 }
0x10ec   :  { %v3266_v27 = vpop.f32.mrf.mxu0  ;;  %v3337_v3 = vpop.f32.mrf.mxu1 }
0x10ed   :  { %v3267_v6 = vadd.f32 %v3266_v27, %v11755_v31  ;;  %v3338_v27 = vadd.f32 %v3337_v3, %v11757_v22 }
0x10ee   :  { %v3268_v52 = vpop.f32.mrf.mxu0  ;;  %v7094_v24 = vpop.f32.mrf.mxu1 }
0x10ef   :  { %v3341_v7 = vadd.f32 %v3267_v6, %v3197_v19  ;;  %v3269_v29 = vadd.f32 %v3268_v52, %v11756_v12  ;;  %v3199_v24 = vadd.f32 %v3193_v44, %v3039_v36  ;;  %v9897_v44 = vld [vmem:[#allocation2] sm:$0xff] }
0x10f1   :  { %v6533_v23 = vmul.f32 -1.442695, %v3341_v7  ;;  %v3348_v5 = vadd.f32 %v3269_v29, %v3198_v40 }
0x10f3   :  { %7550 = vpow2.f32 %v6533_v23  ;;  %v6534_v49 = vmul.f32 -1.442695, %v3348_v5 }
0x10f5   :  { %7552 = vpow2.f32 %v6534_v49 }
0x1100   :  { %v7551_v39 = vpop.eup %7550 }
0x1101   :  { %v3345_v61 = vadd.f32 1.0, %v7551_v39 }
0x1102   :  { %v7553_v17 = vpop.eup %7552 }
0x1103   :  { %7554 = vrcp.f32 %v3345_v61  ;;  %v3352_v59 = vadd.f32 1.0, %v7553_v17  ;;  %v11758_v17 = vld [vmem:[#allocation17_spill] sm:$0xff] }
0x1105   :  { %7556 = vrcp.f32 %v3352_v59 }
0x1110   :  { %v7555_v31 = vpop.eup %7554 }
0x1111   :  { %v3355_v6 = vmul.f32 %v7555_v31, %v3338_v27 }
0x1112   :  { %v7557_v52 = vpop.eup %7556 }
0x1113   :  { %v3356_v7 = vadd.f32 %v3355_v6, %v3199_v24  ;;  %v3358_v0 = vsub.f32 1.0, %v7557_v52  ;;  %v3360_v49 = vmul.f32 %v7557_v52, %v11722_v25  ;;  %v9903_v6 = vld [vmem:[#allocation2 + $0x8] sm:$0xff]  ;;  %v9906_v52 = vld [vmem:[#allocation2 + $0x10] sm:$0xff] }
0x1115   :  { %7558 = vtanh.f32 %v3356_v7 }
0x1122   :  { %v7559_v23 = vpop.eup %7558 }
0x1123   :  { %v3359_v29 = vmul.f32 %v7559_v23, %v3358_v0 }
0x1125   :  { %v9886_v5 = vadd.f32 %v3360_v49, %v3359_v29 }
0x1127   :  { %3363 = vst [vmem:[#allocation11 + $0x18] sm:$0xff] %v9886_v5  ;;  %v3372_v61 = vrot.slane %v9886_v5, %v11758_v17  ;;  %v3365_v19 = vcombine.high %v9886_v5, %v9886_v5 }
0x1129   :  { %v3388_v59 = vrot.slane %v3372_v61, %v11758_v17  ;;  %v3380_v3 = vcombine.high %v3372_v61, %v3372_v61  ;;  %v3379_v26 = vrot.slane %v3365_v19, %v11758_v17  ;;  %v9910_v61 = vld [vmem:[#allocation2 + $0x20] sm:$0xff] }
0x112b   :  { %v3417_v31 = vrot.slane %v3388_v59, %v11543_v43  ;;  %v3402_v40 = vrot.slane %v3380_v3, %v11758_v17  ;;  %v3410_v25 = vcombine.high %v3388_v59, %v3388_v59  ;;  %v3395_v24 = vrot.slane %v3379_v26, %v11758_v17 }
0x112c   :  { %v3381_v29 = vcombine.high %v3379_v26, %v3379_v26  ;;  %v9919_v26 = vld [vmem:[#allocation2 + $0x28] sm:$0xff] }
0x112d   :  { %v3454_v39 = vmul.f32 %v9897_v44, %v3417_v31  ;;  %v3421_v36 = vrot.slane %v3402_v40, %v11543_v43  ;;  %v3425_v27 = vrot.slane %v3410_v25, %v11543_v43  ;;  %v3433_v23 = vrot.slane %v3395_v24, %v11543_v43  ;;  %v9915_v25 = vld [vmem:[#allocation2 + $0x18] sm:$0xff] }
0x112e   :  { %v3412_v49 = vcombine.high %v3402_v40, %v3402_v40  ;;  %v3409_v3 = vrot.slane %v3381_v29, %v11758_v17  ;;  %v3411_v31 = vcombine.high %v3395_v24, %v3395_v24  ;;  %v9927_v29 = vld [vmem:[#allocation2 + $0x38] sm:$0xff] }
0x112f   :  { %3462 = vadd.xlane.f32.xlu0 %v3454_v39  ;;  %v3455_v7 = vmul.f32 %v9903_v6, %v3421_v36  ;;  %v3456_v0 = vmul.f32 %v9906_v52, %v3425_v27  ;;  %v3458_v19 = vmul.f32 %v9910_v61, %v3433_v23 }
0x1130   :  { %v3429_v59 = vrot.slane %v3412_v49, %v11543_v43  ;;  %v3437_v36 = vrot.slane %v3409_v3, %v11543_v43  ;;  %v3441_v27 = vrot.slane %v3411_v31, %v11543_v43 }
0x1131   :  { %3464 = vadd.xlane.f32.xlu1 %v3455_v7  ;;  %v3413_v7 = vcombine.high %v3409_v3, %v3409_v3 }
0x1132   :  { %v3457_v39 = vmul.f32 %v9915_v25, %v3429_v59  ;;  %v3459_v40 = vmul.f32 %v9919_v26, %v3437_v36 }
0x1133   :  { %3466 = vadd.xlane.f32.xlu0 %v3456_v0  ;;  %v9923_v0 = vld [vmem:[#allocation2 + $0x30] sm:$0xff]  ;;  %v3445_v24 = vrot.slane %v3413_v7, %v11543_v43 }
0x1134   :  { %v3460_v23 = vmul.f32 %v9923_v0, %v3441_v27 }
0x1135   :  { %v3461_v49 = vmul.f32 %v9927_v29, %v3445_v24 }
0x1137   :  { %3470 = vadd.xlane.f32.xlu0 %v3458_v19 }
0x113b   :  { %3468 = vadd.xlane.f32.xlu0 %v3457_v39 }
0x113f   :  { %3472 = vadd.xlane.f32.xlu0 %v3459_v40 }
0x1143   :  { %3474 = vadd.xlane.f32.xlu0 %v3460_v23 }
0x1147   :  { %3476 = vadd.xlane.f32.xlu0 %v3461_v49 }
0x11b8   :  { %v3463_v19 = vpop.xlane.xlu0 %3462 }
0x11b9   :  { %v3489_v31 = vrot.slane %v3463_v19, %v11685_v48 }
0x11ba   :  { %v3465_v36 = vpop.xlane.xlu1 %3464 }
0x11bb   :  { %v3493_v3 = vrot.slane %v3465_v36, %v11685_v48 }
0x11bc   :  { %v3467_v59 = vpop.xlane.xlu0 %3466 }
0x11bd   :  { %v3497_v40 = vrot.slane %v3467_v59, %v11685_v48  ;;  %v3518_v7 = vsel %vm352_vm0, %v3493_v3, %v3489_v31 }
0x11bf   :  { %v3519_v22 = vsel %vm354_vm1, %v3497_v40, %v3518_v7 }
0x11c0   :  { %v3471_v39 = vpop.xlane.xlu0 %3470 }
0x11c1   :  { %v3505_v58 = vrot.slane %v3471_v39, %v11685_v48 }
0x11c4   :  { %v3469_v17 = vpop.xlane.xlu0 %3468 }
0x11c5   :  { %v3501_v23 = vrot.slane %v3469_v17, %v11685_v48 }
0x11c7   :  { %v3520_v49 = vsel %vm356_vm2, %v3501_v23, %v3519_v22 }
0x11c8   :  { %v3473_v27 = vpop.xlane.xlu0 %3472  ;;  %v3521_v35 = vsel %vm358_vm3, %v3505_v58, %v3520_v49 }
0x11c9   :  { %v3509_v12 = vrot.slane %v3473_v27, %v11685_v48 }
0x11cb   :  { %v3522_v18 = vsel %vm360_vm4, %v3509_v12, %v3521_v35 }
0x11cc   :  { %v3475_v24 = vpop.xlane.xlu0 %3474 }
0x11cd   :  { %v3513_v9 = vrot.slane %v3475_v24, %v11685_v48 }
0x11cf   :  { %v3523_v31 = vsel %vm362_vm5, %v3513_v9, %v3522_v18 }
0x11d0   :  { %v3477_v57 = vpop.xlane.xlu0 %3476 }
0x11d1   :  { %v3517_v3 = vrot.slane %v3477_v57, %v11685_v48 }
0x11d3   :  { %v3524_v40 = vsel %vm364_vm6, %v3517_v3, %v3523_v31 }
0x11d4   :  { %v3526_v7 = vsel %vm367_vm7, %v3524_v40, -inf }
0x11d5   :  { %3527 = vmax.xlane.f32.xlu0 %v3526_v7 }
0x125e   :  { %v3528_v22 = vpop.xlane.xlu0 %3527 }
0x125f   :  { %v3533_v23 = vrot.slane %v3528_v22, %v11543_v43  ;;  %v3537_v62 = vrot.slane %v3528_v22, %v11686_v51  ;;  %v3541_v16 = vrot.slane %v3528_v22, %v11687_v21  ;;  %v3545_v58 = vrot.slane %v3528_v22, %v11688_v56 }
0x1260   :  { %v3549_v35 = vrot.slane %v3528_v22, %v11689_v60  ;;  %v3553_v18 = vrot.slane %v3528_v22, %v11690_v32  ;;  %v3557_v40 = vrot.slane %v3528_v22, %v11691_v45  ;;  %v3561_v63 = vrot.slane %v3528_v22, %v11692_v1 }
0x1261   :  { %v3570_v12 = vsub.f32 %v3463_v19, %v3533_v23  ;;  %v3571_v49 = vsub.f32 %v3465_v36, %v3537_v62  ;;  %v3572_v8 = vsub.f32 %v3467_v59, %v3541_v16  ;;  %v3573_v9 = vsub.f32 %v3469_v17, %v3545_v58 }
0x1262   :  { %v3574_v7 = vsub.f32 %v3471_v39, %v3549_v35  ;;  %v3575_v10 = vsub.f32 %v3473_v27, %v3553_v18  ;;  %v3576_v28 = vsub.f32 %v3475_v24, %v3557_v40  ;;  %v3577_v62 = vsub.f32 %v3477_v57, %v3561_v63 }
0x1263   :  { %v3578_v3 = vmul.f32 1.442695, %v3570_v12  ;;  %v3580_v31 = vmul.f32 1.442695, %v3571_v49  ;;  %v3582_v4 = vmul.f32 1.442695, %v3572_v8 }
0x1264   :  { %v3584_v2 = vmul.f32 1.442695, %v3573_v9  ;;  %v3586_v19 = vmul.f32 1.442695, %v3574_v7  ;;  %v3588_v16 = vmul.f32 1.442695, %v3575_v10 }
0x1265   :  { %7560 = vpow2.f32 %v3578_v3  ;;  %v3590_v17 = vmul.f32 1.442695, %v3576_v28  ;;  %v3592_v59 = vmul.f32 1.442695, %v3577_v62 }
0x1266   :  { %7562 = vpow2.f32 %v3580_v31 }
0x1267   :  { %7564 = vpow2.f32 %v3582_v4 }
0x1268   :  { %7566 = vpow2.f32 %v3584_v2 }
0x1269   :  { %7568 = vpow2.f32 %v3586_v19 }
0x126a   :  { %7570 = vpow2.f32 %v3588_v16 }
0x126b   :  { %7572 = vpow2.f32 %v3590_v17 }
0x126c   :  { %7574 = vpow2.f32 %v3592_v59 }
0x1272   :  { %v7561_v36 = vpop.eup %7560 }
0x1273   :  { %v7563_v39 = vpop.eup %7562  ;;  %3603 = vperm.xlu0 %7390, %v7561_v36  }
0x1274   :  { %3606 = vperm.xlu1 %7389, %v7563_v39   ;;  %v7565_v8 = vpop.eup %7564 }
0x1275   :  { %v9954_v27 = vpop.eup %7566 }
0x1276   :  { %v9957_v4 = vpop.eup %7568 }
0x1277   :  { %3609 = vperm.xlu0 %7390, %v7565_v8   ;;  %v9959_v2 = vpop.eup %7570 }
0x1278   :  { %3612 = vperm.xlu1 %7389, %v9954_v27   ;;  %v9963_v28 = vpop.eup %7572 }
0x1279   :  { %v9965_v10 = vpop.eup %7574 }
0x127b   :  { %3615 = vperm.xlu0 %7390, %v9957_v4  }
0x127c   :  { %3618 = vperm.xlu1 %7389, %v9959_v2  }
0x127f   :  { %3621 = vperm.xlu0 %7390, %v9963_v28  }
0x1280   :  { %3624 = vperm.xlu1 %7389, %v9965_v10  }
0x12ee   :  { %v3604_v63 = vpop.permute.xlu0 %3603 }
0x12ef   :  { %v3607_v57 = vpop.permute.xlu1 %3606  ;;  %v3629_v22 = vrot.slane %v3604_v63, %v11685_v48 }
0x12f0   :  { %v3633_v24 = vrot.slane %v3607_v57, %v11685_v48 }
0x12f2   :  { %v3610_v23 = vpop.permute.xlu0 %3609  ;;  %v3658_v12 = vsel %vm352_vm0, %v3633_v24, %v3629_v22 }
0x12f3   :  { %v3613_v58 = vpop.permute.xlu1 %3612  ;;  %v3637_v35 = vrot.slane %v3610_v23, %v11685_v48 }
0x12f4   :  { %v3641_v49 = vrot.slane %v3613_v58, %v11685_v48 }
0x12f5   :  { %v3659_v18 = vsel %vm354_vm1, %v3637_v35, %v3658_v12 }
0x12f6   :  { %v3616_v9 = vpop.permute.xlu0 %3615  ;;  %v3660_v7 = vsel %vm356_vm2, %v3641_v49, %v3659_v18 }
0x12f7   :  { %v3619_v3 = vpop.permute.xlu1 %3618  ;;  %v3645_v31 = vrot.slane %v3616_v9, %v11685_v48 }
0x12f8   :  { %v3649_v40 = vrot.slane %v3619_v3, %v11685_v48 }
0x12f9   :  { %v3661_v19 = vsel %vm358_vm3, %v3645_v31, %v3660_v7 }
0x12fa   :  { %v3622_v62 = vpop.permute.xlu0 %3621  ;;  %v3662_v63 = vsel %vm360_vm4, %v3649_v40, %v3661_v19 }
0x12fb   :  { %v3625_v16 = vpop.permute.xlu1 %3624  ;;  %v3653_v17 = vrot.slane %v3622_v62, %v11685_v48 }
0x12fc   :  { %v3657_v59 = vrot.slane %v3625_v16, %v11685_v48 }
0x12fd   :  { %v3663_v57 = vsel %vm362_vm5, %v3653_v17, %v3662_v63 }
0x12fe   :  { %v3664_v24 = vsel %vm364_vm6, %v3657_v59, %v3663_v57 }
0x12ff   :  { %v3666_v22 = vsel %vm367_vm7, %v3664_v24, 0.0 }
0x1300   :  { %3667 = vadd.xlane.f32.xlu0 %v3666_v22 }
0x1389   :  { %v3668_v23 = vpop.xlane.xlu0 %3667 }
0x138a   :  { %v3673_v58 = vrot.slane %v3668_v23, %v11543_v43  ;;  %v3677_v35 = vrot.slane %v3668_v23, %v11686_v51  ;;  %v3681_v12 = vrot.slane %v3668_v23, %v11687_v21  ;;  %v3685_v49 = vrot.slane %v3668_v23, %v11688_v56 }
0x138b   :  { %v3689_v18 = vrot.slane %v3668_v23, %v11689_v60  ;;  %v3693_v3 = vrot.slane %v3668_v23, %v11690_v32  ;;  %v3697_v7 = vrot.slane %v3668_v23, %v11691_v45  ;;  %v3701_v16 = vrot.slane %v3668_v23, %v11692_v1 }
0x138c   :  { %7576 = vrcp.f32 %v3673_v58 }
0x138d   :  { %7578 = vrcp.f32 %v3677_v35 }
0x138e   :  { %7580 = vrcp.f32 %v3681_v12 }
0x138f   :  { %7582 = vrcp.f32 %v3685_v49 }
0x1390   :  { %7584 = vrcp.f32 %v3689_v18 }
0x1391   :  { %7586 = vrcp.f32 %v3693_v3 }
0x1392   :  { %7588 = vrcp.f32 %v3697_v7 }
0x1393   :  { %7590 = vrcp.f32 %v3701_v16 }
0x1399   :  { %v7577_v9 = vpop.eup %7576 }
0x139a   :  { %v3711_v31 = vmul.f32 %v7577_v9, %v7561_v36  ;;  %v7579_v40 = vpop.eup %7578 }
0x139b   :  { %v3713_v19 = vmul.f32 %v7579_v40, %v7563_v39  ;;  %v7581_v62 = vpop.eup %7580 }
0x139c   :  { %3728 = vperm.xlu1 %7389, %v3711_v31   ;;  %v3715_v17 = vmul.f32 %v7581_v62, %v7565_v8  ;;  %v7583_v59 = vpop.eup %7582 }
0x139d   :  { %v3717_v63 = vmul.f32 %v7583_v59, %v9954_v27  ;;  %v7585_v57 = vpop.eup %7584 }
0x139e   :  { %v3719_v36 = vmul.f32 %v7585_v57, %v9957_v4  ;;  %v7587_v24 = vpop.eup %7586 }
0x139f   :  { %v3721_v22 = vmul.f32 %v7587_v24, %v9959_v2  ;;  %v7589_v39 = vpop.eup %7588 }
0x13a0   :  { %3733 = vperm.xlu1 %7389, %v3713_v19   ;;  %v3723_v58 = vmul.f32 %v7589_v39, %v9963_v28  ;;  %v7591_v23 = vpop.eup %7590 }
0x13a1   :  { %v3725_v8 = vmul.f32 %v7591_v23, %v9965_v10 }
0x13a4   :  { %3738 = vperm.xlu1 %7389, %v3715_v17  }
0x13a8   :  { %3743 = vperm.xlu1 %7389, %v3717_v63  }
0x13ac   :  { %3748 = vperm.xlu1 %7389, %v3719_v36  }
0x13b0   :  { %3753 = vperm.xlu1 %7389, %v3721_v22  }
0x13b4   :  { %3758 = vperm.xlu1 %7389, %v3723_v58  }
0x13b8   :  { %3763 = vperm.xlu1 %7389, %v3725_v8  }
0x1417   :  { %v3729_v35 = vpop.permute.xlu1 %3728 }
0x1418   :  { %v3766_v18 = vmul.f32 %v9897_v44, %v3729_v35 }
0x141a   :  { %v3774_v28 = vrot.slane %v3766_v18, 4 }
0x141b   :  { %v3734_v12 = vpop.permute.xlu1 %3733 }
0x141c   :  { %v3767_v49 = vmul.f32 %v9903_v6, %v3734_v12  ;;  %v3775_v16 = vadd.f32 %v3774_v28, %v3766_v18 }
0x141e   :  { %v3780_v2 = vrot.slane %v3767_v49, 4  ;;  %v3776_v39 = vrot.slane %v3775_v16, 2 }
0x141f   :  { %v3739_v27 = vpop.permute.xlu1 %3738 }
0x1420   :  { %v3768_v4 = vmul.f32 %v9906_v52, %v3739_v27  ;;  %v3781_v19 = vadd.f32 %v3780_v2, %v3767_v49 }
0x1422   :  { %v3786_v31 = vrot.slane %v3768_v4, 4  ;;  %v3782_v57 = vrot.slane %v3781_v19, 2 }
0x1423   :  { %v3744_v9 = vpop.permute.xlu1 %3743 }
0x1424   :  { %v3769_v3 = vmul.f32 %v9915_v25, %v3744_v9  ;;  %v3787_v62 = vadd.f32 %v3786_v31, %v3768_v4  ;;  %v3783_v12 = vadd.f32 %v3782_v57, %v3781_v19  ;;  %v3777_v4 = vadd.f32 %v3776_v39, %v3775_v16 }
0x1426   :  { %v3792_v40 = vrot.slane %v3769_v3, 4  ;;  %v3788_v22 = vrot.slane %v3787_v62, 2  ;;  %v3778_v1 = vrot.slane %v3777_v4, 1 }
0x1427   :  { %v3749_v7 = vpop.permute.xlu1 %3748 }
0x1428   :  { %v3770_v10 = vmul.f32 %v9910_v61, %v3749_v7  ;;  %v3793_v17 = vadd.f32 %v3792_v40, %v3769_v3  ;;  %v3789_v9 = vadd.f32 %v3788_v22, %v3787_v62  ;;  %v3784_v40 = vrot.slane %v3783_v12, 1 }
0x1429   :  { %v3779_v22 = vadd.f32 %v3778_v1, %v3777_v4  ;;  %v10013_v4 = vld [vmem:[#allocation10 + $0x168] sm:$0xff] }
0x142a   :  { %v3798_v59 = vrot.slane %v3770_v10, 4  ;;  %v3794_v58 = vrot.slane %v3793_v17, 2 }
0x142b   :  { %v3754_v63 = vpop.permute.xlu1 %3753 }
0x142c   :  { %v3799_v36 = vadd.f32 %v3798_v59, %v3770_v10  ;;  %v3771_v24 = vmul.f32 %v9919_v26, %v3754_v63  ;;  %v3795_v18 = vadd.f32 %v3794_v58, %v3793_v17  ;;  %v3790_v63 = vrot.slane %v3789_v9, 1 }
0x142e   :  { %v3804_v23 = vrot.slane %v3771_v24, 4  ;;  %v3800_v8 = vrot.slane %v3799_v36, 2  ;;  %v3796_v45 = vrot.slane %v3795_v18, 1  ;;  %v3791_v17 = vadd.f32 %v3790_v63, %v3789_v9  ;;  %v10039_v63 = vld [vmem:[#allocation10 + $0x128] sm:$0xff] }
0x142f   :  { %v3759_v35 = vpop.permute.xlu1 %3758 }
0x1430   :  { %v3805_v27 = vadd.f32 %v3804_v23, %v3771_v24  ;;  %v3772_v49 = vmul.f32 %v9923_v0, %v3759_v35  ;;  %v3801_v31 = vadd.f32 %v3800_v8, %v3799_v36  ;;  %v3785_v24 = vadd.f32 %v3784_v40, %v3783_v12  ;;  %v10026_v40 = vld [vmem:[#allocation10 + $0x160] sm:$0xff] }
0x1431   :  { %v3797_v39 = vadd.f32 %v3796_v45, %v3795_v18  ;;  %v10016_v18 = vld [vmem:[#allocation10 + $0x178] sm:$0xff] }
0x1432   :  { %v3806_v2 = vrot.slane %v3805_v27, 2  ;;  %v3810_v3 = vrot.slane %v3772_v49, 4  ;;  %v3802_v57 = vrot.slane %v3801_v31, 1  ;;  %v3834_v35 = vsel %vm352_vm0, %v3785_v24, %v3779_v22  ;;  %v10049_v24 = vld [vmem:[#allocation10 + $0x110] sm:$0xff]  ;;  %v10066_v22 = vld [vmem:[#allocation10 + $0x100] sm:$0xff] }
0x1433   :  { %v3764_v28 = vpop.permute.xlu1 %3763 }
0x1434   :  { %v3807_v7 = vadd.f32 %v3806_v2, %v3805_v27  ;;  %v3811_v10 = vadd.f32 %v3810_v3, %v3772_v49  ;;  %v3773_v59 = vmul.f32 %v9927_v29, %v3764_v28  ;;  %v3803_v8 = vadd.f32 %v3802_v57, %v3801_v31  ;;  %v10019_v31 = vld [vmem:[#allocation10 + $0x158] sm:$0xff]  ;;  %v10046_v57 = vld [vmem:[#allocation10 + $0x130] sm:$0xff] }
0x1435   :  { %v3835_v2 = vsel %vm354_vm1, %v3791_v17, %v3834_v35  ;;  %v10063_v17 = vld [vmem:[#allocation10 + $0xf0] sm:$0xff]  ;;  %v10083_v35 = vld [vmem:[#allocation10 + $0xc0] sm:$0xff] }
0x1436   :  { %v3812_v32 = vrot.slane %v3811_v10, 2  ;;  %v3816_v19 = vrot.slane %v3773_v59, 4  ;;  %v3808_v23 = vrot.slane %v3807_v7, 1  ;;  %v3836_v28 = vsel %vm356_vm2, %v3797_v39, %v3835_v2  ;;  %v10069_v39 = vld [vmem:[#allocation10 + $0xe0] sm:$0xff]  ;;  %v10093_v2 = vld [vmem:[#allocation10 + $0xa8] sm:$0xff] }
0x1437   :  { %v3837_v12 = vsel %vm358_vm3, %v3803_v8, %v3836_v28  ;;  %v10079_v8 = vld [vmem:[#allocation10 + $0xc8] sm:$0xff]  ;;  %v10099_v28 = vld [vmem:[#allocation10 + $0x98] sm:$0xff] }
0x1438   :  { %v3813_v62 = vadd.f32 %v3812_v32, %v3811_v10  ;;  %v3817_v16 = vadd.f32 %v3816_v19, %v3773_v59  ;;  %v3809_v27 = vadd.f32 %v3808_v23, %v3807_v7  ;;  %v10029_v7 = vld [vmem:[#allocation10 + $0x140] sm:$0xff]  ;;  %v10033_v10 = vld [vmem:[#allocation10 + $0x138] sm:$0xff]  ;;  %v10036_v59 = vld [vmem:[#allocation10 + $0x148] sm:$0xff]  ;;  %11759 = vst [vmem:[#allocation61_spill] sm:$0xff] %v10099_v28 }
0x1439   :  { %v10043_v19 = vld [vmem:[#allocation10 + $0x120] sm:$0xff]  ;;  %v10053_v23 = vld [vmem:[#allocation10 + $0x108] sm:$0xff] }
0x143a   :  { %v3814_v36 = vrot.slane %v3813_v62, 1  ;;  %v3818_v58 = vrot.slane %v3817_v16, 2  ;;  %v3838_v9 = vsel %vm360_vm4, %v3809_v27, %v3837_v12  ;;  %v10086_v27 = vld [vmem:[#allocation10 + $0xd0] sm:$0xff] }
0x143b   :  { %v10103_v12 = vld [vmem:[#allocation10 + $0x90] sm:$0xff] }
0x143c   :  { %v3819_v49 = vadd.f32 %v3818_v58, %v3817_v16  ;;  %v3815_v3 = vadd.f32 %v3814_v36, %v3813_v62  ;;  %v10056_v62 = vld [vmem:[#allocation10 + $0x118] sm:$0xff]  ;;  %v10076_v58 = vld [vmem:[#allocation10 + $0xe8] sm:$0xff]  ;;  %11760 = vst [vmem:[#allocation63_spill] sm:$0xff] %v10103_v12 }
0x143d   :  { %v10059_v16 = vld [vmem:[#allocation10 + $0xf8] sm:$0xff] }
0x143e   :  { %v3820_v60 = vrot.slane %v3819_v49, 1  ;;  %v3839_v1 = vsel %vm362_vm5, %v3815_v3, %v3838_v9  ;;  %v10073_v36 = vld [vmem:[#allocation10 + $0xd8] sm:$0xff]  ;;  %v10109_v9 = vld [vmem:[#allocation10 + $0x80] sm:$0xff] }
0x143f   :  { %v10096_v3 = vld [vmem:[#allocation10 + $0xb8] sm:$0xff]  ;;  %11762 = vst [vmem:[#allocation64_spill] sm:$0xff] %v10109_v9 }
0x1440   :  { %v3821_v32 = vadd.f32 %v3820_v60, %v3819_v49  ;;  %v10023_v60 = vld [vmem:[#allocation10 + $0x150] sm:$0xff] }
0x1441   :  { %v10089_v49 = vld [vmem:[#allocation10 + $0xb0] sm:$0xff] }
0x1442   :  { %v3840_v45 = vsel %vm364_vm6, %v3821_v32, %v3839_v1  ;;  %v10106_v32 = vld [vmem:[#allocation10 + $0xa0] sm:$0xff]  ;;  %v10113_v1 = vld [vmem:[#allocation10 + $0x78] sm:$0xff] }
0x1443   :  { %3907 = vmatmul.mubr.f32.vlgmr.msra.gmra.mxu0 %v3840_v45  ;;  %7128 = vmatmul.mubr.f32.vlgmr.msra.gmra.mxu1 %v3840_v45  ;;  %11761 = vst [vmem:[#allocation65_spill] sm:$0xff] %v10106_v32  ;;  %11763 = vst [vmem:[#allocation66_spill] sm:$0xff] %v10113_v1  ;;  %v10116_v45 = vld [vmem:[#allocation10 + $0x88] sm:$0xff] }
0x1444   :  { %3987 = vmatpush1.msra.mxu0 %v10013_v4  ;;  %7131 = vmatpush3.msra.mxu1 %v10016_v18  ;;  %11764 = vst [vmem:[#allocation68_spill] sm:$0xff] %v10116_v45 }
0x1445   :  { %3988 = vmatprep.subr.mxu0 %v10019_v31  ;;  %7132 = vmatprep.subr.mxu1 %v11494_v38 }
0x1446   :  { %3989 = vmatpush1.msra.mxu0 %v10023_v60  ;;  %7133 = vmatpush3.msra.mxu1 %v10026_v40 }
0x1447   :  { %3990 = vmatprep.subr.mxu0 %v10029_v7  ;;  %7134 = vmatprep.subr.mxu1 %v11494_v38 }
0x1448   :  { %3991 = vmatpush1.msra.mxu0 %v10033_v10  ;;  %7135 = vmatpush3.msra.mxu1 %v10036_v59 }
0x1449   :  { %3992 = vmatprep.subr.mxu0 %v10039_v63  ;;  %7136 = vmatprep.subr.mxu1 %v11494_v38 }
0x144a   :  { %3993 = vmatpush1.msra.mxu0 %v10043_v19  ;;  %7137 = vmatpush3.msra.mxu1 %v10046_v57 }
0x144b   :  { %3994 = vmatprep.subr.mxu0 %v10049_v24  ;;  %7138 = vmatprep.subr.mxu1 %v11494_v38 }
0x144c   :  { %3995 = vmatpush1.msra.mxu0 %v10053_v23  ;;  %7139 = vmatpush3.msra.mxu1 %v10056_v62 }
0x144d   :  { %3996 = vmatprep.subr.mxu0 %v10059_v16  ;;  %7140 = vmatprep.subr.mxu1 %v11494_v38 }
0x144e   :  { %3997 = vmatpush1.msra.mxu0 %v10063_v17  ;;  %7141 = vmatpush3.msra.mxu1 %v10066_v22 }
0x144f   :  { %3998 = vmatprep.subr.mxu0 %v10069_v39  ;;  %7142 = vmatprep.subr.mxu1 %v11494_v38 }
0x1450   :  { %3999 = vmatpush1.msra.mxu0 %v10073_v36  ;;  %7143 = vmatpush3.msra.mxu1 %v10076_v58 }
0x1451   :  { %4000 = vmatprep.subr.mxu0 %v10079_v8  ;;  %7144 = vmatprep.subr.mxu1 %v11494_v38 }
0x1452   :  { %4001 = vmatpush1.msra.mxu0 %v10083_v35  ;;  %7145 = vmatpush3.msra.mxu1 %v10086_v27 }
0x1453   :  { %4002 = vmatprep.subr.mxu0 %v10089_v49  ;;  %7146 = vmatprep.subr.mxu1 %v11494_v38 }
0x1454   :  { %4003 = vmatpush1.msra.mxu0 %v10093_v2  ;;  %7147 = vmatpush3.msra.mxu1 %v10096_v3 }
0x1455   :  { %4004 = vmatprep.subr.mxu0 %v10099_v28  ;;  %7148 = vmatprep.subr.mxu1 %v11494_v38  ;;  %v10119_v28 = vld [vmem:[#allocation10 + $0x68] sm:$0xff] }
0x1456   :  { %4005 = vmatpush1.msra.mxu0 %v10103_v12  ;;  %7149 = vmatpush3.msra.mxu1 %v10106_v32  ;;  %11765 = vst [vmem:[#allocation67_spill] sm:$0xff] %v10119_v28  ;;  %v10123_v32 = vld [vmem:[#allocation10 + $0x60] sm:$0xff]  ;;  %v10129_v12 = vld [vmem:[#allocation10 + $0x50] sm:$0xff] }
0x1457   :  { %4006 = vmatprep.subr.mxu0 %v10109_v9  ;;  %7150 = vmatprep.subr.mxu1 %v11494_v38  ;;  %11766 = vst [vmem:[#allocation69_spill] sm:$0xff] %v10123_v32  ;;  %v10126_v9 = vld [vmem:[#allocation10 + $0x70] sm:$0xff]  ;;  %11768 = vst [vmem:[#allocation70_spill] sm:$0xff] %v10129_v12 }
0x1458   :  { %4007 = vmatpush1.msra.mxu0 %v10113_v1  ;;  %7151 = vmatpush3.msra.mxu1 %v10116_v45  ;;  %11767 = vst [vmem:[#allocation71_spill] sm:$0xff] %v10126_v9  ;;  %v10133_v45 = vld [vmem:[#allocation10 + $0x48] sm:$0xff]  ;;  %v10139_v1 = vld [vmem:[#allocation10 + $0x38] sm:$0xff] }
0x1459   :  { %4008 = vmatprep.subr.mxu0 %v10119_v28  ;;  %7152 = vmatprep.subr.mxu1 %v11494_v38  ;;  %11769 = vst [vmem:[#allocation72_spill] sm:$0xff] %v10133_v45  ;;  %v10136_v28 = vld [vmem:[#allocation10 + $0x58] sm:$0xff]  ;;  %11771 = vst [vmem:[#allocation28_spill] sm:$0xff] %v10139_v1 }
0x145a   :  { %4009 = vmatpush1.msra.mxu0 %v10123_v32  ;;  %7153 = vmatpush3.msra.mxu1 %v10126_v9  ;;  %11770 = vst [vmem:[#allocation73_spill] sm:$0xff] %v10136_v28  ;;  %v10143_v9 = vld [vmem:[#allocation10 + $0x30] sm:$0xff]  ;;  %v10149_v32 = vld [vmem:[#allocation10 + $0x20] sm:$0xff] }
0x145b   :  { %4010 = vmatprep.subr.mxu0 %v10129_v12  ;;  %7154 = vmatprep.subr.mxu1 %v11494_v38  ;;  %11772 = vst [vmem:[#allocation74_spill] sm:$0xff] %v10143_v9  ;;  %v10146_v12 = vld [vmem:[#allocation10 + $0x40] sm:$0xff]  ;;  %11774 = vst [vmem:[#allocation76_spill] sm:$0xff] %v10149_v32 }
0x145c   :  { %4011 = vmatpush1.msra.mxu0 %v10133_v45  ;;  %7155 = vmatpush3.msra.mxu1 %v10136_v28  ;;  %11773 = vst [vmem:[#allocation75_spill] sm:$0xff] %v10146_v12  ;;  %v10153_v28 = vld [vmem:[#allocation10 + $0x18] sm:$0xff]  ;;  %v10159_v45 = vld [vmem:[#allocation10 + $0x8] sm:$0xff] }
0x145d   :  { %4012 = vmatprep.subr.mxu0 %v10139_v1  ;;  %7156 = vmatprep.subr.mxu1 %v11494_v38  ;;  %11775 = vst [vmem:[#allocation77_spill] sm:$0xff] %v10153_v28  ;;  %v10156_v1 = vld [vmem:[#allocation10 + $0x28] sm:$0xff]  ;;  %11777 = vst [vmem:[#allocation79_spill] sm:$0xff] %v10159_v45 }
0x145e   :  { %4013 = vmatpush1.msra.mxu0 %v10143_v9  ;;  %7157 = vmatpush3.msra.mxu1 %v10146_v12  ;;  %11776 = vst [vmem:[#allocation78_spill] sm:$0xff] %v10156_v1  ;;  %v10163_v12 = vld [vmem:[#allocation10] sm:$0xff] }
0x145f   :  { %4014 = vmatprep.subr.mxu0 %v10149_v32  ;;  %7158 = vmatprep.subr.mxu1 %v11494_v38  ;;  %11778 = vst [vmem:[#allocation80_spill] sm:$0xff] %v10163_v12  ;;  %v10167_v32 = vld [vmem:[#allocation10 + $0x10] sm:$0xff] }
0x1460   :  { %4015 = vmatpush1.msra.mxu0 %v10153_v28  ;;  %7159 = vmatpush3.msra.mxu1 %v10156_v1  ;;  %11779 = vst [vmem:[#allocation81_spill] sm:$0xff] %v10167_v32 }
0x1461   :  { %4016 = vmatprep.subr.mxu0 %v10159_v45  ;;  %7160 = vmatprep.subr.mxu1 %v11494_v38 }
0x1462   :  { %4017 = vmatpush1.msra.mxu0 %v10163_v12  ;;  %4050 = vmatprep.mubr.f32.mxu0 %v11494_v38 }
0x1463   :  { %7161 = vmatpush3.msra.mxu1 %v10167_v32  ;;  %7162 = vmatprep.mubr.msk.f32.mxu1 %vm8197_vm8, %v11494_v38 }
0x1464   :  { %4051 = vmatmul.mubr.f32.vlgmr.msra.gmra.mxu0 %v9886_v5  ;;  %7163 = vmatmul.mubr.f32.vlgmr.msra.gmra.mxu1 %v9886_v5 }
0x1465   :  { %4628 = vmatprep.subr.mxu0 %v9715_v13  ;;  %7165 = vmatprep.subr.mxu1 %v11494_v38  ;;  %v11780_v13 = vld [vmem:[#allocation32_spill] sm:$0xff] }
0x1466   :  { %4629 = vmatpush1.msra.mxu0 %v9719_v37  ;;  %7166 = vmatpush3.msra.mxu1 %v9722_v53  ;;  %v11781_v37 = vld [vmem:[#allocation31_spill] sm:$0xff]  ;;  %v11782_v53 = vld [vmem:[#allocation33_spill] sm:$0xff] }
0x1467   :  { %4630 = vmatprep.subr.mxu0 %v9725_v14  ;;  %7167 = vmatprep.subr.mxu1 %v11494_v38  ;;  %v11783_v14 = vld [vmem:[#allocation35_spill] sm:$0xff] }
0x1468   :  { %4631 = vmatpush1.msra.mxu0 %v9729_v33  ;;  %7168 = vmatpush3.msra.mxu1 %v9732_v30  ;;  %v11784_v33 = vld [vmem:[#allocation34_spill] sm:$0xff]  ;;  %v11785_v30 = vld [vmem:[#allocation36_spill] sm:$0xff] }
0x1469   :  { %4632 = vmatprep.subr.mxu0 %v9735_v34  ;;  %7169 = vmatprep.subr.mxu1 %v11494_v38  ;;  %v11786_v34 = vld [vmem:[#allocation38_spill] sm:$0xff] }
0x146a   :  { %4633 = vmatpush1.msra.mxu0 %v9739_v20  ;;  %7170 = vmatpush3.msra.mxu1 %v9742_v41  ;;  %v11787_v20 = vld [vmem:[#allocation37_spill] sm:$0xff]  ;;  %v11788_v41 = vld [vmem:[#allocation39_spill] sm:$0xff] }
0x146b   :  { %4634 = vmatprep.subr.mxu0 %v9745_v50  ;;  %7171 = vmatprep.subr.mxu1 %v11494_v38  ;;  %v11789_v50 = vld [vmem:[#allocation41_spill] sm:$0xff] }
0x146c   :  { %4635 = vmatpush1.msra.mxu0 %v9749_v55  ;;  %7172 = vmatpush3.msra.mxu1 %v9752_v11  ;;  %v11790_v55 = vld [vmem:[#allocation40_spill] sm:$0xff]  ;;  %v11791_v11 = vld [vmem:[#allocation42_spill] sm:$0xff] }
0x146d   :  { %4636 = vmatprep.subr.mxu0 %v9755_v46  ;;  %7173 = vmatprep.subr.mxu1 %v11494_v38  ;;  %v11792_v46 = vld [vmem:[#allocation43_spill] sm:$0xff] }
0x146e   :  { %4637 = vmatpush1.msra.mxu0 %v9759_v42  ;;  %7174 = vmatpush3.msra.mxu1 %v9762_v54  ;;  %v11793_v42 = vld [vmem:[#allocation44_spill] sm:$0xff]  ;;  %v11794_v54 = vld [vmem:[#allocation18_spill] sm:$0xff] }
0x146f   :  { %4638 = vmatprep.subr.mxu0 %v9765_v15  ;;  %7175 = vmatprep.subr.mxu1 %v11494_v38  ;;  %v11795_v15 = vld [vmem:[#allocation45_spill] sm:$0xff] }
0x1470   :  { %4639 = vmatpush1.msra.mxu0 %v9769_v47  ;;  %7176 = vmatpush3.msra.mxu1 %v11780_v13  ;;  %v11796_v47 = vld [vmem:[#allocation47_spill] sm:$0xff]  ;;  %v11797_v13 = vld [vmem:[#allocation46_spill] sm:$0xff] }
0x1471   :  { %4640 = vmatprep.subr.mxu0 %v11781_v37  ;;  %7177 = vmatprep.subr.mxu1 %v11494_v38  ;;  %v11798_v37 = vld [vmem:[#allocation48_spill] sm:$0xff] }
0x1472   :  { %4641 = vmatpush1.msra.mxu0 %v11782_v53  ;;  %7178 = vmatpush3.msra.mxu1 %v11783_v14  ;;  %v11799_v53 = vld [vmem:[#allocation50_spill] sm:$0xff]  ;;  %v11800_v14 = vld [vmem:[#allocation49_spill] sm:$0xff] }
0x1473   :  { %4642 = vmatprep.subr.mxu0 %v11784_v33  ;;  %7179 = vmatprep.subr.mxu1 %v11494_v38  ;;  %v11801_v33 = vld [vmem:[#allocation51_spill] sm:$0xff] }
0x1474   :  { %4643 = vmatpush1.msra.mxu0 %v11785_v30  ;;  %7180 = vmatpush3.msra.mxu1 %v11786_v34  ;;  %v11802_v30 = vld [vmem:[#allocation53_spill] sm:$0xff]  ;;  %v11803_v34 = vld [vmem:[#allocation52_spill] sm:$0xff] }
0x1475   :  { %4644 = vmatprep.subr.mxu0 %v11787_v20  ;;  %7181 = vmatprep.subr.mxu1 %v11494_v38  ;;  %v11804_v20 = vld [vmem:[#allocation54_spill] sm:$0xff] }
0x1476   :  { %4645 = vmatpush1.msra.mxu0 %v11788_v41  ;;  %7182 = vmatpush3.msra.mxu1 %v11789_v50  ;;  %v11805_v41 = vld [vmem:[#allocation56_spill] sm:$0xff]  ;;  %v11806_v50 = vld [vmem:[#allocation55_spill] sm:$0xff] }
0x1477   :  { %4646 = vmatprep.subr.mxu0 %v11790_v55  ;;  %7183 = vmatprep.subr.mxu1 %v11494_v38  ;;  %v11807_v55 = vld [vmem:[#allocation57_spill] sm:$0xff] }
0x1478   :  { %4647 = vmatpush1.msra.mxu0 %v11791_v11  ;;  %7184 = vmatpush3.msra.mxu1 %v11792_v46  ;;  %v11808_v11 = vld [vmem:[#allocation59_spill] sm:$0xff]  ;;  %v11809_v46 = vld [vmem:[#allocation58_spill] sm:$0xff] }
0x1479   :  { %4648 = vmatprep.subr.mxu0 %v11793_v42  ;;  %7185 = vmatprep.subr.mxu1 %v11494_v38  ;;  %v11810_v42 = vld [vmem:[#allocation60_spill] sm:$0xff] }
0x147a   :  { %4649 = vmatpush1.msra.mxu0 %v11794_v54  ;;  %7186 = vmatpush3.msra.mxu1 %v11795_v15  ;;  %v11811_v54 = vld [vmem:[#allocation62_spill] sm:$0xff] }
0x147b   :  { %4650 = vmatprep.subr.mxu0 %v11796_v47  ;;  %7187 = vmatprep.subr.mxu1 %v11494_v38 }
0x147c   :  { %4651 = vmatpush1.msra.mxu0 %v11797_v13  ;;  %7188 = vmatpush3.msra.mxu1 %v11798_v37  ;;  %v3823_v37 = vld [vmem:[#allocation5 + $0x60] sm:$0xff] }
0x147d   :  { %4652 = vmatprep.subr.mxu0 %v11799_v53  ;;  %7189 = vmatprep.subr.mxu1 %v11494_v38 }
0x147e   :  { %4653 = vmatpush1.msra.mxu0 %v11800_v14  ;;  %7190 = vmatpush3.msra.mxu1 %v11801_v33 }
0x147f   :  { %4654 = vmatprep.subr.mxu0 %v11802_v30  ;;  %7191 = vmatprep.subr.mxu1 %v11494_v38 }
0x1480   :  { %4655 = vmatpush1.msra.mxu0 %v11803_v34  ;;  %7192 = vmatpush3.msra.mxu1 %v11804_v20  ;;  %v11812_v34 = vld [vmem:[#allocation26_spill] sm:$0xff] }
0x1481   :  { %4656 = vmatprep.subr.mxu0 %v11805_v41  ;;  %7193 = vmatprep.subr.mxu1 %v11494_v38 }
0x1482   :  { %4657 = vmatpush1.msra.mxu0 %v11806_v50  ;;  %7194 = vmatpush3.msra.mxu1 %v11807_v55 }
0x1483   :  { %4658 = vmatprep.subr.mxu0 %v11808_v11  ;;  %7195 = vmatprep.subr.mxu1 %v11494_v38  ;;  %v3824_v11 = vld [vmem:[#allocation5 + $0x68] sm:$0xff] }
0x1484   :  { %4659 = vmatpush1.msra.mxu0 %v11809_v46  ;;  %7196 = vmatpush3.msra.mxu1 %v11810_v42  ;;  %v11813_v42 = vld [vmem:[#allocation27_spill] sm:$0xff] }
0x1485   :  { %4692 = vmatprep.mubr.f32.mxu0 %v11494_v38  ;;  %7197 = vmatprep.mubr.msk.f32.mxu1 %vm8197_vm8, %v11494_v38 }
0x1486   :  { %4772 = vmatprep.subr.mxu0 %v11811_v54  ;;  %7200 = vmatprep.subr.mxu1 %v11494_v38 }
0x1503   :  { %v3979_v15 = vpop.f32.mrf.mxu1  ;;  %v3908_v13 = vpop.f32.mrf.mxu0 }
0x1504   :  { %v3983_v30 = vadd.f32 %v3908_v13, %v3823_v37  ;;  %v3825_v13 = vld [vmem:[#allocation5 + $0x70] sm:$0xff] }
0x1505   :  { %v7129_v47 = vpop.f32.mrf.mxu1  ;;  %v3910_v53 = vpop.f32.mrf.mxu0  ;;  %v11814_v37 = vld [vmem:[#allocation29_spill] sm:$0xff] }
0x1506   :  { %v3984_v54 = vadd.f32 %v3910_v53, %v3824_v11 }
0x1524   :  { %v4052_v14 = vpop.f32.mrf.mxu0  ;;  %v4123_v33 = vpop.f32.mrf.mxu1 }
0x1525   :  { %v4053_v20 = vadd.f32 %v4052_v14, %v11812_v34  ;;  %v4124_v14 = vadd.f32 %v4123_v33, %v11814_v37 }
0x1526   :  { %v4054_v41 = vpop.f32.mrf.mxu0  ;;  %v7164_v50 = vpop.f32.mrf.mxu1 }
0x1527   :  { %v4127_v55 = vadd.f32 %v4053_v20, %v3983_v30  ;;  %v4055_v32 = vadd.f32 %v4054_v41, %v11813_v42  ;;  %v3985_v50 = vadd.f32 %v3979_v15, %v3825_v13 }
0x1529   :  { %v6535_v46 = vmul.f32 -1.442695, %v4127_v55  ;;  %v4134_v12 = vadd.f32 %v4055_v32, %v3984_v54 }
0x152b   :  { %7592 = vpow2.f32 %v6535_v46  ;;  %v6536_v45 = vmul.f32 -1.442695, %v4134_v12 }
0x152d   :  { %7594 = vpow2.f32 %v6536_v45 }
0x1538   :  { %v7593_v47 = vpop.eup %7592 }
0x1539   :  { %v4131_v1 = vadd.f32 1.0, %v7593_v47 }
0x153a   :  { %v7595_v28 = vpop.eup %7594 }
0x153b   :  { %7596 = vrcp.f32 %v4131_v1  ;;  %v4138_v9 = vadd.f32 1.0, %v7595_v28  ;;  %v11816_v28 = vld [vmem:[#allocation17_spill] sm:$0xff] }
0x153d   :  { %7598 = vrcp.f32 %v4138_v9 }
0x1548   :  { %v7597_v34 = vpop.eup %7596 }
0x1549   :  { %v4141_v30 = vmul.f32 %v7597_v34, %v4124_v14 }
0x154a   :  { %v7599_v41 = vpop.eup %7598 }
0x154b   :  { %v4142_v20 = vadd.f32 %v4141_v30, %v3985_v50  ;;  %v4144_v53 = vsub.f32 1.0, %v7599_v41  ;;  %v4146_v12 = vmul.f32 %v7599_v41, %v9886_v5 }
0x154d   :  { %7600 = vtanh.f32 %v4142_v20 }
0x155a   :  { %v7601_v55 = vpop.eup %7600 }
0x155b   :  { %v4145_v32 = vmul.f32 %v7601_v55, %v4144_v53 }
0x155d   :  { %v10247_v45 = vadd.f32 %v4146_v12, %v4145_v32 }
0x155f   :  { %11815 = vst [vmem:[#allocation82_spill] sm:$0xff] %v10247_v45  ;;  %4149 = vst [vmem:[#allocation11 + $0x20] sm:$0xff] %v10247_v45  ;;  %v4158_v1 = vrot.slane %v10247_v45, %v11816_v28  ;;  %v4151_v15 = vcombine.high %v10247_v45, %v10247_v45 }
0x1561   :  { %v4174_v9 = vrot.slane %v4158_v1, %v11816_v28  ;;  %v4166_v33 = vcombine.high %v4158_v1, %v4158_v1  ;;  %v4165_v34 = vrot.slane %v4151_v15, %v11816_v28 }
0x1563   :  { %v4203_v11 = vrot.slane %v4174_v9, %v11543_v43  ;;  %v4188_v46 = vrot.slane %v4166_v33, %v11816_v28  ;;  %v4196_v5 = vcombine.high %v4174_v9, %v4174_v9  ;;  %v4181_v14 = vrot.slane %v4165_v34, %v11816_v28 }
0x1564   :  { %v4167_v53 = vcombine.high %v4165_v34, %v4165_v34 }
0x1565   :  { %v4240_v54 = vmul.f32 %v9897_v44, %v4203_v11  ;;  %v4207_v47 = vrot.slane %v4188_v46, %v11543_v43  ;;  %v4211_v13 = vrot.slane %v4196_v5, %v11543_v43  ;;  %v4219_v20 = vrot.slane %v4181_v14, %v11543_v43 }
0x1566   :  { %v4198_v41 = vcombine.high %v4188_v46, %v4188_v46  ;;  %v4195_v32 = vrot.slane %v4167_v53, %v11816_v28 }
0x1567   :  { %4248 = vadd.xlane.f32.xlu0 %v4240_v54  ;;  %v4241_v50 = vmul.f32 %v9903_v6, %v4207_v47  ;;  %v4242_v30 = vmul.f32 %v9906_v52, %v4211_v13  ;;  %v4244_v55 = vmul.f32 %v9910_v61, %v4219_v20  ;;  %v4197_v6 = vcombine.high %v4181_v14, %v4181_v14 }
0x1568   :  { %v4215_v44 = vrot.slane %v4198_v41, %v11543_v43  ;;  %v4223_v1 = vrot.slane %v4195_v32, %v11543_v43  ;;  %v4199_v9 = vcombine.high %v4195_v32, %v4195_v32 }
0x1569   :  { %4250 = vadd.xlane.f32.xlu1 %v4241_v50  ;;  %v4227_v15 = vrot.slane %v4197_v6, %v11543_v43 }
0x156a   :  { %v4243_v12 = vmul.f32 %v9915_v25, %v4215_v44  ;;  %v4245_v52 = vmul.f32 %v9919_v26, %v4223_v1  ;;  %v4231_v61 = vrot.slane %v4199_v9, %v11543_v43 }
0x156b   :  { %4252 = vadd.xlane.f32.xlu0 %v4242_v30  ;;  %v4246_v33 = vmul.f32 %v9923_v0, %v4227_v15 }
0x156c   :  { %v4247_v34 = vmul.f32 %v9927_v29, %v4231_v61 }
0x156f   :  { %4256 = vadd.xlane.f32.xlu0 %v4244_v55 }
0x1573   :  { %4254 = vadd.xlane.f32.xlu0 %v4243_v12 }
0x1577   :  { %4258 = vadd.xlane.f32.xlu0 %v4245_v52 }
0x157b   :  { %4260 = vadd.xlane.f32.xlu0 %v4246_v33 }
0x157f   :  { %4262 = vadd.xlane.f32.xlu0 %v4247_v34 }
0x15f0   :  { %v4249_v11 = vpop.xlane.xlu0 %4248 }
0x15f1   :  { %v4275_v26 = vrot.slane %v4249_v11, %v11685_v48 }
0x15f2   :  { %v4251_v5 = vpop.xlane.xlu1 %4250 }
0x15f3   :  { %v4279_v47 = vrot.slane %v4251_v5, %v11685_v48 }
0x15f4   :  { %v4253_v25 = vpop.xlane.xlu0 %4252 }
0x15f5   :  { %v4283_v13 = vrot.slane %v4253_v25, %v11685_v48  ;;  %v4304_v0 = vsel %vm352_vm0, %v4279_v47, %v4275_v26  ;;  %v11817_v26 = vld [vmem:[#allocation22_spill] sm:$0xff] }
0x15f7   :  { %v4305_v30 = vsel %vm354_vm1, %v4283_v13, %v4304_v0 }
0x15f8   :  { %v4257_v46 = vpop.xlane.xlu0 %4256 }
0x15f9   :  { %v4291_v53 = vrot.slane %v4257_v46, %v11685_v48 }
0x15fc   :  { %v4255_v54 = vpop.xlane.xlu0 %4254 }
0x15fd   :  { %v4287_v50 = vrot.slane %v4255_v54, %v11685_v48 }
0x15ff   :  { %v4306_v20 = vsel %vm356_vm2, %v4287_v50, %v4305_v30 }
0x1600   :  { %v4259_v14 = vpop.xlane.xlu0 %4258  ;;  %v4307_v44 = vsel %vm358_vm3, %v4291_v53, %v4306_v20  ;;  %v11818_v20 = vld [vmem:[#allocation23_spill] sm:$0xff] }
0x1601   :  { %v4295_v41 = vrot.slane %v4259_v14, %v11685_v48 }
0x1603   :  { %v4308_v12 = vsel %vm360_vm4, %v4295_v41, %v4307_v44 }
0x1604   :  { %v4261_v29 = vpop.xlane.xlu0 %4260 }
0x1605   :  { %v4299_v55 = vrot.slane %v4261_v29, %v11685_v48 }
0x1607   :  { %v4309_v6 = vsel %vm362_vm5, %v4299_v55, %v4308_v12  ;;  %v11819_v12 = vld [vmem:[#allocation24_spill] sm:$0xff] }
0x1608   :  { %v4263_v32 = vpop.xlane.xlu0 %4262 }
0x1609   :  { %v4303_v1 = vrot.slane %v4263_v32, %v11685_v48 }
0x160b   :  { %v4310_v52 = vsel %vm364_vm6, %v4303_v1, %v4309_v6 }
0x160c   :  { %v4312_v15 = vsel %vm367_vm7, %v4310_v52, -inf }
0x160d   :  { %4313 = vmax.xlane.f32.xlu0 %v4312_v15  ;;  %v11820_v15 = vld [vmem:[#allocation25_spill] sm:$0xff] }
0x1696   :  { %v4314_v9 = vpop.xlane.xlu0 %4313 }
0x1697   :  { %v4319_v33 = vrot.slane %v4314_v9, %v11543_v43  ;;  %v4323_v61 = vrot.slane %v4314_v9, %v11686_v51  ;;  %v4327_v34 = vrot.slane %v4314_v9, %v11687_v21  ;;  %v4331_v47 = vrot.slane %v4314_v9, %v11688_v56 }
0x1698   :  { %v4335_v13 = vrot.slane %v4314_v9, %v11817_v26  ;;  %v4339_v41 = vrot.slane %v4314_v9, %v11818_v20  ;;  %v4343_v1 = vrot.slane %v4314_v9, %v11819_v12  ;;  %v4347_v28 = vrot.slane %v4314_v9, %v11820_v15 }
0x1699   :  { %v4356_v0 = vsub.f32 %v4249_v11, %v4319_v33  ;;  %v4357_v50 = vsub.f32 %v4251_v5, %v4323_v61  ;;  %v4358_v30 = vsub.f32 %v4253_v25, %v4327_v34  ;;  %v4359_v53 = vsub.f32 %v4255_v54, %v4331_v47 }
0x169a   :  { %v4360_v6 = vsub.f32 %v4257_v46, %v4335_v13  ;;  %v4361_v37 = vsub.f32 %v4259_v14, %v4339_v41  ;;  %v4362_v45 = vsub.f32 %v4261_v29, %v4343_v1  ;;  %v4363_v5 = vsub.f32 %v4263_v32, %v4347_v28 }
0x169b   :  { %v4364_v55 = vmul.f32 1.442695, %v4356_v0  ;;  %v4366_v44 = vmul.f32 1.442695, %v4357_v50  ;;  %v4368_v52 = vmul.f32 1.442695, %v4358_v30 }
0x169c   :  { %v4370_v42 = vmul.f32 1.442695, %v4359_v53  ;;  %v4372_v11 = vmul.f32 1.442695, %v4360_v6  ;;  %v4374_v25 = vmul.f32 1.442695, %v4361_v37 }
0x169d   :  { %7602 = vpow2.f32 %v4364_v55  ;;  %v4376_v54 = vmul.f32 1.442695, %v4362_v45  ;;  %v4378_v33 = vmul.f32 1.442695, %v4363_v5 }
0x169e   :  { %7604 = vpow2.f32 %v4366_v44 }
0x169f   :  { %7606 = vpow2.f32 %v4368_v52 }
0x16a0   :  { %7608 = vpow2.f32 %v4370_v42 }
0x16a1   :  { %7610 = vpow2.f32 %v4372_v11 }
0x16a2   :  { %7612 = vpow2.f32 %v4374_v25 }
0x16a3   :  { %7614 = vpow2.f32 %v4376_v54 }
0x16a4   :  { %7616 = vpow2.f32 %v4378_v33 }
0x16aa   :  { %v7603_v61 = vpop.eup %7602 }
0x16ab   :  { %v7605_v46 = vpop.eup %7604  ;;  %4389 = vperm.xlu0 %7390, %v7603_v61  }
0x16ac   :  { %4392 = vperm.xlu1 %7389, %v7605_v46   ;;  %v7607_v9 = vpop.eup %7606 }
0x16ad   :  { %v10299_v14 = vpop.eup %7608 }
0x16ae   :  { %v10302_v29 = vpop.eup %7610 }
0x16af   :  { %4395 = vperm.xlu0 %7390, %v7607_v9   ;;  %v10304_v42 = vpop.eup %7612 }
0x16b0   :  { %4398 = vperm.xlu1 %7389, %v10299_v14   ;;  %v10308_v37 = vpop.eup %7614 }
0x16b1   :  { %v10310_v45 = vpop.eup %7616 }
0x16b3   :  { %4401 = vperm.xlu0 %7390, %v10302_v29  }
0x16b4   :  { %4404 = vperm.xlu1 %7389, %v10304_v42  }
0x16b7   :  { %4407 = vperm.xlu0 %7390, %v10308_v37  }
0x16b8   :  { %4410 = vperm.xlu1 %7389, %v10310_v45  }
0x1726   :  { %v4390_v28 = vpop.permute.xlu0 %4389 }
0x1727   :  { %v4393_v32 = vpop.permute.xlu1 %4392  ;;  %v4415_v47 = vrot.slane %v4390_v28, %v11685_v48 }
0x1728   :  { %v4419_v34 = vrot.slane %v4393_v32, %v11685_v48 }
0x172a   :  { %v4396_v13 = vpop.permute.xlu0 %4395  ;;  %v4444_v30 = vsel %vm352_vm0, %v4419_v34, %v4415_v47 }
0x172b   :  { %v4399_v0 = vpop.permute.xlu1 %4398  ;;  %v4423_v50 = vrot.slane %v4396_v13, %v11685_v48 }
0x172c   :  { %v4427_v41 = vrot.slane %v4399_v0, %v11685_v48 }
0x172d   :  { %v4445_v53 = vsel %vm354_vm1, %v4423_v50, %v4444_v30 }
0x172e   :  { %v4402_v55 = vpop.permute.xlu0 %4401  ;;  %v4446_v52 = vsel %vm356_vm2, %v4427_v41, %v4445_v53 }
0x172f   :  { %v4405_v44 = vpop.permute.xlu1 %4404  ;;  %v4431_v1 = vrot.slane %v4402_v55, %v11685_v48 }
0x1730   :  { %v4435_v6 = vrot.slane %v4405_v44, %v11685_v48 }
0x1731   :  { %v4447_v11 = vsel %vm358_vm3, %v4431_v1, %v4446_v52 }
0x1732   :  { %v4408_v5 = vpop.permute.xlu0 %4407  ;;  %v4448_v28 = vsel %vm360_vm4, %v4435_v6, %v4447_v11 }
0x1733   :  { %v4411_v25 = vpop.permute.xlu1 %4410  ;;  %v4439_v54 = vrot.slane %v4408_v5, %v11685_v48 }
0x1734   :  { %v4443_v33 = vrot.slane %v4411_v25, %v11685_v48 }
0x1735   :  { %v4449_v32 = vsel %vm362_vm5, %v4439_v54, %v4448_v28 }
0x1736   :  { %v4450_v34 = vsel %vm364_vm6, %v4443_v33, %v4449_v32 }
0x1737   :  { %v4452_v47 = vsel %vm367_vm7, %v4450_v34, 0.0 }
0x1738   :  { %4453 = vadd.xlane.f32.xlu0 %v4452_v47 }
0x17c1   :  { %v4454_v13 = vpop.xlane.xlu0 %4453 }
0x17c2   :  { %v4459_v0 = vrot.slane %v4454_v13, %v11543_v43  ;;  %v4463_v50 = vrot.slane %v4454_v13, %v11686_v51  ;;  %v4467_v30 = vrot.slane %v4454_v13, %v11687_v21  ;;  %v4471_v41 = vrot.slane %v4454_v13, %v11688_v56  ;;  %v10364_v21 = vld [vmem:[#allocation2 + $0x38] sm:$0xff] }
0x17c3   :  { %v4475_v53 = vrot.slane %v4454_v13, %v11817_v26  ;;  %v4479_v44 = vrot.slane %v4454_v13, %v11818_v20  ;;  %v4483_v52 = vrot.slane %v4454_v13, %v11819_v12  ;;  %v4487_v25 = vrot.slane %v4454_v13, %v11820_v15  ;;  %11824 = vst [vmem:[#allocation32_spill] sm:$0xff] %v10364_v21 }
0x17c4   :  { %7618 = vrcp.f32 %v4459_v0 }
0x17c5   :  { %7620 = vrcp.f32 %v4463_v50 }
0x17c6   :  { %7622 = vrcp.f32 %v4467_v30 }
0x17c7   :  { %7624 = vrcp.f32 %v4471_v41  ;;  %v10343_v41 = vld [vmem:[#allocation2 + $0x8] sm:$0xff] }
0x17c8   :  { %7626 = vrcp.f32 %v4475_v53  ;;  %v10346_v53 = vld [vmem:[#allocation2 + $0x10] sm:$0xff] }
0x17c9   :  { %7628 = vrcp.f32 %v4479_v44 }
0x17ca   :  { %7630 = vrcp.f32 %v4483_v52 }
0x17cb   :  { %7632 = vrcp.f32 %v4487_v25 }
0x17d1   :  { %v7619_v55 = vpop.eup %7618 }
0x17d2   :  { %v4497_v1 = vmul.f32 %v7619_v55, %v7603_v61  ;;  %v7621_v6 = vpop.eup %7620  ;;  %v10349_v55 = vld [vmem:[#allocation2] sm:$0xff] }
0x17d3   :  { %v4499_v11 = vmul.f32 %v7621_v6, %v7605_v46  ;;  %v7623_v5 = vpop.eup %7622  ;;  %v10352_v6 = vld [vmem:[#allocation2 + $0x18] sm:$0xff] }
0x17d4   :  { %4514 = vperm.xlu1 %7389, %v4497_v1   ;;  %v4501_v54 = vmul.f32 %v7623_v5, %v7607_v9  ;;  %v7625_v33 = vpop.eup %7624  ;;  %11821 = vst [vmem:[#allocation83_spill] sm:$0xff] %v10352_v6 }
0x17d5   :  { %v4503_v28 = vmul.f32 %v7625_v33, %v10299_v14  ;;  %v7627_v32 = vpop.eup %7626  ;;  %v10355_v33 = vld [vmem:[#allocation2 + $0x20] sm:$0xff] }
0x17d6   :  { %v4505_v61 = vmul.f32 %v7627_v32, %v10302_v29  ;;  %v7629_v34 = vpop.eup %7628 }
0x17d7   :  { %v4507_v47 = vmul.f32 %v7629_v34, %v10304_v42  ;;  %v7631_v46 = vpop.eup %7630 }
0x17d8   :  { %4519 = vperm.xlu1 %7389, %v4499_v11   ;;  %v4509_v0 = vmul.f32 %v7631_v46, %v10308_v37  ;;  %v7633_v13 = vpop.eup %7632 }
0x17d9   :  { %v4511_v9 = vmul.f32 %v7633_v13, %v10310_v45 }
0x17dc   :  { %4524 = vperm.xlu1 %7389, %v4501_v54  }
0x17e0   :  { %4529 = vperm.xlu1 %7389, %v4503_v28  }
0x17e4   :  { %4534 = vperm.xlu1 %7389, %v4505_v61  }
0x17e8   :  { %4539 = vperm.xlu1 %7389, %v4507_v47  }
0x17ec   :  { %4544 = vperm.xlu1 %7389, %v4509_v0  }
0x17f0   :  { %4549 = vperm.xlu1 %7389, %v4511_v9   ;;  %v10358_v9 = vld [vmem:[#allocation2 + $0x28] sm:$0xff] }
0x17f1   :  { %11822 = vst [vmem:[#allocation84_spill] sm:$0xff] %v10358_v9 }
0x184f   :  { %v4515_v50 = vpop.permute.xlu1 %4514 }
0x1850   :  { %v4552_v37 = vmul.f32 %v10349_v55, %v4515_v50 }
0x1852   :  { %v4560_v11 = vrot.slane %v4552_v37, 4 }
0x1853   :  { %v4520_v30 = vpop.permute.xlu1 %4519 }
0x1854   :  { %v4553_v29 = vmul.f32 %v10343_v41, %v4520_v30  ;;  %v4561_v61 = vadd.f32 %v4560_v11, %v4552_v37 }
0x1856   :  { %v4566_v1 = vrot.slane %v4553_v29, 4 }
0x1857   :  { %v4525_v14 = vpop.permute.xlu1 %4524 }
0x1858   :  { %v4554_v42 = vmul.f32 %v10346_v53, %v4525_v14  ;;  %v4567_v54 = vadd.f32 %v4566_v1, %v4553_v29  ;;  %v4562_v14 = vrot.slane %v4561_v61, 2 }
0x185a   :  { %v4572_v52 = vrot.slane %v4554_v42, 4  ;;  %v4568_v0 = vrot.slane %v4567_v54, 2 }
0x185b   :  { %v4530_v44 = vpop.permute.xlu1 %4529 }
0x185c   :  { %v4555_v45 = vmul.f32 %v10352_v6, %v4530_v44  ;;  %v4573_v32 = vadd.f32 %v4572_v52, %v4554_v42  ;;  %v4569_v12 = vadd.f32 %v4568_v0, %v4567_v54 }
0x185e   :  { %v4578_v5 = vrot.slane %v4555_v45, 4  ;;  %v4574_v30 = vrot.slane %v4573_v32, 2 }
0x185f   :  { %v4535_v25 = vpop.permute.xlu1 %4534 }
0x1860   :  { %v4556_v28 = vmul.f32 %v10355_v33, %v4535_v25  ;;  %v4579_v34 = vadd.f32 %v4578_v5, %v4555_v45  ;;  %v10361_v25 = vld [vmem:[#allocation2 + $0x30] sm:$0xff]  ;;  %v4575_v37 = vadd.f32 %v4574_v30, %v4573_v32  ;;  %v4563_v45 = vadd.f32 %v4562_v14, %v4561_v61 }
0x1861   :  { %11823 = vst [vmem:[#allocation30_spill] sm:$0xff] %v10361_v25 }
0x1862   :  { %v4584_v47 = vrot.slane %v4556_v28, 4  ;;  %v4580_v44 = vrot.slane %v4579_v34, 2  ;;  %v4576_v54 = vrot.slane %v4575_v37, 1 }
0x1863   :  { %v4540_v46 = vpop.permute.xlu1 %4539 }
0x1864   :  { %v4585_v13 = vadd.f32 %v4584_v47, %v4556_v28  ;;  %v4557_v50 = vmul.f32 %v10358_v9, %v4540_v46  ;;  %v4581_v52 = vadd.f32 %v4580_v44, %v4579_v34  ;;  %v4570_v46 = vrot.slane %v4569_v12, 1 }
0x1865   :  { %v4577_v14 = vadd.f32 %v4576_v54, %v4575_v37  ;;  %v10485_v54 = vld [vmem:[#allocation8 + $0x108] sm:$0xff] }
0x1866   :  { %v4590_v15 = vrot.slane %v4557_v50, 4  ;;  %v4586_v29 = vrot.slane %v4585_v13, 2  ;;  %v4582_v0 = vrot.slane %v4581_v52, 1  ;;  %v4571_v32 = vadd.f32 %v4570_v46, %v4569_v12  ;;  %v10481_v46 = vld [vmem:[#allocation8 + $0x110] sm:$0xff] }
0x1867   :  { %v4545_v1 = vpop.permute.xlu1 %4544 }
0x1868   :  { %v4591_v20 = vadd.f32 %v4590_v15, %v4557_v50  ;;  %v4558_v42 = vmul.f32 %v10361_v25, %v4545_v1  ;;  %v4587_v28 = vadd.f32 %v4586_v29, %v4585_v13  ;;  %v4564_v15 = vrot.slane %v4563_v45, 1 }
0x1869   :  { %v4583_v44 = vadd.f32 %v4582_v0, %v4581_v52  ;;  %v10475_v52 = vld [vmem:[#allocation8 + $0x120] sm:$0xff]  ;;  %v10491_v0 = vld [vmem:[#allocation8 + $0xf8] sm:$0xff] }
0x186a   :  { %v4592_v11 = vrot.slane %v4591_v20, 2  ;;  %v4596_v5 = vrot.slane %v4558_v42, 4  ;;  %v4588_v1 = vrot.slane %v4587_v28, 1  ;;  %v4565_v13 = vadd.f32 %v4564_v15, %v4563_v45  ;;  %v10471_v45 = vld [vmem:[#allocation8 + $0x128] sm:$0xff]  ;;  %v10488_v15 = vld [vmem:[#allocation8 + $0x118] sm:$0xff] }
0x186b   :  { %v4550_v47 = vpop.permute.xlu1 %4549 }
0x186c   :  { %v4593_v26 = vadd.f32 %v4592_v11, %v4591_v20  ;;  %v4597_v56 = vadd.f32 %v4596_v5, %v4558_v42  ;;  %v4559_v51 = vmul.f32 %v10364_v21, %v4550_v47  ;;  %v4589_v42 = vadd.f32 %v4588_v1, %v4587_v28  ;;  %v10478_v28 = vld [vmem:[#allocation8 + $0x130] sm:$0xff]  ;;  %v10498_v1 = vld [vmem:[#allocation8 + $0x100] sm:$0xff] }
0x186d   :  { %v4620_v11 = vsel %vm352_vm0, %v4571_v32, %v4565_v13  ;;  %11847 = vst [vmem:[#allocation31_spill] sm:$0xff] %v10498_v1  ;;  %v10501_v32 = vld [vmem:[#allocation8 + $0xe0] sm:$0xff]  ;;  %v10518_v13 = vld [vmem:[#allocation8 + $0xd0] sm:$0xff] }
0x186e   :  { %v4598_v50 = vrot.slane %v4597_v56, 2  ;;  %v4602_v48 = vrot.slane %v4559_v51, 4  ;;  %v4594_v61 = vrot.slane %v4593_v26, 1  ;;  %v4621_v21 = vsel %vm354_vm1, %v4577_v14, %v4620_v11  ;;  %11848 = vst [vmem:[#allocation33_spill] sm:$0xff] %v10501_v32  ;;  %v10515_v14 = vld [vmem:[#allocation8 + $0xc0] sm:$0xff]  ;;  %11853 = vst [vmem:[#allocation37_spill] sm:$0xff] %v10518_v13 }
0x186f   :  { %v4622_v9 = vsel %vm356_vm2, %v4583_v44, %v4621_v21  ;;  %v11825_v21 = vld [vmem:[#allocation61_spill] sm:$0xff]  ;;  %11852 = vst [vmem:[#allocation38_spill] sm:$0xff] %v10515_v14  ;;  %v10521_v44 = vld [vmem:[#allocation8 + $0xb0] sm:$0xff] }
0x1870   :  { %v4599_v34 = vadd.f32 %v4598_v50, %v4597_v56  ;;  %v4603_v30 = vadd.f32 %v4602_v48, %v4559_v51  ;;  %v4595_v5 = vadd.f32 %v4594_v61, %v4593_v26  ;;  %v4623_v12 = vsel %vm358_vm3, %v4589_v42, %v4622_v9  ;;  %v10458_v26 = vld [vmem:[#allocation8 + $0x160] sm:$0xff]  ;;  %v10465_v9 = vld [vmem:[#allocation8 + $0x138] sm:$0xff]  ;;  %v10495_v50 = vld [vmem:[#allocation8 + $0xf0] sm:$0xff]  ;;  %11854 = vst [vmem:[#allocation39_spill] sm:$0xff] %v10521_v44 }
0x1871   :  { %v10505_v61 = vld [vmem:[#allocation8 + $0xd8] sm:$0xff]  ;;  %v10535_v11 = vld [vmem:[#allocation8 + $0x90] sm:$0xff] }
0x1872   :  { %v4600_v29 = vrot.slane %v4599_v34, 1  ;;  %v4604_v20 = vrot.slane %v4603_v30, 2  ;;  %v4624_v51 = vsel %vm360_vm4, %v4595_v5, %v4623_v12  ;;  %11849 = vst [vmem:[#allocation35_spill] sm:$0xff] %v10505_v61  ;;  %v10531_v42 = vld [vmem:[#allocation8 + $0x98] sm:$0xff]  ;;  %11858 = vst [vmem:[#allocation43_spill] sm:$0xff] %v10535_v11  ;;  %v10538_v5 = vld [vmem:[#allocation8 + $0xa0] sm:$0xff] }
0x1873   :  { %11857 = vst [vmem:[#allocation42_spill] sm:$0xff] %v10531_v42  ;;  %11859 = vst [vmem:[#allocation44_spill] sm:$0xff] %v10538_v5  ;;  %v10545_v12 = vld [vmem:[#allocation8 + $0x78] sm:$0xff] }
0x1874   :  { %v4605_v47 = vadd.f32 %v4604_v20, %v4603_v30  ;;  %v4601_v25 = vadd.f32 %v4600_v29, %v4599_v34  ;;  %v10508_v34 = vld [vmem:[#allocation8 + $0xe8] sm:$0xff]  ;;  %v10528_v20 = vld [vmem:[#allocation8 + $0xb8] sm:$0xff]  ;;  %11861 = vst [vmem:[#allocation45_spill] sm:$0xff] %v10545_v12 }
0x1875   :  { %11850 = vst [vmem:[#allocation34_spill] sm:$0xff] %v10508_v34  ;;  %v10511_v30 = vld [vmem:[#allocation8 + $0xc8] sm:$0xff]  ;;  %11856 = vst [vmem:[#allocation40_spill] sm:$0xff] %v10528_v20 }
0x1876   :  { %v4606_v6 = vrot.slane %v4605_v47, 1  ;;  %v4625_v48 = vsel %vm362_vm5, %v4601_v25, %v4624_v51  ;;  %v10468_v25 = vld [vmem:[#allocation8 + $0x148] sm:$0xff]  ;;  %11851 = vst [vmem:[#allocation36_spill] sm:$0xff] %v10511_v30 }
0x1877   :  { %v10525_v29 = vld [vmem:[#allocation8 + $0xa8] sm:$0xff] }
0x1878   :  { %v4607_v56 = vadd.f32 %v4606_v6, %v4605_v47  ;;  %v10461_v6 = vld [vmem:[#allocation8 + $0x140] sm:$0xff]  ;;  %11855 = vst [vmem:[#allocation41_spill] sm:$0xff] %v10525_v29  ;;  %v10551_v51 = vld [vmem:[#allocation8 + $0x68] sm:$0xff] }
0x1879   :  { %v10541_v47 = vld [vmem:[#allocation8 + $0x80] sm:$0xff]  ;;  %11863 = vst [vmem:[#allocation46_spill] sm:$0xff] %v10551_v51 }
0x187a   :  { %v4626_v37 = vsel %vm364_vm6, %v4607_v56, %v4625_v48  ;;  %11860 = vst [vmem:[#allocation18_spill] sm:$0xff] %v10541_v47  ;;  %v10548_v56 = vld [vmem:[#allocation8 + $0x88] sm:$0xff]  ;;  %v10555_v48 = vld [vmem:[#allocation8 + $0x60] sm:$0xff] }
0x187b   :  { %4693 = vmatmul.mubr.f32.vlgmr.msra.gmra.mxu0 %v4626_v37  ;;  %7198 = vmatmul.mubr.f32.vlgmr.msra.gmra.mxu1 %v4626_v37  ;;  %11862 = vst [vmem:[#allocation47_spill] sm:$0xff] %v10548_v56  ;;  %11864 = vst [vmem:[#allocation48_spill] sm:$0xff] %v10555_v48  ;;  %v10558_v37 = vld [vmem:[#allocation8 + $0x70] sm:$0xff] }
0x187c   :  { %4773 = vmatpush1.msra.mxu0 %v10013_v4  ;;  %7201 = vmatpush3.msra.mxu1 %v10016_v18  ;;  %v11826_v4 = vld [vmem:[#allocation63_spill] sm:$0xff]  ;;  %v11827_v18 = vld [vmem:[#allocation65_spill] sm:$0xff]  ;;  %11865 = vst [vmem:[#allocation50_spill] sm:$0xff] %v10558_v37 }
0x187d   :  { %4774 = vmatprep.subr.mxu0 %v10019_v31  ;;  %7202 = vmatprep.subr.mxu1 %v11494_v38  ;;  %v11828_v31 = vld [vmem:[#allocation64_spill] sm:$0xff] }
0x187e   :  { %4775 = vmatpush1.msra.mxu0 %v10023_v60  ;;  %7203 = vmatpush3.msra.mxu1 %v10026_v40  ;;  %v11829_v60 = vld [vmem:[#allocation66_spill] sm:$0xff]  ;;  %v11830_v40 = vld [vmem:[#allocation68_spill] sm:$0xff] }
0x187f   :  { %4776 = vmatprep.subr.mxu0 %v10029_v7  ;;  %7204 = vmatprep.subr.mxu1 %v11494_v38  ;;  %v11831_v7 = vld [vmem:[#allocation67_spill] sm:$0xff] }
0x1880   :  { %4777 = vmatpush1.msra.mxu0 %v10033_v10  ;;  %7205 = vmatpush3.msra.mxu1 %v10036_v59  ;;  %v11832_v10 = vld [vmem:[#allocation69_spill] sm:$0xff]  ;;  %v11833_v59 = vld [vmem:[#allocation71_spill] sm:$0xff] }
0x1881   :  { %4778 = vmatprep.subr.mxu0 %v10039_v63  ;;  %7206 = vmatprep.subr.mxu1 %v11494_v38  ;;  %v11834_v63 = vld [vmem:[#allocation70_spill] sm:$0xff] }
0x1882   :  { %4779 = vmatpush1.msra.mxu0 %v10043_v19  ;;  %7207 = vmatpush3.msra.mxu1 %v10046_v57  ;;  %v11835_v19 = vld [vmem:[#allocation72_spill] sm:$0xff]  ;;  %v11836_v57 = vld [vmem:[#allocation73_spill] sm:$0xff] }
0x1883   :  { %4780 = vmatprep.subr.mxu0 %v10049_v24  ;;  %7208 = vmatprep.subr.mxu1 %v11494_v38  ;;  %v11837_v24 = vld [vmem:[#allocation28_spill] sm:$0xff] }
0x1884   :  { %4781 = vmatpush1.msra.mxu0 %v10053_v23  ;;  %7209 = vmatpush3.msra.mxu1 %v10056_v62  ;;  %v11838_v23 = vld [vmem:[#allocation74_spill] sm:$0xff]  ;;  %v11839_v62 = vld [vmem:[#allocation75_spill] sm:$0xff] }
0x1885   :  { %4782 = vmatprep.subr.mxu0 %v10059_v16  ;;  %7210 = vmatprep.subr.mxu1 %v11494_v38  ;;  %v11840_v16 = vld [vmem:[#allocation76_spill] sm:$0xff] }
0x1886   :  { %4783 = vmatpush1.msra.mxu0 %v10063_v17  ;;  %7211 = vmatpush3.msra.mxu1 %v10066_v22  ;;  %v11841_v17 = vld [vmem:[#allocation77_spill] sm:$0xff]  ;;  %v11842_v22 = vld [vmem:[#allocation78_spill] sm:$0xff] }
0x1887   :  { %4784 = vmatprep.subr.mxu0 %v10069_v39  ;;  %7212 = vmatprep.subr.mxu1 %v11494_v38  ;;  %v11843_v39 = vld [vmem:[#allocation79_spill] sm:$0xff] }
0x1888   :  { %4785 = vmatpush1.msra.mxu0 %v10073_v36  ;;  %7213 = vmatpush3.msra.mxu1 %v10076_v58  ;;  %v11844_v36 = vld [vmem:[#allocation80_spill] sm:$0xff]  ;;  %v11845_v58 = vld [vmem:[#allocation81_spill] sm:$0xff] }
0x1889   :  { %4786 = vmatprep.subr.mxu0 %v10079_v8  ;;  %7214 = vmatprep.subr.mxu1 %v11494_v38  ;;  %v11846_v8 = vld [vmem:[#allocation82_spill] sm:$0xff] }
0x188a   :  { %4787 = vmatpush1.msra.mxu0 %v10083_v35  ;;  %7215 = vmatpush3.msra.mxu1 %v10086_v27  ;;  %v10441_v35 = vld [vmem:[#allocation8 + $0x170] sm:$0xff]  ;;  %v10445_v27 = vld [vmem:[#allocation8 + $0x168] sm:$0xff] }
0x188b   :  { %4788 = vmatprep.subr.mxu0 %v10089_v49  ;;  %7216 = vmatprep.subr.mxu1 %v11494_v38  ;;  %v10448_v49 = vld [vmem:[#allocation8 + $0x178] sm:$0xff] }
0x188c   :  { %4789 = vmatpush1.msra.mxu0 %v10093_v2  ;;  %7217 = vmatpush3.msra.mxu1 %v10096_v3  ;;  %v10451_v2 = vld [vmem:[#allocation8 + $0x158] sm:$0xff]  ;;  %v10455_v3 = vld [vmem:[#allocation8 + $0x150] sm:$0xff] }
0x188d   :  { %4790 = vmatprep.subr.mxu0 %v11825_v21  ;;  %7218 = vmatprep.subr.mxu1 %v11494_v38  ;;  %v10561_v21 = vld [vmem:[#allocation8 + $0x50] sm:$0xff] }
0x188e   :  { %4791 = vmatpush1.msra.mxu0 %v11826_v4  ;;  %7219 = vmatpush3.msra.mxu1 %v11827_v18  ;;  %11866 = vst [vmem:[#allocation49_spill] sm:$0xff] %v10561_v21  ;;  %v10565_v4 = vld [vmem:[#allocation8 + $0x48] sm:$0xff]  ;;  %v10568_v18 = vld [vmem:[#allocation8 + $0x58] sm:$0xff] }
0x188f   :  { %4792 = vmatprep.subr.mxu0 %v11828_v31  ;;  %7220 = vmatprep.subr.mxu1 %v11494_v38  ;;  %11867 = vst [vmem:[#allocation51_spill] sm:$0xff] %v10565_v4  ;;  %11868 = vst [vmem:[#allocation53_spill] sm:$0xff] %v10568_v18  ;;  %v10571_v31 = vld [vmem:[#allocation8 + $0x38] sm:$0xff] }
0x1890   :  { %4793 = vmatpush1.msra.mxu0 %v11829_v60  ;;  %7221 = vmatpush3.msra.mxu1 %v11830_v40  ;;  %11869 = vst [vmem:[#allocation52_spill] sm:$0xff] %v10571_v31  ;;  %v10575_v60 = vld [vmem:[#allocation8 + $0x30] sm:$0xff]  ;;  %v10578_v40 = vld [vmem:[#allocation8 + $0x40] sm:$0xff] }
0x1891   :  { %4794 = vmatprep.subr.mxu0 %v11831_v7  ;;  %7222 = vmatprep.subr.mxu1 %v11494_v38  ;;  %11870 = vst [vmem:[#allocation54_spill] sm:$0xff] %v10575_v60  ;;  %11871 = vst [vmem:[#allocation56_spill] sm:$0xff] %v10578_v40  ;;  %v10581_v7 = vld [vmem:[#allocation8 + $0x20] sm:$0xff] }
0x1892   :  { %4795 = vmatpush1.msra.mxu0 %v11832_v10  ;;  %7223 = vmatpush3.msra.mxu1 %v11833_v59  ;;  %11872 = vst [vmem:[#allocation55_spill] sm:$0xff] %v10581_v7  ;;  %v10585_v10 = vld [vmem:[#allocation8 + $0x18] sm:$0xff]  ;;  %v10588_v59 = vld [vmem:[#allocation8 + $0x28] sm:$0xff] }
0x1893   :  { %4796 = vmatprep.subr.mxu0 %v11834_v63  ;;  %7224 = vmatprep.subr.mxu1 %v11494_v38  ;;  %11873 = vst [vmem:[#allocation57_spill] sm:$0xff] %v10585_v10  ;;  %11874 = vst [vmem:[#allocation59_spill] sm:$0xff] %v10588_v59  ;;  %v10591_v63 = vld [vmem:[#allocation8 + $0x8] sm:$0xff] }
0x1894   :  { %4797 = vmatpush1.msra.mxu0 %v11835_v19  ;;  %7225 = vmatpush3.msra.mxu1 %v11836_v57  ;;  %11875 = vst [vmem:[#allocation58_spill] sm:$0xff] %v10591_v63  ;;  %v10595_v19 = vld [vmem:[#allocation8] sm:$0xff]  ;;  %v10598_v57 = vld [vmem:[#allocation8 + $0x10] sm:$0xff] }
0x1895   :  { %4798 = vmatprep.subr.mxu0 %v11837_v24  ;;  %7226 = vmatprep.subr.mxu1 %v11494_v38  ;;  %11876 = vst [vmem:[#allocation60_spill] sm:$0xff] %v10595_v19  ;;  %11877 = vst [vmem:[#allocation62_spill] sm:$0xff] %v10598_v57  ;;  %v10604_v24 = vld [vmem:[#allocation10 + $0x170] sm:$0xff] }
0x1896   :  { %4799 = vmatpush1.msra.mxu0 %v11838_v23  ;;  %7227 = vmatpush3.msra.mxu1 %v11839_v62  ;;  %11878 = vst [vmem:[#allocation61_spill] sm:$0xff] %v10604_v24 }
0x1897   :  { %4800 = vmatprep.subr.mxu0 %v11840_v16  ;;  %7228 = vmatprep.subr.mxu1 %v11494_v38 }
0x1898   :  { %4801 = vmatpush1.msra.mxu0 %v11841_v17  ;;  %7229 = vmatpush3.msra.mxu1 %v11842_v22  ;;  %v4609_v17 = vld [vmem:[#allocation5 + $0x78] sm:$0xff] }
0x1899   :  { %4802 = vmatprep.subr.mxu0 %v11843_v39  ;;  %7230 = vmatprep.subr.mxu1 %v11494_v38 }
0x189a   :  { %4803 = vmatpush1.msra.mxu0 %v11844_v36  ;;  %4836 = vmatprep.mubr.f32.mxu0 %v11494_v38 }
0x189b   :  { %7231 = vmatpush3.msra.mxu1 %v11845_v58  ;;  %7232 = vmatprep.mubr.msk.f32.mxu1 %vm8197_vm8, %v11494_v38 }
0x189c   :  { %4837 = vmatmul.mubr.f32.vlgmr.msra.gmra.mxu0 %v11846_v8  ;;  %7233 = vmatmul.mubr.f32.vlgmr.msra.gmra.mxu1 %v11846_v8 }
0x189d   :  { %5414 = vmatprep.subr.mxu0 %v10441_v35  ;;  %7235 = vmatprep.subr.mxu1 %v11494_v38 }
0x189e   :  { %5415 = vmatpush1.msra.mxu0 %v10445_v27  ;;  %7236 = vmatpush3.msra.mxu1 %v10448_v49 }
0x189f   :  { %5416 = vmatprep.subr.mxu0 %v10451_v2  ;;  %7237 = vmatprep.subr.mxu1 %v11494_v38 }
0x18a0   :  { %5417 = vmatpush1.msra.mxu0 %v10455_v3  ;;  %7238 = vmatpush3.msra.mxu1 %v10458_v26 }
0x18a1   :  { %5418 = vmatprep.subr.mxu0 %v10461_v6  ;;  %7239 = vmatprep.subr.mxu1 %v11494_v38 }
0x18a2   :  { %5419 = vmatpush1.msra.mxu0 %v10465_v9  ;;  %7240 = vmatpush3.msra.mxu1 %v10468_v25 }
0x18a3   :  { %5420 = vmatprep.subr.mxu0 %v10471_v45  ;;  %7241 = vmatprep.subr.mxu1 %v11494_v38 }
0x18a4   :  { %5421 = vmatpush1.msra.mxu0 %v10475_v52  ;;  %7242 = vmatpush3.msra.mxu1 %v10478_v28 }
0x18a5   :  { %5422 = vmatprep.subr.mxu0 %v10481_v46  ;;  %7243 = vmatprep.subr.mxu1 %v11494_v38 }
0x18a6   :  { %5423 = vmatpush1.msra.mxu0 %v10485_v54  ;;  %7244 = vmatpush3.msra.mxu1 %v10488_v15 }
0x18a7   :  { %5424 = vmatprep.subr.mxu0 %v10491_v0  ;;  %7245 = vmatprep.subr.mxu1 %v11494_v38 }
0x18a8   :  { %5425 = vmatpush1.msra.mxu0 %v10495_v50  ;;  %7246 = vmatpush3.msra.mxu1 %v10498_v1 }
0x18a9   :  { %5426 = vmatprep.subr.mxu0 %v10501_v32  ;;  %7247 = vmatprep.subr.mxu1 %v11494_v38 }
0x18aa   :  { %5427 = vmatpush1.msra.mxu0 %v10505_v61  ;;  %7248 = vmatpush3.msra.mxu1 %v10508_v34 }
0x18ab   :  { %5428 = vmatprep.subr.mxu0 %v10511_v30  ;;  %7249 = vmatprep.subr.mxu1 %v11494_v38  ;;  %v11894_v30 = vld [vmem:[#allocation25_spill] sm:$0xff] }
0x18ac   :  { %5429 = vmatpush1.msra.mxu0 %v10515_v14  ;;  %7250 = vmatpush3.msra.mxu1 %v10518_v13 }
0x18ad   :  { %5430 = vmatprep.subr.mxu0 %v10521_v44  ;;  %7251 = vmatprep.subr.mxu1 %v11494_v38 }
0x18ae   :  { %5431 = vmatpush1.msra.mxu0 %v10525_v29  ;;  %7252 = vmatpush3.msra.mxu1 %v10528_v20 }
0x18af   :  { %5432 = vmatprep.subr.mxu0 %v10531_v42  ;;  %7253 = vmatprep.subr.mxu1 %v11494_v38  ;;  %v11891_v42 = vld [vmem:[#allocation22_spill] sm:$0xff] }
0x18b0   :  { %5433 = vmatpush1.msra.mxu0 %v10535_v11  ;;  %7254 = vmatpush3.msra.mxu1 %v10538_v5  ;;  %v11889_v5 = vld [vmem:[#allocation20_spill] sm:$0xff] }
0x18b1   :  { %5434 = vmatprep.subr.mxu0 %v10541_v47  ;;  %7255 = vmatprep.subr.mxu1 %v11494_v38 }
0x18b2   :  { %5435 = vmatpush1.msra.mxu0 %v10545_v12  ;;  %7256 = vmatpush3.msra.mxu1 %v10548_v56  ;;  %v11888_v12 = vld [vmem:[#allocation19_spill] sm:$0xff] }
0x18b3   :  { %5436 = vmatprep.subr.mxu0 %v10551_v51  ;;  %7257 = vmatprep.subr.mxu1 %v11494_v38 }
0x18b4   :  { %5437 = vmatpush1.msra.mxu0 %v10555_v48  ;;  %7258 = vmatpush3.msra.mxu1 %v10558_v37 }
0x18b5   :  { %5438 = vmatprep.subr.mxu0 %v10561_v21  ;;  %7259 = vmatprep.subr.mxu1 %v11494_v38 }
0x18b6   :  { %5439 = vmatpush1.msra.mxu0 %v10565_v4  ;;  %7260 = vmatpush3.msra.mxu1 %v10568_v18 }
0x18b7   :  { %5440 = vmatprep.subr.mxu0 %v10571_v31  ;;  %7261 = vmatprep.subr.mxu1 %v11494_v38 }
0x18b8   :  { %5441 = vmatpush1.msra.mxu0 %v10575_v60  ;;  %7262 = vmatpush3.msra.mxu1 %v10578_v40  ;;  %v11880_v60 = vld [vmem:[#allocation27_spill] sm:$0xff] }
0x18b9   :  { %5442 = vmatprep.subr.mxu0 %v10581_v7  ;;  %7263 = vmatprep.subr.mxu1 %v11494_v38  ;;  %v4610_v7 = vld [vmem:[#allocation5 + $0x80] sm:$0xff] }
0x18ba   :  { %5443 = vmatpush1.msra.mxu0 %v10585_v10  ;;  %7264 = vmatpush3.msra.mxu1 %v10588_v59 }
0x18bb   :  { %5444 = vmatprep.subr.mxu0 %v10591_v63  ;;  %7265 = vmatprep.subr.mxu1 %v11494_v38 }
0x18bc   :  { %5445 = vmatpush1.msra.mxu0 %v10595_v19  ;;  %7266 = vmatpush3.msra.mxu1 %v10598_v57  ;;  %v11879_v57 = vld [vmem:[#allocation26_spill] sm:$0xff] }
0x18bd   :  { %5478 = vmatprep.mubr.f32.mxu0 %v11494_v38  ;;  %7267 = vmatprep.mubr.msk.f32.mxu1 %vm8197_vm8, %v11494_v38 }
0x18be   :  { %5558 = vmatprep.subr.mxu0 %v10604_v24  ;;  %7270 = vmatprep.subr.mxu1 %v11494_v38 }
0x193b   :  { %v4765_v23 = vpop.f32.mrf.mxu1  ;;  %v4694_v16 = vpop.f32.mrf.mxu0 }
0x193c   :  { %v4769_v58 = vadd.f32 %v4694_v16, %v4609_v17  ;;  %v4611_v16 = vld [vmem:[#allocation5 + $0x88] sm:$0xff]  ;;  %v11881_v17 = vld [vmem:[#allocation29_spill] sm:$0xff] }
0x193d   :  { %v7199_v62 = vpop.f32.mrf.mxu1  ;;  %v4696_v22 = vpop.f32.mrf.mxu0 }
0x193e   :  { %v4770_v24 = vadd.f32 %v4696_v22, %v4610_v7 }
0x195c   :  { %v4838_v39 = vpop.f32.mrf.mxu0  ;;  %v4909_v36 = vpop.f32.mrf.mxu1 }
0x195d   :  { %v4839_v19 = vadd.f32 %v4838_v39, %v11879_v57  ;;  %v4910_v39 = vadd.f32 %v4909_v36, %v11881_v17 }
0x195e   :  { %v4840_v63 = vpop.f32.mrf.mxu0  ;;  %v7234_v59 = vpop.f32.mrf.mxu1 }
0x195f   :  { %v4913_v10 = vadd.f32 %v4839_v19, %v4769_v58  ;;  %v4841_v31 = vadd.f32 %v4840_v63, %v11880_v60  ;;  %v4771_v59 = vadd.f32 %v4765_v23, %v4611_v16 }
0x1961   :  { %v6537_v40 = vmul.f32 -1.442695, %v4913_v10  ;;  %v4920_v18 = vadd.f32 %v4841_v31, %v4770_v24 }
0x1963   :  { %7634 = vpow2.f32 %v6537_v40  ;;  %v6538_v4 = vmul.f32 -1.442695, %v4920_v18 }
0x1965   :  { %7636 = vpow2.f32 %v6538_v4 }
0x1970   :  { %v7635_v62 = vpop.eup %7634 }
0x1971   :  { %v4917_v21 = vadd.f32 1.0, %v7635_v62 }
0x1972   :  { %v7637_v37 = vpop.eup %7636 }
0x1973   :  { %7638 = vrcp.f32 %v4917_v21  ;;  %v4924_v48 = vadd.f32 1.0, %v7637_v37  ;;  %v11882_v37 = vld [vmem:[#allocation17_spill] sm:$0xff] }
0x1975   :  { %7640 = vrcp.f32 %v4924_v48 }
0x1980   :  { %v7639_v57 = vpop.eup %7638 }
0x1981   :  { %v4927_v19 = vmul.f32 %v7639_v57, %v4910_v39 }
0x1982   :  { %v7641_v63 = vpop.eup %7640 }
0x1983   :  { %v4928_v10 = vadd.f32 %v4927_v19, %v4771_v59  ;;  %v4930_v7 = vsub.f32 1.0, %v7641_v63  ;;  %v4932_v4 = vmul.f32 %v7641_v63, %v11846_v8 }
0x1985   :  { %7642 = vtanh.f32 %v4928_v10 }
0x1992   :  { %v7643_v40 = vpop.eup %7642 }
0x1993   :  { %v4931_v31 = vmul.f32 %v7643_v40, %v4930_v7 }
0x1995   :  { %v10612_v18 = vadd.f32 %v4932_v4, %v4931_v31 }
0x1997   :  { %4935 = vst [vmem:[#allocation11 + $0x28] sm:$0xff] %v10612_v18  ;;  %v4944_v21 = vrot.slane %v10612_v18, %v11882_v37  ;;  %v4937_v24 = vcombine.high %v10612_v18, %v10612_v18 }
0x1999   :  { %v4960_v48 = vrot.slane %v4944_v21, %v11882_v37  ;;  %v4952_v57 = vcombine.high %v4944_v21, %v4944_v21  ;;  %v4951_v23 = vrot.slane %v4937_v24, %v11882_v37  ;;  %v11883_v21 = vld [vmem:[#allocation83_spill] sm:$0xff] }
0x199b   :  { %v4989_v22 = vrot.slane %v4960_v48, %v11543_v43  ;;  %v4974_v36 = vrot.slane %v4952_v57, %v11882_v37  ;;  %v4982_v8 = vcombine.high %v4960_v48, %v4960_v48  ;;  %v4967_v39 = vrot.slane %v4951_v23, %v11882_v37 }
0x199c   :  { %v4953_v7 = vcombine.high %v4951_v23, %v4951_v23  ;;  %v11885_v23 = vld [vmem:[#allocation30_spill] sm:$0xff] }
0x199d   :  { %v5026_v58 = vmul.f32 %v10349_v55, %v4989_v22  ;;  %v4993_v62 = vrot.slane %v4974_v36, %v11543_v43  ;;  %v4997_v16 = vrot.slane %v4982_v8, %v11543_v43  ;;  %v5005_v10 = vrot.slane %v4967_v39, %v11543_v43  ;;  %v11884_v22 = vld [vmem:[#allocation84_spill] sm:$0xff] }
0x199e   :  { %v4984_v63 = vcombine.high %v4974_v36, %v4974_v36  ;;  %v4981_v4 = vrot.slane %v4953_v7, %v11882_v37  ;;  %v4983_v57 = vcombine.high %v4967_v39, %v4967_v39 }
0x199f   :  { %5034 = vadd.xlane.f32.xlu0 %v5026_v58  ;;  %v5027_v59 = vmul.f32 %v10343_v41, %v4993_v62  ;;  %v5028_v19 = vmul.f32 %v10346_v53, %v4997_v16  ;;  %v5030_v40 = vmul.f32 %v10355_v33, %v5005_v10 }
0x19a0   :  { %v5001_v31 = vrot.slane %v4984_v63, %v11543_v43  ;;  %v5009_v48 = vrot.slane %v4981_v4, %v11543_v43  ;;  %v5013_v58 = vrot.slane %v4983_v57, %v11543_v43  ;;  %v4985_v36 = vcombine.high %v4981_v4, %v4981_v4 }
0x19a1   :  { %5036 = vadd.xlane.f32.xlu1 %v5027_v59  ;;  %v11886_v59 = vld [vmem:[#allocation32_spill] sm:$0xff] }
0x19a2   :  { %v5029_v24 = vmul.f32 %v11883_v21, %v5001_v31  ;;  %v5031_v8 = vmul.f32 %v11884_v22, %v5009_v48  ;;  %v5032_v62 = vmul.f32 %v11885_v23, %v5013_v58  ;;  %v5017_v16 = vrot.slane %v4985_v36, %v11543_v43  ;;  %v11887_v31 = vld [vmem:[#allocation16_spill] sm:$0xff] }
0x19a3   :  { %5038 = vadd.xlane.f32.xlu0 %v5028_v19 }
0x19a4   :  { %v5033_v19 = vmul.f32 %v11886_v59, %v5017_v16 }
0x19a7   :  { %5042 = vadd.xlane.f32.xlu0 %v5030_v40 }
0x19ab   :  { %5040 = vadd.xlane.f32.xlu0 %v5029_v24 }
0x19af   :  { %5044 = vadd.xlane.f32.xlu0 %v5031_v8 }
0x19b3   :  { %5046 = vadd.xlane.f32.xlu0 %v5032_v62 }
0x19b7   :  { %5048 = vadd.xlane.f32.xlu0 %v5033_v19 }
0x1a28   :  { %v5035_v10 = vpop.xlane.xlu0 %5034 }
0x1a29   :  { %v5061_v48 = vrot.slane %v5035_v10, %v11887_v31 }
0x1a2a   :  { %v5037_v40 = vpop.xlane.xlu1 %5036 }
0x1a2b   :  { %v5065_v24 = vrot.slane %v5037_v40, %v11887_v31 }
0x1a2c   :  { %v5039_v63 = vpop.xlane.xlu0 %5038 }
0x1a2d   :  { %v5069_v4 = vrot.slane %v5039_v63, %v11887_v31  ;;  %v5090_v8 = vsel %vm352_vm0, %v5065_v24, %v5061_v48 }
0x1a2f   :  { %v5091_v36 = vsel %vm354_vm1, %v5069_v4, %v5090_v8 }
0x1a30   :  { %v5043_v7 = vpop.xlane.xlu0 %5042 }
0x1a31   :  { %v5077_v37 = vrot.slane %v5043_v7, %v11887_v31 }
0x1a34   :  { %v5041_v39 = vpop.xlane.xlu0 %5040 }
0x1a35   :  { %v5073_v58 = vrot.slane %v5041_v39, %v11887_v31 }
0x1a37   :  { %v5092_v16 = vsel %vm356_vm2, %v5073_v58, %v5091_v36 }
0x1a38   :  { %v5045_v57 = vpop.xlane.xlu0 %5044  ;;  %v5093_v60 = vsel %vm358_vm3, %v5077_v37, %v5092_v16  ;;  %v11890_v37 = vld [vmem:[#allocation21_spill] sm:$0xff] }
0x1a39   :  { %v5081_v19 = vrot.slane %v5045_v57, %v11887_v31 }
0x1a3b   :  { %v5094_v56 = vsel %vm360_vm4, %v5081_v19, %v5093_v60 }
0x1a3c   :  { %v5047_v62 = vpop.xlane.xlu0 %5046 }
0x1a3d   :  { %v5085_v17 = vrot.slane %v5047_v62, %v11887_v31 }
0x1a3f   :  { %v5095_v48 = vsel %vm362_vm5, %v5085_v17, %v5094_v56  ;;  %v11892_v56 = vld [vmem:[#allocation23_spill] sm:$0xff] }
0x1a40   :  { %v5049_v51 = vpop.xlane.xlu0 %5048 }
0x1a41   :  { %v5089_v24 = vrot.slane %v5049_v51, %v11887_v31 }
0x1a43   :  { %v5096_v4 = vsel %vm364_vm6, %v5089_v24, %v5095_v48 }
0x1a44   :  { %v5098_v8 = vsel %vm367_vm7, %v5096_v4, -inf }
0x1a45   :  { %5099 = vmax.xlane.f32.xlu0 %v5098_v8  ;;  %v11893_v8 = vld [vmem:[#allocation24_spill] sm:$0xff] }
0x1ace   :  { %v5100_v58 = vpop.xlane.xlu0 %5099 }
0x1acf   :  { %v5105_v36 = vrot.slane %v5100_v58, %v11543_v43  ;;  %v5109_v47 = vrot.slane %v5100_v58, %v11888_v12  ;;  %v5113_v11 = vrot.slane %v5100_v58, %v11889_v5  ;;  %v5117_v16 = vrot.slane %v5100_v58, %v11890_v37 }
0x1ad0   :  { %v5121_v60 = vrot.slane %v5100_v58, %v11891_v42  ;;  %v5125_v17 = vrot.slane %v5100_v58, %v11892_v56  ;;  %v5129_v44 = vrot.slane %v5100_v58, %v11893_v8  ;;  %v5133_v34 = vrot.slane %v5100_v58, %v11894_v30 }
0x1ad1   :  { %v5142_v19 = vsub.f32 %v5035_v10, %v5105_v36  ;;  %v5143_v20 = vsub.f32 %v5037_v40, %v5109_v47  ;;  %v5144_v29 = vsub.f32 %v5039_v63, %v5113_v11  ;;  %v5145_v24 = vsub.f32 %v5041_v39, %v5117_v16 }
0x1ad2   :  { %v5146_v13 = vsub.f32 %v5043_v7, %v5121_v60  ;;  %v5147_v61 = vsub.f32 %v5045_v57, %v5125_v17  ;;  %v5148_v1 = vsub.f32 %v5047_v62, %v5129_v44  ;;  %v5149_v47 = vsub.f32 %v5049_v51, %v5133_v34 }
0x1ad3   :  { %v5150_v48 = vmul.f32 1.442695, %v5142_v19  ;;  %v5152_v4 = vmul.f32 1.442695, %v5143_v20  ;;  %v5154_v14 = vmul.f32 1.442695, %v5144_v29 }
0x1ad4   :  { %v5156_v32 = vmul.f32 1.442695, %v5145_v24  ;;  %v5158_v10 = vmul.f32 1.442695, %v5146_v13  ;;  %v5160_v11 = vmul.f32 1.442695, %v5147_v61 }
0x1ad5   :  { %7644 = vpow2.f32 %v5150_v48  ;;  %v5162_v63 = vmul.f32 1.442695, %v5148_v1  ;;  %v5164_v20 = vmul.f32 1.442695, %v5149_v47 }
0x1ad6   :  { %7646 = vpow2.f32 %v5152_v4 }
0x1ad7   :  { %7648 = vpow2.f32 %v5154_v14 }
0x1ad8   :  { %7650 = vpow2.f32 %v5156_v32 }
0x1ad9   :  { %7652 = vpow2.f32 %v5158_v10 }
0x1ada   :  { %7654 = vpow2.f32 %v5160_v11 }
0x1adb   :  { %7656 = vpow2.f32 %v5162_v63 }
0x1adc   :  { %7658 = vpow2.f32 %v5164_v20 }
0x1ae2   :  { %v7645_v40 = vpop.eup %7644 }
0x1ae3   :  { %v7647_v7 = vpop.eup %7646  ;;  %5175 = vperm.xlu0 %7390, %v7645_v40  }
0x1ae4   :  { %5178 = vperm.xlu1 %7389, %v7647_v7   ;;  %v7649_v29 = vpop.eup %7648 }
0x1ae5   :  { %v10664_v39 = vpop.eup %7650 }
0x1ae6   :  { %v10667_v14 = vpop.eup %7652 }
0x1ae7   :  { %5181 = vperm.xlu0 %7390, %v7649_v29   ;;  %v10669_v32 = vpop.eup %7654 }
0x1ae8   :  { %5184 = vperm.xlu1 %7389, %v10664_v39   ;;  %v10673_v1 = vpop.eup %7656 }
0x1ae9   :  { %v10675_v61 = vpop.eup %7658 }
0x1aeb   :  { %5187 = vperm.xlu0 %7390, %v10667_v14  }
0x1aec   :  { %5190 = vperm.xlu1 %7389, %v10669_v32  }
0x1aef   :  { %5193 = vperm.xlu0 %7390, %v10673_v1  }
0x1af0   :  { %5196 = vperm.xlu1 %7389, %v10675_v61  }
0x1b5e   :  { %v5176_v34 = vpop.permute.xlu0 %5175 }
0x1b5f   :  { %v5179_v13 = vpop.permute.xlu1 %5178  ;;  %v5201_v51 = vrot.slane %v5176_v34, %v11887_v31 }
0x1b60   :  { %v5205_v44 = vrot.slane %v5179_v13, %v11887_v31 }
0x1b62   :  { %v5182_v57 = vpop.permute.xlu0 %5181  ;;  %v5230_v36 = vsel %vm352_vm0, %v5205_v44, %v5201_v51 }
0x1b63   :  { %v5185_v62 = vpop.permute.xlu1 %5184  ;;  %v5209_v58 = vrot.slane %v5182_v57, %v11887_v31 }
0x1b64   :  { %v5213_v16 = vrot.slane %v5185_v62, %v11887_v31 }
0x1b65   :  { %v5231_v60 = vsel %vm354_vm1, %v5209_v58, %v5230_v36 }
0x1b66   :  { %v5188_v19 = vpop.permute.xlu0 %5187  ;;  %v5232_v4 = vsel %vm356_vm2, %v5213_v16, %v5231_v60 }
0x1b67   :  { %v5191_v17 = vpop.permute.xlu1 %5190  ;;  %v5217_v24 = vrot.slane %v5188_v19, %v11887_v31 }
0x1b68   :  { %v5221_v48 = vrot.slane %v5191_v17, %v11887_v31 }
0x1b69   :  { %v5233_v10 = vsel %vm358_vm3, %v5217_v24, %v5232_v4 }
0x1b6a   :  { %v5194_v47 = vpop.permute.xlu0 %5193  ;;  %v5234_v34 = vsel %vm360_vm4, %v5221_v48, %v5233_v10 }
0x1b6b   :  { %v5197_v11 = vpop.permute.xlu1 %5196  ;;  %v5225_v63 = vrot.slane %v5194_v47, %v11887_v31 }
0x1b6c   :  { %v5229_v20 = vrot.slane %v5197_v11, %v11887_v31 }
0x1b6d   :  { %v5235_v13 = vsel %vm362_vm5, %v5225_v63, %v5234_v34 }
0x1b6e   :  { %v5236_v44 = vsel %vm364_vm6, %v5229_v20, %v5235_v13 }
0x1b6f   :  { %v5238_v51 = vsel %vm367_vm7, %v5236_v44, 0.0 }
0x1b70   :  { %5239 = vadd.xlane.f32.xlu0 %v5238_v51 }
0x1bf9   :  { %v5240_v57 = vpop.xlane.xlu0 %5239 }
0x1bfa   :  { %v5245_v62 = vrot.slane %v5240_v57, %v11543_v43  ;;  %v5249_v58 = vrot.slane %v5240_v57, %v11888_v12  ;;  %v5253_v36 = vrot.slane %v5240_v57, %v11889_v5  ;;  %v5257_v16 = vrot.slane %v5240_v57, %v11890_v37 }
0x1bfb   :  { %v5261_v60 = vrot.slane %v5240_v57, %v11891_v42  ;;  %v5265_v17 = vrot.slane %v5240_v57, %v11892_v56  ;;  %v5269_v4 = vrot.slane %v5240_v57, %v11893_v8  ;;  %v5273_v11 = vrot.slane %v5240_v57, %v11894_v30 }
0x1bfc   :  { %7660 = vrcp.f32 %v5245_v62 }
0x1bfd   :  { %7662 = vrcp.f32 %v5249_v58 }
0x1bfe   :  { %7664 = vrcp.f32 %v5253_v36 }
0x1bff   :  { %7666 = vrcp.f32 %v5257_v16 }
0x1c00   :  { %7668 = vrcp.f32 %v5261_v60 }
0x1c01   :  { %7670 = vrcp.f32 %v5265_v17 }
0x1c02   :  { %7672 = vrcp.f32 %v5269_v4 }
0x1c03   :  { %7674 = vrcp.f32 %v5273_v11 }
0x1c09   :  { %v7661_v19 = vpop.eup %7660 }
0x1c0a   :  { %v5283_v24 = vmul.f32 %v7661_v19, %v7645_v40  ;;  %v7663_v48 = vpop.eup %7662 }
0x1c0b   :  { %v5285_v10 = vmul.f32 %v7663_v48, %v7647_v7  ;;  %v7665_v47 = vpop.eup %7664 }
0x1c0c   :  { %5300 = vperm.xlu1 %7389, %v5283_v24   ;;  %v5287_v63 = vmul.f32 %v7665_v47, %v7649_v29  ;;  %v7667_v20 = vpop.eup %7666 }
0x1c0d   :  { %v5289_v34 = vmul.f32 %v7667_v20, %v10664_v39  ;;  %v7669_v13 = vpop.eup %7668 }
0x1c0e   :  { %v5291_v40 = vmul.f32 %v7669_v13, %v10667_v14  ;;  %v7671_v44 = vpop.eup %7670 }
0x1c0f   :  { %v5293_v51 = vmul.f32 %v7671_v44, %v10669_v32  ;;  %v7673_v7 = vpop.eup %7672 }
0x1c10   :  { %5305 = vperm.xlu1 %7389, %v5285_v10   ;;  %v5295_v62 = vmul.f32 %v7673_v7, %v10673_v1  ;;  %v7675_v57 = vpop.eup %7674 }
0x1c11   :  { %v5297_v29 = vmul.f32 %v7675_v57, %v10675_v61 }
0x1c14   :  { %5310 = vperm.xlu1 %7389, %v5287_v63  }
0x1c18   :  { %5315 = vperm.xlu1 %7389, %v5289_v34  }
0x1c1c   :  { %5320 = vperm.xlu1 %7389, %v5291_v40  }
0x1c20   :  { %5325 = vperm.xlu1 %7389, %v5293_v51  }
0x1c24   :  { %5330 = vperm.xlu1 %7389, %v5295_v62  }
0x1c28   :  { %5335 = vperm.xlu1 %7389, %v5297_v29  }
0x1c87   :  { %v5301_v58 = vpop.permute.xlu1 %5300 }
0x1c88   :  { %v5338_v60 = vmul.f32 %v10349_v55, %v5301_v58 }
0x1c8a   :  { %v5346_v1 = vrot.slane %v5338_v60, 4 }
0x1c8b   :  { %v5306_v36 = vpop.permute.xlu1 %5305 }
0x1c8c   :  { %v5339_v16 = vmul.f32 %v10343_v41, %v5306_v36  ;;  %v5347_v11 = vadd.f32 %v5346_v1, %v5338_v60 }
0x1c8e   :  { %v5352_v32 = vrot.slane %v5339_v16, 4  ;;  %v5348_v40 = vrot.slane %v5347_v11, 2 }
0x1c8f   :  { %v5311_v39 = vpop.permute.xlu1 %5310 }
0x1c90   :  { %v5340_v14 = vmul.f32 %v10346_v53, %v5311_v39  ;;  %v5353_v10 = vadd.f32 %v5352_v32, %v5339_v16  ;;  %v5349_v58 = vadd.f32 %v5348_v40, %v5347_v11 }
0x1c92   :  { %v5358_v24 = vrot.slane %v5340_v14, 4  ;;  %v5354_v34 = vrot.slane %v5353_v10, 2  ;;  %v5350_v1 = vrot.slane %v5349_v58, 1 }
0x1c93   :  { %v5316_v19 = vpop.permute.xlu1 %5315 }
0x1c94   :  { %v5341_v17 = vmul.f32 %v11883_v21, %v5316_v19  ;;  %v5359_v47 = vadd.f32 %v5358_v24, %v5340_v14  ;;  %v5355_v62 = vadd.f32 %v5354_v34, %v5353_v10 }
0x1c96   :  { %v5364_v48 = vrot.slane %v5341_v17, 4  ;;  %v5360_v13 = vrot.slane %v5359_v47, 2  ;;  %v5356_v19 = vrot.slane %v5355_v62, 1 }
0x1c97   :  { %v5321_v4 = vpop.permute.xlu1 %5320 }
0x1c98   :  { %v5342_v61 = vmul.f32 %v10355_v33, %v5321_v4  ;;  %v5365_v63 = vadd.f32 %v5364_v48, %v5341_v17  ;;  %v5361_v33 = vadd.f32 %v5360_v13, %v5359_v47 }
0x1c9a   :  { %v5370_v20 = vrot.slane %v5342_v61, 4  ;;  %v5366_v44 = vrot.slane %v5365_v63, 2  ;;  %v5362_v24 = vrot.slane %v5361_v33, 1 }
0x1c9b   :  { %v5326_v41 = vpop.permute.xlu1 %5325 }
0x1c9c   :  { %v5371_v53 = vadd.f32 %v5370_v20, %v5342_v61  ;;  %v5343_v55 = vmul.f32 %v11884_v22, %v5326_v41  ;;  %v5367_v36 = vadd.f32 %v5366_v44, %v5365_v63  ;;  %v5357_v20 = vadd.f32 %v5356_v19, %v5355_v62  ;;  %v10736_v19 = vld [vmem:[#allocation10 + $0x160] sm:$0xff] }
0x1c9d   :  { %v5363_v63 = vadd.f32 %v5362_v24, %v5361_v33  ;;  %v5351_v41 = vadd.f32 %v5350_v1, %v5349_v58  ;;  %v10749_v24 = vld [vmem:[#allocation10 + $0x128] sm:$0xff]  ;;  %v10753_v1 = vld [vmem:[#allocation10 + $0x120] sm:$0xff] }
0x1c9e   :  { %v5376_v21 = vrot.slane %v5343_v55, 4  ;;  %v5372_v51 = vrot.slane %v5371_v53, 2  ;;  %v5368_v48 = vrot.slane %v5367_v36, 1 }
0x1c9f   :  { %v5331_v7 = vpop.permute.xlu1 %5330  ;;  %v5406_v40 = vsel %vm352_vm0, %v5357_v20, %v5351_v41  ;;  %v10769_v20 = vld [vmem:[#allocation10 + $0xf8] sm:$0xff]  ;;  %v10786_v41 = vld [vmem:[#allocation10 + $0xe8] sm:$0xff] }
0x1ca0   :  { %v5377_v57 = vadd.f32 %v5376_v21, %v5343_v55  ;;  %v5344_v29 = vmul.f32 %v11885_v23, %v5331_v7  ;;  %v5373_v14 = vadd.f32 %v5372_v51, %v5371_v53  ;;  %v5369_v34 = vadd.f32 %v5368_v48, %v5367_v36  ;;  %v10756_v48 = vld [vmem:[#allocation10 + $0x130] sm:$0xff]  ;;  %11896 = vst [vmem:[#allocation65_spill] sm:$0xff] %v10786_v41 }
0x1ca1   :  { %v5407_v21 = vsel %vm354_vm1, %v5363_v63, %v5406_v40  ;;  %v10783_v63 = vld [vmem:[#allocation10 + $0xd8] sm:$0xff]  ;;  %v10803_v40 = vld [vmem:[#allocation10 + $0xa8] sm:$0xff] }
0x1ca2   :  { %v5378_v39 = vrot.slane %v5377_v57, 2  ;;  %v5382_v16 = vrot.slane %v5344_v29, 4  ;;  %v5374_v61 = vrot.slane %v5373_v14, 1  ;;  %v5408_v7 = vsel %vm356_vm2, %v5369_v34, %v5407_v21  ;;  %11895 = vst [vmem:[#allocation63_spill] sm:$0xff] %v10783_v63  ;;  %v10789_v34 = vld [vmem:[#allocation10 + $0xc8] sm:$0xff]  ;;  %11901 = vst [vmem:[#allocation69_spill] sm:$0xff] %v10803_v40 }
0x1ca3   :  { %v5336_v60 = vpop.permute.xlu1 %5335  ;;  %11897 = vst [vmem:[#allocation64_spill] sm:$0xff] %v10789_v34  ;;  %v10813_v21 = vld [vmem:[#allocation10 + $0x90] sm:$0xff] }
0x1ca4   :  { %v5379_v32 = vadd.f32 %v5378_v39, %v5377_v57  ;;  %v5383_v22 = vadd.f32 %v5382_v16, %v5344_v29  ;;  %v5345_v17 = vmul.f32 %v11886_v59, %v5336_v60  ;;  %v5375_v13 = vadd.f32 %v5374_v61, %v5373_v14  ;;  %v10723_v39 = vld [vmem:[#allocation10 + $0x168] sm:$0xff]  ;;  %v10726_v16 = vld [vmem:[#allocation10 + $0x178] sm:$0xff]  ;;  %v10733_v60 = vld [vmem:[#allocation10 + $0x150] sm:$0xff]  ;;  %11904 = vst [vmem:[#allocation72_spill] sm:$0xff] %v10813_v21 }
0x1ca5   :  { %v10729_v14 = vld [vmem:[#allocation10 + $0x158] sm:$0xff] }
0x1ca6   :  { %v5384_v4 = vrot.slane %v5383_v22, 2  ;;  %v5388_v10 = vrot.slane %v5345_v17, 4  ;;  %v5380_v23 = vrot.slane %v5379_v32, 1  ;;  %v5409_v62 = vsel %vm358_vm3, %v5375_v13, %v5408_v7  ;;  %v10766_v61 = vld [vmem:[#allocation10 + $0x118] sm:$0xff]  ;;  %v10799_v13 = vld [vmem:[#allocation10 + $0xb0] sm:$0xff]  ;;  %v10819_v7 = vld [vmem:[#allocation10 + $0x80] sm:$0xff] }
0x1ca7   :  { %11900 = vst [vmem:[#allocation67_spill] sm:$0xff] %v10799_v13  ;;  %11906 = vst [vmem:[#allocation28_spill] sm:$0xff] %v10819_v7 }
0x1ca8   :  { %v5385_v47 = vadd.f32 %v5384_v4, %v5383_v22  ;;  %v5389_v11 = vadd.f32 %v5388_v10, %v5345_v17  ;;  %v5381_v44 = vadd.f32 %v5380_v23, %v5379_v32  ;;  %v10739_v32 = vld [vmem:[#allocation10 + $0x140] sm:$0xff]  ;;  %v10743_v22 = vld [vmem:[#allocation10 + $0x138] sm:$0xff]  ;;  %v10746_v17 = vld [vmem:[#allocation10 + $0x148] sm:$0xff] }
0x1ca9   :  { %v10759_v4 = vld [vmem:[#allocation10 + $0x110] sm:$0xff]  ;;  %v10763_v10 = vld [vmem:[#allocation10 + $0x108] sm:$0xff] }
0x1caa   :  { %v5386_v53 = vrot.slane %v5385_v47, 1  ;;  %v5390_v55 = vrot.slane %v5389_v11, 2  ;;  %v5410_v33 = vsel %vm360_vm4, %v5381_v44, %v5409_v62  ;;  %v10773_v23 = vld [vmem:[#allocation10 + $0xf0] sm:$0xff]  ;;  %v10806_v44 = vld [vmem:[#allocation10 + $0xb8] sm:$0xff]  ;;  %v10826_v62 = vld [vmem:[#allocation10 + $0x88] sm:$0xff] }
0x1cab   :  { %11902 = vst [vmem:[#allocation71_spill] sm:$0xff] %v10806_v44  ;;  %11908 = vst [vmem:[#allocation75_spill] sm:$0xff] %v10826_v62 }
0x1cac   :  { %v5391_v59 = vadd.f32 %v5390_v55, %v5389_v11  ;;  %v5387_v51 = vadd.f32 %v5386_v53, %v5385_v47  ;;  %v10776_v47 = vld [vmem:[#allocation10 + $0x100] sm:$0xff]  ;;  %v10796_v55 = vld [vmem:[#allocation10 + $0xd0] sm:$0xff] }
0x1cad   :  { %v10779_v11 = vld [vmem:[#allocation10 + $0xe0] sm:$0xff]  ;;  %11899 = vst [vmem:[#allocation68_spill] sm:$0xff] %v10796_v55 }
0x1cae   :  { %v5392_v57 = vrot.slane %v5391_v59, 1  ;;  %v5411_v58 = vsel %vm362_vm5, %v5387_v51, %v5410_v33  ;;  %v10793_v53 = vld [vmem:[#allocation10 + $0xc0] sm:$0xff] }
0x1caf   :  { %11898 = vst [vmem:[#allocation66_spill] sm:$0xff] %v10793_v53  ;;  %v10816_v51 = vld [vmem:[#allocation10 + $0xa0] sm:$0xff] }
0x1cb0   :  { %v5393_v29 = vadd.f32 %v5392_v57, %v5391_v59  ;;  %v10809_v59 = vld [vmem:[#allocation10 + $0x98] sm:$0xff]  ;;  %11905 = vst [vmem:[#allocation73_spill] sm:$0xff] %v10816_v51  ;;  %v10833_v33 = vld [vmem:[#allocation10 + $0x60] sm:$0xff] }
0x1cb1   :  { %11903 = vst [vmem:[#allocation70_spill] sm:$0xff] %v10809_v59  ;;  %v10823_v57 = vld [vmem:[#allocation10 + $0x78] sm:$0xff]  ;;  %11910 = vst [vmem:[#allocation77_spill] sm:$0xff] %v10833_v33 }
0x1cb2   :  { %v5412_v36 = vsel %vm364_vm6, %v5393_v29, %v5411_v58  ;;  %11907 = vst [vmem:[#allocation74_spill] sm:$0xff] %v10823_v57  ;;  %v10829_v29 = vld [vmem:[#allocation10 + $0x68] sm:$0xff]  ;;  %v10836_v58 = vld [vmem:[#allocation10 + $0x70] sm:$0xff] }
0x1cb3   :  { %5479 = vmatmul.mubr.f32.vlgmr.msra.gmra.mxu0 %v5412_v36  ;;  %7268 = vmatmul.mubr.f32.vlgmr.msra.gmra.mxu1 %v5412_v36  ;;  %11909 = vst [vmem:[#allocation76_spill] sm:$0xff] %v10829_v29  ;;  %11911 = vst [vmem:[#allocation78_spill] sm:$0xff] %v10836_v58  ;;  %v10839_v36 = vld [vmem:[#allocation10 + $0x50] sm:$0xff] }
0x1cb4   :  { %5559 = vmatpush1.msra.mxu0 %v10723_v39  ;;  %7271 = vmatpush3.msra.mxu1 %v10726_v16  ;;  %11912 = vst [vmem:[#allocation79_spill] sm:$0xff] %v10839_v36 }
0x1cb5   :  { %5560 = vmatprep.subr.mxu0 %v10729_v14  ;;  %7272 = vmatprep.subr.mxu1 %v11494_v38 }
0x1cb6   :  { %5561 = vmatpush1.msra.mxu0 %v10733_v60  ;;  %7273 = vmatpush3.msra.mxu1 %v10736_v19 }
0x1cb7   :  { %5562 = vmatprep.subr.mxu0 %v10739_v32  ;;  %7274 = vmatprep.subr.mxu1 %v11494_v38 }
0x1cb8   :  { %5563 = vmatpush1.msra.mxu0 %v10743_v22  ;;  %7275 = vmatpush3.msra.mxu1 %v10746_v17 }
0x1cb9   :  { %5564 = vmatprep.subr.mxu0 %v10749_v24  ;;  %7276 = vmatprep.subr.mxu1 %v11494_v38 }
0x1cba   :  { %5565 = vmatpush1.msra.mxu0 %v10753_v1  ;;  %7277 = vmatpush3.msra.mxu1 %v10756_v48 }
0x1cbb   :  { %5566 = vmatprep.subr.mxu0 %v10759_v4  ;;  %7278 = vmatprep.subr.mxu1 %v11494_v38 }
0x1cbc   :  { %5567 = vmatpush1.msra.mxu0 %v10763_v10  ;;  %7279 = vmatpush3.msra.mxu1 %v10766_v61 }
0x1cbd   :  { %5568 = vmatprep.subr.mxu0 %v10769_v20  ;;  %7280 = vmatprep.subr.mxu1 %v11494_v38 }
0x1cbe   :  { %5569 = vmatpush1.msra.mxu0 %v10773_v23  ;;  %7281 = vmatpush3.msra.mxu1 %v10776_v47 }
0x1cbf   :  { %5570 = vmatprep.subr.mxu0 %v10779_v11  ;;  %7282 = vmatprep.subr.mxu1 %v11494_v38 }
0x1cc0   :  { %5571 = vmatpush1.msra.mxu0 %v10783_v63  ;;  %7283 = vmatpush3.msra.mxu1 %v10786_v41 }
0x1cc1   :  { %5572 = vmatprep.subr.mxu0 %v10789_v34  ;;  %7284 = vmatprep.subr.mxu1 %v11494_v38 }
0x1cc2   :  { %5573 = vmatpush1.msra.mxu0 %v10793_v53  ;;  %7285 = vmatpush3.msra.mxu1 %v10796_v55 }
0x1cc3   :  { %5574 = vmatprep.subr.mxu0 %v10799_v13  ;;  %7286 = vmatprep.subr.mxu1 %v11494_v38 }
0x1cc4   :  { %5575 = vmatpush1.msra.mxu0 %v10803_v40  ;;  %7287 = vmatpush3.msra.mxu1 %v10806_v44 }
0x1cc5   :  { %5576 = vmatprep.subr.mxu0 %v10809_v59  ;;  %7288 = vmatprep.subr.mxu1 %v11494_v38 }
0x1cc6   :  { %5577 = vmatpush1.msra.mxu0 %v10813_v21  ;;  %7289 = vmatpush3.msra.mxu1 %v10816_v51 }
0x1cc7   :  { %5578 = vmatprep.subr.mxu0 %v10819_v7  ;;  %7290 = vmatprep.subr.mxu1 %v11494_v38 }
0x1cc8   :  { %5579 = vmatpush1.msra.mxu0 %v10823_v57  ;;  %7291 = vmatpush3.msra.mxu1 %v10826_v62  ;;  %v10843_v62 = vld [vmem:[#allocation10 + $0x48] sm:$0xff]  ;;  %v10849_v57 = vld [vmem:[#allocation10 + $0x38] sm:$0xff] }
0x1cc9   :  { %5580 = vmatprep.subr.mxu0 %v10829_v29  ;;  %7292 = vmatprep.subr.mxu1 %v11494_v38  ;;  %11913 = vst [vmem:[#allocation80_spill] sm:$0xff] %v10843_v62  ;;  %v10846_v29 = vld [vmem:[#allocation10 + $0x58] sm:$0xff]  ;;  %11915 = vst [vmem:[#allocation82_spill] sm:$0xff] %v10849_v57 }
0x1cca   :  { %5581 = vmatpush1.msra.mxu0 %v10833_v33  ;;  %7293 = vmatpush3.msra.mxu1 %v10836_v58  ;;  %11914 = vst [vmem:[#allocation81_spill] sm:$0xff] %v10846_v29  ;;  %v10853_v58 = vld [vmem:[#allocation10 + $0x30] sm:$0xff]  ;;  %v10859_v33 = vld [vmem:[#allocation10 + $0x20] sm:$0xff] }
0x1ccb   :  { %5582 = vmatprep.subr.mxu0 %v10839_v36  ;;  %7294 = vmatprep.subr.mxu1 %v11494_v38  ;;  %11916 = vst [vmem:[#allocation83_spill] sm:$0xff] %v10853_v58  ;;  %v10856_v36 = vld [vmem:[#allocation10 + $0x40] sm:$0xff]  ;;  %11918 = vst [vmem:[#allocation30_spill] sm:$0xff] %v10859_v33 }
0x1ccc   :  { %5583 = vmatpush1.msra.mxu0 %v10843_v62  ;;  %7295 = vmatpush3.msra.mxu1 %v10846_v29  ;;  %11917 = vst [vmem:[#allocation84_spill] sm:$0xff] %v10856_v36  ;;  %v10863_v29 = vld [vmem:[#allocation10 + $0x18] sm:$0xff]  ;;  %v10869_v62 = vld [vmem:[#allocation10 + $0x8] sm:$0xff] }
0x1ccd   :  { %5584 = vmatprep.subr.mxu0 %v10849_v57  ;;  %7296 = vmatprep.subr.mxu1 %v11494_v38  ;;  %11919 = vst [vmem:[#allocation32_spill] sm:$0xff] %v10863_v29  ;;  %v10866_v57 = vld [vmem:[#allocation10 + $0x28] sm:$0xff]  ;;  %11921 = vst [vmem:[#allocation19_spill] sm:$0xff] %v10869_v62 }
0x1cce   :  { %5585 = vmatpush1.msra.mxu0 %v10853_v58  ;;  %7297 = vmatpush3.msra.mxu1 %v10856_v36  ;;  %11920 = vst [vmem:[#allocation16_spill] sm:$0xff] %v10866_v57  ;;  %v10873_v36 = vld [vmem:[#allocation10] sm:$0xff] }
0x1ccf   :  { %5586 = vmatprep.subr.mxu0 %v10859_v33  ;;  %7298 = vmatprep.subr.mxu1 %v11494_v38  ;;  %11922 = vst [vmem:[#allocation20_spill] sm:$0xff] %v10873_v36  ;;  %v10877_v33 = vld [vmem:[#allocation10 + $0x10] sm:$0xff] }
0x1cd0   :  { %5587 = vmatpush1.msra.mxu0 %v10863_v29  ;;  %7299 = vmatpush3.msra.mxu1 %v10866_v57  ;;  %11923 = vst [vmem:[#allocation21_spill] sm:$0xff] %v10877_v33 }
0x1cd1   :  { %5588 = vmatprep.subr.mxu0 %v10869_v62  ;;  %7300 = vmatprep.subr.mxu1 %v11494_v38 }
0x1cd2   :  { %5589 = vmatpush1.msra.mxu0 %v10873_v36  ;;  %5622 = vmatprep.mubr.f32.mxu0 %v11494_v38 }
0x1cd3   :  { %7301 = vmatpush3.msra.mxu1 %v10877_v33  ;;  %7302 = vmatprep.mubr.msk.f32.mxu1 %vm8197_vm8, %v11494_v38 }
0x1cd4   :  { %5623 = vmatmul.mubr.f32.vlgmr.msra.gmra.mxu0 %v10612_v18  ;;  %7303 = vmatmul.mubr.f32.vlgmr.msra.gmra.mxu1 %v10612_v18 }
0x1cd5   :  { %6200 = vmatprep.subr.mxu0 %v10441_v35  ;;  %7305 = vmatprep.subr.mxu1 %v11494_v38  ;;  %v11924_v35 = vld [vmem:[#allocation31_spill] sm:$0xff] }
0x1cd6   :  { %6201 = vmatpush1.msra.mxu0 %v10445_v27  ;;  %7306 = vmatpush3.msra.mxu1 %v10448_v49  ;;  %v11925_v27 = vld [vmem:[#allocation33_spill] sm:$0xff]  ;;  %v11926_v49 = vld [vmem:[#allocation35_spill] sm:$0xff] }
0x1cd7   :  { %6202 = vmatprep.subr.mxu0 %v10451_v2  ;;  %7307 = vmatprep.subr.mxu1 %v11494_v38  ;;  %v11927_v2 = vld [vmem:[#allocation34_spill] sm:$0xff] }
0x1cd8   :  { %6203 = vmatpush1.msra.mxu0 %v10455_v3  ;;  %7308 = vmatpush3.msra.mxu1 %v10458_v26  ;;  %v11928_v3 = vld [vmem:[#allocation36_spill] sm:$0xff]  ;;  %v11929_v26 = vld [vmem:[#allocation38_spill] sm:$0xff] }
0x1cd9   :  { %6204 = vmatprep.subr.mxu0 %v10461_v6  ;;  %7309 = vmatprep.subr.mxu1 %v11494_v38  ;;  %v11930_v6 = vld [vmem:[#allocation37_spill] sm:$0xff] }
0x1cda   :  { %6205 = vmatpush1.msra.mxu0 %v10465_v9  ;;  %7310 = vmatpush3.msra.mxu1 %v10468_v25  ;;  %v11931_v9 = vld [vmem:[#allocation39_spill] sm:$0xff]  ;;  %v11932_v25 = vld [vmem:[#allocation41_spill] sm:$0xff] }
0x1cdb   :  { %6206 = vmatprep.subr.mxu0 %v10471_v45  ;;  %7311 = vmatprep.subr.mxu1 %v11494_v38  ;;  %v11933_v45 = vld [vmem:[#allocation40_spill] sm:$0xff] }
0x1cdc   :  { %6207 = vmatpush1.msra.mxu0 %v10475_v52  ;;  %7312 = vmatpush3.msra.mxu1 %v10478_v28  ;;  %v11934_v52 = vld [vmem:[#allocation42_spill] sm:$0xff]  ;;  %v11935_v28 = vld [vmem:[#allocation43_spill] sm:$0xff] }
0x1cdd   :  { %6208 = vmatprep.subr.mxu0 %v10481_v46  ;;  %7313 = vmatprep.subr.mxu1 %v11494_v38  ;;  %v11936_v46 = vld [vmem:[#allocation44_spill] sm:$0xff] }
0x1cde   :  { %6209 = vmatpush1.msra.mxu0 %v10485_v54  ;;  %7314 = vmatpush3.msra.mxu1 %v10488_v15  ;;  %v11937_v54 = vld [vmem:[#allocation18_spill] sm:$0xff]  ;;  %v11938_v15 = vld [vmem:[#allocation45_spill] sm:$0xff] }
0x1cdf   :  { %6210 = vmatprep.subr.mxu0 %v10491_v0  ;;  %7315 = vmatprep.subr.mxu1 %v11494_v38  ;;  %v11939_v0 = vld [vmem:[#allocation47_spill] sm:$0xff] }
0x1ce0   :  { %6211 = vmatpush1.msra.mxu0 %v10495_v50  ;;  %7316 = vmatpush3.msra.mxu1 %v11924_v35  ;;  %v11940_v50 = vld [vmem:[#allocation46_spill] sm:$0xff]  ;;  %v11941_v35 = vld [vmem:[#allocation48_spill] sm:$0xff] }
0x1ce1   :  { %6212 = vmatprep.subr.mxu0 %v11925_v27  ;;  %7317 = vmatprep.subr.mxu1 %v11494_v38  ;;  %v11942_v27 = vld [vmem:[#allocation50_spill] sm:$0xff] }
0x1ce2   :  { %6213 = vmatpush1.msra.mxu0 %v11926_v49  ;;  %7318 = vmatpush3.msra.mxu1 %v11927_v2  ;;  %v11943_v49 = vld [vmem:[#allocation49_spill] sm:$0xff]  ;;  %v11944_v2 = vld [vmem:[#allocation51_spill] sm:$0xff] }
0x1ce3   :  { %6214 = vmatprep.subr.mxu0 %v11928_v3  ;;  %7319 = vmatprep.subr.mxu1 %v11494_v38  ;;  %v11945_v3 = vld [vmem:[#allocation53_spill] sm:$0xff] }
0x1ce4   :  { %6215 = vmatpush1.msra.mxu0 %v11929_v26  ;;  %7320 = vmatpush3.msra.mxu1 %v11930_v6  ;;  %v11946_v26 = vld [vmem:[#allocation52_spill] sm:$0xff]  ;;  %v11947_v6 = vld [vmem:[#allocation54_spill] sm:$0xff] }
0x1ce5   :  { %6216 = vmatprep.subr.mxu0 %v11931_v9  ;;  %7321 = vmatprep.subr.mxu1 %v11494_v38  ;;  %v11948_v9 = vld [vmem:[#allocation56_spill] sm:$0xff] }
0x1ce6   :  { %6217 = vmatpush1.msra.mxu0 %v11932_v25  ;;  %7322 = vmatpush3.msra.mxu1 %v11933_v45  ;;  %v11949_v25 = vld [vmem:[#allocation55_spill] sm:$0xff]  ;;  %v11950_v45 = vld [vmem:[#allocation57_spill] sm:$0xff] }
0x1ce7   :  { %6218 = vmatprep.subr.mxu0 %v11934_v52  ;;  %7323 = vmatprep.subr.mxu1 %v11494_v38  ;;  %v11951_v52 = vld [vmem:[#allocation59_spill] sm:$0xff] }
0x1ce8   :  { %6219 = vmatpush1.msra.mxu0 %v11935_v28  ;;  %7324 = vmatpush3.msra.mxu1 %v11936_v46  ;;  %v11952_v28 = vld [vmem:[#allocation58_spill] sm:$0xff]  ;;  %v11953_v46 = vld [vmem:[#allocation60_spill] sm:$0xff] }
0x1ce9   :  { %6220 = vmatprep.subr.mxu0 %v11937_v54  ;;  %7325 = vmatprep.subr.mxu1 %v11494_v38  ;;  %v11954_v54 = vld [vmem:[#allocation62_spill] sm:$0xff] }
0x1cea   :  { %6221 = vmatpush1.msra.mxu0 %v11938_v15  ;;  %7326 = vmatpush3.msra.mxu1 %v11939_v0  ;;  %v11955_v15 = vld [vmem:[#allocation61_spill] sm:$0xff] }
0x1ceb   :  { %6222 = vmatprep.subr.mxu0 %v11940_v50  ;;  %7327 = vmatprep.subr.mxu1 %v11494_v38 }
0x1cec   :  { %6223 = vmatpush1.msra.mxu0 %v11941_v35  ;;  %7328 = vmatpush3.msra.mxu1 %v11942_v27  ;;  %v5395_v27 = vld [vmem:[#allocation5 + $0x90] sm:$0xff] }
0x1ced   :  { %6224 = vmatprep.subr.mxu0 %v11943_v49  ;;  %7329 = vmatprep.subr.mxu1 %v11494_v38 }
0x1cee   :  { %6225 = vmatpush1.msra.mxu0 %v11944_v2  ;;  %7330 = vmatpush3.msra.mxu1 %v11945_v3 }
0x1cef   :  { %6226 = vmatprep.subr.mxu0 %v11946_v26  ;;  %7331 = vmatprep.subr.mxu1 %v11494_v38 }
0x1cf0   :  { %6227 = vmatpush1.msra.mxu0 %v11947_v6  ;;  %7332 = vmatpush3.msra.mxu1 %v11948_v9  ;;  %v11956_v6 = vld [vmem:[#allocation26_spill] sm:$0xff] }
0x1cf1   :  { %6228 = vmatprep.subr.mxu0 %v11949_v25  ;;  %7333 = vmatprep.subr.mxu1 %v11494_v38 }
0x1cf2   :  { %6229 = vmatpush1.msra.mxu0 %v11950_v45  ;;  %7334 = vmatpush3.msra.mxu1 %v11951_v52 }
0x1cf3   :  { %6230 = vmatprep.subr.mxu0 %v11952_v28  ;;  %7335 = vmatprep.subr.mxu1 %v11494_v38  ;;  %v5396_v28 = vld [vmem:[#allocation5 + $0x98] sm:$0xff] }
0x1cf4   :  { %6231 = vmatpush1.msra.mxu0 %v11953_v46  ;;  %7336 = vmatpush3.msra.mxu1 %v11954_v54  ;;  %v11957_v54 = vld [vmem:[#allocation27_spill] sm:$0xff] }
0x1cf5   :  { %6264 = vmatprep.mubr.f32.mxu0 %v11494_v38  ;;  %7337 = vmatprep.mubr.msk.f32.mxu1 %vm8197_vm8, %v11494_v38 }
0x1cf6   :  { %6344 = vmatprep.subr.mxu0 %v11955_v15  ;;  %7340 = vmatprep.subr.mxu1 %v11494_v38 }
0x1d73   :  { %v5551_v0 = vpop.f32.mrf.mxu1  ;;  %v5480_v35 = vpop.f32.mrf.mxu0 }
0x1d74   :  { %v5555_v26 = vadd.f32 %v5480_v35, %v5395_v27  ;;  %v5397_v35 = vld [vmem:[#allocation5 + $0xa0] sm:$0xff]  ;;  %v11958_v27 = vld [vmem:[#allocation29_spill] sm:$0xff] }
0x1d75   :  { %v7269_v50 = vpop.f32.mrf.mxu1  ;;  %v5482_v49 = vpop.f32.mrf.mxu0 }
0x1d76   :  { %v5556_v15 = vadd.f32 %v5482_v49, %v5396_v28 }
0x1d94   :  { %v5624_v2 = vpop.f32.mrf.mxu0  ;;  %v5695_v3 = vpop.f32.mrf.mxu1 }
0x1d95   :  { %v5625_v9 = vadd.f32 %v5624_v2, %v11956_v6  ;;  %v5696_v2 = vadd.f32 %v5695_v3, %v11958_v27 }
0x1d96   :  { %v5626_v25 = vpop.f32.mrf.mxu0  ;;  %v7304_v45 = vpop.f32.mrf.mxu1 }
0x1d97   :  { %v5699_v52 = vadd.f32 %v5625_v9, %v5555_v26  ;;  %v5627_v33 = vadd.f32 %v5626_v25, %v11957_v54  ;;  %v5557_v45 = vadd.f32 %v5551_v0, %v5397_v35 }
0x1d99   :  { %v6539_v46 = vmul.f32 -1.442695, %v5699_v52  ;;  %v5706_v36 = vadd.f32 %v5627_v33, %v5556_v15  ;;  %v10968_v15 = vld [vmem:[#allocation2] sm:$0xff] }
0x1d9b   :  { %7676 = vpow2.f32 %v6539_v46  ;;  %v6540_v62 = vmul.f32 -1.442695, %v5706_v36 }
0x1d9d   :  { %7678 = vpow2.f32 %v6540_v62 }
0x1da8   :  { %v7677_v50 = vpop.eup %7676 }
0x1da9   :  { %v5703_v57 = vadd.f32 1.0, %v7677_v50 }
0x1daa   :  { %v7679_v29 = vpop.eup %7678 }
0x1dab   :  { %7680 = vrcp.f32 %v5703_v57  ;;  %v5710_v58 = vadd.f32 1.0, %v7679_v29  ;;  %v11960_v57 = vld [vmem:[#allocation17_spill] sm:$0xff] }
0x1dad   :  { %7682 = vrcp.f32 %v5710_v58 }
0x1db8   :  { %v7681_v6 = vpop.eup %7680 }
0x1db9   :  { %v5713_v26 = vmul.f32 %v7681_v6, %v5696_v2 }
0x1dba   :  { %v7683_v25 = vpop.eup %7682 }
0x1dbb   :  { %v5714_v9 = vadd.f32 %v5713_v26, %v5557_v45  ;;  %v5716_v49 = vsub.f32 1.0, %v7683_v25  ;;  %v5718_v62 = vmul.f32 %v7683_v25, %v10612_v18  ;;  %v10974_v26 = vld [vmem:[#allocation2 + $0x8] sm:$0xff]  ;;  %v10977_v25 = vld [vmem:[#allocation2 + $0x10] sm:$0xff] }
0x1dbd   :  { %7684 = vtanh.f32 %v5714_v9 }
0x1dca   :  { %v7685_v52 = vpop.eup %7684 }
0x1dcb   :  { %v5717_v33 = vmul.f32 %v7685_v52, %v5716_v49 }
0x1dcd   :  { %v10957_v36 = vadd.f32 %v5718_v62, %v5717_v33 }
0x1dcf   :  { %11959 = vst [vmem:[#allocation22_spill] sm:$0xff] %v10957_v36  ;;  %5721 = vst [vmem:[#allocation11 + $0x30] sm:$0xff] %v10957_v36  ;;  %v5730_v29 = vrot.slane %v10957_v36, %v11960_v57  ;;  %v5723_v0 = vcombine.high %v10957_v36, %v10957_v36 }
0x1dd1   :  { %v5746_v58 = vrot.slane %v5730_v29, %v11960_v57  ;;  %v5738_v3 = vcombine.high %v5730_v29, %v5730_v29  ;;  %v5737_v6 = vrot.slane %v5723_v0, %v11960_v57  ;;  %v10981_v29 = vld [vmem:[#allocation2 + $0x20] sm:$0xff] }
0x1dd3   :  { %v5775_v28 = vrot.slane %v5746_v58, %v11543_v43  ;;  %v5760_v46 = vrot.slane %v5738_v3, %v11960_v57  ;;  %v5768_v18 = vcombine.high %v5746_v58, %v5746_v58  ;;  %v5753_v45 = vrot.slane %v5737_v6, %v11960_v57 }
0x1dd4   :  { %v5739_v62 = vcombine.high %v5737_v6, %v5737_v6 }
0x1dd5   :  { %v5812_v50 = vmul.f32 %v10968_v15, %v5775_v28  ;;  %v5779_v35 = vrot.slane %v5760_v46, %v11543_v43  ;;  %v5783_v2 = vrot.slane %v5768_v18, %v11543_v43  ;;  %v5791_v52 = vrot.slane %v5753_v45, %v11543_v43  ;;  %v10986_v28 = vld [vmem:[#allocation2 + $0x18] sm:$0xff] }
0x1dd6   :  { %v5770_v33 = vcombine.high %v5760_v46, %v5760_v46  ;;  %v5767_v3 = vrot.slane %v5739_v62, %v11960_v57  ;;  %v10990_v46 = vld [vmem:[#allocation2 + $0x28] sm:$0xff] }
0x1dd7   :  { %5820 = vadd.xlane.f32.xlu0 %v5812_v50  ;;  %v5813_v9 = vmul.f32 %v10974_v26, %v5779_v35  ;;  %v5814_v49 = vmul.f32 %v10977_v25, %v5783_v2  ;;  %v5816_v0 = vmul.f32 %v10981_v29, %v5791_v52  ;;  %v5769_v35 = vcombine.high %v5753_v45, %v5753_v45 }
0x1dd8   :  { %v5787_v58 = vrot.slane %v5770_v33, %v11543_v43  ;;  %v5795_v50 = vrot.slane %v5767_v3, %v11543_v43  ;;  %v10998_v33 = vld [vmem:[#allocation2 + $0x38] sm:$0xff] }
0x1dd9   :  { %5822 = vadd.xlane.f32.xlu1 %v5813_v9  ;;  %v5799_v2 = vrot.slane %v5769_v35, %v11543_v43  ;;  %v5771_v9 = vcombine.high %v5767_v3, %v5767_v3 }
0x1dda   :  { %v5815_v18 = vmul.f32 %v10986_v28, %v5787_v58  ;;  %v5817_v6 = vmul.f32 %v10990_v46, %v5795_v50 }
0x1ddb   :  { %5824 = vadd.xlane.f32.xlu0 %v5814_v49  ;;  %v10994_v49 = vld [vmem:[#allocation2 + $0x30] sm:$0xff]  ;;  %v5803_v52 = vrot.slane %v5771_v9, %v11543_v43 }
0x1ddc   :  { %v5818_v57 = vmul.f32 %v10994_v49, %v5799_v2 }
0x1ddd   :  { %v5819_v45 = vmul.f32 %v10998_v33, %v5803_v52 }
0x1ddf   :  { %5828 = vadd.xlane.f32.xlu0 %v5816_v0 }
0x1de3   :  { %5826 = vadd.xlane.f32.xlu0 %v5815_v18 }
0x1de7   :  { %5830 = vadd.xlane.f32.xlu0 %v5817_v6 }
0x1deb   :  { %5832 = vadd.xlane.f32.xlu0 %v5818_v57 }
0x1def   :  { %5834 = vadd.xlane.f32.xlu0 %v5819_v45 }
0x1e60   :  { %v5821_v62 = vpop.xlane.xlu0 %5820 }
0x1e61   :  { %v5847_v35 = vrot.slane %v5821_v62, %v11887_v31 }
0x1e62   :  { %v5823_v18 = vpop.xlane.xlu1 %5822 }
0x1e63   :  { %v5851_v3 = vrot.slane %v5823_v18, %v11887_v31 }
0x1e64   :  { %v5825_v0 = vpop.xlane.xlu0 %5824 }
0x1e65   :  { %v5855_v6 = vrot.slane %v5825_v0, %v11887_v31  ;;  %v5876_v9 = vsel %vm352_vm0, %v5851_v3, %v5847_v35 }
0x1e67   :  { %v5877_v27 = vsel %vm354_vm1, %v5855_v6, %v5876_v9 }
0x1e68   :  { %v5829_v58 = vpop.xlane.xlu0 %5828 }
0x1e69   :  { %v5863_v36 = vrot.slane %v5829_v58, %v11887_v31 }
0x1e6c   :  { %v5827_v50 = vpop.xlane.xlu0 %5826 }
0x1e6d   :  { %v5859_v57 = vrot.slane %v5827_v50, %v11887_v31 }
0x1e6f   :  { %v5878_v45 = vsel %vm356_vm2, %v5859_v57, %v5877_v27 }
0x1e70   :  { %v5831_v2 = vpop.xlane.xlu0 %5830  ;;  %v5879_v51 = vsel %vm358_vm3, %v5863_v36, %v5878_v45 }
0x1e71   :  { %v5867_v54 = vrot.slane %v5831_v2, %v11887_v31 }
0x1e73   :  { %v5880_v59 = vsel %vm360_vm4, %v5867_v54, %v5879_v51 }
0x1e74   :  { %v5833_v52 = vpop.xlane.xlu0 %5832 }
0x1e75   :  { %v5871_v7 = vrot.slane %v5833_v52, %v11887_v31 }
0x1e77   :  { %v5881_v35 = vsel %vm362_vm5, %v5871_v7, %v5880_v59 }
0x1e78   :  { %v5835_v21 = vpop.xlane.xlu0 %5834 }
0x1e79   :  { %v5875_v3 = vrot.slane %v5835_v21, %v11887_v31 }
0x1e7b   :  { %v5882_v6 = vsel %vm364_vm6, %v5875_v3, %v5881_v35 }
0x1e7c   :  { %v5884_v9 = vsel %vm367_vm7, %v5882_v6, -inf }
0x1e7d   :  { %5885 = vmax.xlane.f32.xlu0 %v5884_v9 }
0x1f06   :  { %v5886_v27 = vpop.xlane.xlu0 %5885 }
0x1f07   :  { %v5891_v57 = vrot.slane %v5886_v27, %v11543_v43  ;;  %v5895_v44 = vrot.slane %v5886_v27, %v11888_v12  ;;  %v5899_v40 = vrot.slane %v5886_v27, %v11889_v5  ;;  %v5903_v36 = vrot.slane %v5886_v27, %v11890_v37 }
0x1f08   :  { %v5907_v51 = vrot.slane %v5886_v27, %v11891_v42  ;;  %v5911_v59 = vrot.slane %v5886_v27, %v11892_v56  ;;  %v5915_v6 = vrot.slane %v5886_v27, %v11893_v8  ;;  %v5919_v53 = vrot.slane %v5886_v27, %v11894_v30 }
0x1f09   :  { %v5928_v54 = vsub.f32 %v5821_v62, %v5891_v57  ;;  %v5929_v45 = vsub.f32 %v5823_v18, %v5895_v44  ;;  %v5930_v13 = vsub.f32 %v5825_v0, %v5899_v40  ;;  %v5931_v7 = vsub.f32 %v5827_v50, %v5903_v36 }
0x1f0a   :  { %v5932_v9 = vsub.f32 %v5829_v58, %v5907_v51  ;;  %v5933_v34 = vsub.f32 %v5831_v2, %v5911_v59  ;;  %v5934_v63 = vsub.f32 %v5833_v52, %v5915_v6  ;;  %v5935_v44 = vsub.f32 %v5835_v21, %v5919_v53 }
0x1f0b   :  { %v5936_v3 = vmul.f32 1.442695, %v5928_v54  ;;  %v5938_v35 = vmul.f32 1.442695, %v5929_v45  ;;  %v5940_v55 = vmul.f32 1.442695, %v5930_v13 }
0x1f0c   :  { %v5942_v41 = vmul.f32 1.442695, %v5931_v7  ;;  %v5944_v62 = vmul.f32 1.442695, %v5932_v9  ;;  %v5946_v40 = vmul.f32 1.442695, %v5933_v34 }
0x1f0d   :  { %7686 = vpow2.f32 %v5936_v3  ;;  %v5948_v0 = vmul.f32 1.442695, %v5934_v63  ;;  %v5950_v18 = vmul.f32 1.442695, %v5935_v44 }
0x1f0e   :  { %7688 = vpow2.f32 %v5938_v35 }
0x1f0f   :  { %7690 = vpow2.f32 %v5940_v55 }
0x1f10   :  { %7692 = vpow2.f32 %v5942_v41 }
0x1f11   :  { %7694 = vpow2.f32 %v5944_v62 }
0x1f12   :  { %7696 = vpow2.f32 %v5946_v40 }
0x1f13   :  { %7698 = vpow2.f32 %v5948_v0 }
0x1f14   :  { %7700 = vpow2.f32 %v5950_v18 }
0x1f1a   :  { %v7687_v50 = vpop.eup %7686 }
0x1f1b   :  { %v7689_v58 = vpop.eup %7688  ;;  %5961 = vperm.xlu0 %7390, %v7687_v50  }
0x1f1c   :  { %5964 = vperm.xlu1 %7389, %v7689_v58   ;;  %v7691_v13 = vpop.eup %7690 }
0x1f1d   :  { %v11025_v2 = vpop.eup %7692 }
0x1f1e   :  { %v11028_v55 = vpop.eup %7694 }
0x1f1f   :  { %5967 = vperm.xlu0 %7390, %v7691_v13   ;;  %v11030_v41 = vpop.eup %7696 }
0x1f20   :  { %5970 = vperm.xlu1 %7389, %v11025_v2   ;;  %v11034_v63 = vpop.eup %7698 }
0x1f21   :  { %v11036_v34 = vpop.eup %7700 }
0x1f23   :  { %5973 = vperm.xlu0 %7390, %v11028_v55  }
0x1f24   :  { %5976 = vperm.xlu1 %7389, %v11030_v41  }
0x1f27   :  { %5979 = vperm.xlu0 %7390, %v11034_v63  }
0x1f28   :  { %5982 = vperm.xlu1 %7389, %v11036_v34  }
0x1f96   :  { %v5962_v53 = vpop.permute.xlu0 %5961 }
0x1f97   :  { %v5965_v21 = vpop.permute.xlu1 %5964  ;;  %v5987_v27 = vrot.slane %v5962_v53, %v11887_v31 }
0x1f98   :  { %v5991_v52 = vrot.slane %v5965_v21, %v11887_v31 }
0x1f9a   :  { %v5968_v57 = vpop.permute.xlu0 %5967  ;;  %v6016_v54 = vsel %vm352_vm0, %v5991_v52, %v5987_v27 }
0x1f9b   :  { %v5971_v36 = vpop.permute.xlu1 %5970  ;;  %v5995_v51 = vrot.slane %v5968_v57, %v11887_v31 }
0x1f9c   :  { %v5999_v45 = vrot.slane %v5971_v36, %v11887_v31 }
0x1f9d   :  { %v6017_v59 = vsel %vm354_vm1, %v5995_v51, %v6016_v54 }
0x1f9e   :  { %v5974_v7 = vpop.permute.xlu0 %5973  ;;  %v6018_v9 = vsel %vm356_vm2, %v5999_v45, %v6017_v59 }
0x1f9f   :  { %v5977_v3 = vpop.permute.xlu1 %5976  ;;  %v6003_v35 = vrot.slane %v5974_v7, %v11887_v31 }
0x1fa0   :  { %v6007_v6 = vrot.slane %v5977_v3, %v11887_v31 }
0x1fa1   :  { %v6019_v62 = vsel %vm358_vm3, %v6003_v35, %v6018_v9 }
0x1fa2   :  { %v5980_v44 = vpop.permute.xlu0 %5979  ;;  %v6020_v53 = vsel %vm360_vm4, %v6007_v6, %v6019_v62 }
0x1fa3   :  { %v5983_v40 = vpop.permute.xlu1 %5982  ;;  %v6011_v0 = vrot.slane %v5980_v44, %v11887_v31 }
0x1fa4   :  { %v6015_v18 = vrot.slane %v5983_v40, %v11887_v31 }
0x1fa5   :  { %v6021_v21 = vsel %vm362_vm5, %v6011_v0, %v6020_v53 }
0x1fa6   :  { %v6022_v52 = vsel %vm364_vm6, %v6015_v18, %v6021_v21 }
0x1fa7   :  { %v6024_v27 = vsel %vm367_vm7, %v6022_v52, 0.0 }
0x1fa8   :  { %6025 = vadd.xlane.f32.xlu0 %v6024_v27 }
0x2031   :  { %v6026_v57 = vpop.xlane.xlu0 %6025 }
0x2032   :  { %v6031_v36 = vrot.slane %v6026_v57, %v11543_v43  ;;  %v6035_v51 = vrot.slane %v6026_v57, %v11888_v12  ;;  %v6039_v54 = vrot.slane %v6026_v57, %v11889_v5  ;;  %v6043_v31 = vrot.slane %v6026_v57, %v11890_v37 }
0x2033   :  { %v6047_v45 = vrot.slane %v6026_v57, %v11891_v42  ;;  %v6051_v7 = vrot.slane %v6026_v57, %v11892_v56  ;;  %v6055_v43 = vrot.slane %v6026_v57, %v11893_v8  ;;  %v6059_v5 = vrot.slane %v6026_v57, %v11894_v30 }
0x2034   :  { %7702 = vrcp.f32 %v6031_v36 }
0x2035   :  { %7704 = vrcp.f32 %v6035_v51 }
0x2036   :  { %7706 = vrcp.f32 %v6039_v54 }
0x2037   :  { %7708 = vrcp.f32 %v6043_v31 }
0x2038   :  { %7710 = vrcp.f32 %v6047_v45 }
0x2039   :  { %7712 = vrcp.f32 %v6051_v7 }
0x203a   :  { %7714 = vrcp.f32 %v6055_v43 }
0x203b   :  { %7716 = vrcp.f32 %v6059_v5 }
0x2041   :  { %v7703_v59 = vpop.eup %7702 }
0x2042   :  { %v6069_v3 = vmul.f32 %v7703_v59, %v7687_v50  ;;  %v7705_v35 = vpop.eup %7704 }
0x2043   :  { %v6071_v12 = vmul.f32 %v7705_v35, %v7689_v58  ;;  %v7707_v6 = vpop.eup %7706 }
0x2044   :  { %6086 = vperm.xlu1 %7389, %v6069_v3   ;;  %v6073_v37 = vmul.f32 %v7707_v6, %v7691_v13  ;;  %v7709_v9 = vpop.eup %7708 }
0x2045   :  { %v6075_v42 = vmul.f32 %v7709_v9, %v11025_v2  ;;  %v7711_v56 = vpop.eup %7710 }
0x2046   :  { %v6077_v50 = vmul.f32 %v7711_v56, %v11028_v55  ;;  %v7713_v62 = vpop.eup %7712 }
0x2047   :  { %v6079_v8 = vmul.f32 %v7713_v62, %v11030_v41  ;;  %v7715_v58 = vpop.eup %7714 }
0x2048   :  { %6091 = vperm.xlu1 %7389, %v6071_v12   ;;  %v6081_v44 = vmul.f32 %v7715_v58, %v11034_v63  ;;  %v7717_v30 = vpop.eup %7716 }
0x2049   :  { %v6083_v13 = vmul.f32 %v7717_v30, %v11036_v34 }
0x204c   :  { %6096 = vperm.xlu1 %7389, %v6073_v37  }
0x2050   :  { %6101 = vperm.xlu1 %7389, %v6075_v42  }
0x2054   :  { %6106 = vperm.xlu1 %7389, %v6077_v50  }
0x2058   :  { %6111 = vperm.xlu1 %7389, %v6079_v8  }
0x205c   :  { %6116 = vperm.xlu1 %7389, %v6081_v44  }
0x2060   :  { %6121 = vperm.xlu1 %7389, %v6083_v13  }
0x20bf   :  { %v6087_v40 = vpop.permute.xlu1 %6086 }
0x20c0   :  { %v6124_v53 = vmul.f32 %v10968_v15, %v6087_v40 }
0x20c2   :  { %v6132_v63 = vrot.slane %v6124_v53, 4 }
0x20c3   :  { %v6092_v0 = vpop.permute.xlu1 %6091 }
0x20c4   :  { %v6125_v18 = vmul.f32 %v10974_v26, %v6092_v0  ;;  %v6133_v31 = vadd.f32 %v6132_v63, %v6124_v53 }
0x20c6   :  { %v6138_v41 = vrot.slane %v6125_v18, 4  ;;  %v6134_v35 = vrot.slane %v6133_v31, 2 }
0x20c7   :  { %v6097_v2 = vpop.permute.xlu1 %6096 }
0x20c8   :  { %v6126_v55 = vmul.f32 %v10977_v25, %v6097_v2  ;;  %v6139_v51 = vadd.f32 %v6138_v41, %v6125_v18  ;;  %v6135_v42 = vadd.f32 %v6134_v35, %v6133_v31 }
0x20ca   :  { %v6144_v27 = vrot.slane %v6126_v55, 4  ;;  %v6140_v7 = vrot.slane %v6139_v51, 2  ;;  %v6136_v0 = vrot.slane %v6135_v42, 1 }
0x20cb   :  { %v6102_v21 = vpop.permute.xlu1 %6101 }
0x20cc   :  { %v6127_v52 = vmul.f32 %v10986_v28, %v6102_v21  ;;  %v6145_v54 = vadd.f32 %v6144_v27, %v6126_v55  ;;  %v6141_v5 = vadd.f32 %v6140_v7, %v6139_v51  ;;  %v6137_v63 = vadd.f32 %v6136_v0, %v6135_v42  ;;  %v11986_v42 = vld [vmem:[#allocation16_spill] sm:$0xff] }
0x20ce   :  { %v6150_v57 = vrot.slane %v6127_v52, 4  ;;  %v6146_v3 = vrot.slane %v6145_v54, 2  ;;  %v6142_v44 = vrot.slane %v6141_v5, 1 }
0x20cf   :  { %v6107_v36 = vpop.permute.xlu1 %6106 }
0x20d0   :  { %v6128_v34 = vmul.f32 %v10981_v29, %v6107_v36  ;;  %v6151_v45 = vadd.f32 %v6150_v57, %v6127_v52  ;;  %v6147_v29 = vadd.f32 %v6146_v3, %v6145_v54  ;;  %v6143_v21 = vadd.f32 %v6142_v44, %v6141_v5  ;;  %v11982_v5 = vld [vmem:[#allocation83_spill] sm:$0xff] }
0x20d2   :  { %v6156_v59 = vrot.slane %v6128_v34, 4  ;;  %v6152_v43 = vrot.slane %v6151_v45, 2  ;;  %v6148_v40 = vrot.slane %v6147_v29, 1  ;;  %v6192_v54 = vsel %vm352_vm0, %v6143_v21, %v6137_v63 }
0x20d3   :  { %v6112_v26 = vpop.permute.xlu1 %6111 }
0x20d4   :  { %v6157_v25 = vadd.f32 %v6156_v59, %v6128_v34  ;;  %v6129_v15 = vmul.f32 %v10990_v46, %v6112_v26  ;;  %v6153_v56 = vadd.f32 %v6152_v43, %v6151_v45  ;;  %v6149_v27 = vadd.f32 %v6148_v40, %v6147_v29  ;;  %v11985_v29 = vld [vmem:[#allocation32_spill] sm:$0xff] }
0x20d6   :  { %v6162_v28 = vrot.slane %v6129_v15, 4  ;;  %v6158_v12 = vrot.slane %v6157_v25, 2  ;;  %v6154_v2 = vrot.slane %v6153_v56, 1  ;;  %v6193_v45 = vsel %vm354_vm1, %v6149_v27, %v6192_v54 }
0x20d7   :  { %v6117_v6 = vpop.permute.xlu1 %6116 }
0x20d8   :  { %v6163_v37 = vadd.f32 %v6162_v28, %v6129_v15  ;;  %v6130_v9 = vmul.f32 %v10994_v49, %v6117_v6  ;;  %v6159_v8 = vadd.f32 %v6158_v12, %v6157_v25  ;;  %v6155_v57 = vadd.f32 %v6154_v2, %v6153_v56  ;;  %v11979_v28 = vld [vmem:[#allocation80_spill] sm:$0xff]  ;;  %v11980_v12 = vld [vmem:[#allocation81_spill] sm:$0xff]  ;;  %v11981_v6 = vld [vmem:[#allocation82_spill] sm:$0xff] }
0x20d9   :  { %v11987_v56 = vld [vmem:[#allocation19_spill] sm:$0xff] }
0x20da   :  { %v6164_v50 = vrot.slane %v6163_v37, 2  ;;  %v6168_v62 = vrot.slane %v6130_v9, 4  ;;  %v6160_v53 = vrot.slane %v6159_v8, 1  ;;  %v6194_v26 = vsel %vm356_vm2, %v6155_v57, %v6193_v45  ;;  %v11993_v45 = vld [vmem:[#allocation29_spill] sm:$0xff] }
0x20db   :  { %v6122_v58 = vpop.permute.xlu1 %6121 }
0x20dc   :  { %v6165_v30 = vadd.f32 %v6164_v50, %v6163_v37  ;;  %v6169_v46 = vadd.f32 %v6168_v62, %v6130_v9  ;;  %v6131_v13 = vmul.f32 %v10998_v33, %v6122_v58  ;;  %v6161_v34 = vadd.f32 %v6160_v53, %v6159_v8  ;;  %v11983_v37 = vld [vmem:[#allocation84_spill] sm:$0xff]  ;;  %v11984_v9 = vld [vmem:[#allocation30_spill] sm:$0xff]  ;;  %v11989_v62 = vld [vmem:[#allocation21_spill] sm:$0xff] }
0x20dd   :  { %v11988_v50 = vld [vmem:[#allocation20_spill] sm:$0xff]  ;;  %v11990_v8 = vld [vmem:[#allocation22_spill] sm:$0xff] }
0x20de   :  { %v6170_v18 = vrot.slane %v6169_v46, 2  ;;  %v6174_v55 = vrot.slane %v6131_v13, 4  ;;  %v6166_v49 = vrot.slane %v6165_v30, 1  ;;  %v6195_v25 = vsel %vm358_vm3, %v6161_v34, %v6194_v26 }
0x20e0   :  { %v6171_v41 = vadd.f32 %v6170_v18, %v6169_v46  ;;  %v6175_v52 = vadd.f32 %v6174_v55, %v6131_v13  ;;  %v6167_v31 = vadd.f32 %v6166_v49, %v6165_v30  ;;  %v6181_v46 = vld [vmem:[#allocation5 + $0xa8] sm:$0xff]  ;;  %v11991_v18 = vld [vmem:[#allocation26_spill] sm:$0xff] }
0x20e2   :  { %v6172_v36 = vrot.slane %v6171_v41, 1  ;;  %v6176_v51 = vrot.slane %v6175_v52, 2  ;;  %v6196_v3 = vsel %vm360_vm4, %v6167_v31, %v6195_v25 }
0x20e4   :  { %v6177_v33 = vadd.f32 %v6176_v51, %v6175_v52  ;;  %v6173_v59 = vadd.f32 %v6172_v36, %v6171_v41  ;;  %v6182_v41 = vld [vmem:[#allocation5 + $0xb0] sm:$0xff] }
0x20e6   :  { %v6178_v7 = vrot.slane %v6177_v33, 1  ;;  %v6197_v35 = vsel %vm362_vm5, %v6173_v59, %v6196_v3 }
0x20e8   :  { %v6179_v15 = vadd.f32 %v6178_v7, %v6177_v33  ;;  %v6183_v33 = vld [vmem:[#allocation5 + $0xb8] sm:$0xff] }
0x20ea   :  { %v6198_v43 = vsel %vm364_vm6, %v6179_v15, %v6197_v35 }
0x20eb   :  { %6265 = vmatmul.mubr.f32.vlgmr.msra.gmra.mxu0 %v6198_v43  ;;  %7338 = vmatmul.mubr.f32.vlgmr.msra.gmra.mxu1 %v6198_v43 }
0x20ec   :  { %6345 = vmatpush1.msra.mxu0 %v10723_v39  ;;  %7341 = vmatpush3.msra.mxu1 %v10726_v16  ;;  %v11961_v39 = vld [vmem:[#allocation63_spill] sm:$0xff]  ;;  %v11962_v16 = vld [vmem:[#allocation65_spill] sm:$0xff] }
0x20ed   :  { %6346 = vmatprep.subr.mxu0 %v10729_v14  ;;  %7342 = vmatprep.subr.mxu1 %v11494_v38  ;;  %v11963_v14 = vld [vmem:[#allocation64_spill] sm:$0xff] }
0x20ee   :  { %6347 = vmatpush1.msra.mxu0 %v10733_v60  ;;  %7343 = vmatpush3.msra.mxu1 %v10736_v19  ;;  %v11964_v60 = vld [vmem:[#allocation66_spill] sm:$0xff]  ;;  %v11965_v19 = vld [vmem:[#allocation68_spill] sm:$0xff] }
0x20ef   :  { %6348 = vmatprep.subr.mxu0 %v10739_v32  ;;  %7344 = vmatprep.subr.mxu1 %v11494_v38  ;;  %v11966_v32 = vld [vmem:[#allocation67_spill] sm:$0xff] }
0x20f0   :  { %6349 = vmatpush1.msra.mxu0 %v10743_v22  ;;  %7345 = vmatpush3.msra.mxu1 %v10746_v17  ;;  %v11967_v22 = vld [vmem:[#allocation69_spill] sm:$0xff]  ;;  %v11968_v17 = vld [vmem:[#allocation71_spill] sm:$0xff] }
0x20f1   :  { %6350 = vmatprep.subr.mxu0 %v10749_v24  ;;  %7346 = vmatprep.subr.mxu1 %v11494_v38  ;;  %v11969_v24 = vld [vmem:[#allocation70_spill] sm:$0xff] }
0x20f2   :  { %6351 = vmatpush1.msra.mxu0 %v10753_v1  ;;  %7347 = vmatpush3.msra.mxu1 %v10756_v48  ;;  %v11970_v1 = vld [vmem:[#allocation72_spill] sm:$0xff]  ;;  %v11971_v48 = vld [vmem:[#allocation73_spill] sm:$0xff] }
0x20f3   :  { %6352 = vmatprep.subr.mxu0 %v10759_v4  ;;  %7348 = vmatprep.subr.mxu1 %v11494_v38  ;;  %v11972_v4 = vld [vmem:[#allocation28_spill] sm:$0xff] }
0x20f4   :  { %6353 = vmatpush1.msra.mxu0 %v10763_v10  ;;  %7349 = vmatpush3.msra.mxu1 %v10766_v61  ;;  %v11973_v10 = vld [vmem:[#allocation74_spill] sm:$0xff]  ;;  %v11974_v61 = vld [vmem:[#allocation75_spill] sm:$0xff] }
0x20f5   :  { %6354 = vmatprep.subr.mxu0 %v10769_v20  ;;  %7350 = vmatprep.subr.mxu1 %v11494_v38  ;;  %v11975_v20 = vld [vmem:[#allocation76_spill] sm:$0xff] }
0x20f6   :  { %6355 = vmatpush1.msra.mxu0 %v10773_v23  ;;  %7351 = vmatpush3.msra.mxu1 %v10776_v47  ;;  %v11976_v23 = vld [vmem:[#allocation77_spill] sm:$0xff]  ;;  %v11977_v47 = vld [vmem:[#allocation78_spill] sm:$0xff] }
0x20f7   :  { %6356 = vmatprep.subr.mxu0 %v10779_v11  ;;  %7352 = vmatprep.subr.mxu1 %v11494_v38  ;;  %v11978_v11 = vld [vmem:[#allocation79_spill] sm:$0xff] }
0x20f8   :  { %6357 = vmatpush1.msra.mxu0 %v11961_v39  ;;  %7353 = vmatpush3.msra.mxu1 %v11962_v16 }
0x20f9   :  { %6358 = vmatprep.subr.mxu0 %v11963_v14  ;;  %7354 = vmatprep.subr.mxu1 %v11494_v38 }
0x20fa   :  { %6359 = vmatpush1.msra.mxu0 %v11964_v60  ;;  %7355 = vmatpush3.msra.mxu1 %v11965_v19 }
0x20fb   :  { %6360 = vmatprep.subr.mxu0 %v11966_v32  ;;  %7356 = vmatprep.subr.mxu1 %v11494_v38 }
0x20fc   :  { %6361 = vmatpush1.msra.mxu0 %v11967_v22  ;;  %7357 = vmatpush3.msra.mxu1 %v11968_v17 }
0x20fd   :  { %6362 = vmatprep.subr.mxu0 %v11969_v24  ;;  %7358 = vmatprep.subr.mxu1 %v11494_v38 }
0x20fe   :  { %6363 = vmatpush1.msra.mxu0 %v11970_v1  ;;  %7359 = vmatpush3.msra.mxu1 %v11971_v48 }
0x20ff   :  { %6364 = vmatprep.subr.mxu0 %v11972_v4  ;;  %7360 = vmatprep.subr.mxu1 %v11494_v38 }
0x2100   :  { %6365 = vmatpush1.msra.mxu0 %v11973_v10  ;;  %7361 = vmatpush3.msra.mxu1 %v11974_v61 }
0x2101   :  { %6366 = vmatprep.subr.mxu0 %v11975_v20  ;;  %7362 = vmatprep.subr.mxu1 %v11494_v38 }
0x2102   :  { %6367 = vmatpush1.msra.mxu0 %v11976_v23  ;;  %7363 = vmatpush3.msra.mxu1 %v11977_v47 }
0x2103   :  { %6368 = vmatprep.subr.mxu0 %v11978_v11  ;;  %7364 = vmatprep.subr.mxu1 %v11494_v38 }
0x2104   :  { %6369 = vmatpush1.msra.mxu0 %v11979_v28  ;;  %7365 = vmatpush3.msra.mxu1 %v11980_v12 }
0x2105   :  { %6370 = vmatprep.subr.mxu0 %v11981_v6  ;;  %7366 = vmatprep.subr.mxu1 %v11494_v38 }
0x2106   :  { %6371 = vmatpush1.msra.mxu0 %v11982_v5  ;;  %7367 = vmatpush3.msra.mxu1 %v11983_v37 }
0x2107   :  { %6372 = vmatprep.subr.mxu0 %v11984_v9  ;;  %7368 = vmatprep.subr.mxu1 %v11494_v38 }
0x2108   :  { %6373 = vmatpush1.msra.mxu0 %v11985_v29  ;;  %7369 = vmatpush3.msra.mxu1 %v11986_v42 }
0x2109   :  { %6374 = vmatprep.subr.mxu0 %v11987_v56  ;;  %7370 = vmatprep.subr.mxu1 %v11494_v38 }
0x210a   :  { %6375 = vmatpush1.msra.mxu0 %v11988_v50  ;;  %6408 = vmatprep.mubr.f32.mxu0 %v11494_v38 }
0x210b   :  { %7371 = vmatpush3.msra.mxu1 %v11989_v62  ;;  %7372 = vmatprep.mubr.msk.f32.mxu1 %vm8197_vm8, %v11494_v38  ;;  %v11992_v38 = vld [vmem:[#allocation27_spill] sm:$0xff] }
0x210c   :  { %6409 = vmatmul.mubr.f32.vlgmr.msra.gmra.mxu0 %v11990_v8  ;;  %7373 = vmatmul.mubr.f32.vlgmr.msra.gmra.mxu1 %v11990_v8 }
0x21ab   :  { %v6337_v58 = vpop.f32.mrf.mxu1  ;;  %v6266_v30 = vpop.f32.mrf.mxu0 }
0x21ac   :  { %v6341_v2 = vadd.f32 %v6266_v30, %v6181_v46  ;;  %v6343_v7 = vadd.f32 %v6337_v58, %v6183_v33 }
0x21ad   :  { %v7339_v44 = vpop.f32.mrf.mxu1  ;;  %v6268_v13 = vpop.f32.mrf.mxu0 }
0x21ae   :  { %v6342_v63 = vadd.f32 %v6268_v13, %v6182_v41 }
0x21cc   :  { %v6410_v40 = vpop.f32.mrf.mxu0  ;;  %v6481_v0 = vpop.f32.mrf.mxu1 }
0x21cd   :  { %v6411_v55 = vadd.f32 %v6410_v40, %v11991_v18  ;;  %v6482_v59 = vadd.f32 %v6481_v0, %v11993_v45 }
0x21ce   :  { %v6412_v53 = vpop.f32.mrf.mxu0  ;;  %v7374_v21 = vpop.f32.mrf.mxu1 }
0x21cf   :  { %v6485_v49 = vadd.f32 %v6411_v55, %v6341_v2  ;;  %v6413_v27 = vadd.f32 %v6412_v53, %v11992_v38 }
0x21d1   :  { %v6541_v52 = vmul.f32 -1.442695, %v6485_v49  ;;  %v6492_v57 = vadd.f32 %v6413_v27, %v6342_v63 }
0x21d3   :  { %7718 = vpow2.f32 %v6541_v52  ;;  %v6542_v36 = vmul.f32 -1.442695, %v6492_v57 }
0x21d5   :  { %7720 = vpow2.f32 %v6542_v36 }
0x21e0   :  { %v7719_v51 = vpop.eup %7718 }
0x21e1   :  { %v6489_v34 = vadd.f32 1.0, %v7719_v51 }
0x21e2   :  { %v7721_v54 = vpop.eup %7720 }
0x21e3   :  { %7722 = vrcp.f32 %v6489_v34  ;;  %v6496_v31 = vadd.f32 1.0, %v7721_v54 }
0x21e5   :  { %7724 = vrcp.f32 %v6496_v31 }
0x21f0   :  { %v7723_v26 = vpop.eup %7722 }
0x21f1   :  { %v6499_v25 = vmul.f32 %v7723_v26, %v6482_v59 }
0x21f2   :  { %v7725_v3 = vpop.eup %7724 }
0x21f3   :  { %v6500_v15 = vadd.f32 %v6499_v25, %v6343_v7  ;;  %v6502_v35 = vsub.f32 1.0, %v7725_v3  ;;  %v6504_v16 = vmul.f32 %v7725_v3, %v11990_v8 }
0x21f5   :  { %7726 = vtanh.f32 %v6500_v15 }
0x2202   :  { %v7727_v43 = vpop.eup %7726 }
0x2203   :  { %v6503_v39 = vmul.f32 %v7727_v43, %v6502_v35 }
0x2205   :  { %v6505_v14 = vadd.f32 %v6504_v16, %v6503_v39 }
0x2207   :  { %6507 = vst [vmem:[#allocation11 + $0x38] sm:$0xff] %v6505_v14 }
0x2208   :  { %8168 = shalt.err (!%p8165_p1)
}
0x2209   :  { %6519 = dma.vmem_to_hbm [thread:$0]  %s6514_s23, 1024, %s11167_s6, [#allocation4], %s8190_s11, %s8190_s11, %s8191_s12  }
0x220a   :  { %8183 = dma.done.wait [#allocation4], 1024  }
0x220b   :  { %8184 = vsyncadd [#allocation4], 4294966272 }
0x220c   :  { %6523 = vsyncpa [#allocation3], 1 }
0x220d   :  { %6524 = vsyncpa [#allocation6], 1 }
0x220e   :  { %6525 = vsyncpa [#allocation9], 1 }
0x220f   :  { %6526 = vsyncpa [#allocation4], 1 }

</bundles_post_ra>
